<compile_context>
chip_gen: v7x
topology: tpu7x:2x2x1
jax: 0.10.0
libtpu: 0.0.40
codegen_flags: <defaults>
</compile_context>

<pallas_src>
import jax
import jax.numpy as jnp
from jax import lax
from jax.experimental import pallas as pl
from jax.experimental.pallas import tpu as pltpu


def _round_up(x, m):
    return (x + m - 1) // m * m


def _vmem_capacity_bytes():
    try:
        info = pltpu.get_tpu_info()
        cap = getattr(info, "vmem_capacity_bytes", None)
        if cap:
            return int(cap)
    except Exception:
        pass
    return 64 * 1024 * 1024  # conservative (v7x per-TensorCore VMEM)


# ----------------------------------------------------------------------------
# Parameter packing (done ONCE, outside the forward pass)
# ----------------------------------------------------------------------------
_GATE_ORDER = (0, 1, 3, 2)  # PyTorch (i, f, g, o) -> packed (i, f, o, g)


def _pack_gate_weight(w, in_pad, h_pad, dtype):
    """PyTorch (4H, Din) gate-major weight -> (in_pad, 4*h_pad), gate order (i,f,o,g),
    each gate's H columns at a lane-aligned offset k*h_pad (zeros elsewhere)."""
    four_h, d_in = w.shape
    h = four_h // 4
    w = w.astype(jnp.float32).reshape(4, h, d_in)
    w = w[jnp.array(_GATE_ORDER)]                       # (4, H, Din) in (i,f,o,g)
    w = w.transpose(2, 0, 1)                            # (Din, 4, H)
    w = jnp.pad(w, ((0, in_pad - d_in), (0, 0), (0, h_pad - h)))
    return w.reshape(in_pad, 4 * h_pad).astype(dtype)


def _pack_gate_bias(b_ih, b_hh, h_pad):
    b = (b_ih + b_hh).astype(jnp.float32).reshape(4, -1)
    b = b[jnp.array(_GATE_ORDER)]
    h = b.shape[1]
    b = jnp.pad(b, ((0, 0), (0, h_pad - h)))
    return b.reshape(1, 4 * h_pad)                      # biases stay f32


def prepare_params(raw, input_size, hidden_size, output_size,
                   weights_dtype=jnp.bfloat16):
    """PyTorch-layout params -> padded / pre-transposed device layout.

    weights_dtype=bf16 (default) halves resident weight VMEM and uses the 2x bf16 MXU
    rate on v6e/v7x; all accumulation and c/h math stay f32. Pass jnp.float32 for
    bit-for-bit-closer numerics.
    """
    H = hidden_size
    H_pad = _round_up(H, 128)
    O_pad = _round_up(output_size, 128)
    layers = raw["lstm"]
    L = len(layers)

    wih0 = _pack_gate_weight(layers[0]["w_ih"], input_size, H_pad, weights_dtype)
    if L > 1:
        wih_rest = jnp.stack(
            [_pack_gate_weight(layers[l]["w_ih"], H_pad, H_pad, weights_dtype)
             for l in range(1, L)], axis=0)
    else:
        wih_rest = jnp.zeros((1, H_pad, 4 * H_pad), weights_dtype)   # dummy, never read
    whh = jnp.stack(
        [_pack_gate_weight(layers[l]["w_hh"], H_pad, H_pad, weights_dtype)
         for l in range(L)], axis=0)
    bias = jnp.stack(
        [_pack_gate_bias(layers[l]["b_ih"], layers[l]["b_hh"], H_pad)
         for l in range(L)], axis=0)                                  # (L, 1, 4*H_pad) f32

    wfc = jnp.pad(raw["fc_w"].astype(jnp.float32).T,
                  ((0, H_pad - H), (0, O_pad - output_size))).astype(weights_dtype)
    bfc = jnp.pad(raw["fc_b"].astype(jnp.float32)[None, :],
                  ((0, 0), (0, O_pad - output_size)))                 # (1, O_pad) f32

    return {
        "wih0": wih0, "wih_rest": wih_rest, "whh": whh, "bias": bias,
        "wfc": wfc, "bfc": bfc,
        "meta": {"H": H, "H_pad": H_pad, "O": output_size, "O_pad": O_pad,
                 "L": L, "Din": input_size},
    }


# ----------------------------------------------------------------------------
# Fused kernel: all LSTM layers + last-timestep FC, streamed over T blocks.
# ----------------------------------------------------------------------------
def _make_fused_kernel(*, L, T_real, T_BLK, B_pad, Din, H_pad, unroll, needs_mask):
    G = 4 * H_pad

    def kernel(x_ref, wih0_ref, wih_rest_ref, whh_ref, b_ref, wfc_ref, bfc_ref,
               out_ref, h_scr, c_scr, act_scr, proj_scr):
        # x_ref:        (T_BLK*B_pad, Din)      current time block (time-major rows)
        # wih0_ref:     (Din, G)                layer-0 input weights (gate-packed)
        # wih_rest_ref: (max(L-1,1), H_pad, G)  layer>=1 input weights
        # whh_ref:      (L, H_pad, G)           recurrent weights
        # b_ref:        (L, 1, G)               bias_ih + bias_hh per layer (f32)
        # wfc_ref/bfc_ref: FC weight/bias
        # out_ref:      (B_pad, O_pad)          written at the last grid step
        # h_scr/c_scr:  (L, B_pad, H_pad)       recurrent state carried across grid steps
        # act_scr:      (T_BLK*B_pad, H_pad)    inter-layer activations for this block
        # proj_scr:     (T_BLK*B_pad, G)        hoisted input projection for this block
        step_idx = pl.program_id(0)
        last_block = pl.num_programs(0) - 1

        @pl.when(step_idx == 0)
        def _init():
            h_scr[...] = jnp.zeros_like(h_scr)
            c_scr[...] = jnp.zeros_like(c_scr)

        for layer in range(L):
            if layer == 0:
                layer_in = x_ref[...]
                w_in = wih0_ref[...]
            else:
                layer_in = act_scr[...]
                w_in = wih_rest_ref[layer - 1]

            # Hoisted input projection + bias for the WHOLE time block: one MXU matmul.
            proj_scr[...] = (
                jnp.dot(layer_in.astype(w_in.dtype), w_in,
                        preferred_element_type=jnp.float32)
                + b_ref[layer]
            )
            w_hh = whh_ref[layer]
            is_last_layer = layer == L - 1

            def run_loop(masked, layer=layer, w_hh=w_hh, is_last_layer=is_last_layer):
                def body():
                    if masked:
                        t0 = step_idx * T_BLK

                    def step(t, carry):
                        h_prev, c_prev = carry
                        row = pl.multiple_of(t * B_pad, B_pad)
                        gates = proj_scr[pl.ds(row, B_pad), :] + jnp.dot(
                            h_prev.astype(w_hh.dtype), w_hh,
                            preferred_element_type=jnp.float32)
                        # gate order (i, f, o, g): one sigmoid slab + one tanh slab.
                        sig = jax.nn.sigmoid(gates[:, :3 * H_pad])
                        i_g = sig[:, 0 * H_pad:1 * H_pad]
                        f_g = sig[:, 1 * H_pad:2 * H_pad]
                        o_g = sig[:, 2 * H_pad:3 * H_pad]
                        g_g = jnp.tanh(gates[:, 3 * H_pad:4 * H_pad])
                        c_new = f_g * c_prev + i_g * g_g
                        h_new = o_g * jnp.tanh(c_new)
                        if masked:  # only compiled for the tail block variant
                            valid = (t0 + t) < T_real
                            c_new = jnp.where(valid, c_new, c_prev)
                            h_new = jnp.where(valid, h_new, h_prev)
                        if not is_last_layer:  # last layer's per-step outputs are dead
                            act_scr[pl.ds(row, B_pad), :] = h_new
                        return (h_new, c_new)

                    h_fin, c_fin = lax.fori_loop(
                        0, T_BLK, step, (h_scr[layer], c_scr[layer]), unroll=unroll)
                    # State lives in vregs through the loop; one write-back per block.
                    h_scr[layer] = h_fin
                    c_scr[layer] = c_fin
                return body

            if needs_mask:
                pl.when(step_idx < last_block)(run_loop(False))
                pl.when(step_idx == last_block)(run_loop(True))
            else:
                run_loop(False)()

        # Fused "last timestep -> dropout(eval)=identity -> Linear" epilogue.
        # TODO(synk): nn.Dropout / inter-layer LSTM dropout are identity in eval mode.
        @pl.when(step_idx == last_block)
        def _fc():
            h_last = h_scr[L - 1]
            out_ref[...] = (
                jnp.dot(h_last.astype(wfc_ref.dtype), wfc_ref[...],
                        preferred_element_type=jnp.float32)
                + bfc_ref[...]
            ).astype(out_ref.dtype)

    return kernel


# ----------------------------------------------------------------------------
# Wrapper
# ----------------------------------------------------------------------------
def _choose_t_block(T, B_pad, Din, H_pad, G, L, O_pad, weight_bytes, vmem_cap, t_block):
    if t_block is not None:
        return max(1, min(int(t_block), T))
    # Fit in ~60% of VMEM: weights (2x, worst case), state, out, then per-timestep bufs.
    fixed = 2 * weight_bytes + 4 * (2 * L * B_pad * H_pad + 2 * B_pad * O_pad)
    per_t = 4 * B_pad * (2 * Din + H_pad + G)   # x (double-buffered) + act + proj, f32
    budget = int(0.6 * vmem_cap) - fixed
    tb = budget // per_t if per_t > 0 else T
    tb = int(max(1, min(tb, 128, T)))
    # Prefer a divisor of T so the masked tail-loop variant is never needed.
    div = next((c for c in range(tb, 0, -1) if T % c == 0), 1)
    return div if 2 * div >= tb else tb


def lstm_predictor_forward(x_btd, prep, *, t_block=None):
    """Equivalent of LSTMPredictor.forward in eval mode.

    x_btd: (B, T, input_size) (PyTorch batch_first layout)
    prep:  output of prepare_params()
    """
    meta = prep["meta"]
    L, Din = meta["L"], meta["Din"]
    H_pad, O_pad, O = meta["H_pad"], meta["O_pad"], meta["O"]
    G = 4 * H_pad

    B, T, d = x_btd.shape
    assert d == Din, (d, Din)
    B_pad = _round_up(B, 8)

    vmem_cap = _vmem_capacity_bytes()
    weight_bytes = sum(int(prep[k].size) * prep[k].dtype.itemsize
                       for k in ("wih0", "wih_rest", "whh", "bias", "wfc", "bfc"))

    T_BLK = _choose_t_block(T, B_pad, Din, H_pad, G, L, O_pad,
                            weight_bytes, vmem_cap, t_block)
    n_blocks = -(-T // T_BLK)
    T_pad = n_blocks * T_BLK
    needs_mask = (T_pad != T)

    if T_BLK <= 8:
        unroll = True
    elif H_pad >= 512:
        unroll = 2          # keep gate intermediates inside the 64-vreg file
    else:
        unroll = 4

    # time-major, padded, flattened to (T_pad*B_pad, Din): row t*B_pad + b is (t, b).
    x = jnp.transpose(x_btd, (1, 0, 2)).astype(jnp.float32)
    x = jnp.pad(x, ((0, T_pad - T), (0, B_pad - B), (0, 0)))
    x = x.reshape(T_pad * B_pad, Din)

    L_rest = prep["wih_rest"].shape[0]

    # VMEM budget (bytes): weights counted 2x (worst case: double-buffered), scratch,
    # double-buffered x block, double-buffered out.
    scratch_bytes = 4 * (2 * L * B_pad * H_pad + T_BLK * B_pad * H_pad
                         + T_BLK * B_pad * G)
    est = (2 * weight_bytes + scratch_bytes
           + 2 * 4 * T_BLK * B_pad * Din + 2 * 4 * B_pad * O_pad)
    vmem_limit = int(min(max(int(1.5 * est), 32 * 1024 * 1024), int(0.78 * vmem_cap)))

    kernel = _make_fused_kernel(L=L, T_real=T, T_BLK=T_BLK, B_pad=B_pad, Din=Din,
                                H_pad=H_pad, unroll=unroll, needs_mask=needs_mask)

    def call(single_buffer_weights):
        const_kwargs = {}
        if single_buffer_weights:
            # Weight/bias blocks never change index -> a single VMEM buffer suffices.
            const_kwargs = dict(pipeline_mode=pl.Buffered(1))

        def const_spec(shape):
            return pl.BlockSpec(shape, lambda i: (0,) * len(shape), **const_kwargs)

        grid_spec = pltpu.PrefetchScalarGridSpec(
            num_scalar_prefetch=0,
            grid=(n_blocks,),
            in_specs=[
                pl.BlockSpec((T_BLK * B_pad, Din), lambda i: (i, 0)),  # streamed x
                const_spec((Din, G)),
                const_spec((L_rest, H_pad, G)),
                const_spec((L, H_pad, G)),
                const_spec((L, 1, G)),
                const_spec((H_pad, O_pad)),
                const_spec((1, O_pad)),
            ],
            out_specs=pl.BlockSpec((B_pad, O_pad), lambda i: (0, 0)),
            scratch_shapes=[
                pltpu.VMEM((L, B_pad, H_pad), jnp.float32),        # h carry (per layer)
                pltpu.VMEM((L, B_pad, H_pad), jnp.float32),        # c carry (per layer)
                pltpu.VMEM((T_BLK * B_pad, H_pad), jnp.float32),   # inter-layer acts
                pltpu.VMEM((T_BLK * B_pad, G), jnp.float32),       # hoisted projection
            ],
        )
        return pl.pallas_call(
            kernel,
            out_shape=jax.ShapeDtypeStruct((B_pad, O_pad), jnp.float32),
            grid_spec=grid_spec,
            compiler_params=pltpu.CompilerParams(
                dimension_semantics=("arbitrary",),   # recurrent carry across time blocks
                vmem_limit_bytes=vmem_limit,
            ),
        )(x, prep["wih0"], prep["wih_rest"], prep["whh"], prep["bias"],
          prep["wfc"], prep["bfc"])

    try:
        out_pad = call(True)
    except Exception:
        # Some Pallas versions reject single-buffered weight specs; fall back to the
        # default double-buffered pipeline (correct, just uses more VMEM).
        out_pad = call(False)

    return out_pad[:B, :O]


# ----------------------------------------------------------------------------
# Deterministic parameter init (PyTorch-style U(-1/sqrt(H), 1/sqrt(H)), PyTorch layout)
# ----------------------------------------------------------------------------
def init_params(key, input_size, hidden_size, num_layers, output_size):
    k = 1.0 / jnp.sqrt(hidden_size)
    params = {"lstm": []}
    for l in range(num_layers):
        d_in = input_size if l == 0 else hidden_size
        key, k1, k2, k3, k4 = jax.random.split(key, 5)
        params["lstm"].append({
            "w_ih": jax.random.uniform(k1, (4 * hidden_size, d_in), jnp.float32, -k, k),
            "w_hh": jax.random.uniform(k2, (4 * hidden_size, hidden_size), jnp.float32, -k, k),
            "b_ih": jax.random.uniform(k3, (4 * hidden_size,), jnp.float32, -k, k),
            "b_hh": jax.random.uniform(k4, (4 * hidden_size,), jnp.float32, -k, k),
        })
    key, k1, k2 = jax.random.split(key, 3)
    params["fc_w"] = jax.random.uniform(k1, (output_size, hidden_size), jnp.float32, -k, k)
    params["fc_b"] = jax.random.uniform(k2, (output_size,), jnp.float32, -k, k)
    return params


# ----------------------------------------------------------------------------
# Pure-JAX reference (PyTorch semantics: gate order i,f,g,o; f32 everywhere)
# ----------------------------------------------------------------------------
def _reference_forward(x_btd, params):
    x = jnp.transpose(x_btd, (1, 0, 2)).astype(jnp.float32)   # (T, B, Din)
    for layer in params["lstm"]:
        T, B, _ = x.shape
        H = layer["w_hh"].shape[1]
        h = jnp.zeros((B, H), jnp.float32)
        c = jnp.zeros((B, H), jnp.float32)
        outs = []
        for t in range(T):
            gates = x[t] @ layer["w_ih"].T + h @ layer["w_hh"].T + layer["b_ih"] + layer["b_hh"]
            i_g = jax.nn.sigmoid(gates[:, 0 * H:1 * H])
            f_g = jax.nn.sigmoid(gates[:, 1 * H:2 * H])
            g_g = jnp.tanh(gates[:, 2 * H:3 * H])
            o_g = jax.nn.sigmoid(gates[:, 3 * H:4 * H])
            c = f_g * c + i_g * g_g
            h = o_g * jnp.tanh(c)
            outs.append(h)
        x = jnp.stack(outs, axis=0)
    return x[-1] @ params["fc_w"].T + params["fc_b"]


# ----------------------------------------------------------------------------
if __name__ == "__main__":
    B, T = 2, 8
    input_size, hidden_size, num_layers, output_size = 4, 32, 2, 1

    key = jax.random.PRNGKey(0)
    key, pkey, xkey = jax.random.split(key, 3)
    raw_params = init_params(pkey, input_size, hidden_size, num_layers, output_size)
    x = jax.random.normal(xkey, (B, T, input_size), jnp.float32)

    ref = _reference_forward(x, raw_params)

    # f32 weights: strict numerical check against the PyTorch-semantics reference.
    prep_f32 = prepare_params(raw_params, input_size, hidden_size, output_size,
                              weights_dtype=jnp.float32)
    out_f32 = jax.block_until_ready(lstm_predictor_forward(x, prep_f32))
    assert out_f32.shape == (B, output_size), out_f32.shape
    assert jnp.allclose(out_f32, ref, atol=1e-3, rtol=1e-3), (out_f32, ref)

    # bf16 weights (v6e/v7x fast path, f32 accumulation): looser check.
    prep_bf16 = prepare_params(raw_params, input_size, hidden_size, output_size,
                               weights_dtype=jnp.bfloat16)
    out_bf16 = jax.block_until_ready(lstm_predictor_forward(x, prep_bf16))
    assert out_bf16.shape == (B, output_size), out_bf16.shape
    assert jnp.allclose(out_bf16, ref, atol=5e-2, rtol=5e-2), (out_bf16, ref)

    print("KERNEL_OK")
</pallas_src>

<mosaic_0001>
module attributes {stable_mosaic.version = 11 : i64} {
  func.func @kernel(%arg0: i32, %arg1: memref<64x4xf32, #tpu.memory_space<vmem>>, %arg2: memref<4x512xf32, #tpu.memory_space<vmem>>, %arg3: memref<1x128x512xf32, #tpu.memory_space<vmem>>, %arg4: memref<2x128x512xf32, #tpu.memory_space<vmem>>, %arg5: memref<2x1x512xf32, #tpu.memory_space<vmem>>, %arg6: memref<128x128xf32, #tpu.memory_space<vmem>>, %arg7: memref<1x128xf32, #tpu.memory_space<vmem>>, %arg8: memref<8x128xf32, #tpu.memory_space<vmem>>, %arg9: memref<2x8x128xf32, #tpu.memory_space<vmem>>, %arg10: memref<2x8x128xf32, #tpu.memory_space<vmem>>, %arg11: memref<64x128xf32, #tpu.memory_space<vmem>>, %arg12: memref<64x512xf32, #tpu.memory_space<vmem>>) attributes {dimension_semantics = [#tpu.dimension_semantics<arbitrary>], iteration_bounds = array<i64: 1>, scalar_prefetch = 0 : i64, scratch_operands = 4 : i64, tpu.core_type = #tpu.core_type<tc>, window_params = [{transform_indices = @transform_0, window_bounds = array<i64: 64, 4>}, {pipeline_mode = #tpu.pipeline_mode<synchronous>, transform_indices = @transform_1, window_bounds = array<i64: 4, 512>}, {pipeline_mode = #tpu.pipeline_mode<synchronous>, transform_indices = @transform_2, window_bounds = array<i64: 1, 128, 512>}, {pipeline_mode = #tpu.pipeline_mode<synchronous>, transform_indices = @transform_3, window_bounds = array<i64: 2, 128, 512>}, {pipeline_mode = #tpu.pipeline_mode<synchronous>, transform_indices = @transform_4, window_bounds = array<i64: 2, 1, 512>}, {pipeline_mode = #tpu.pipeline_mode<synchronous>, transform_indices = @transform_5, window_bounds = array<i64: 128, 128>}, {pipeline_mode = #tpu.pipeline_mode<synchronous>, transform_indices = @transform_6, window_bounds = array<i64: 1, 128>}, {pipeline_mode = #tpu.pipeline_mode<synchronous>, transform_indices = @transform_7, window_bounds = array<i64: 8, 128>}]} {
    %c0_i32 = arith.constant 0 : i32
    %0 = arith.cmpi eq, %arg0, %c0_i32 : i32
    %1 = arith.extui %0 : i1 to i32
    %c0_i32_0 = arith.constant 0 : i32
    %2 = arith.cmpi ne, %1, %c0_i32_0 : i32
    scf.if %2 {
      %cst_133 = arith.constant 0.000000e+00 : f32
      %415 = vector.broadcast %cst_133 : f32 to vector<2x8x128xf32>
      %c0_134 = arith.constant 0 : index
      %c0_135 = arith.constant 0 : index
      %c0_136 = arith.constant 0 : index
      %416 = vector.load %arg9[%c0_134, %c0_135, %c0_136] : memref<2x8x128xf32, #tpu.memory_space<vmem>>, vector<2x8x128xf32>
      tpu.vector_store %arg9[%c0_134, %c0_135, %c0_136], %415 {strides = array<i32>} : memref<2x8x128xf32, #tpu.memory_space<vmem>>, vector<2x8x128xf32>,
      %cst_137 = arith.constant 0.000000e+00 : f32
      %417 = vector.broadcast %cst_137 : f32 to vector<2x8x128xf32>
      %c0_138 = arith.constant 0 : index
      %c0_139 = arith.constant 0 : index
      %c0_140 = arith.constant 0 : index
      %418 = vector.load %arg10[%c0_138, %c0_139, %c0_140] : memref<2x8x128xf32, #tpu.memory_space<vmem>>, vector<2x8x128xf32>
      tpu.vector_store %arg10[%c0_138, %c0_139, %c0_140], %417 {strides = array<i32>} : memref<2x8x128xf32, #tpu.memory_space<vmem>>, vector<2x8x128xf32>,
    } else {
    }
    %c0 = arith.constant 0 : index
    %c0_1 = arith.constant 0 : index
    %3 = vector.load %arg1[%c0, %c0_1] : memref<64x4xf32, #tpu.memory_space<vmem>>, vector<64x4xf32>
    %c0_2 = arith.constant 0 : index
    %c0_3 = arith.constant 0 : index
    %4 = vector.load %arg2[%c0_2, %c0_3] : memref<4x512xf32, #tpu.memory_space<vmem>>, vector<4x512xf32>
    %cst = arith.constant dense<0.000000e+00> : vector<64x512xf32>
    %5 = tpu.matmul %3, %4, %cst {dimension_numbers = #tpu.dot_dimension_numbers<[1], [0], [0], [1], [0, 0, 1, 1], [], []>} : vector<64x4xf32>, vector<4x512xf32>, vector<64x512xf32> -> vector<64x512xf32>
    %c0_4 = arith.constant 0 : index
    %c0_5 = arith.constant 0 : index
    %c0_6 = arith.constant 0 : index
    %6 = vector.load %arg5[%c0_4, %c0_5, %c0_6] : memref<2x1x512xf32, #tpu.memory_space<vmem>>, vector<1x1x512xf32>
    %7 = vector.shape_cast %6 : vector<1x1x512xf32> to vector<1x512xf32>
    %8 = vector.broadcast %7 : vector<1x512xf32> to vector<64x512xf32>
    %9 = arith.addf %5, %8 : vector<64x512xf32>
    %c0_7 = arith.constant 0 : index
    %c0_8 = arith.constant 0 : index
    %10 = vector.load %arg12[%c0_7, %c0_8] : memref<64x512xf32, #tpu.memory_space<vmem>>, vector<64x512xf32>
    tpu.vector_store %arg12[%c0_7, %c0_8], %9 {strides = array<i32>} : memref<64x512xf32, #tpu.memory_space<vmem>>, vector<64x512xf32>,
    %c0_9 = arith.constant 0 : index
    %c0_10 = arith.constant 0 : index
    %c0_11 = arith.constant 0 : index
    %11 = vector.load %arg4[%c0_9, %c0_10, %c0_11] : memref<2x128x512xf32, #tpu.memory_space<vmem>>, vector<1x128x512xf32>
    %12 = vector.shape_cast %11 : vector<1x128x512xf32> to vector<128x512xf32>
    %c0_12 = arith.constant 0 : index
    %c0_13 = arith.constant 0 : index
    %c0_14 = arith.constant 0 : index
    %13 = vector.load %arg9[%c0_12, %c0_13, %c0_14] : memref<2x8x128xf32, #tpu.memory_space<vmem>>, vector<1x8x128xf32>
    %14 = vector.shape_cast %13 : vector<1x8x128xf32> to vector<8x128xf32>
    %c0_15 = arith.constant 0 : index
    %c0_16 = arith.constant 0 : index
    %c0_17 = arith.constant 0 : index
    %15 = vector.load %arg10[%c0_15, %c0_16, %c0_17] : memref<2x8x128xf32, #tpu.memory_space<vmem>>, vector<1x8x128xf32>
    %16 = vector.shape_cast %15 : vector<1x8x128xf32> to vector<8x128xf32>
    %c0_i32_18 = arith.constant 0 : i32
    %c8_i32 = arith.constant 8 : i32
    %17 = arith.muli %c0_i32_18, %c8_i32 : i32
    %18 = tpu.assume_multiple %17, 8 : i32
    %19 = arith.index_cast %18 : i32 to index
    %c0_19 = arith.constant 0 : index
    %20 = vector.load %arg12[%19, %c0_19] : memref<64x512xf32, #tpu.memory_space<vmem>>, vector<8x512xf32>
    %cst_20 = arith.constant dense<0.000000e+00> : vector<8x512xf32>
    %21 = tpu.matmul %14, %12, %cst_20 {dimension_numbers = #tpu.dot_dimension_numbers<[1], [0], [0], [1], [0, 0, 1, 1], [], []>} : vector<8x128xf32>, vector<128x512xf32>, vector<8x512xf32> -> vector<8x512xf32>
    %22 = arith.addf %20, %21 : vector<8x512xf32>
    %23 = vector.extract_strided_slice %22 {offsets = [0, 0], sizes = [8, 384], strides = [1, 1]} : vector<8x512xf32> to vector<8x384xf32>
    %24 = arith.negf %23 : vector<8x384xf32>
    %25 = math.exp %24 : vector<8x384xf32>
    %cst_21 = arith.constant 1.000000e+00 : f32
    %26 = vector.broadcast %cst_21 : f32 to vector<8x384xf32>
    %27 = arith.addf %26, %25 : vector<8x384xf32>
    %28 = arith.divf %26, %27 : vector<8x384xf32>
    %29 = vector.extract_strided_slice %28 {offsets = [0, 0], sizes = [8, 128], strides = [1, 1]} : vector<8x384xf32> to vector<8x128xf32>
    %30 = vector.extract_strided_slice %28 {offsets = [0, 128], sizes = [8, 128], strides = [1, 1]} : vector<8x384xf32> to vector<8x128xf32>
    %31 = vector.extract_strided_slice %28 {offsets = [0, 256], sizes = [8, 128], strides = [1, 1]} : vector<8x384xf32> to vector<8x128xf32>
    %32 = vector.extract_strided_slice %22 {offsets = [0, 384], sizes = [8, 128], strides = [1, 1]} : vector<8x512xf32> to vector<8x128xf32>
    %33 = math.tanh %32 : vector<8x128xf32>
    %34 = arith.mulf %30, %16 : vector<8x128xf32>
    %35 = arith.mulf %29, %33 : vector<8x128xf32>
    %36 = arith.addf %34, %35 : vector<8x128xf32>
    %37 = math.tanh %36 : vector<8x128xf32>
    %38 = arith.mulf %31, %37 : vector<8x128xf32>
    %39 = arith.index_cast %18 : i32 to index
    %c0_22 = arith.constant 0 : index
    %40 = vector.load %arg11[%39, %c0_22] : memref<64x128xf32, #tpu.memory_space<vmem>>, vector<8x128xf32>
    tpu.vector_store %arg11[%39, %c0_22], %38 {strides = array<i32>} : memref<64x128xf32, #tpu.memory_space<vmem>>, vector<8x128xf32>,
    %c1_i32 = arith.constant 1 : i32
    %c8_i32_23 = arith.constant 8 : i32
    %41 = arith.muli %c1_i32, %c8_i32_23 : i32
    %42 = tpu.assume_multiple %41, 8 : i32
    %43 = arith.index_cast %42 : i32 to index
    %c0_24 = arith.constant 0 : index
    %44 = vector.load %arg12[%43, %c0_24] : memref<64x512xf32, #tpu.memory_space<vmem>>, vector<8x512xf32>
    %cst_25 = arith.constant dense<0.000000e+00> : vector<8x512xf32>
    %45 = tpu.matmul %38, %12, %cst_25 {dimension_numbers = #tpu.dot_dimension_numbers<[1], [0], [0], [1], [0, 0, 1, 1], [], []>} : vector<8x128xf32>, vector<128x512xf32>, vector<8x512xf32> -> vector<8x512xf32>
    %46 = arith.addf %44, %45 : vector<8x512xf32>
    %47 = vector.extract_strided_slice %46 {offsets = [0, 0], sizes = [8, 384], strides = [1, 1]} : vector<8x512xf32> to vector<8x384xf32>
    %48 = arith.negf %47 : vector<8x384xf32>
    %49 = math.exp %48 : vector<8x384xf32>
    %cst_26 = arith.constant 1.000000e+00 : f32
    %50 = vector.broadcast %cst_26 : f32 to vector<8x384xf32>
    %51 = arith.addf %50, %49 : vector<8x384xf32>
    %52 = arith.divf %50, %51 : vector<8x384xf32>
    %53 = vector.extract_strided_slice %52 {offsets = [0, 0], sizes = [8, 128], strides = [1, 1]} : vector<8x384xf32> to vector<8x128xf32>
    %54 = vector.extract_strided_slice %52 {offsets = [0, 128], sizes = [8, 128], strides = [1, 1]} : vector<8x384xf32> to vector<8x128xf32>
    %55 = vector.extract_strided_slice %52 {offsets = [0, 256], sizes = [8, 128], strides = [1, 1]} : vector<8x384xf32> to vector<8x128xf32>
    %56 = vector.extract_strided_slice %46 {offsets = [0, 384], sizes = [8, 128], strides = [1, 1]} : vector<8x512xf32> to vector<8x128xf32>
    %57 = math.tanh %56 : vector<8x128xf32>
    %58 = arith.mulf %54, %36 : vector<8x128xf32>
    %59 = arith.mulf %53, %57 : vector<8x128xf32>
    %60 = arith.addf %58, %59 : vector<8x128xf32>
    %61 = math.tanh %60 : vector<8x128xf32>
    %62 = arith.mulf %55, %61 : vector<8x128xf32>
    %63 = arith.index_cast %42 : i32 to index
    %c0_27 = arith.constant 0 : index
    %64 = vector.load %arg11[%63, %c0_27] : memref<64x128xf32, #tpu.memory_space<vmem>>, vector<8x128xf32>
    tpu.vector_store %arg11[%63, %c0_27], %62 {strides = array<i32>} : memref<64x128xf32, #tpu.memory_space<vmem>>, vector<8x128xf32>,
    %c2_i32 = arith.constant 2 : i32
    %c8_i32_28 = arith.constant 8 : i32
    %65 = arith.muli %c2_i32, %c8_i32_28 : i32
    %66 = tpu.assume_multiple %65, 8 : i32
    %67 = arith.index_cast %66 : i32 to index
    %c0_29 = arith.constant 0 : index
    %68 = vector.load %arg12[%67, %c0_29] : memref<64x512xf32, #tpu.memory_space<vmem>>, vector<8x512xf32>
    %cst_30 = arith.constant dense<0.000000e+00> : vector<8x512xf32>
    %69 = tpu.matmul %62, %12, %cst_30 {dimension_numbers = #tpu.dot_dimension_numbers<[1], [0], [0], [1], [0, 0, 1, 1], [], []>} : vector<8x128xf32>, vector<128x512xf32>, vector<8x512xf32> -> vector<8x512xf32>
    %70 = arith.addf %68, %69 : vector<8x512xf32>
    %71 = vector.extract_strided_slice %70 {offsets = [0, 0], sizes = [8, 384], strides = [1, 1]} : vector<8x512xf32> to vector<8x384xf32>
    %72 = arith.negf %71 : vector<8x384xf32>
    %73 = math.exp %72 : vector<8x384xf32>
    %cst_31 = arith.constant 1.000000e+00 : f32
    %74 = vector.broadcast %cst_31 : f32 to vector<8x384xf32>
    %75 = arith.addf %74, %73 : vector<8x384xf32>
    %76 = arith.divf %74, %75 : vector<8x384xf32>
    %77 = vector.extract_strided_slice %76 {offsets = [0, 0], sizes = [8, 128], strides = [1, 1]} : vector<8x384xf32> to vector<8x128xf32>
    %78 = vector.extract_strided_slice %76 {offsets = [0, 128], sizes = [8, 128], strides = [1, 1]} : vector<8x384xf32> to vector<8x128xf32>
    %79 = vector.extract_strided_slice %76 {offsets = [0, 256], sizes = [8, 128], strides = [1, 1]} : vector<8x384xf32> to vector<8x128xf32>
    %80 = vector.extract_strided_slice %70 {offsets = [0, 384], sizes = [8, 128], strides = [1, 1]} : vector<8x512xf32> to vector<8x128xf32>
    %81 = math.tanh %80 : vector<8x128xf32>
    %82 = arith.mulf %78, %60 : vector<8x128xf32>
    %83 = arith.mulf %77, %81 : vector<8x128xf32>
    %84 = arith.addf %82, %83 : vector<8x128xf32>
    %85 = math.tanh %84 : vector<8x128xf32>
    %86 = arith.mulf %79, %85 : vector<8x128xf32>
    %87 = arith.index_cast %66 : i32 to index
    %c0_32 = arith.constant 0 : index
    %88 = vector.load %arg11[%87, %c0_32] : memref<64x128xf32, #tpu.memory_space<vmem>>, vector<8x128xf32>
    tpu.vector_store %arg11[%87, %c0_32], %86 {strides = array<i32>} : memref<64x128xf32, #tpu.memory_space<vmem>>, vector<8x128xf32>,
    %c3_i32 = arith.constant 3 : i32
    %c8_i32_33 = arith.constant 8 : i32
    %89 = arith.muli %c3_i32, %c8_i32_33 : i32
    %90 = tpu.assume_multiple %89, 8 : i32
    %91 = arith.index_cast %90 : i32 to index
    %c0_34 = arith.constant 0 : index
    %92 = vector.load %arg12[%91, %c0_34] : memref<64x512xf32, #tpu.memory_space<vmem>>, vector<8x512xf32>
    %cst_35 = arith.constant dense<0.000000e+00> : vector<8x512xf32>
    %93 = tpu.matmul %86, %12, %cst_35 {dimension_numbers = #tpu.dot_dimension_numbers<[1], [0], [0], [1], [0, 0, 1, 1], [], []>} : vector<8x128xf32>, vector<128x512xf32>, vector<8x512xf32> -> vector<8x512xf32>
    %94 = arith.addf %92, %93 : vector<8x512xf32>
    %95 = vector.extract_strided_slice %94 {offsets = [0, 0], sizes = [8, 384], strides = [1, 1]} : vector<8x512xf32> to vector<8x384xf32>
    %96 = arith.negf %95 : vector<8x384xf32>
    %97 = math.exp %96 : vector<8x384xf32>
    %cst_36 = arith.constant 1.000000e+00 : f32
    %98 = vector.broadcast %cst_36 : f32 to vector<8x384xf32>
    %99 = arith.addf %98, %97 : vector<8x384xf32>
    %100 = arith.divf %98, %99 : vector<8x384xf32>
    %101 = vector.extract_strided_slice %100 {offsets = [0, 0], sizes = [8, 128], strides = [1, 1]} : vector<8x384xf32> to vector<8x128xf32>
    %102 = vector.extract_strided_slice %100 {offsets = [0, 128], sizes = [8, 128], strides = [1, 1]} : vector<8x384xf32> to vector<8x128xf32>
    %103 = vector.extract_strided_slice %100 {offsets = [0, 256], sizes = [8, 128], strides = [1, 1]} : vector<8x384xf32> to vector<8x128xf32>
    %104 = vector.extract_strided_slice %94 {offsets = [0, 384], sizes = [8, 128], strides = [1, 1]} : vector<8x512xf32> to vector<8x128xf32>
    %105 = math.tanh %104 : vector<8x128xf32>
    %106 = arith.mulf %102, %84 : vector<8x128xf32>
    %107 = arith.mulf %101, %105 : vector<8x128xf32>
    %108 = arith.addf %106, %107 : vector<8x128xf32>
    %109 = math.tanh %108 : vector<8x128xf32>
    %110 = arith.mulf %103, %109 : vector<8x128xf32>
    %111 = arith.index_cast %90 : i32 to index
    %c0_37 = arith.constant 0 : index
    %112 = vector.load %arg11[%111, %c0_37] : memref<64x128xf32, #tpu.memory_space<vmem>>, vector<8x128xf32>
    tpu.vector_store %arg11[%111, %c0_37], %110 {strides = array<i32>} : memref<64x128xf32, #tpu.memory_space<vmem>>, vector<8x128xf32>,
    %c4_i32 = arith.constant 4 : i32
    %c8_i32_38 = arith.constant 8 : i32
    %113 = arith.muli %c4_i32, %c8_i32_38 : i32
    %114 = tpu.assume_multiple %113, 8 : i32
    %115 = arith.index_cast %114 : i32 to index
    %c0_39 = arith.constant 0 : index
    %116 = vector.load %arg12[%115, %c0_39] : memref<64x512xf32, #tpu.memory_space<vmem>>, vector<8x512xf32>
    %cst_40 = arith.constant dense<0.000000e+00> : vector<8x512xf32>
    %117 = tpu.matmul %110, %12, %cst_40 {dimension_numbers = #tpu.dot_dimension_numbers<[1], [0], [0], [1], [0, 0, 1, 1], [], []>} : vector<8x128xf32>, vector<128x512xf32>, vector<8x512xf32> -> vector<8x512xf32>
    %118 = arith.addf %116, %117 : vector<8x512xf32>
    %119 = vector.extract_strided_slice %118 {offsets = [0, 0], sizes = [8, 384], strides = [1, 1]} : vector<8x512xf32> to vector<8x384xf32>
    %120 = arith.negf %119 : vector<8x384xf32>
    %121 = math.exp %120 : vector<8x384xf32>
    %cst_41 = arith.constant 1.000000e+00 : f32
    %122 = vector.broadcast %cst_41 : f32 to vector<8x384xf32>
    %123 = arith.addf %122, %121 : vector<8x384xf32>
    %124 = arith.divf %122, %123 : vector<8x384xf32>
    %125 = vector.extract_strided_slice %124 {offsets = [0, 0], sizes = [8, 128], strides = [1, 1]} : vector<8x384xf32> to vector<8x128xf32>
    %126 = vector.extract_strided_slice %124 {offsets = [0, 128], sizes = [8, 128], strides = [1, 1]} : vector<8x384xf32> to vector<8x128xf32>
    %127 = vector.extract_strided_slice %124 {offsets = [0, 256], sizes = [8, 128], strides = [1, 1]} : vector<8x384xf32> to vector<8x128xf32>
    %128 = vector.extract_strided_slice %118 {offsets = [0, 384], sizes = [8, 128], strides = [1, 1]} : vector<8x512xf32> to vector<8x128xf32>
    %129 = math.tanh %128 : vector<8x128xf32>
    %130 = arith.mulf %126, %108 : vector<8x128xf32>
    %131 = arith.mulf %125, %129 : vector<8x128xf32>
    %132 = arith.addf %130, %131 : vector<8x128xf32>
    %133 = math.tanh %132 : vector<8x128xf32>
    %134 = arith.mulf %127, %133 : vector<8x128xf32>
    %135 = arith.index_cast %114 : i32 to index
    %c0_42 = arith.constant 0 : index
    %136 = vector.load %arg11[%135, %c0_42] : memref<64x128xf32, #tpu.memory_space<vmem>>, vector<8x128xf32>
    tpu.vector_store %arg11[%135, %c0_42], %134 {strides = array<i32>} : memref<64x128xf32, #tpu.memory_space<vmem>>, vector<8x128xf32>,
    %c5_i32 = arith.constant 5 : i32
    %c8_i32_43 = arith.constant 8 : i32
    %137 = arith.muli %c5_i32, %c8_i32_43 : i32
    %138 = tpu.assume_multiple %137, 8 : i32
    %139 = arith.index_cast %138 : i32 to index
    %c0_44 = arith.constant 0 : index
    %140 = vector.load %arg12[%139, %c0_44] : memref<64x512xf32, #tpu.memory_space<vmem>>, vector<8x512xf32>
    %cst_45 = arith.constant dense<0.000000e+00> : vector<8x512xf32>
    %141 = tpu.matmul %134, %12, %cst_45 {dimension_numbers = #tpu.dot_dimension_numbers<[1], [0], [0], [1], [0, 0, 1, 1], [], []>} : vector<8x128xf32>, vector<128x512xf32>, vector<8x512xf32> -> vector<8x512xf32>
    %142 = arith.addf %140, %141 : vector<8x512xf32>
    %143 = vector.extract_strided_slice %142 {offsets = [0, 0], sizes = [8, 384], strides = [1, 1]} : vector<8x512xf32> to vector<8x384xf32>
    %144 = arith.negf %143 : vector<8x384xf32>
    %145 = math.exp %144 : vector<8x384xf32>
    %cst_46 = arith.constant 1.000000e+00 : f32
    %146 = vector.broadcast %cst_46 : f32 to vector<8x384xf32>
    %147 = arith.addf %146, %145 : vector<8x384xf32>
    %148 = arith.divf %146, %147 : vector<8x384xf32>
    %149 = vector.extract_strided_slice %148 {offsets = [0, 0], sizes = [8, 128], strides = [1, 1]} : vector<8x384xf32> to vector<8x128xf32>
    %150 = vector.extract_strided_slice %148 {offsets = [0, 128], sizes = [8, 128], strides = [1, 1]} : vector<8x384xf32> to vector<8x128xf32>
    %151 = vector.extract_strided_slice %148 {offsets = [0, 256], sizes = [8, 128], strides = [1, 1]} : vector<8x384xf32> to vector<8x128xf32>
    %152 = vector.extract_strided_slice %142 {offsets = [0, 384], sizes = [8, 128], strides = [1, 1]} : vector<8x512xf32> to vector<8x128xf32>
    %153 = math.tanh %152 : vector<8x128xf32>
    %154 = arith.mulf %150, %132 : vector<8x128xf32>
    %155 = arith.mulf %149, %153 : vector<8x128xf32>
    %156 = arith.addf %154, %155 : vector<8x128xf32>
    %157 = math.tanh %156 : vector<8x128xf32>
    %158 = arith.mulf %151, %157 : vector<8x128xf32>
    %159 = arith.index_cast %138 : i32 to index
    %c0_47 = arith.constant 0 : index
    %160 = vector.load %arg11[%159, %c0_47] : memref<64x128xf32, #tpu.memory_space<vmem>>, vector<8x128xf32>
    tpu.vector_store %arg11[%159, %c0_47], %158 {strides = array<i32>} : memref<64x128xf32, #tpu.memory_space<vmem>>, vector<8x128xf32>,
    %c6_i32 = arith.constant 6 : i32
    %c8_i32_48 = arith.constant 8 : i32
    %161 = arith.muli %c6_i32, %c8_i32_48 : i32
    %162 = tpu.assume_multiple %161, 8 : i32
    %163 = arith.index_cast %162 : i32 to index
    %c0_49 = arith.constant 0 : index
    %164 = vector.load %arg12[%163, %c0_49] : memref<64x512xf32, #tpu.memory_space<vmem>>, vector<8x512xf32>
    %cst_50 = arith.constant dense<0.000000e+00> : vector<8x512xf32>
    %165 = tpu.matmul %158, %12, %cst_50 {dimension_numbers = #tpu.dot_dimension_numbers<[1], [0], [0], [1], [0, 0, 1, 1], [], []>} : vector<8x128xf32>, vector<128x512xf32>, vector<8x512xf32> -> vector<8x512xf32>
    %166 = arith.addf %164, %165 : vector<8x512xf32>
    %167 = vector.extract_strided_slice %166 {offsets = [0, 0], sizes = [8, 384], strides = [1, 1]} : vector<8x512xf32> to vector<8x384xf32>
    %168 = arith.negf %167 : vector<8x384xf32>
    %169 = math.exp %168 : vector<8x384xf32>
    %cst_51 = arith.constant 1.000000e+00 : f32
    %170 = vector.broadcast %cst_51 : f32 to vector<8x384xf32>
    %171 = arith.addf %170, %169 : vector<8x384xf32>
    %172 = arith.divf %170, %171 : vector<8x384xf32>
    %173 = vector.extract_strided_slice %172 {offsets = [0, 0], sizes = [8, 128], strides = [1, 1]} : vector<8x384xf32> to vector<8x128xf32>
    %174 = vector.extract_strided_slice %172 {offsets = [0, 128], sizes = [8, 128], strides = [1, 1]} : vector<8x384xf32> to vector<8x128xf32>
    %175 = vector.extract_strided_slice %172 {offsets = [0, 256], sizes = [8, 128], strides = [1, 1]} : vector<8x384xf32> to vector<8x128xf32>
    %176 = vector.extract_strided_slice %166 {offsets = [0, 384], sizes = [8, 128], strides = [1, 1]} : vector<8x512xf32> to vector<8x128xf32>
    %177 = math.tanh %176 : vector<8x128xf32>
    %178 = arith.mulf %174, %156 : vector<8x128xf32>
    %179 = arith.mulf %173, %177 : vector<8x128xf32>
    %180 = arith.addf %178, %179 : vector<8x128xf32>
    %181 = math.tanh %180 : vector<8x128xf32>
    %182 = arith.mulf %175, %181 : vector<8x128xf32>
    %183 = arith.index_cast %162 : i32 to index
    %c0_52 = arith.constant 0 : index
    %184 = vector.load %arg11[%183, %c0_52] : memref<64x128xf32, #tpu.memory_space<vmem>>, vector<8x128xf32>
    tpu.vector_store %arg11[%183, %c0_52], %182 {strides = array<i32>} : memref<64x128xf32, #tpu.memory_space<vmem>>, vector<8x128xf32>,
    %c7_i32 = arith.constant 7 : i32
    %c8_i32_53 = arith.constant 8 : i32
    %185 = arith.muli %c7_i32, %c8_i32_53 : i32
    %186 = tpu.assume_multiple %185, 8 : i32
    %187 = arith.index_cast %186 : i32 to index
    %c0_54 = arith.constant 0 : index
    %188 = vector.load %arg12[%187, %c0_54] : memref<64x512xf32, #tpu.memory_space<vmem>>, vector<8x512xf32>
    %cst_55 = arith.constant dense<0.000000e+00> : vector<8x512xf32>
    %189 = tpu.matmul %182, %12, %cst_55 {dimension_numbers = #tpu.dot_dimension_numbers<[1], [0], [0], [1], [0, 0, 1, 1], [], []>} : vector<8x128xf32>, vector<128x512xf32>, vector<8x512xf32> -> vector<8x512xf32>
    %190 = arith.addf %188, %189 : vector<8x512xf32>
    %191 = vector.extract_strided_slice %190 {offsets = [0, 0], sizes = [8, 384], strides = [1, 1]} : vector<8x512xf32> to vector<8x384xf32>
    %192 = arith.negf %191 : vector<8x384xf32>
    %193 = math.exp %192 : vector<8x384xf32>
    %cst_56 = arith.constant 1.000000e+00 : f32
    %194 = vector.broadcast %cst_56 : f32 to vector<8x384xf32>
    %195 = arith.addf %194, %193 : vector<8x384xf32>
    %196 = arith.divf %194, %195 : vector<8x384xf32>
    %197 = vector.extract_strided_slice %196 {offsets = [0, 0], sizes = [8, 128], strides = [1, 1]} : vector<8x384xf32> to vector<8x128xf32>
    %198 = vector.extract_strided_slice %196 {offsets = [0, 128], sizes = [8, 128], strides = [1, 1]} : vector<8x384xf32> to vector<8x128xf32>
    %199 = vector.extract_strided_slice %196 {offsets = [0, 256], sizes = [8, 128], strides = [1, 1]} : vector<8x384xf32> to vector<8x128xf32>
    %200 = vector.extract_strided_slice %190 {offsets = [0, 384], sizes = [8, 128], strides = [1, 1]} : vector<8x512xf32> to vector<8x128xf32>
    %201 = math.tanh %200 : vector<8x128xf32>
    %202 = arith.mulf %198, %180 : vector<8x128xf32>
    %203 = arith.mulf %197, %201 : vector<8x128xf32>
    %204 = arith.addf %202, %203 : vector<8x128xf32>
    %205 = math.tanh %204 : vector<8x128xf32>
    %206 = arith.mulf %199, %205 : vector<8x128xf32>
    %207 = arith.index_cast %186 : i32 to index
    %c0_57 = arith.constant 0 : index
    %208 = vector.load %arg11[%207, %c0_57] : memref<64x128xf32, #tpu.memory_space<vmem>>, vector<8x128xf32>
    tpu.vector_store %arg11[%207, %c0_57], %206 {strides = array<i32>} : memref<64x128xf32, #tpu.memory_space<vmem>>, vector<8x128xf32>,
    %c8_i32_58 = arith.constant 8 : i32
    %c0_59 = arith.constant 0 : index
    %c0_60 = arith.constant 0 : index
    %c0_61 = arith.constant 0 : index
    %209 = vector.load %arg9[%c0_59, %c0_60, %c0_61] : memref<2x8x128xf32, #tpu.memory_space<vmem>>, vector<1x8x128xf32>
    %210 = vector.shape_cast %209 : vector<1x8x128xf32> to vector<8x128xf32>
    %211 = vector.shape_cast %206 : vector<8x128xf32> to vector<1x8x128xf32>
    tpu.vector_store %arg9[%c0_59, %c0_60, %c0_61], %211 {strides = array<i32>} : memref<2x8x128xf32, #tpu.memory_space<vmem>>, vector<1x8x128xf32>,
    %c0_62 = arith.constant 0 : index
    %c0_63 = arith.constant 0 : index
    %c0_64 = arith.constant 0 : index
    %212 = vector.load %arg10[%c0_62, %c0_63, %c0_64] : memref<2x8x128xf32, #tpu.memory_space<vmem>>, vector<1x8x128xf32>
    %213 = vector.shape_cast %212 : vector<1x8x128xf32> to vector<8x128xf32>
    %214 = vector.shape_cast %204 : vector<8x128xf32> to vector<1x8x128xf32>
    tpu.vector_store %arg10[%c0_62, %c0_63, %c0_64], %214 {strides = array<i32>} : memref<2x8x128xf32, #tpu.memory_space<vmem>>, vector<1x8x128xf32>,
    %c0_65 = arith.constant 0 : index
    %c0_66 = arith.constant 0 : index
    %215 = vector.load %arg11[%c0_65, %c0_66] : memref<64x128xf32, #tpu.memory_space<vmem>>, vector<64x128xf32>
    %c0_67 = arith.constant 0 : index
    %c0_68 = arith.constant 0 : index
    %c0_69 = arith.constant 0 : index
    %216 = vector.load %arg3[%c0_67, %c0_68, %c0_69] : memref<1x128x512xf32, #tpu.memory_space<vmem>>, vector<1x128x512xf32>
    %217 = vector.shape_cast %216 : vector<1x128x512xf32> to vector<128x512xf32>
    %cst_70 = arith.constant dense<0.000000e+00> : vector<64x512xf32>
    %218 = tpu.matmul %215, %217, %cst_70 {dimension_numbers = #tpu.dot_dimension_numbers<[1], [0], [0], [1], [0, 0, 1, 1], [], []>} : vector<64x128xf32>, vector<128x512xf32>, vector<64x512xf32> -> vector<64x512xf32>
    %c1 = arith.constant 1 : index
    %c0_71 = arith.constant 0 : index
    %c0_72 = arith.constant 0 : index
    %219 = vector.load %arg5[%c1, %c0_71, %c0_72] : memref<2x1x512xf32, #tpu.memory_space<vmem>>, vector<1x1x512xf32>
    %220 = vector.shape_cast %219 : vector<1x1x512xf32> to vector<1x512xf32>
    %221 = vector.broadcast %220 : vector<1x512xf32> to vector<64x512xf32>
    %222 = arith.addf %218, %221 : vector<64x512xf32>
    %c0_73 = arith.constant 0 : index
    %c0_74 = arith.constant 0 : index
    %223 = vector.load %arg12[%c0_73, %c0_74] : memref<64x512xf32, #tpu.memory_space<vmem>>, vector<64x512xf32>
    tpu.vector_store %arg12[%c0_73, %c0_74], %222 {strides = array<i32>} : memref<64x512xf32, #tpu.memory_space<vmem>>, vector<64x512xf32>,
    %c1_75 = arith.constant 1 : index
    %c0_76 = arith.constant 0 : index
    %c0_77 = arith.constant 0 : index
    %224 = vector.load %arg4[%c1_75, %c0_76, %c0_77] : memref<2x128x512xf32, #tpu.memory_space<vmem>>, vector<1x128x512xf32>
    %225 = vector.shape_cast %224 : vector<1x128x512xf32> to vector<128x512xf32>
    %c1_78 = arith.constant 1 : index
    %c0_79 = arith.constant 0 : index
    %c0_80 = arith.constant 0 : index
    %226 = vector.load %arg9[%c1_78, %c0_79, %c0_80] : memref<2x8x128xf32, #tpu.memory_space<vmem>>, vector<1x8x128xf32>
    %227 = vector.shape_cast %226 : vector<1x8x128xf32> to vector<8x128xf32>
    %c1_81 = arith.constant 1 : index
    %c0_82 = arith.constant 0 : index
    %c0_83 = arith.constant 0 : index
    %228 = vector.load %arg10[%c1_81, %c0_82, %c0_83] : memref<2x8x128xf32, #tpu.memory_space<vmem>>, vector<1x8x128xf32>
    %229 = vector.shape_cast %228 : vector<1x8x128xf32> to vector<8x128xf32>
    %c0_i32_84 = arith.constant 0 : i32
    %c8_i32_85 = arith.constant 8 : i32
    %230 = arith.muli %c0_i32_84, %c8_i32_85 : i32
    %231 = tpu.assume_multiple %230, 8 : i32
    %232 = arith.index_cast %231 : i32 to index
    %c0_86 = arith.constant 0 : index
    %233 = vector.load %arg12[%232, %c0_86] : memref<64x512xf32, #tpu.memory_space<vmem>>, vector<8x512xf32>
    %cst_87 = arith.constant dense<0.000000e+00> : vector<8x512xf32>
    %234 = tpu.matmul %227, %225, %cst_87 {dimension_numbers = #tpu.dot_dimension_numbers<[1], [0], [0], [1], [0, 0, 1, 1], [], []>} : vector<8x128xf32>, vector<128x512xf32>, vector<8x512xf32> -> vector<8x512xf32>
    %235 = arith.addf %233, %234 : vector<8x512xf32>
    %236 = vector.extract_strided_slice %235 {offsets = [0, 0], sizes = [8, 384], strides = [1, 1]} : vector<8x512xf32> to vector<8x384xf32>
    %237 = arith.negf %236 : vector<8x384xf32>
    %238 = math.exp %237 : vector<8x384xf32>
    %cst_88 = arith.constant 1.000000e+00 : f32
    %239 = vector.broadcast %cst_88 : f32 to vector<8x384xf32>
    %240 = arith.addf %239, %238 : vector<8x384xf32>
    %241 = arith.divf %239, %240 : vector<8x384xf32>
    %242 = vector.extract_strided_slice %241 {offsets = [0, 0], sizes = [8, 128], strides = [1, 1]} : vector<8x384xf32> to vector<8x128xf32>
    %243 = vector.extract_strided_slice %241 {offsets = [0, 128], sizes = [8, 128], strides = [1, 1]} : vector<8x384xf32> to vector<8x128xf32>
    %244 = vector.extract_strided_slice %241 {offsets = [0, 256], sizes = [8, 128], strides = [1, 1]} : vector<8x384xf32> to vector<8x128xf32>
    %245 = vector.extract_strided_slice %235 {offsets = [0, 384], sizes = [8, 128], strides = [1, 1]} : vector<8x512xf32> to vector<8x128xf32>
    %246 = math.tanh %245 : vector<8x128xf32>
    %247 = arith.mulf %243, %229 : vector<8x128xf32>
    %248 = arith.mulf %242, %246 : vector<8x128xf32>
    %249 = arith.addf %247, %248 : vector<8x128xf32>
    %250 = math.tanh %249 : vector<8x128xf32>
    %251 = arith.mulf %244, %250 : vector<8x128xf32>
    %c1_i32_89 = arith.constant 1 : i32
    %c8_i32_90 = arith.constant 8 : i32
    %252 = arith.muli %c1_i32_89, %c8_i32_90 : i32
    %253 = tpu.assume_multiple %252, 8 : i32
    %254 = arith.index_cast %253 : i32 to index
    %c0_91 = arith.constant 0 : index
    %255 = vector.load %arg12[%254, %c0_91] : memref<64x512xf32, #tpu.memory_space<vmem>>, vector<8x512xf32>
    %cst_92 = arith.constant dense<0.000000e+00> : vector<8x512xf32>
    %256 = tpu.matmul %251, %225, %cst_92 {dimension_numbers = #tpu.dot_dimension_numbers<[1], [0], [0], [1], [0, 0, 1, 1], [], []>} : vector<8x128xf32>, vector<128x512xf32>, vector<8x512xf32> -> vector<8x512xf32>
    %257 = arith.addf %255, %256 : vector<8x512xf32>
    %258 = vector.extract_strided_slice %257 {offsets = [0, 0], sizes = [8, 384], strides = [1, 1]} : vector<8x512xf32> to vector<8x384xf32>
    %259 = arith.negf %258 : vector<8x384xf32>
    %260 = math.exp %259 : vector<8x384xf32>
    %cst_93 = arith.constant 1.000000e+00 : f32
    %261 = vector.broadcast %cst_93 : f32 to vector<8x384xf32>
    %262 = arith.addf %261, %260 : vector<8x384xf32>
    %263 = arith.divf %261, %262 : vector<8x384xf32>
    %264 = vector.extract_strided_slice %263 {offsets = [0, 0], sizes = [8, 128], strides = [1, 1]} : vector<8x384xf32> to vector<8x128xf32>
    %265 = vector.extract_strided_slice %263 {offsets = [0, 128], sizes = [8, 128], strides = [1, 1]} : vector<8x384xf32> to vector<8x128xf32>
    %266 = vector.extract_strided_slice %263 {offsets = [0, 256], sizes = [8, 128], strides = [1, 1]} : vector<8x384xf32> to vector<8x128xf32>
    %267 = vector.extract_strided_slice %257 {offsets = [0, 384], sizes = [8, 128], strides = [1, 1]} : vector<8x512xf32> to vector<8x128xf32>
    %268 = math.tanh %267 : vector<8x128xf32>
    %269 = arith.mulf %265, %249 : vector<8x128xf32>
    %270 = arith.mulf %264, %268 : vector<8x128xf32>
    %271 = arith.addf %269, %270 : vector<8x128xf32>
    %272 = math.tanh %271 : vector<8x128xf32>
    %273 = arith.mulf %266, %272 : vector<8x128xf32>
    %c2_i32_94 = arith.constant 2 : i32
    %c8_i32_95 = arith.constant 8 : i32
    %274 = arith.muli %c2_i32_94, %c8_i32_95 : i32
    %275 = tpu.assume_multiple %274, 8 : i32
    %276 = arith.index_cast %275 : i32 to index
    %c0_96 = arith.constant 0 : index
    %277 = vector.load %arg12[%276, %c0_96] : memref<64x512xf32, #tpu.memory_space<vmem>>, vector<8x512xf32>
    %cst_97 = arith.constant dense<0.000000e+00> : vector<8x512xf32>
    %278 = tpu.matmul %273, %225, %cst_97 {dimension_numbers = #tpu.dot_dimension_numbers<[1], [0], [0], [1], [0, 0, 1, 1], [], []>} : vector<8x128xf32>, vector<128x512xf32>, vector<8x512xf32> -> vector<8x512xf32>
    %279 = arith.addf %277, %278 : vector<8x512xf32>
    %280 = vector.extract_strided_slice %279 {offsets = [0, 0], sizes = [8, 384], strides = [1, 1]} : vector<8x512xf32> to vector<8x384xf32>
    %281 = arith.negf %280 : vector<8x384xf32>
    %282 = math.exp %281 : vector<8x384xf32>
    %cst_98 = arith.constant 1.000000e+00 : f32
    %283 = vector.broadcast %cst_98 : f32 to vector<8x384xf32>
    %284 = arith.addf %283, %282 : vector<8x384xf32>
    %285 = arith.divf %283, %284 : vector<8x384xf32>
    %286 = vector.extract_strided_slice %285 {offsets = [0, 0], sizes = [8, 128], strides = [1, 1]} : vector<8x384xf32> to vector<8x128xf32>
    %287 = vector.extract_strided_slice %285 {offsets = [0, 128], sizes = [8, 128], strides = [1, 1]} : vector<8x384xf32> to vector<8x128xf32>
    %288 = vector.extract_strided_slice %285 {offsets = [0, 256], sizes = [8, 128], strides = [1, 1]} : vector<8x384xf32> to vector<8x128xf32>
    %289 = vector.extract_strided_slice %279 {offsets = [0, 384], sizes = [8, 128], strides = [1, 1]} : vector<8x512xf32> to vector<8x128xf32>
    %290 = math.tanh %289 : vector<8x128xf32>
    %291 = arith.mulf %287, %271 : vector<8x128xf32>
    %292 = arith.mulf %286, %290 : vector<8x128xf32>
    %293 = arith.addf %291, %292 : vector<8x128xf32>
    %294 = math.tanh %293 : vector<8x128xf32>
    %295 = arith.mulf %288, %294 : vector<8x128xf32>
    %c3_i32_99 = arith.constant 3 : i32
    %c8_i32_100 = arith.constant 8 : i32
    %296 = arith.muli %c3_i32_99, %c8_i32_100 : i32
    %297 = tpu.assume_multiple %296, 8 : i32
    %298 = arith.index_cast %297 : i32 to index
    %c0_101 = arith.constant 0 : index
    %299 = vector.load %arg12[%298, %c0_101] : memref<64x512xf32, #tpu.memory_space<vmem>>, vector<8x512xf32>
    %cst_102 = arith.constant dense<0.000000e+00> : vector<8x512xf32>
    %300 = tpu.matmul %295, %225, %cst_102 {dimension_numbers = #tpu.dot_dimension_numbers<[1], [0], [0], [1], [0, 0, 1, 1], [], []>} : vector<8x128xf32>, vector<128x512xf32>, vector<8x512xf32> -> vector<8x512xf32>
    %301 = arith.addf %299, %300 : vector<8x512xf32>
    %302 = vector.extract_strided_slice %301 {offsets = [0, 0], sizes = [8, 384], strides = [1, 1]} : vector<8x512xf32> to vector<8x384xf32>
    %303 = arith.negf %302 : vector<8x384xf32>
    %304 = math.exp %303 : vector<8x384xf32>
    %cst_103 = arith.constant 1.000000e+00 : f32
    %305 = vector.broadcast %cst_103 : f32 to vector<8x384xf32>
    %306 = arith.addf %305, %304 : vector<8x384xf32>
    %307 = arith.divf %305, %306 : vector<8x384xf32>
    %308 = vector.extract_strided_slice %307 {offsets = [0, 0], sizes = [8, 128], strides = [1, 1]} : vector<8x384xf32> to vector<8x128xf32>
    %309 = vector.extract_strided_slice %307 {offsets = [0, 128], sizes = [8, 128], strides = [1, 1]} : vector<8x384xf32> to vector<8x128xf32>
    %310 = vector.extract_strided_slice %307 {offsets = [0, 256], sizes = [8, 128], strides = [1, 1]} : vector<8x384xf32> to vector<8x128xf32>
    %311 = vector.extract_strided_slice %301 {offsets = [0, 384], sizes = [8, 128], strides = [1, 1]} : vector<8x512xf32> to vector<8x128xf32>
    %312 = math.tanh %311 : vector<8x128xf32>
    %313 = arith.mulf %309, %293 : vector<8x128xf32>
    %314 = arith.mulf %308, %312 : vector<8x128xf32>
    %315 = arith.addf %313, %314 : vector<8x128xf32>
    %316 = math.tanh %315 : vector<8x128xf32>
    %317 = arith.mulf %310, %316 : vector<8x128xf32>
    %c4_i32_104 = arith.constant 4 : i32
    %c8_i32_105 = arith.constant 8 : i32
    %318 = arith.muli %c4_i32_104, %c8_i32_105 : i32
    %319 = tpu.assume_multiple %318, 8 : i32
    %320 = arith.index_cast %319 : i32 to index
    %c0_106 = arith.constant 0 : index
    %321 = vector.load %arg12[%320, %c0_106] : memref<64x512xf32, #tpu.memory_space<vmem>>, vector<8x512xf32>
    %cst_107 = arith.constant dense<0.000000e+00> : vector<8x512xf32>
    %322 = tpu.matmul %317, %225, %cst_107 {dimension_numbers = #tpu.dot_dimension_numbers<[1], [0], [0], [1], [0, 0, 1, 1], [], []>} : vector<8x128xf32>, vector<128x512xf32>, vector<8x512xf32> -> vector<8x512xf32>
    %323 = arith.addf %321, %322 : vector<8x512xf32>
    %324 = vector.extract_strided_slice %323 {offsets = [0, 0], sizes = [8, 384], strides = [1, 1]} : vector<8x512xf32> to vector<8x384xf32>
    %325 = arith.negf %324 : vector<8x384xf32>
    %326 = math.exp %325 : vector<8x384xf32>
    %cst_108 = arith.constant 1.000000e+00 : f32
    %327 = vector.broadcast %cst_108 : f32 to vector<8x384xf32>
    %328 = arith.addf %327, %326 : vector<8x384xf32>
    %329 = arith.divf %327, %328 : vector<8x384xf32>
    %330 = vector.extract_strided_slice %329 {offsets = [0, 0], sizes = [8, 128], strides = [1, 1]} : vector<8x384xf32> to vector<8x128xf32>
    %331 = vector.extract_strided_slice %329 {offsets = [0, 128], sizes = [8, 128], strides = [1, 1]} : vector<8x384xf32> to vector<8x128xf32>
    %332 = vector.extract_strided_slice %329 {offsets = [0, 256], sizes = [8, 128], strides = [1, 1]} : vector<8x384xf32> to vector<8x128xf32>
    %333 = vector.extract_strided_slice %323 {offsets = [0, 384], sizes = [8, 128], strides = [1, 1]} : vector<8x512xf32> to vector<8x128xf32>
    %334 = math.tanh %333 : vector<8x128xf32>
    %335 = arith.mulf %331, %315 : vector<8x128xf32>
    %336 = arith.mulf %330, %334 : vector<8x128xf32>
    %337 = arith.addf %335, %336 : vector<8x128xf32>
    %338 = math.tanh %337 : vector<8x128xf32>
    %339 = arith.mulf %332, %338 : vector<8x128xf32>
    %c5_i32_109 = arith.constant 5 : i32
    %c8_i32_110 = arith.constant 8 : i32
    %340 = arith.muli %c5_i32_109, %c8_i32_110 : i32
    %341 = tpu.assume_multiple %340, 8 : i32
    %342 = arith.index_cast %341 : i32 to index
    %c0_111 = arith.constant 0 : index
    %343 = vector.load %arg12[%342, %c0_111] : memref<64x512xf32, #tpu.memory_space<vmem>>, vector<8x512xf32>
    %cst_112 = arith.constant dense<0.000000e+00> : vector<8x512xf32>
    %344 = tpu.matmul %339, %225, %cst_112 {dimension_numbers = #tpu.dot_dimension_numbers<[1], [0], [0], [1], [0, 0, 1, 1], [], []>} : vector<8x128xf32>, vector<128x512xf32>, vector<8x512xf32> -> vector<8x512xf32>
    %345 = arith.addf %343, %344 : vector<8x512xf32>
    %346 = vector.extract_strided_slice %345 {offsets = [0, 0], sizes = [8, 384], strides = [1, 1]} : vector<8x512xf32> to vector<8x384xf32>
    %347 = arith.negf %346 : vector<8x384xf32>
    %348 = math.exp %347 : vector<8x384xf32>
    %cst_113 = arith.constant 1.000000e+00 : f32
    %349 = vector.broadcast %cst_113 : f32 to vector<8x384xf32>
    %350 = arith.addf %349, %348 : vector<8x384xf32>
    %351 = arith.divf %349, %350 : vector<8x384xf32>
    %352 = vector.extract_strided_slice %351 {offsets = [0, 0], sizes = [8, 128], strides = [1, 1]} : vector<8x384xf32> to vector<8x128xf32>
    %353 = vector.extract_strided_slice %351 {offsets = [0, 128], sizes = [8, 128], strides = [1, 1]} : vector<8x384xf32> to vector<8x128xf32>
    %354 = vector.extract_strided_slice %351 {offsets = [0, 256], sizes = [8, 128], strides = [1, 1]} : vector<8x384xf32> to vector<8x128xf32>
    %355 = vector.extract_strided_slice %345 {offsets = [0, 384], sizes = [8, 128], strides = [1, 1]} : vector<8x512xf32> to vector<8x128xf32>
    %356 = math.tanh %355 : vector<8x128xf32>
    %357 = arith.mulf %353, %337 : vector<8x128xf32>
    %358 = arith.mulf %352, %356 : vector<8x128xf32>
    %359 = arith.addf %357, %358 : vector<8x128xf32>
    %360 = math.tanh %359 : vector<8x128xf32>
    %361 = arith.mulf %354, %360 : vector<8x128xf32>
    %c6_i32_114 = arith.constant 6 : i32
    %c8_i32_115 = arith.constant 8 : i32
    %362 = arith.muli %c6_i32_114, %c8_i32_115 : i32
    %363 = tpu.assume_multiple %362, 8 : i32
    %364 = arith.index_cast %363 : i32 to index
    %c0_116 = arith.constant 0 : index
    %365 = vector.load %arg12[%364, %c0_116] : memref<64x512xf32, #tpu.memory_space<vmem>>, vector<8x512xf32>
    %cst_117 = arith.constant dense<0.000000e+00> : vector<8x512xf32>
    %366 = tpu.matmul %361, %225, %cst_117 {dimension_numbers = #tpu.dot_dimension_numbers<[1], [0], [0], [1], [0, 0, 1, 1], [], []>} : vector<8x128xf32>, vector<128x512xf32>, vector<8x512xf32> -> vector<8x512xf32>
    %367 = arith.addf %365, %366 : vector<8x512xf32>
    %368 = vector.extract_strided_slice %367 {offsets = [0, 0], sizes = [8, 384], strides = [1, 1]} : vector<8x512xf32> to vector<8x384xf32>
    %369 = arith.negf %368 : vector<8x384xf32>
    %370 = math.exp %369 : vector<8x384xf32>
    %cst_118 = arith.constant 1.000000e+00 : f32
    %371 = vector.broadcast %cst_118 : f32 to vector<8x384xf32>
    %372 = arith.addf %371, %370 : vector<8x384xf32>
    %373 = arith.divf %371, %372 : vector<8x384xf32>
    %374 = vector.extract_strided_slice %373 {offsets = [0, 0], sizes = [8, 128], strides = [1, 1]} : vector<8x384xf32> to vector<8x128xf32>
    %375 = vector.extract_strided_slice %373 {offsets = [0, 128], sizes = [8, 128], strides = [1, 1]} : vector<8x384xf32> to vector<8x128xf32>
    %376 = vector.extract_strided_slice %373 {offsets = [0, 256], sizes = [8, 128], strides = [1, 1]} : vector<8x384xf32> to vector<8x128xf32>
    %377 = vector.extract_strided_slice %367 {offsets = [0, 384], sizes = [8, 128], strides = [1, 1]} : vector<8x512xf32> to vector<8x128xf32>
    %378 = math.tanh %377 : vector<8x128xf32>
    %379 = arith.mulf %375, %359 : vector<8x128xf32>
    %380 = arith.mulf %374, %378 : vector<8x128xf32>
    %381 = arith.addf %379, %380 : vector<8x128xf32>
    %382 = math.tanh %381 : vector<8x128xf32>
    %383 = arith.mulf %376, %382 : vector<8x128xf32>
    %c7_i32_119 = arith.constant 7 : i32
    %c8_i32_120 = arith.constant 8 : i32
    %384 = arith.muli %c7_i32_119, %c8_i32_120 : i32
    %385 = tpu.assume_multiple %384, 8 : i32
    %386 = arith.index_cast %385 : i32 to index
    %c0_121 = arith.constant 0 : index
    %387 = vector.load %arg12[%386, %c0_121] : memref<64x512xf32, #tpu.memory_space<vmem>>, vector<8x512xf32>
    %cst_122 = arith.constant dense<0.000000e+00> : vector<8x512xf32>
    %388 = tpu.matmul %383, %225, %cst_122 {dimension_numbers = #tpu.dot_dimension_numbers<[1], [0], [0], [1], [0, 0, 1, 1], [], []>} : vector<8x128xf32>, vector<128x512xf32>, vector<8x512xf32> -> vector<8x512xf32>
    %389 = arith.addf %387, %388 : vector<8x512xf32>
    %390 = vector.extract_strided_slice %389 {offsets = [0, 0], sizes = [8, 384], strides = [1, 1]} : vector<8x512xf32> to vector<8x384xf32>
    %391 = arith.negf %390 : vector<8x384xf32>
    %392 = math.exp %391 : vector<8x384xf32>
    %cst_123 = arith.constant 1.000000e+00 : f32
    %393 = vector.broadcast %cst_123 : f32 to vector<8x384xf32>
    %394 = arith.addf %393, %392 : vector<8x384xf32>
    %395 = arith.divf %393, %394 : vector<8x384xf32>
    %396 = vector.extract_strided_slice %395 {offsets = [0, 0], sizes = [8, 128], strides = [1, 1]} : vector<8x384xf32> to vector<8x128xf32>
    %397 = vector.extract_strided_slice %395 {offsets = [0, 128], sizes = [8, 128], strides = [1, 1]} : vector<8x384xf32> to vector<8x128xf32>
    %398 = vector.extract_strided_slice %395 {offsets = [0, 256], sizes = [8, 128], strides = [1, 1]} : vector<8x384xf32> to vector<8x128xf32>
    %399 = vector.extract_strided_slice %389 {offsets = [0, 384], sizes = [8, 128], strides = [1, 1]} : vector<8x512xf32> to vector<8x128xf32>
    %400 = math.tanh %399 : vector<8x128xf32>
    %401 = arith.mulf %397, %381 : vector<8x128xf32>
    %402 = arith.mulf %396, %400 : vector<8x128xf32>
    %403 = arith.addf %401, %402 : vector<8x128xf32>
    %404 = math.tanh %403 : vector<8x128xf32>
    %405 = arith.mulf %398, %404 : vector<8x128xf32>
    %c8_i32_124 = arith.constant 8 : i32
    %c1_125 = arith.constant 1 : index
    %c0_126 = arith.constant 0 : index
    %c0_127 = arith.constant 0 : index
    %406 = vector.load %arg9[%c1_125, %c0_126, %c0_127] : memref<2x8x128xf32, #tpu.memory_space<vmem>>, vector<1x8x128xf32>
    %407 = vector.shape_cast %406 : vector<1x8x128xf32> to vector<8x128xf32>
    %408 = vector.shape_cast %405 : vector<8x128xf32> to vector<1x8x128xf32>
    tpu.vector_store %arg9[%c1_125, %c0_126, %c0_127], %408 {strides = array<i32>} : memref<2x8x128xf32, #tpu.memory_space<vmem>>, vector<1x8x128xf32>,
    %c1_128 = arith.constant 1 : index
    %c0_129 = arith.constant 0 : index
    %c0_130 = arith.constant 0 : index
    %409 = vector.load %arg10[%c1_128, %c0_129, %c0_130] : memref<2x8x128xf32, #tpu.memory_space<vmem>>, vector<1x8x128xf32>
    %410 = vector.shape_cast %409 : vector<1x8x128xf32> to vector<8x128xf32>
    %411 = vector.shape_cast %403 : vector<8x128xf32> to vector<1x8x128xf32>
    tpu.vector_store %arg10[%c1_128, %c0_129, %c0_130], %411 {strides = array<i32>} : memref<2x8x128xf32, #tpu.memory_space<vmem>>, vector<1x8x128xf32>,
    %c0_i32_131 = arith.constant 0 : i32
    %412 = arith.cmpi eq, %arg0, %c0_i32_131 : i32
    %413 = arith.extui %412 : i1 to i32
    %c0_i32_132 = arith.constant 0 : i32
    %414 = arith.cmpi ne, %413, %c0_i32_132 : i32
    scf.if %414 {
      %c1_133 = arith.constant 1 : index
      %c0_134 = arith.constant 0 : index
      %c0_135 = arith.constant 0 : index
      %415 = vector.load %arg9[%c1_133, %c0_134, %c0_135] : memref<2x8x128xf32, #tpu.memory_space<vmem>>, vector<1x8x128xf32>
      %416 = vector.shape_cast %415 : vector<1x8x128xf32> to vector<8x128xf32>
      %c0_136 = arith.constant 0 : index
      %c0_137 = arith.constant 0 : index
      %417 = vector.load %arg6[%c0_136, %c0_137] : memref<128x128xf32, #tpu.memory_space<vmem>>, vector<128x128xf32>
      %cst_138 = arith.constant dense<0.000000e+00> : vector<8x128xf32>
      %418 = tpu.matmul %416, %417, %cst_138 {dimension_numbers = #tpu.dot_dimension_numbers<[1], [0], [0], [1], [0, 0, 1, 1], [], []>} : vector<8x128xf32>, vector<128x128xf32>, vector<8x128xf32> -> vector<8x128xf32>
      %c0_139 = arith.constant 0 : index
      %c0_140 = arith.constant 0 : index
      %419 = vector.load %arg7[%c0_139, %c0_140] : memref<1x128xf32, #tpu.memory_space<vmem>>, vector<1x128xf32>
      %420 = vector.broadcast %419 : vector<1x128xf32> to vector<8x128xf32>
      %421 = arith.addf %418, %420 : vector<8x128xf32>
      %c0_141 = arith.constant 0 : index
      %c0_142 = arith.constant 0 : index
      %422 = vector.load %arg8[%c0_141, %c0_142] : memref<8x128xf32, #tpu.memory_space<vmem>>, vector<8x128xf32>
      tpu.vector_store %arg8[%c0_141, %c0_142], %421 {strides = array<i32>} : memref<8x128xf32, #tpu.memory_space<vmem>>, vector<8x128xf32>,
    } else {
    }
    return
  }
  func.func @transform_0(%arg0: i32) -> (i32, i32) {
    %c0_i32 = arith.constant 0 : i32
    %c0_i32_0 = arith.constant 0 : i32
    return %arg0, %c0_i32 : i32, i32
  }
  func.func @transform_1(%arg0: i32) -> (i32, i32) {
    %c0_i32 = arith.constant 0 : i32
    %c0_i32_0 = arith.constant 0 : i32
    %c0_i32_1 = arith.constant 0 : i32
    return %c0_i32, %c0_i32_0 : i32, i32
  }
  func.func @transform_2(%arg0: i32) -> (i32, i32, i32) {
    %c0_i32 = arith.constant 0 : i32
    %c0_i32_0 = arith.constant 0 : i32
    %c0_i32_1 = arith.constant 0 : i32
    %c0_i32_2 = arith.constant 0 : i32
    return %c0_i32, %c0_i32_0, %c0_i32_1 : i32, i32, i32
  }
  func.func @transform_3(%arg0: i32) -> (i32, i32, i32) {
    %c0_i32 = arith.constant 0 : i32
    %c0_i32_0 = arith.constant 0 : i32
    %c0_i32_1 = arith.constant 0 : i32
    %c0_i32_2 = arith.constant 0 : i32
    return %c0_i32, %c0_i32_0, %c0_i32_1 : i32, i32, i32
  }
  func.func @transform_4(%arg0: i32) -> (i32, i32, i32) {
    %c0_i32 = arith.constant 0 : i32
    %c0_i32_0 = arith.constant 0 : i32
    %c0_i32_1 = arith.constant 0 : i32
    %c0_i32_2 = arith.constant 0 : i32
    return %c0_i32, %c0_i32_0, %c0_i32_1 : i32, i32, i32
  }
  func.func @transform_5(%arg0: i32) -> (i32, i32) {
    %c0_i32 = arith.constant 0 : i32
    %c0_i32_0 = arith.constant 0 : i32
    %c0_i32_1 = arith.constant 0 : i32
    return %c0_i32, %c0_i32_0 : i32, i32
  }
  func.func @transform_6(%arg0: i32) -> (i32, i32) {
    %c0_i32 = arith.constant 0 : i32
    %c0_i32_0 = arith.constant 0 : i32
    %c0_i32_1 = arith.constant 0 : i32
    return %c0_i32, %c0_i32_0 : i32, i32
  }
  func.func @transform_7(%arg0: i32) -> (i32, i32) {
    %c0_i32 = arith.constant 0 : i32
    %c0_i32_0 = arith.constant 0 : i32
    %c0_i32_1 = arith.constant 0 : i32
    return %c0_i32, %c0_i32_0 : i32, i32
  }
}

module attributes {stable_mosaic.version = 11 : i64} {
  func.func @kernel(%arg0: i32, %arg1: memref<64x4xf32, #tpu.memory_space<vmem>>, %arg2: memref<4x512xf32, #tpu.memory_space<vmem>>, %arg3: memref<1x128x512xf32, #tpu.memory_space<vmem>>, %arg4: memref<2x128x512xf32, #tpu.memory_space<vmem>>, %arg5: memref<2x1x512xf32, #tpu.memory_space<vmem>>, %arg6: memref<128x128xf32, #tpu.memory_space<vmem>>, %arg7: memref<1x128xf32, #tpu.memory_space<vmem>>, %arg8: memref<8x128xf32, #tpu.memory_space<vmem>>, %arg9: memref<2x8x128xf32, #tpu.memory_space<vmem>>, %arg10: memref<2x8x128xf32, #tpu.memory_space<vmem>>, %arg11: memref<64x128xf32, #tpu.memory_space<vmem>>, %arg12: memref<64x512xf32, #tpu.memory_space<vmem>>) attributes {dimension_semantics = [#tpu.dimension_semantics<arbitrary>], iteration_bounds = array<i64: 1>, scalar_prefetch = 0 : i64, scratch_operands = 4 : i64, tpu.core_type = #tpu.core_type<tc>, window_params = [{transform_indices = @transform_0, window_bounds = array<i64: 64, 4>}, {pipeline_mode = #tpu.pipeline_mode<synchronous>, transform_indices = @transform_1, window_bounds = array<i64: 4, 512>}, {pipeline_mode = #tpu.pipeline_mode<synchronous>, transform_indices = @transform_2, window_bounds = array<i64: 1, 128, 512>}, {pipeline_mode = #tpu.pipeline_mode<synchronous>, transform_indices = @transform_3, window_bounds = array<i64: 2, 128, 512>}, {pipeline_mode = #tpu.pipeline_mode<synchronous>, transform_indices = @transform_4, window_bounds = array<i64: 2, 1, 512>}, {pipeline_mode = #tpu.pipeline_mode<synchronous>, transform_indices = @transform_5, window_bounds = array<i64: 128, 128>}, {pipeline_mode = #tpu.pipeline_mode<synchronous>, transform_indices = @transform_6, window_bounds = array<i64: 1, 128>}, {pipeline_mode = #tpu.pipeline_mode<synchronous>, transform_indices = @transform_7, window_bounds = array<i64: 8, 128>}]} {
    %c0_i32 = arith.constant 0 : i32
    %0 = arith.cmpi eq, %arg0, %c0_i32 : i32
    %1 = arith.extui %0 : i1 to i32
    %c0_i32_0 = arith.constant 0 : i32
    %2 = arith.cmpi ne, %1, %c0_i32_0 : i32
    scf.if %2 {
      %cst_133 = arith.constant 0.000000e+00 : f32
      %415 = vector.broadcast %cst_133 : f32 to vector<2x8x128xf32>
      %c0_134 = arith.constant 0 : index
      %c0_135 = arith.constant 0 : index
      %c0_136 = arith.constant 0 : index
      %416 = vector.load %arg9[%c0_134, %c0_135, %c0_136] : memref<2x8x128xf32, #tpu.memory_space<vmem>>, vector<2x8x128xf32>
      tpu.vector_store %arg9[%c0_134, %c0_135, %c0_136], %415 {strides = array<i32>} : memref<2x8x128xf32, #tpu.memory_space<vmem>>, vector<2x8x128xf32>,
      %cst_137 = arith.constant 0.000000e+00 : f32
      %417 = vector.broadcast %cst_137 : f32 to vector<2x8x128xf32>
      %c0_138 = arith.constant 0 : index
      %c0_139 = arith.constant 0 : index
      %c0_140 = arith.constant 0 : index
      %418 = vector.load %arg10[%c0_138, %c0_139, %c0_140] : memref<2x8x128xf32, #tpu.memory_space<vmem>>, vector<2x8x128xf32>
      tpu.vector_store %arg10[%c0_138, %c0_139, %c0_140], %417 {strides = array<i32>} : memref<2x8x128xf32, #tpu.memory_space<vmem>>, vector<2x8x128xf32>,
    } else {
    }
    %c0 = arith.constant 0 : index
    %c0_1 = arith.constant 0 : index
    %3 = vector.load %arg1[%c0, %c0_1] : memref<64x4xf32, #tpu.memory_space<vmem>>, vector<64x4xf32>
    %c0_2 = arith.constant 0 : index
    %c0_3 = arith.constant 0 : index
    %4 = vector.load %arg2[%c0_2, %c0_3] : memref<4x512xf32, #tpu.memory_space<vmem>>, vector<4x512xf32>
    %cst = arith.constant dense<0.000000e+00> : vector<64x512xf32>
    %5 = tpu.matmul %3, %4, %cst {dimension_numbers = #tpu.dot_dimension_numbers<[1], [0], [0], [1], [0, 0, 1, 1], [], []>} : vector<64x4xf32>, vector<4x512xf32>, vector<64x512xf32> -> vector<64x512xf32>
    %c0_4 = arith.constant 0 : index
    %c0_5 = arith.constant 0 : index
    %c0_6 = arith.constant 0 : index
    %6 = vector.load %arg5[%c0_4, %c0_5, %c0_6] : memref<2x1x512xf32, #tpu.memory_space<vmem>>, vector<1x1x512xf32>
    %7 = vector.shape_cast %6 : vector<1x1x512xf32> to vector<1x512xf32>
    %8 = vector.broadcast %7 : vector<1x512xf32> to vector<64x512xf32>
    %9 = arith.addf %5, %8 : vector<64x512xf32>
    %c0_7 = arith.constant 0 : index
    %c0_8 = arith.constant 0 : index
    %10 = vector.load %arg12[%c0_7, %c0_8] : memref<64x512xf32, #tpu.memory_space<vmem>>, vector<64x512xf32>
    tpu.vector_store %arg12[%c0_7, %c0_8], %9 {strides = array<i32>} : memref<64x512xf32, #tpu.memory_space<vmem>>, vector<64x512xf32>,
    %c0_9 = arith.constant 0 : index
    %c0_10 = arith.constant 0 : index
    %c0_11 = arith.constant 0 : index
    %11 = vector.load %arg4[%c0_9, %c0_10, %c0_11] : memref<2x128x512xf32, #tpu.memory_space<vmem>>, vector<1x128x512xf32>
    %12 = vector.shape_cast %11 : vector<1x128x512xf32> to vector<128x512xf32>
    %c0_12 = arith.constant 0 : index
    %c0_13 = arith.constant 0 : index
    %c0_14 = arith.constant 0 : index
    %13 = vector.load %arg9[%c0_12, %c0_13, %c0_14] : memref<2x8x128xf32, #tpu.memory_space<vmem>>, vector<1x8x128xf32>
    %14 = vector.shape_cast %13 : vector<1x8x128xf32> to vector<8x128xf32>
    %c0_15 = arith.constant 0 : index
    %c0_16 = arith.constant 0 : index
    %c0_17 = arith.constant 0 : index
    %15 = vector.load %arg10[%c0_15, %c0_16, %c0_17] : memref<2x8x128xf32, #tpu.memory_space<vmem>>, vector<1x8x128xf32>
    %16 = vector.shape_cast %15 : vector<1x8x128xf32> to vector<8x128xf32>
    %c0_i32_18 = arith.constant 0 : i32
    %c8_i32 = arith.constant 8 : i32
    %17 = arith.muli %c0_i32_18, %c8_i32 : i32
    %18 = tpu.assume_multiple %17, 8 : i32
    %19 = arith.index_cast %18 : i32 to index
    %c0_19 = arith.constant 0 : index
    %20 = vector.load %arg12[%19, %c0_19] : memref<64x512xf32, #tpu.memory_space<vmem>>, vector<8x512xf32>
    %cst_20 = arith.constant dense<0.000000e+00> : vector<8x512xf32>
    %21 = tpu.matmul %14, %12, %cst_20 {dimension_numbers = #tpu.dot_dimension_numbers<[1], [0], [0], [1], [0, 0, 1, 1], [], []>} : vector<8x128xf32>, vector<128x512xf32>, vector<8x512xf32> -> vector<8x512xf32>
    %22 = arith.addf %20, %21 : vector<8x512xf32>
    %23 = vector.extract_strided_slice %22 {offsets = [0, 0], sizes = [8, 384], strides = [1, 1]} : vector<8x512xf32> to vector<8x384xf32>
    %24 = arith.negf %23 : vector<8x384xf32>
    %25 = math.exp %24 : vector<8x384xf32>
    %cst_21 = arith.constant 1.000000e+00 : f32
    %26 = vector.broadcast %cst_21 : f32 to vector<8x384xf32>
    %27 = arith.addf %26, %25 : vector<8x384xf32>
    %28 = arith.divf %26, %27 : vector<8x384xf32>
    %29 = vector.extract_strided_slice %28 {offsets = [0, 0], sizes = [8, 128], strides = [1, 1]} : vector<8x384xf32> to vector<8x128xf32>
    %30 = vector.extract_strided_slice %28 {offsets = [0, 128], sizes = [8, 128], strides = [1, 1]} : vector<8x384xf32> to vector<8x128xf32>
    %31 = vector.extract_strided_slice %28 {offsets = [0, 256], sizes = [8, 128], strides = [1, 1]} : vector<8x384xf32> to vector<8x128xf32>
    %32 = vector.extract_strided_slice %22 {offsets = [0, 384], sizes = [8, 128], strides = [1, 1]} : vector<8x512xf32> to vector<8x128xf32>
    %33 = math.tanh %32 : vector<8x128xf32>
    %34 = arith.mulf %30, %16 : vector<8x128xf32>
    %35 = arith.mulf %29, %33 : vector<8x128xf32>
    %36 = arith.addf %34, %35 : vector<8x128xf32>
    %37 = math.tanh %36 : vector<8x128xf32>
    %38 = arith.mulf %31, %37 : vector<8x128xf32>
    %39 = arith.index_cast %18 : i32 to index
    %c0_22 = arith.constant 0 : index
    %40 = vector.load %arg11[%39, %c0_22] : memref<64x128xf32, #tpu.memory_space<vmem>>, vector<8x128xf32>
    tpu.vector_store %arg11[%39, %c0_22], %38 {strides = array<i32>} : memref<64x128xf32, #tpu.memory_space<vmem>>, vector<8x128xf32>,
    %c1_i32 = arith.constant 1 : i32
    %c8_i32_23 = arith.constant 8 : i32
    %41 = arith.muli %c1_i32, %c8_i32_23 : i32
    %42 = tpu.assume_multiple %41, 8 : i32
    %43 = arith.index_cast %42 : i32 to index
    %c0_24 = arith.constant 0 : index
    %44 = vector.load %arg12[%43, %c0_24] : memref<64x512xf32, #tpu.memory_space<vmem>>, vector<8x512xf32>
    %cst_25 = arith.constant dense<0.000000e+00> : vector<8x512xf32>
    %45 = tpu.matmul %38, %12, %cst_25 {dimension_numbers = #tpu.dot_dimension_numbers<[1], [0], [0], [1], [0, 0, 1, 1], [], []>} : vector<8x128xf32>, vector<128x512xf32>, vector<8x512xf32> -> vector<8x512xf32>
    %46 = arith.addf %44, %45 : vector<8x512xf32>
    %47 = vector.extract_strided_slice %46 {offsets = [0, 0], sizes = [8, 384], strides = [1, 1]} : vector<8x512xf32> to vector<8x384xf32>
    %48 = arith.negf %47 : vector<8x384xf32>
    %49 = math.exp %48 : vector<8x384xf32>
    %cst_26 = arith.constant 1.000000e+00 : f32
    %50 = vector.broadcast %cst_26 : f32 to vector<8x384xf32>
    %51 = arith.addf %50, %49 : vector<8x384xf32>
    %52 = arith.divf %50, %51 : vector<8x384xf32>
    %53 = vector.extract_strided_slice %52 {offsets = [0, 0], sizes = [8, 128], strides = [1, 1]} : vector<8x384xf32> to vector<8x128xf32>
    %54 = vector.extract_strided_slice %52 {offsets = [0, 128], sizes = [8, 128], strides = [1, 1]} : vector<8x384xf32> to vector<8x128xf32>
    %55 = vector.extract_strided_slice %52 {offsets = [0, 256], sizes = [8, 128], strides = [1, 1]} : vector<8x384xf32> to vector<8x128xf32>
    %56 = vector.extract_strided_slice %46 {offsets = [0, 384], sizes = [8, 128], strides = [1, 1]} : vector<8x512xf32> to vector<8x128xf32>
    %57 = math.tanh %56 : vector<8x128xf32>
    %58 = arith.mulf %54, %36 : vector<8x128xf32>
    %59 = arith.mulf %53, %57 : vector<8x128xf32>
    %60 = arith.addf %58, %59 : vector<8x128xf32>
    %61 = math.tanh %60 : vector<8x128xf32>
    %62 = arith.mulf %55, %61 : vector<8x128xf32>
    %63 = arith.index_cast %42 : i32 to index
    %c0_27 = arith.constant 0 : index
    %64 = vector.load %arg11[%63, %c0_27] : memref<64x128xf32, #tpu.memory_space<vmem>>, vector<8x128xf32>
    tpu.vector_store %arg11[%63, %c0_27], %62 {strides = array<i32>} : memref<64x128xf32, #tpu.memory_space<vmem>>, vector<8x128xf32>,
    %c2_i32 = arith.constant 2 : i32
    %c8_i32_28 = arith.constant 8 : i32
    %65 = arith.muli %c2_i32, %c8_i32_28 : i32
    %66 = tpu.assume_multiple %65, 8 : i32
    %67 = arith.index_cast %66 : i32 to index
    %c0_29 = arith.constant 0 : index
    %68 = vector.load %arg12[%67, %c0_29] : memref<64x512xf32, #tpu.memory_space<vmem>>, vector<8x512xf32>
    %cst_30 = arith.constant dense<0.000000e+00> : vector<8x512xf32>
    %69 = tpu.matmul %62, %12, %cst_30 {dimension_numbers = #tpu.dot_dimension_numbers<[1], [0], [0], [1], [0, 0, 1, 1], [], []>} : vector<8x128xf32>, vector<128x512xf32>, vector<8x512xf32> -> vector<8x512xf32>
    %70 = arith.addf %68, %69 : vector<8x512xf32>
    %71 = vector.extract_strided_slice %70 {offsets = [0, 0], sizes = [8, 384], strides = [1, 1]} : vector<8x512xf32> to vector<8x384xf32>
    %72 = arith.negf %71 : vector<8x384xf32>
    %73 = math.exp %72 : vector<8x384xf32>
    %cst_31 = arith.constant 1.000000e+00 : f32
    %74 = vector.broadcast %cst_31 : f32 to vector<8x384xf32>
    %75 = arith.addf %74, %73 : vector<8x384xf32>
    %76 = arith.divf %74, %75 : vector<8x384xf32>
    %77 = vector.extract_strided_slice %76 {offsets = [0, 0], sizes = [8, 128], strides = [1, 1]} : vector<8x384xf32> to vector<8x128xf32>
    %78 = vector.extract_strided_slice %76 {offsets = [0, 128], sizes = [8, 128], strides = [1, 1]} : vector<8x384xf32> to vector<8x128xf32>
    %79 = vector.extract_strided_slice %76 {offsets = [0, 256], sizes = [8, 128], strides = [1, 1]} : vector<8x384xf32> to vector<8x128xf32>
    %80 = vector.extract_strided_slice %70 {offsets = [0, 384], sizes = [8, 128], strides = [1, 1]} : vector<8x512xf32> to vector<8x128xf32>
    %81 = math.tanh %80 : vector<8x128xf32>
    %82 = arith.mulf %78, %60 : vector<8x128xf32>
    %83 = arith.mulf %77, %81 : vector<8x128xf32>
    %84 = arith.addf %82, %83 : vector<8x128xf32>
    %85 = math.tanh %84 : vector<8x128xf32>
    %86 = arith.mulf %79, %85 : vector<8x128xf32>
    %87 = arith.index_cast %66 : i32 to index
    %c0_32 = arith.constant 0 : index
    %88 = vector.load %arg11[%87, %c0_32] : memref<64x128xf32, #tpu.memory_space<vmem>>, vector<8x128xf32>
    tpu.vector_store %arg11[%87, %c0_32], %86 {strides = array<i32>} : memref<64x128xf32, #tpu.memory_space<vmem>>, vector<8x128xf32>,
    %c3_i32 = arith.constant 3 : i32
    %c8_i32_33 = arith.constant 8 : i32
    %89 = arith.muli %c3_i32, %c8_i32_33 : i32
    %90 = tpu.assume_multiple %89, 8 : i32
    %91 = arith.index_cast %90 : i32 to index
    %c0_34 = arith.constant 0 : index
    %92 = vector.load %arg12[%91, %c0_34] : memref<64x512xf32, #tpu.memory_space<vmem>>, vector<8x512xf32>
    %cst_35 = arith.constant dense<0.000000e+00> : vector<8x512xf32>
    %93 = tpu.matmul %86, %12, %cst_35 {dimension_numbers = #tpu.dot_dimension_numbers<[1], [0], [0], [1], [0, 0, 1, 1], [], []>} : vector<8x128xf32>, vector<128x512xf32>, vector<8x512xf32> -> vector<8x512xf32>
    %94 = arith.addf %92, %93 : vector<8x512xf32>
    %95 = vector.extract_strided_slice %94 {offsets = [0, 0], sizes = [8, 384], strides = [1, 1]} : vector<8x512xf32> to vector<8x384xf32>
    %96 = arith.negf %95 : vector<8x384xf32>
    %97 = math.exp %96 : vector<8x384xf32>
    %cst_36 = arith.constant 1.000000e+00 : f32
    %98 = vector.broadcast %cst_36 : f32 to vector<8x384xf32>
    %99 = arith.addf %98, %97 : vector<8x384xf32>
    %100 = arith.divf %98, %99 : vector<8x384xf32>
    %101 = vector.extract_strided_slice %100 {offsets = [0, 0], sizes = [8, 128], strides = [1, 1]} : vector<8x384xf32> to vector<8x128xf32>
    %102 = vector.extract_strided_slice %100 {offsets = [0, 128], sizes = [8, 128], strides = [1, 1]} : vector<8x384xf32> to vector<8x128xf32>
    %103 = vector.extract_strided_slice %100 {offsets = [0, 256], sizes = [8, 128], strides = [1, 1]} : vector<8x384xf32> to vector<8x128xf32>
    %104 = vector.extract_strided_slice %94 {offsets = [0, 384], sizes = [8, 128], strides = [1, 1]} : vector<8x512xf32> to vector<8x128xf32>
    %105 = math.tanh %104 : vector<8x128xf32>
    %106 = arith.mulf %102, %84 : vector<8x128xf32>
    %107 = arith.mulf %101, %105 : vector<8x128xf32>
    %108 = arith.addf %106, %107 : vector<8x128xf32>
    %109 = math.tanh %108 : vector<8x128xf32>
    %110 = arith.mulf %103, %109 : vector<8x128xf32>
    %111 = arith.index_cast %90 : i32 to index
    %c0_37 = arith.constant 0 : index
    %112 = vector.load %arg11[%111, %c0_37] : memref<64x128xf32, #tpu.memory_space<vmem>>, vector<8x128xf32>
    tpu.vector_store %arg11[%111, %c0_37], %110 {strides = array<i32>} : memref<64x128xf32, #tpu.memory_space<vmem>>, vector<8x128xf32>,
    %c4_i32 = arith.constant 4 : i32
    %c8_i32_38 = arith.constant 8 : i32
    %113 = arith.muli %c4_i32, %c8_i32_38 : i32
    %114 = tpu.assume_multiple %113, 8 : i32
    %115 = arith.index_cast %114 : i32 to index
    %c0_39 = arith.constant 0 : index
    %116 = vector.load %arg12[%115, %c0_39] : memref<64x512xf32, #tpu.memory_space<vmem>>, vector<8x512xf32>
    %cst_40 = arith.constant dense<0.000000e+00> : vector<8x512xf32>
    %117 = tpu.matmul %110, %12, %cst_40 {dimension_numbers = #tpu.dot_dimension_numbers<[1], [0], [0], [1], [0, 0, 1, 1], [], []>} : vector<8x128xf32>, vector<128x512xf32>, vector<8x512xf32> -> vector<8x512xf32>
    %118 = arith.addf %116, %117 : vector<8x512xf32>
    %119 = vector.extract_strided_slice %118 {offsets = [0, 0], sizes = [8, 384], strides = [1, 1]} : vector<8x512xf32> to vector<8x384xf32>
    %120 = arith.negf %119 : vector<8x384xf32>
    %121 = math.exp %120 : vector<8x384xf32>
    %cst_41 = arith.constant 1.000000e+00 : f32
    %122 = vector.broadcast %cst_41 : f32 to vector<8x384xf32>
    %123 = arith.addf %122, %121 : vector<8x384xf32>
    %124 = arith.divf %122, %123 : vector<8x384xf32>
    %125 = vector.extract_strided_slice %124 {offsets = [0, 0], sizes = [8, 128], strides = [1, 1]} : vector<8x384xf32> to vector<8x128xf32>
    %126 = vector.extract_strided_slice %124 {offsets = [0, 128], sizes = [8, 128], strides = [1, 1]} : vector<8x384xf32> to vector<8x128xf32>
    %127 = vector.extract_strided_slice %124 {offsets = [0, 256], sizes = [8, 128], strides = [1, 1]} : vector<8x384xf32> to vector<8x128xf32>
    %128 = vector.extract_strided_slice %118 {offsets = [0, 384], sizes = [8, 128], strides = [1, 1]} : vector<8x512xf32> to vector<8x128xf32>
    %129 = math.tanh %128 : vector<8x128xf32>
    %130 = arith.mulf %126, %108 : vector<8x128xf32>
    %131 = arith.mulf %125, %129 : vector<8x128xf32>
    %132 = arith.addf %130, %131 : vector<8x128xf32>
    %133 = math.tanh %132 : vector<8x128xf32>
    %134 = arith.mulf %127, %133 : vector<8x128xf32>
    %135 = arith.index_cast %114 : i32 to index
    %c0_42 = arith.constant 0 : index
    %136 = vector.load %arg11[%135, %c0_42] : memref<64x128xf32, #tpu.memory_space<vmem>>, vector<8x128xf32>
    tpu.vector_store %arg11[%135, %c0_42], %134 {strides = array<i32>} : memref<64x128xf32, #tpu.memory_space<vmem>>, vector<8x128xf32>,
    %c5_i32 = arith.constant 5 : i32
    %c8_i32_43 = arith.constant 8 : i32
    %137 = arith.muli %c5_i32, %c8_i32_43 : i32
    %138 = tpu.assume_multiple %137, 8 : i32
    %139 = arith.index_cast %138 : i32 to index
    %c0_44 = arith.constant 0 : index
    %140 = vector.load %arg12[%139, %c0_44] : memref<64x512xf32, #tpu.memory_space<vmem>>, vector<8x512xf32>
    %cst_45 = arith.constant dense<0.000000e+00> : vector<8x512xf32>
    %141 = tpu.matmul %134, %12, %cst_45 {dimension_numbers = #tpu.dot_dimension_numbers<[1], [0], [0], [1], [0, 0, 1, 1], [], []>} : vector<8x128xf32>, vector<128x512xf32>, vector<8x512xf32> -> vector<8x512xf32>
    %142 = arith.addf %140, %141 : vector<8x512xf32>
    %143 = vector.extract_strided_slice %142 {offsets = [0, 0], sizes = [8, 384], strides = [1, 1]} : vector<8x512xf32> to vector<8x384xf32>
    %144 = arith.negf %143 : vector<8x384xf32>
    %145 = math.exp %144 : vector<8x384xf32>
    %cst_46 = arith.constant 1.000000e+00 : f32
    %146 = vector.broadcast %cst_46 : f32 to vector<8x384xf32>
    %147 = arith.addf %146, %145 : vector<8x384xf32>
    %148 = arith.divf %146, %147 : vector<8x384xf32>
    %149 = vector.extract_strided_slice %148 {offsets = [0, 0], sizes = [8, 128], strides = [1, 1]} : vector<8x384xf32> to vector<8x128xf32>
    %150 = vector.extract_strided_slice %148 {offsets = [0, 128], sizes = [8, 128], strides = [1, 1]} : vector<8x384xf32> to vector<8x128xf32>
    %151 = vector.extract_strided_slice %148 {offsets = [0, 256], sizes = [8, 128], strides = [1, 1]} : vector<8x384xf32> to vector<8x128xf32>
    %152 = vector.extract_strided_slice %142 {offsets = [0, 384], sizes = [8, 128], strides = [1, 1]} : vector<8x512xf32> to vector<8x128xf32>
    %153 = math.tanh %152 : vector<8x128xf32>
    %154 = arith.mulf %150, %132 : vector<8x128xf32>
    %155 = arith.mulf %149, %153 : vector<8x128xf32>
    %156 = arith.addf %154, %155 : vector<8x128xf32>
    %157 = math.tanh %156 : vector<8x128xf32>
    %158 = arith.mulf %151, %157 : vector<8x128xf32>
    %159 = arith.index_cast %138 : i32 to index
    %c0_47 = arith.constant 0 : index
    %160 = vector.load %arg11[%159, %c0_47] : memref<64x128xf32, #tpu.memory_space<vmem>>, vector<8x128xf32>
    tpu.vector_store %arg11[%159, %c0_47], %158 {strides = array<i32>} : memref<64x128xf32, #tpu.memory_space<vmem>>, vector<8x128xf32>,
    %c6_i32 = arith.constant 6 : i32
    %c8_i32_48 = arith.constant 8 : i32
    %161 = arith.muli %c6_i32, %c8_i32_48 : i32
    %162 = tpu.assume_multiple %161, 8 : i32
    %163 = arith.index_cast %162 : i32 to index
    %c0_49 = arith.constant 0 : index
    %164 = vector.load %arg12[%163, %c0_49] : memref<64x512xf32, #tpu.memory_space<vmem>>, vector<8x512xf32>
    %cst_50 = arith.constant dense<0.000000e+00> : vector<8x512xf32>
    %165 = tpu.matmul %158, %12, %cst_50 {dimension_numbers = #tpu.dot_dimension_numbers<[1], [0], [0], [1], [0, 0, 1, 1], [], []>} : vector<8x128xf32>, vector<128x512xf32>, vector<8x512xf32> -> vector<8x512xf32>
    %166 = arith.addf %164, %165 : vector<8x512xf32>
    %167 = vector.extract_strided_slice %166 {offsets = [0, 0], sizes = [8, 384], strides = [1, 1]} : vector<8x512xf32> to vector<8x384xf32>
    %168 = arith.negf %167 : vector<8x384xf32>
    %169 = math.exp %168 : vector<8x384xf32>
    %cst_51 = arith.constant 1.000000e+00 : f32
    %170 = vector.broadcast %cst_51 : f32 to vector<8x384xf32>
    %171 = arith.addf %170, %169 : vector<8x384xf32>
    %172 = arith.divf %170, %171 : vector<8x384xf32>
    %173 = vector.extract_strided_slice %172 {offsets = [0, 0], sizes = [8, 128], strides = [1, 1]} : vector<8x384xf32> to vector<8x128xf32>
    %174 = vector.extract_strided_slice %172 {offsets = [0, 128], sizes = [8, 128], strides = [1, 1]} : vector<8x384xf32> to vector<8x128xf32>
    %175 = vector.extract_strided_slice %172 {offsets = [0, 256], sizes = [8, 128], strides = [1, 1]} : vector<8x384xf32> to vector<8x128xf32>
    %176 = vector.extract_strided_slice %166 {offsets = [0, 384], sizes = [8, 128], strides = [1, 1]} : vector<8x512xf32> to vector<8x128xf32>
    %177 = math.tanh %176 : vector<8x128xf32>
    %178 = arith.mulf %174, %156 : vector<8x128xf32>
    %179 = arith.mulf %173, %177 : vector<8x128xf32>
    %180 = arith.addf %178, %179 : vector<8x128xf32>
    %181 = math.tanh %180 : vector<8x128xf32>
    %182 = arith.mulf %175, %181 : vector<8x128xf32>
    %183 = arith.index_cast %162 : i32 to index
    %c0_52 = arith.constant 0 : index
    %184 = vector.load %arg11[%183, %c0_52] : memref<64x128xf32, #tpu.memory_space<vmem>>, vector<8x128xf32>
    tpu.vector_store %arg11[%183, %c0_52], %182 {strides = array<i32>} : memref<64x128xf32, #tpu.memory_space<vmem>>, vector<8x128xf32>,
    %c7_i32 = arith.constant 7 : i32
    %c8_i32_53 = arith.constant 8 : i32
    %185 = arith.muli %c7_i32, %c8_i32_53 : i32
    %186 = tpu.assume_multiple %185, 8 : i32
    %187 = arith.index_cast %186 : i32 to index
    %c0_54 = arith.constant 0 : index
    %188 = vector.load %arg12[%187, %c0_54] : memref<64x512xf32, #tpu.memory_space<vmem>>, vector<8x512xf32>
    %cst_55 = arith.constant dense<0.000000e+00> : vector<8x512xf32>
    %189 = tpu.matmul %182, %12, %cst_55 {dimension_numbers = #tpu.dot_dimension_numbers<[1], [0], [0], [1], [0, 0, 1, 1], [], []>} : vector<8x128xf32>, vector<128x512xf32>, vector<8x512xf32> -> vector<8x512xf32>
    %190 = arith.addf %188, %189 : vector<8x512xf32>
    %191 = vector.extract_strided_slice %190 {offsets = [0, 0], sizes = [8, 384], strides = [1, 1]} : vector<8x512xf32> to vector<8x384xf32>
    %192 = arith.negf %191 : vector<8x384xf32>
    %193 = math.exp %192 : vector<8x384xf32>
    %cst_56 = arith.constant 1.000000e+00 : f32
    %194 = vector.broadcast %cst_56 : f32 to vector<8x384xf32>
    %195 = arith.addf %194, %193 : vector<8x384xf32>
    %196 = arith.divf %194, %195 : vector<8x384xf32>
    %197 = vector.extract_strided_slice %196 {offsets = [0, 0], sizes = [8, 128], strides = [1, 1]} : vector<8x384xf32> to vector<8x128xf32>
    %198 = vector.extract_strided_slice %196 {offsets = [0, 128], sizes = [8, 128], strides = [1, 1]} : vector<8x384xf32> to vector<8x128xf32>
    %199 = vector.extract_strided_slice %196 {offsets = [0, 256], sizes = [8, 128], strides = [1, 1]} : vector<8x384xf32> to vector<8x128xf32>
    %200 = vector.extract_strided_slice %190 {offsets = [0, 384], sizes = [8, 128], strides = [1, 1]} : vector<8x512xf32> to vector<8x128xf32>
    %201 = math.tanh %200 : vector<8x128xf32>
    %202 = arith.mulf %198, %180 : vector<8x128xf32>
    %203 = arith.mulf %197, %201 : vector<8x128xf32>
    %204 = arith.addf %202, %203 : vector<8x128xf32>
    %205 = math.tanh %204 : vector<8x128xf32>
    %206 = arith.mulf %199, %205 : vector<8x128xf32>
    %207 = arith.index_cast %186 : i32 to index
    %c0_57 = arith.constant 0 : index
    %208 = vector.load %arg11[%207, %c0_57] : memref<64x128xf32, #tpu.memory_space<vmem>>, vector<8x128xf32>
    tpu.vector_store %arg11[%207, %c0_57], %206 {strides = array<i32>} : memref<64x128xf32, #tpu.memory_space<vmem>>, vector<8x128xf32>,
    %c8_i32_58 = arith.constant 8 : i32
    %c0_59 = arith.constant 0 : index
    %c0_60 = arith.constant 0 : index
    %c0_61 = arith.constant 0 : index
    %209 = vector.load %arg9[%c0_59, %c0_60, %c0_61] : memref<2x8x128xf32, #tpu.memory_space<vmem>>, vector<1x8x128xf32>
    %210 = vector.shape_cast %209 : vector<1x8x128xf32> to vector<8x128xf32>
    %211 = vector.shape_cast %206 : vector<8x128xf32> to vector<1x8x128xf32>
    tpu.vector_store %arg9[%c0_59, %c0_60, %c0_61], %211 {strides = array<i32>} : memref<2x8x128xf32, #tpu.memory_space<vmem>>, vector<1x8x128xf32>,
    %c0_62 = arith.constant 0 : index
    %c0_63 = arith.constant 0 : index
    %c0_64 = arith.constant 0 : index
    %212 = vector.load %arg10[%c0_62, %c0_63, %c0_64] : memref<2x8x128xf32, #tpu.memory_space<vmem>>, vector<1x8x128xf32>
    %213 = vector.shape_cast %212 : vector<1x8x128xf32> to vector<8x128xf32>
    %214 = vector.shape_cast %204 : vector<8x128xf32> to vector<1x8x128xf32>
    tpu.vector_store %arg10[%c0_62, %c0_63, %c0_64], %214 {strides = array<i32>} : memref<2x8x128xf32, #tpu.memory_space<vmem>>, vector<1x8x128xf32>,
    %c0_65 = arith.constant 0 : index
    %c0_66 = arith.constant 0 : index
    %215 = vector.load %arg11[%c0_65, %c0_66] : memref<64x128xf32, #tpu.memory_space<vmem>>, vector<64x128xf32>
    %c0_67 = arith.constant 0 : index
    %c0_68 = arith.constant 0 : index
    %c0_69 = arith.constant 0 : index
    %216 = vector.load %arg3[%c0_67, %c0_68, %c0_69] : memref<1x128x512xf32, #tpu.memory_space<vmem>>, vector<1x128x512xf32>
    %217 = vector.shape_cast %216 : vector<1x128x512xf32> to vector<128x512xf32>
    %cst_70 = arith.constant dense<0.000000e+00> : vector<64x512xf32>
    %218 = tpu.matmul %215, %217, %cst_70 {dimension_numbers = #tpu.dot_dimension_numbers<[1], [0], [0], [1], [0, 0, 1, 1], [], []>} : vector<64x128xf32>, vector<128x512xf32>, vector<64x512xf32> -> vector<64x512xf32>
    %c1 = arith.constant 1 : index
    %c0_71 = arith.constant 0 : index
    %c0_72 = arith.constant 0 : index
    %219 = vector.load %arg5[%c1, %c0_71, %c0_72] : memref<2x1x512xf32, #tpu.memory_space<vmem>>, vector<1x1x512xf32>
    %220 = vector.shape_cast %219 : vector<1x1x512xf32> to vector<1x512xf32>
    %221 = vector.broadcast %220 : vector<1x512xf32> to vector<64x512xf32>
    %222 = arith.addf %218, %221 : vector<64x512xf32>
    %c0_73 = arith.constant 0 : index
    %c0_74 = arith.constant 0 : index
    %223 = vector.load %arg12[%c0_73, %c0_74] : memref<64x512xf32, #tpu.memory_space<vmem>>, vector<64x512xf32>
    tpu.vector_store %arg12[%c0_73, %c0_74], %222 {strides = array<i32>} : memref<64x512xf32, #tpu.memory_space<vmem>>, vector<64x512xf32>,
    %c1_75 = arith.constant 1 : index
    %c0_76 = arith.constant 0 : index
    %c0_77 = arith.constant 0 : index
    %224 = vector.load %arg4[%c1_75, %c0_76, %c0_77] : memref<2x128x512xf32, #tpu.memory_space<vmem>>, vector<1x128x512xf32>
    %225 = vector.shape_cast %224 : vector<1x128x512xf32> to vector<128x512xf32>
    %c1_78 = arith.constant 1 : index
    %c0_79 = arith.constant 0 : index
    %c0_80 = arith.constant 0 : index
    %226 = vector.load %arg9[%c1_78, %c0_79, %c0_80] : memref<2x8x128xf32, #tpu.memory_space<vmem>>, vector<1x8x128xf32>
    %227 = vector.shape_cast %226 : vector<1x8x128xf32> to vector<8x128xf32>
    %c1_81 = arith.constant 1 : index
    %c0_82 = arith.constant 0 : index
    %c0_83 = arith.constant 0 : index
    %228 = vector.load %arg10[%c1_81, %c0_82, %c0_83] : memref<2x8x128xf32, #tpu.memory_space<vmem>>, vector<1x8x128xf32>
    %229 = vector.shape_cast %228 : vector<1x8x128xf32> to vector<8x128xf32>
    %c0_i32_84 = arith.constant 0 : i32
    %c8_i32_85 = arith.constant 8 : i32
    %230 = arith.muli %c0_i32_84, %c8_i32_85 : i32
    %231 = tpu.assume_multiple %230, 8 : i32
    %232 = arith.index_cast %231 : i32 to index
    %c0_86 = arith.constant 0 : index
    %233 = vector.load %arg12[%232, %c0_86] : memref<64x512xf32, #tpu.memory_space<vmem>>, vector<8x512xf32>
    %cst_87 = arith.constant dense<0.000000e+00> : vector<8x512xf32>
    %234 = tpu.matmul %227, %225, %cst_87 {dimension_numbers = #tpu.dot_dimension_numbers<[1], [0], [0], [1], [0, 0, 1, 1], [], []>} : vector<8x128xf32>, vector<128x512xf32>, vector<8x512xf32> -> vector<8x512xf32>
    %235 = arith.addf %233, %234 : vector<8x512xf32>
    %236 = vector.extract_strided_slice %235 {offsets = [0, 0], sizes = [8, 384], strides = [1, 1]} : vector<8x512xf32> to vector<8x384xf32>
    %237 = arith.negf %236 : vector<8x384xf32>
    %238 = math.exp %237 : vector<8x384xf32>
    %cst_88 = arith.constant 1.000000e+00 : f32
    %239 = vector.broadcast %cst_88 : f32 to vector<8x384xf32>
    %240 = arith.addf %239, %238 : vector<8x384xf32>
    %241 = arith.divf %239, %240 : vector<8x384xf32>
    %242 = vector.extract_strided_slice %241 {offsets = [0, 0], sizes = [8, 128], strides = [1, 1]} : vector<8x384xf32> to vector<8x128xf32>
    %243 = vector.extract_strided_slice %241 {offsets = [0, 128], sizes = [8, 128], strides = [1, 1]} : vector<8x384xf32> to vector<8x128xf32>
    %244 = vector.extract_strided_slice %241 {offsets = [0, 256], sizes = [8, 128], strides = [1, 1]} : vector<8x384xf32> to vector<8x128xf32>
    %245 = vector.extract_strided_slice %235 {offsets = [0, 384], sizes = [8, 128], strides = [1, 1]} : vector<8x512xf32> to vector<8x128xf32>
    %246 = math.tanh %245 : vector<8x128xf32>
    %247 = arith.mulf %243, %229 : vector<8x128xf32>
    %248 = arith.mulf %242, %246 : vector<8x128xf32>
    %249 = arith.addf %247, %248 : vector<8x128xf32>
    %250 = math.tanh %249 : vector<8x128xf32>
    %251 = arith.mulf %244, %250 : vector<8x128xf32>
    %c1_i32_89 = arith.constant 1 : i32
    %c8_i32_90 = arith.constant 8 : i32
    %252 = arith.muli %c1_i32_89, %c8_i32_90 : i32
    %253 = tpu.assume_multiple %252, 8 : i32
    %254 = arith.index_cast %253 : i32 to index
    %c0_91 = arith.constant 0 : index
    %255 = vector.load %arg12[%254, %c0_91] : memref<64x512xf32, #tpu.memory_space<vmem>>, vector<8x512xf32>
    %cst_92 = arith.constant dense<0.000000e+00> : vector<8x512xf32>
    %256 = tpu.matmul %251, %225, %cst_92 {dimension_numbers = #tpu.dot_dimension_numbers<[1], [0], [0], [1], [0, 0, 1, 1], [], []>} : vector<8x128xf32>, vector<128x512xf32>, vector<8x512xf32> -> vector<8x512xf32>
    %257 = arith.addf %255, %256 : vector<8x512xf32>
    %258 = vector.extract_strided_slice %257 {offsets = [0, 0], sizes = [8, 384], strides = [1, 1]} : vector<8x512xf32> to vector<8x384xf32>
    %259 = arith.negf %258 : vector<8x384xf32>
    %260 = math.exp %259 : vector<8x384xf32>
    %cst_93 = arith.constant 1.000000e+00 : f32
    %261 = vector.broadcast %cst_93 : f32 to vector<8x384xf32>
    %262 = arith.addf %261, %260 : vector<8x384xf32>
    %263 = arith.divf %261, %262 : vector<8x384xf32>
    %264 = vector.extract_strided_slice %263 {offsets = [0, 0], sizes = [8, 128], strides = [1, 1]} : vector<8x384xf32> to vector<8x128xf32>
    %265 = vector.extract_strided_slice %263 {offsets = [0, 128], sizes = [8, 128], strides = [1, 1]} : vector<8x384xf32> to vector<8x128xf32>
    %266 = vector.extract_strided_slice %263 {offsets = [0, 256], sizes = [8, 128], strides = [1, 1]} : vector<8x384xf32> to vector<8x128xf32>
    %267 = vector.extract_strided_slice %257 {offsets = [0, 384], sizes = [8, 128], strides = [1, 1]} : vector<8x512xf32> to vector<8x128xf32>
    %268 = math.tanh %267 : vector<8x128xf32>
    %269 = arith.mulf %265, %249 : vector<8x128xf32>
    %270 = arith.mulf %264, %268 : vector<8x128xf32>
    %271 = arith.addf %269, %270 : vector<8x128xf32>
    %272 = math.tanh %271 : vector<8x128xf32>
    %273 = arith.mulf %266, %272 : vector<8x128xf32>
    %c2_i32_94 = arith.constant 2 : i32
    %c8_i32_95 = arith.constant 8 : i32
    %274 = arith.muli %c2_i32_94, %c8_i32_95 : i32
    %275 = tpu.assume_multiple %274, 8 : i32
    %276 = arith.index_cast %275 : i32 to index
    %c0_96 = arith.constant 0 : index
    %277 = vector.load %arg12[%276, %c0_96] : memref<64x512xf32, #tpu.memory_space<vmem>>, vector<8x512xf32>
    %cst_97 = arith.constant dense<0.000000e+00> : vector<8x512xf32>
    %278 = tpu.matmul %273, %225, %cst_97 {dimension_numbers = #tpu.dot_dimension_numbers<[1], [0], [0], [1], [0, 0, 1, 1], [], []>} : vector<8x128xf32>, vector<128x512xf32>, vector<8x512xf32> -> vector<8x512xf32>
    %279 = arith.addf %277, %278 : vector<8x512xf32>
    %280 = vector.extract_strided_slice %279 {offsets = [0, 0], sizes = [8, 384], strides = [1, 1]} : vector<8x512xf32> to vector<8x384xf32>
    %281 = arith.negf %280 : vector<8x384xf32>
    %282 = math.exp %281 : vector<8x384xf32>
    %cst_98 = arith.constant 1.000000e+00 : f32
    %283 = vector.broadcast %cst_98 : f32 to vector<8x384xf32>
    %284 = arith.addf %283, %282 : vector<8x384xf32>
    %285 = arith.divf %283, %284 : vector<8x384xf32>
    %286 = vector.extract_strided_slice %285 {offsets = [0, 0], sizes = [8, 128], strides = [1, 1]} : vector<8x384xf32> to vector<8x128xf32>
    %287 = vector.extract_strided_slice %285 {offsets = [0, 128], sizes = [8, 128], strides = [1, 1]} : vector<8x384xf32> to vector<8x128xf32>
    %288 = vector.extract_strided_slice %285 {offsets = [0, 256], sizes = [8, 128], strides = [1, 1]} : vector<8x384xf32> to vector<8x128xf32>
    %289 = vector.extract_strided_slice %279 {offsets = [0, 384], sizes = [8, 128], strides = [1, 1]} : vector<8x512xf32> to vector<8x128xf32>
    %290 = math.tanh %289 : vector<8x128xf32>
    %291 = arith.mulf %287, %271 : vector<8x128xf32>
    %292 = arith.mulf %286, %290 : vector<8x128xf32>
    %293 = arith.addf %291, %292 : vector<8x128xf32>
    %294 = math.tanh %293 : vector<8x128xf32>
    %295 = arith.mulf %288, %294 : vector<8x128xf32>
    %c3_i32_99 = arith.constant 3 : i32
    %c8_i32_100 = arith.constant 8 : i32
    %296 = arith.muli %c3_i32_99, %c8_i32_100 : i32
    %297 = tpu.assume_multiple %296, 8 : i32
    %298 = arith.index_cast %297 : i32 to index
    %c0_101 = arith.constant 0 : index
    %299 = vector.load %arg12[%298, %c0_101] : memref<64x512xf32, #tpu.memory_space<vmem>>, vector<8x512xf32>
    %cst_102 = arith.constant dense<0.000000e+00> : vector<8x512xf32>
    %300 = tpu.matmul %295, %225, %cst_102 {dimension_numbers = #tpu.dot_dimension_numbers<[1], [0], [0], [1], [0, 0, 1, 1], [], []>} : vector<8x128xf32>, vector<128x512xf32>, vector<8x512xf32> -> vector<8x512xf32>
    %301 = arith.addf %299, %300 : vector<8x512xf32>
    %302 = vector.extract_strided_slice %301 {offsets = [0, 0], sizes = [8, 384], strides = [1, 1]} : vector<8x512xf32> to vector<8x384xf32>
    %303 = arith.negf %302 : vector<8x384xf32>
    %304 = math.exp %303 : vector<8x384xf32>
    %cst_103 = arith.constant 1.000000e+00 : f32
    %305 = vector.broadcast %cst_103 : f32 to vector<8x384xf32>
    %306 = arith.addf %305, %304 : vector<8x384xf32>
    %307 = arith.divf %305, %306 : vector<8x384xf32>
    %308 = vector.extract_strided_slice %307 {offsets = [0, 0], sizes = [8, 128], strides = [1, 1]} : vector<8x384xf32> to vector<8x128xf32>
    %309 = vector.extract_strided_slice %307 {offsets = [0, 128], sizes = [8, 128], strides = [1, 1]} : vector<8x384xf32> to vector<8x128xf32>
    %310 = vector.extract_strided_slice %307 {offsets = [0, 256], sizes = [8, 128], strides = [1, 1]} : vector<8x384xf32> to vector<8x128xf32>
    %311 = vector.extract_strided_slice %301 {offsets = [0, 384], sizes = [8, 128], strides = [1, 1]} : vector<8x512xf32> to vector<8x128xf32>
    %312 = math.tanh %311 : vector<8x128xf32>
    %313 = arith.mulf %309, %293 : vector<8x128xf32>
    %314 = arith.mulf %308, %312 : vector<8x128xf32>
    %315 = arith.addf %313, %314 : vector<8x128xf32>
    %316 = math.tanh %315 : vector<8x128xf32>
    %317 = arith.mulf %310, %316 : vector<8x128xf32>
    %c4_i32_104 = arith.constant 4 : i32
    %c8_i32_105 = arith.constant 8 : i32
    %318 = arith.muli %c4_i32_104, %c8_i32_105 : i32
    %319 = tpu.assume_multiple %318, 8 : i32
    %320 = arith.index_cast %319 : i32 to index
    %c0_106 = arith.constant 0 : index
    %321 = vector.load %arg12[%320, %c0_106] : memref<64x512xf32, #tpu.memory_space<vmem>>, vector<8x512xf32>
    %cst_107 = arith.constant dense<0.000000e+00> : vector<8x512xf32>
    %322 = tpu.matmul %317, %225, %cst_107 {dimension_numbers = #tpu.dot_dimension_numbers<[1], [0], [0], [1], [0, 0, 1, 1], [], []>} : vector<8x128xf32>, vector<128x512xf32>, vector<8x512xf32> -> vector<8x512xf32>
    %323 = arith.addf %321, %322 : vector<8x512xf32>
    %324 = vector.extract_strided_slice %323 {offsets = [0, 0], sizes = [8, 384], strides = [1, 1]} : vector<8x512xf32> to vector<8x384xf32>
    %325 = arith.negf %324 : vector<8x384xf32>
    %326 = math.exp %325 : vector<8x384xf32>
    %cst_108 = arith.constant 1.000000e+00 : f32
    %327 = vector.broadcast %cst_108 : f32 to vector<8x384xf32>
    %328 = arith.addf %327, %326 : vector<8x384xf32>
    %329 = arith.divf %327, %328 : vector<8x384xf32>
    %330 = vector.extract_strided_slice %329 {offsets = [0, 0], sizes = [8, 128], strides = [1, 1]} : vector<8x384xf32> to vector<8x128xf32>
    %331 = vector.extract_strided_slice %329 {offsets = [0, 128], sizes = [8, 128], strides = [1, 1]} : vector<8x384xf32> to vector<8x128xf32>
    %332 = vector.extract_strided_slice %329 {offsets = [0, 256], sizes = [8, 128], strides = [1, 1]} : vector<8x384xf32> to vector<8x128xf32>
    %333 = vector.extract_strided_slice %323 {offsets = [0, 384], sizes = [8, 128], strides = [1, 1]} : vector<8x512xf32> to vector<8x128xf32>
    %334 = math.tanh %333 : vector<8x128xf32>
    %335 = arith.mulf %331, %315 : vector<8x128xf32>
    %336 = arith.mulf %330, %334 : vector<8x128xf32>
    %337 = arith.addf %335, %336 : vector<8x128xf32>
    %338 = math.tanh %337 : vector<8x128xf32>
    %339 = arith.mulf %332, %338 : vector<8x128xf32>
    %c5_i32_109 = arith.constant 5 : i32
    %c8_i32_110 = arith.constant 8 : i32
    %340 = arith.muli %c5_i32_109, %c8_i32_110 : i32
    %341 = tpu.assume_multiple %340, 8 : i32
    %342 = arith.index_cast %341 : i32 to index
    %c0_111 = arith.constant 0 : index
    %343 = vector.load %arg12[%342, %c0_111] : memref<64x512xf32, #tpu.memory_space<vmem>>, vector<8x512xf32>
    %cst_112 = arith.constant dense<0.000000e+00> : vector<8x512xf32>
    %344 = tpu.matmul %339, %225, %cst_112 {dimension_numbers = #tpu.dot_dimension_numbers<[1], [0], [0], [1], [0, 0, 1, 1], [], []>} : vector<8x128xf32>, vector<128x512xf32>, vector<8x512xf32> -> vector<8x512xf32>
    %345 = arith.addf %343, %344 : vector<8x512xf32>
    %346 = vector.extract_strided_slice %345 {offsets = [0, 0], sizes = [8, 384], strides = [1, 1]} : vector<8x512xf32> to vector<8x384xf32>
    %347 = arith.negf %346 : vector<8x384xf32>
    %348 = math.exp %347 : vector<8x384xf32>
    %cst_113 = arith.constant 1.000000e+00 : f32
    %349 = vector.broadcast %cst_113 : f32 to vector<8x384xf32>
    %350 = arith.addf %349, %348 : vector<8x384xf32>
    %351 = arith.divf %349, %350 : vector<8x384xf32>
    %352 = vector.extract_strided_slice %351 {offsets = [0, 0], sizes = [8, 128], strides = [1, 1]} : vector<8x384xf32> to vector<8x128xf32>
    %353 = vector.extract_strided_slice %351 {offsets = [0, 128], sizes = [8, 128], strides = [1, 1]} : vector<8x384xf32> to vector<8x128xf32>
    %354 = vector.extract_strided_slice %351 {offsets = [0, 256], sizes = [8, 128], strides = [1, 1]} : vector<8x384xf32> to vector<8x128xf32>
    %355 = vector.extract_strided_slice %345 {offsets = [0, 384], sizes = [8, 128], strides = [1, 1]} : vector<8x512xf32> to vector<8x128xf32>
    %356 = math.tanh %355 : vector<8x128xf32>
    %357 = arith.mulf %353, %337 : vector<8x128xf32>
    %358 = arith.mulf %352, %356 : vector<8x128xf32>
    %359 = arith.addf %357, %358 : vector<8x128xf32>
    %360 = math.tanh %359 : vector<8x128xf32>
    %361 = arith.mulf %354, %360 : vector<8x128xf32>
    %c6_i32_114 = arith.constant 6 : i32
    %c8_i32_115 = arith.constant 8 : i32
    %362 = arith.muli %c6_i32_114, %c8_i32_115 : i32
    %363 = tpu.assume_multiple %362, 8 : i32
    %364 = arith.index_cast %363 : i32 to index
    %c0_116 = arith.constant 0 : index
    %365 = vector.load %arg12[%364, %c0_116] : memref<64x512xf32, #tpu.memory_space<vmem>>, vector<8x512xf32>
    %cst_117 = arith.constant dense<0.000000e+00> : vector<8x512xf32>
    %366 = tpu.matmul %361, %225, %cst_117 {dimension_numbers = #tpu.dot_dimension_numbers<[1], [0], [0], [1], [0, 0, 1, 1], [], []>} : vector<8x128xf32>, vector<128x512xf32>, vector<8x512xf32> -> vector<8x512xf32>
    %367 = arith.addf %365, %366 : vector<8x512xf32>
    %368 = vector.extract_strided_slice %367 {offsets = [0, 0], sizes = [8, 384], strides = [1, 1]} : vector<8x512xf32> to vector<8x384xf32>
    %369 = arith.negf %368 : vector<8x384xf32>
    %370 = math.exp %369 : vector<8x384xf32>
    %cst_118 = arith.constant 1.000000e+00 : f32
    %371 = vector.broadcast %cst_118 : f32 to vector<8x384xf32>
    %372 = arith.addf %371, %370 : vector<8x384xf32>
    %373 = arith.divf %371, %372 : vector<8x384xf32>
    %374 = vector.extract_strided_slice %373 {offsets = [0, 0], sizes = [8, 128], strides = [1, 1]} : vector<8x384xf32> to vector<8x128xf32>
    %375 = vector.extract_strided_slice %373 {offsets = [0, 128], sizes = [8, 128], strides = [1, 1]} : vector<8x384xf32> to vector<8x128xf32>
    %376 = vector.extract_strided_slice %373 {offsets = [0, 256], sizes = [8, 128], strides = [1, 1]} : vector<8x384xf32> to vector<8x128xf32>
    %377 = vector.extract_strided_slice %367 {offsets = [0, 384], sizes = [8, 128], strides = [1, 1]} : vector<8x512xf32> to vector<8x128xf32>
    %378 = math.tanh %377 : vector<8x128xf32>
    %379 = arith.mulf %375, %359 : vector<8x128xf32>
    %380 = arith.mulf %374, %378 : vector<8x128xf32>
    %381 = arith.addf %379, %380 : vector<8x128xf32>
    %382 = math.tanh %381 : vector<8x128xf32>
    %383 = arith.mulf %376, %382 : vector<8x128xf32>
    %c7_i32_119 = arith.constant 7 : i32
    %c8_i32_120 = arith.constant 8 : i32
    %384 = arith.muli %c7_i32_119, %c8_i32_120 : i32
    %385 = tpu.assume_multiple %384, 8 : i32
    %386 = arith.index_cast %385 : i32 to index
    %c0_121 = arith.constant 0 : index
    %387 = vector.load %arg12[%386, %c0_121] : memref<64x512xf32, #tpu.memory_space<vmem>>, vector<8x512xf32>
    %cst_122 = arith.constant dense<0.000000e+00> : vector<8x512xf32>
    %388 = tpu.matmul %383, %225, %cst_122 {dimension_numbers = #tpu.dot_dimension_numbers<[1], [0], [0], [1], [0, 0, 1, 1], [], []>} : vector<8x128xf32>, vector<128x512xf32>, vector<8x512xf32> -> vector<8x512xf32>
    %389 = arith.addf %387, %388 : vector<8x512xf32>
    %390 = vector.extract_strided_slice %389 {offsets = [0, 0], sizes = [8, 384], strides = [1, 1]} : vector<8x512xf32> to vector<8x384xf32>
    %391 = arith.negf %390 : vector<8x384xf32>
    %392 = math.exp %391 : vector<8x384xf32>
    %cst_123 = arith.constant 1.000000e+00 : f32
    %393 = vector.broadcast %cst_123 : f32 to vector<8x384xf32>
    %394 = arith.addf %393, %392 : vector<8x384xf32>
    %395 = arith.divf %393, %394 : vector<8x384xf32>
    %396 = vector.extract_strided_slice %395 {offsets = [0, 0], sizes = [8, 128], strides = [1, 1]} : vector<8x384xf32> to vector<8x128xf32>
    %397 = vector.extract_strided_slice %395 {offsets = [0, 128], sizes = [8, 128], strides = [1, 1]} : vector<8x384xf32> to vector<8x128xf32>
    %398 = vector.extract_strided_slice %395 {offsets = [0, 256], sizes = [8, 128], strides = [1, 1]} : vector<8x384xf32> to vector<8x128xf32>
    %399 = vector.extract_strided_slice %389 {offsets = [0, 384], sizes = [8, 128], strides = [1, 1]} : vector<8x512xf32> to vector<8x128xf32>
    %400 = math.tanh %399 : vector<8x128xf32>
    %401 = arith.mulf %397, %381 : vector<8x128xf32>
    %402 = arith.mulf %396, %400 : vector<8x128xf32>
    %403 = arith.addf %401, %402 : vector<8x128xf32>
    %404 = math.tanh %403 : vector<8x128xf32>
    %405 = arith.mulf %398, %404 : vector<8x128xf32>
    %c8_i32_124 = arith.constant 8 : i32
    %c1_125 = arith.constant 1 : index
    %c0_126 = arith.constant 0 : index
    %c0_127 = arith.constant 0 : index
    %406 = vector.load %arg9[%c1_125, %c0_126, %c0_127] : memref<2x8x128xf32, #tpu.memory_space<vmem>>, vector<1x8x128xf32>
    %407 = vector.shape_cast %406 : vector<1x8x128xf32> to vector<8x128xf32>
    %408 = vector.shape_cast %405 : vector<8x128xf32> to vector<1x8x128xf32>
    tpu.vector_store %arg9[%c1_125, %c0_126, %c0_127], %408 {strides = array<i32>} : memref<2x8x128xf32, #tpu.memory_space<vmem>>, vector<1x8x128xf32>,
    %c1_128 = arith.constant 1 : index
    %c0_129 = arith.constant 0 : index
    %c0_130 = arith.constant 0 : index
    %409 = vector.load %arg10[%c1_128, %c0_129, %c0_130] : memref<2x8x128xf32, #tpu.memory_space<vmem>>, vector<1x8x128xf32>
    %410 = vector.shape_cast %409 : vector<1x8x128xf32> to vector<8x128xf32>
    %411 = vector.shape_cast %403 : vector<8x128xf32> to vector<1x8x128xf32>
    tpu.vector_store %arg10[%c1_128, %c0_129, %c0_130], %411 {strides = array<i32>} : memref<2x8x128xf32, #tpu.memory_space<vmem>>, vector<1x8x128xf32>,
    %c0_i32_131 = arith.constant 0 : i32
    %412 = arith.cmpi eq, %arg0, %c0_i32_131 : i32
    %413 = arith.extui %412 : i1 to i32
    %c0_i32_132 = arith.constant 0 : i32
    %414 = arith.cmpi ne, %413, %c0_i32_132 : i32
    scf.if %414 {
      %c1_133 = arith.constant 1 : index
      %c0_134 = arith.constant 0 : index
      %c0_135 = arith.constant 0 : index
      %415 = vector.load %arg9[%c1_133, %c0_134, %c0_135] : memref<2x8x128xf32, #tpu.memory_space<vmem>>, vector<1x8x128xf32>
      %416 = vector.shape_cast %415 : vector<1x8x128xf32> to vector<8x128xf32>
      %c0_136 = arith.constant 0 : index
      %c0_137 = arith.constant 0 : index
      %417 = vector.load %arg6[%c0_136, %c0_137] : memref<128x128xf32, #tpu.memory_space<vmem>>, vector<128x128xf32>
      %cst_138 = arith.constant dense<0.000000e+00> : vector<8x128xf32>
      %418 = tpu.matmul %416, %417, %cst_138 {dimension_numbers = #tpu.dot_dimension_numbers<[1], [0], [0], [1], [0, 0, 1, 1], [], []>} : vector<8x128xf32>, vector<128x128xf32>, vector<8x128xf32> -> vector<8x128xf32>
      %c0_139 = arith.constant 0 : index
      %c0_140 = arith.constant 0 : index
      %419 = vector.load %arg7[%c0_139, %c0_140] : memref<1x128xf32, #tpu.memory_space<vmem>>, vector<1x128xf32>
      %420 = vector.broadcast %419 : vector<1x128xf32> to vector<8x128xf32>
      %421 = arith.addf %418, %420 : vector<8x128xf32>
      %c0_141 = arith.constant 0 : index
      %c0_142 = arith.constant 0 : index
      %422 = vector.load %arg8[%c0_141, %c0_142] : memref<8x128xf32, #tpu.memory_space<vmem>>, vector<8x128xf32>
      tpu.vector_store %arg8[%c0_141, %c0_142], %421 {strides = array<i32>} : memref<8x128xf32, #tpu.memory_space<vmem>>, vector<8x128xf32>,
    } else {
    }
    return
  }
  func.func @transform_0(%arg0: i32) -> (i32, i32) {
    %c0_i32 = arith.constant 0 : i32
    %c0_i32_0 = arith.constant 0 : i32
    return %arg0, %c0_i32 : i32, i32
  }
  func.func @transform_1(%arg0: i32) -> (i32, i32) {
    %c0_i32 = arith.constant 0 : i32
    %c0_i32_0 = arith.constant 0 : i32
    %c0_i32_1 = arith.constant 0 : i32
    return %c0_i32, %c0_i32_0 : i32, i32
  }
  func.func @transform_2(%arg0: i32) -> (i32, i32, i32) {
    %c0_i32 = arith.constant 0 : i32
    %c0_i32_0 = arith.constant 0 : i32
    %c0_i32_1 = arith.constant 0 : i32
    %c0_i32_2 = arith.constant 0 : i32
    return %c0_i32, %c0_i32_0, %c0_i32_1 : i32, i32, i32
  }
  func.func @transform_3(%arg0: i32) -> (i32, i32, i32) {
    %c0_i32 = arith.constant 0 : i32
    %c0_i32_0 = arith.constant 0 : i32
    %c0_i32_1 = arith.constant 0 : i32
    %c0_i32_2 = arith.constant 0 : i32
    return %c0_i32, %c0_i32_0, %c0_i32_1 : i32, i32, i32
  }
  func.func @transform_4(%arg0: i32) -> (i32, i32, i32) {
    %c0_i32 = arith.constant 0 : i32
    %c0_i32_0 = arith.constant 0 : i32
    %c0_i32_1 = arith.constant 0 : i32
    %c0_i32_2 = arith.constant 0 : i32
    return %c0_i32, %c0_i32_0, %c0_i32_1 : i32, i32, i32
  }
  func.func @transform_5(%arg0: i32) -> (i32, i32) {
    %c0_i32 = arith.constant 0 : i32
    %c0_i32_0 = arith.constant 0 : i32
    %c0_i32_1 = arith.constant 0 : i32
    return %c0_i32, %c0_i32_0 : i32, i32
  }
  func.func @transform_6(%arg0: i32) -> (i32, i32) {
    %c0_i32 = arith.constant 0 : i32
    %c0_i32_0 = arith.constant 0 : i32
    %c0_i32_1 = arith.constant 0 : i32
    return %c0_i32, %c0_i32_0 : i32, i32
  }
  func.func @transform_7(%arg0: i32) -> (i32, i32) {
    %c0_i32 = arith.constant 0 : i32
    %c0_i32_0 = arith.constant 0 : i32
    %c0_i32_1 = arith.constant 0 : i32
    return %c0_i32, %c0_i32_0 : i32, i32
  }
}

</mosaic_0001>

<bundles_post_ra>
// kernel: tpu_custom_call.1
= control target key start
LH: loop header
LB: loop body
LE: loop exit
PB: predicated region body
PF: predicated region fallthrough
CT: control target
= control target key end

     0   :  { %12 = vsyncpa [#allocation7], 0  ;;  %s6639_s0 = inlined_call_operand.vmem [shape: f32[64,4], index: 0, kind: input, shape index: {}]   ;;  %s6640_s1 = inlined_call_operand.vmem [shape: f32[4,512], index: 1, kind: input, shape index: {}]   ;;  %s6641_s2 = inlined_call_operand.hbm [shape: f32[1,128,512], index: 2, kind: input, shape index: {}]   ;;  %s6642_s3 = inlined_call_operand.hbm [shape: f32[2,128,512], index: 3, kind: input, shape index: {}]   ;;  %s6643_s4 = inlined_call_operand.vmem [shape: f32[2,1,512], index: 4, kind: input, shape index: {}]   ;;  %s6644_s5 = inlined_call_operand.hbm [shape: f32[128,128], index: 5, kind: input, shape index: {}]   ;;  %s6645_s6 = inlined_call_operand.vmem [shape: f32[1,128], index: 6, kind: input, shape index: {}]   ;;  %s6646_s7 = inlined_call_operand.hbm [shape: f32[8,128], index: 7, kind: output, shape index: {}]  }
   0x1   :  { %13 = vsyncpa [#allocation10], 0 }
   0x2   :  { %14 = vsyncpa [#allocation8], 0  ;;  %s5565_s24 = smov [#allocation9]   ;;  %s5566_s26 = smov [#allocation6]  }
   0x3   :  { %s36_s25 = sshll.u32 %s5565_s24, 4  ;;  %s24_s27 = sshll.u32 %s5566_s26, 4  ;;  %s37_s25 = int_to_ptr.vmem [resolvable:$true] %s36_s25  ;;  %s5616_s27 = int_to_ptr.vmem [resolvable:$true] %s24_s27 }
   0x4   :  { %s5471_s30 = scalar_lea.hbm %s6642_s3, 16384 }
   0x5   :  { %p5472_p0 = scmp.ne.s32.totalorder %s6642_s3, %s5471_s30  ;;  %p5475_p1 = scmp.lt.u32.totalorder %s5471_s30, %s6642_s3 }
   0x7   :  { %p5477_p2 = pnand %p5475_p1, %p5472_p0 }
   0x9   :  { %5480 = shalt.err (!%p5477_p2)
}
   0xa   :  { %s5481_s12 = scalar_lea.vmem %s37_s25, 16384  ;;  %p5486_p4 = scmp.lt.s32.totalorder %s37_s25, %s37_s25 }
   0xb   :  { %p5482_p3 = scmp.ne.s32.totalorder %s37_s25, %s5481_s12  ;;  %p5487_p5 = scmp.lt.s32.totalorder %s5481_s12, %s5481_s12 }
   0xd   :  { %p5488_p6 = por %p5487_p5, %p5486_p4 }
   0xf   :  { %p5489_p7 = pnand %p5488_p6, %p5482_p3 }
  0x11   :  { %5492 = shalt.err (!%p5489_p7)
}
  0x12   :  { %s5567_s13 = smov 512   ;;  %s5568_s14 = smov 32  }
  0x13   :  { %42 = dma.hbm_to_vmem [thread:$0]  %s6642_s3, 16384, %s37_s25, [#allocation10], %s5567_s13, %s5567_s13, %s5568_s14  }
  0x14   :  { %s5493_s19 = scalar_lea.hbm %s6641_s2, 8192 }
  0x15   :  { %p5494_p8 = scmp.ne.s32.totalorder %s6641_s2, %s5493_s19  ;;  %p5497_p9 = scmp.lt.u32.totalorder %s5493_s19, %s6641_s2 }
  0x17   :  { %p5499_p10 = pnand %p5497_p9, %p5494_p8 }
  0x19   :  { %5502 = shalt.err (!%p5499_p10)
}
  0x1a   :  { %s5503_s24 = scalar_lea.vmem %s5616_s27, 8192  ;;  %p5508_p12 = scmp.lt.s32.totalorder %s5616_s27, %s5616_s27 }
  0x1b   :  { %p5504_p11 = scmp.ne.s32.totalorder %s5616_s27, %s5503_s24  ;;  %p5509_p13 = scmp.lt.s32.totalorder %s5503_s24, %s5503_s24 }
  0x1d   :  { %p5510_p0 = por %p5509_p13, %p5508_p12 }
  0x1f   :  { %p5511_p1 = pnand %p5510_p0, %p5504_p11 }
  0x21   :  { %5514 = shalt.err (!%p5511_p1)
}
  0x22   :  { %30 = dma.hbm_to_vmem [thread:$0]  %s6641_s2, 8192, %s5616_s27, [#allocation7], %s5567_s13, %s5567_s13, %s5568_s14  }
  0x23   :  { %s5569_s26 = smov [#allocation11]   ;;  %s5515_s8 = scalar_lea.hbm %s6644_s5, 2048 }
  0x24   :  { %s50_s28 = sshll.u32 %s5569_s26, 4  ;;  %p5516_p2 = scmp.ne.s32.totalorder %s6644_s5, %s5515_s8  ;;  %s51_s28 = int_to_ptr.vmem [resolvable:$true] %s50_s28 }
  0x25   :  { %p5519_p3 = scmp.lt.u32.totalorder %s5515_s8, %s6644_s5 }
  0x27   :  { %p5521_p4 = pnand %p5519_p3, %p5516_p2 }
  0x29   :  { %5524 = shalt.err (!%p5521_p4)
}
  0x2a   :  { %s5525_s15 = scalar_lea.vmem %s51_s28, 2048  ;;  %p5530_p6 = scmp.lt.s32.totalorder %s51_s28, %s51_s28 }
  0x2b   :  { %p5526_p5 = scmp.ne.s32.totalorder %s51_s28, %s5525_s15  ;;  %p5531_p7 = scmp.lt.s32.totalorder %s5525_s15, %s5525_s15 }
  0x2d   :  { %p5532_p8 = por %p5531_p7, %p5530_p6 }
  0x2f   :  { %p5533_p9 = pnand %p5532_p8, %p5526_p5 }
  0x31   :  { %5536 = shalt.err (!%p5533_p9)
}
  0x32   :  { %s5570_s2 = smov 128   ;;  %s5571_s27 = smov 8  }
  0x33   :  { %56 = dma.hbm_to_vmem [thread:$0]  %s6644_s5, 2048, %s51_s28, [#allocation10], %s5570_s2, %s5570_s2, %s5571_s27  }
  0x34   :  { %5559 = dma.done.wait [#allocation7], 8192  }
  0x35   :  { %5560 = vsyncadd [#allocation7], 4294959104 }
  0x36   :  { %5561 = dma.done.wait [#allocation10], 18432  }
  0x37   :  { %5562 = vsyncadd [#allocation10], 4294948864  ;;  %v5572_v0 = vmov 0.0   ;;  %v84_v1 = vld [vmem:[%s6640_s1] sm:$0xff]  ;;  %vm137_vm0 = vcmask 1043456   ;;  %v85_v2 = vld [vmem:[%s6640_s1 + $0x8] sm:$0xff] }
  0x38   :  { %210 = vmatprep.mubr.f32.mxu0 %v5572_v0  ;;  %323 = vmatprep.mubr.f32.mxu1 %v5572_v0  ;;  %v76_v3 = vld [vmem:[%s6639_s0] sm:$0xff]  ;;  %v110_v4 = vcombine.high %v84_v1, %v84_v1  ;;  %v111_v5 = vcombine.high %v85_v2, %v85_v2  ;;  %v405_v6 = vld [vmem:[#allocation9 + $0x8] sm:$0xff]  ;;  %v407_v8 = vld [vmem:[#allocation9 + $0x18] sm:$0xff]  ;;  %vm112_vm1 = vcmask 31744   ;;  %vm5574_vm2 = vmmov 0   ;;  %s5575_s27 = smov [#allocation12]  }
  0x39   :  { %v409_v7 = vld [vmem:[#allocation9 + $0x28] sm:$0xff]  ;;  %v411_v10 = vld [vmem:[#allocation9 + $0x38] sm:$0xff]  ;;  %v404_v11 = vld [vmem:[#allocation9] sm:$0xff]  ;;  %s3823_s13 = sshll.u32 %s5575_s27, 4  ;;  %s3824_s13 = int_to_ptr.vmem [resolvable:$true] %s3823_s13 }
  0x3a   :  { %v5670_v9 = vpack.c.bf16 %v409_v7, %v405_v6  ;;  %v408_v12 = vld [vmem:[#allocation9 + $0x20] sm:$0xff]  ;;  %3840 = vmatprep.subr.msk.mxu0 %vm137_vm0, %v110_v4  ;;  %3850 = vmatprep.subr.msk.mxu1 %vm137_vm0, %v111_v5  ;;  %v5674_v13 = vpack.c.bf16 %v411_v10, %v407_v8  ;;  %v406_v15 = vld [vmem:[#allocation9 + $0x10] sm:$0xff]  ;;  %v413_v18 = vld [vmem:[#allocation9 + $0x48] sm:$0xff]  ;;  %s5537_s14 = scalar_lea.vmem %s3824_s13, 128  ;;  %p5542_p11 = scmp.lt.s32.totalorder %s3824_s13, %s3824_s13 }
  0x3b   :  { %v5676_v14 = vpack.c.bf16 %v408_v12, %v404_v11  ;;  %v410_v16 = vld [vmem:[#allocation9 + $0x30] sm:$0xff]  ;;  %3841 = vmatpush1.msk.msra.mxu0 %vm137_vm0, %v84_v1  ;;  %3851 = vmatpush1.msk.msra.mxu1 %vm137_vm0, %v85_v2  ;;  %v417_v19 = vld [vmem:[#allocation9 + $0x68] sm:$0xff]  ;;  %v415_v20 = vld [vmem:[#allocation9 + $0x58] sm:$0xff]  ;;  %p5538_p10 = scmp.ne.s32.totalorder %s3824_s13, %s5537_s14  ;;  %p5543_p12 = scmp.lt.s32.totalorder %s5537_s14, %s5537_s14 }
  0x3c   :  { %v5680_v17 = vpack.c.bf16 %v410_v16, %v406_v15  ;;  %3842 = vmatmul.mubr.msk.f32.vlgmr.msra.gmra.mrb[0].mxu0 %vm112_vm1, %v76_v3  ;;  %3852 = vmatmul.mubr.msk.f32.vlgmr.msra.gmra.mrb[0].mxu1 %vm112_vm1, %v76_v3  ;;  %v419_v21 = vld [vmem:[#allocation9 + $0x78] sm:$0xff]  ;;  %v412_v22 = vld [vmem:[#allocation9 + $0x40] sm:$0xff]  ;;  %v77_v24 = vld [vmem:[%s6639_s0 + $0x8] sm:$0xff]  ;;  %v5689_v25 = vpack.c.bf16 %v417_v19, %v413_v18 }
  0x3d   :  { %v416_v23 = vld [vmem:[#allocation9 + $0x60] sm:$0xff]  ;;  %3963 = vmatprep.subr.bf16.mxu0 %v5670_v9  ;;  %3995 = vmatprep.subr.bf16.mxu1 %v5674_v13  ;;  %v5691_v26 = vpack.c.bf16 %v419_v21, %v415_v20  ;;  %v414_v27 = vld [vmem:[#allocation9 + $0x50] sm:$0xff]  ;;  %v421_v31 = vld [vmem:[#allocation9 + $0x88] sm:$0xff]  ;;  %p5544_p13 = por %p5543_p12, %p5542_p11 }
  0x3e   :  { %v418_v28 = vld [vmem:[#allocation9 + $0x70] sm:$0xff]  ;;  %3965 = vmatpush1.bf16.msra.mxu0 %v5676_v14  ;;  %3997 = vmatpush1.bf16.msra.mxu1 %v5680_v17  ;;  %v5695_v29 = vpack.c.bf16 %v416_v23, %v412_v22  ;;  %v425_v32 = vld [vmem:[#allocation9 + $0xa8] sm:$0xff]  ;;  %v423_v33 = vld [vmem:[#allocation9 + $0x98] sm:$0xff] }
  0x3f   :  { %v5697_v30 = vpack.c.bf16 %v418_v28, %v414_v27  ;;  %216 = vmatprep.mubr.f32.mxu0 %v5572_v0  ;;  %329 = vmatprep.mubr.f32.mxu1 %v5572_v0  ;;  %v427_v34 = vld [vmem:[#allocation9 + $0xb8] sm:$0xff]  ;;  %v420_v35 = vld [vmem:[#allocation9 + $0x80] sm:$0xff]  ;;  %v422_v37 = vld [vmem:[#allocation9 + $0x90] sm:$0xff]  ;;  %v5708_v40 = vpack.c.bf16 %v425_v32, %v421_v31  ;;  %p5545_p0 = pnand %p5544_p13, %p5538_p10 }
  0x40   :  { %v424_v36 = vld [vmem:[#allocation9 + $0xa0] sm:$0xff]  ;;  %3843 = vmatmul.mubr.msk.f32.gmra.mrb[2].mxu0 %vm112_vm1, %v77_v24  ;;  %3853 = vmatmul.mubr.msk.f32.gmra.mrb[2].mxu1 %vm112_vm1, %v77_v24  ;;  %v426_v38 = vld [vmem:[#allocation9 + $0xb0] sm:$0xff]  ;;  %v5710_v41 = vpack.c.bf16 %v427_v34, %v423_v33  ;;  %v429_v42 = vld [vmem:[#allocation9 + $0xc8] sm:$0xff] }
  0x41   :  { %3967 = vmatprep.subr.bf16.mxu0 %v5689_v25  ;;  %3999 = vmatprep.subr.bf16.mxu1 %v5691_v26  ;;  %v78_v39 = vld [vmem:[%s6639_s0 + $0x10] sm:$0xff]  ;;  %v433_v43 = vld [vmem:[#allocation9 + $0xe8] sm:$0xff]  ;;  %v5714_v44 = vpack.c.bf16 %v424_v36, %v420_v35  ;;  %v5716_v45 = vpack.c.bf16 %v426_v38, %v422_v37  ;;  %v431_v46 = vld [vmem:[#allocation9 + $0xd8] sm:$0xff] }
  0x42   :  { %3969 = vmatpush1.bf16.msra.mxu0 %v5695_v29  ;;  %4001 = vmatpush1.bf16.msra.mxu1 %v5697_v30  ;;  %v435_v47 = vld [vmem:[#allocation9 + $0xf8] sm:$0xff]  ;;  %v428_v48 = vld [vmem:[#allocation9 + $0xc0] sm:$0xff]  ;;  %v430_v50 = vld [vmem:[#allocation9 + $0xd0] sm:$0xff]  ;;  %v5727_v53 = vpack.c.bf16 %v433_v43, %v429_v42 }
  0x43   :  { %222 = vmatprep.mubr.f32.mxu0 %v5572_v0  ;;  %335 = vmatprep.mubr.f32.mxu1 %v5572_v0  ;;  %v432_v49 = vld [vmem:[#allocation9 + $0xe0] sm:$0xff]  ;;  %v434_v51 = vld [vmem:[#allocation9 + $0xf0] sm:$0xff]  ;;  %v79_v52 = vld [vmem:[%s6639_s0 + $0x18] sm:$0xff]  ;;  %v5729_v54 = vpack.c.bf16 %v435_v47, %v431_v46 }
  0x44   :  { %3844 = vmatmul.mubr.msk.f32.gmra.mrb[4].mxu0 %vm112_vm1, %v78_v39  ;;  %3854 = vmatmul.mubr.msk.f32.gmra.mrb[4].mxu1 %vm112_vm1, %v78_v39  ;;  %v437_v55 = vld [vmem:[#allocation9 + $0x108] sm:$0xff]  ;;  %v5733_v57 = vpack.c.bf16 %v432_v49, %v428_v48  ;;  %v5735_v58 = vpack.c.bf16 %v434_v51, %v430_v50  ;;  %v439_v59 = vld [vmem:[#allocation9 + $0x118] sm:$0xff]  ;;  %v436_v61 = vld [vmem:[#allocation9 + $0x100] sm:$0xff] }
  0x45   :  { %3971 = vmatprep.subr.bf16.mxu0 %v5708_v40  ;;  %4003 = vmatprep.subr.bf16.mxu1 %v5710_v41  ;;  %v441_v56 = vld [vmem:[#allocation9 + $0x128] sm:$0xff]  ;;  %v443_v60 = vld [vmem:[#allocation9 + $0x138] sm:$0xff]  ;;  %v440_v62 = vld [vmem:[#allocation9 + $0x120] sm:$0xff] }
  0x46   :  { %3973 = vmatpush1.bf16.msra.mxu0 %v5714_v44  ;;  %4005 = vmatpush1.bf16.msra.mxu1 %v5716_v45  ;;  %v438_v63 = vld [vmem:[#allocation9 + $0x110] sm:$0xff]  ;;  %v80_v2 = vld [vmem:[%s6639_s0 + $0x20] sm:$0xff]  ;;  %v5746_v3 = vpack.c.bf16 %v441_v56, %v437_v55  ;;  %v5748_v4 = vpack.c.bf16 %v443_v60, %v439_v59  ;;  %v445_v5 = vld [vmem:[#allocation9 + $0x148] sm:$0xff]  ;;  %v5752_v7 = vpack.c.bf16 %v440_v62, %v436_v61  ;;  %v88_v62 = vlaneseq }
  0x47   :  { %228 = vmatprep.mubr.f32.mxu0 %v5572_v0  ;;  %341 = vmatprep.mubr.f32.mxu1 %v5572_v0  ;;  %v442_v1 = vld [vmem:[#allocation9 + $0x130] sm:$0xff]  ;;  %v449_v6 = vld [vmem:[#allocation9 + $0x168] sm:$0xff]  ;;  %v447_v10 = vld [vmem:[#allocation9 + $0x158] sm:$0xff] }
  0x48   :  { %3845 = vmatmul.mubr.msk.f32.gmra.mrb[6].mxu0 %vm112_vm1, %v79_v52  ;;  %3855 = vmatmul.mubr.msk.f32.gmra.mrb[6].mxu1 %vm112_vm1, %v79_v52  ;;  %v5754_v8 = vpack.c.bf16 %v442_v1, %v438_v63  ;;  %v451_v11 = vld [vmem:[#allocation9 + $0x178] sm:$0xff]  ;;  %v444_v12 = vld [vmem:[#allocation9 + $0x140] sm:$0xff]  ;;  %v446_v16 = vld [vmem:[#allocation9 + $0x150] sm:$0xff]  ;;  %v5765_v20 = vpack.c.bf16 %v449_v6, %v445_v5  ;;  %v5861_v63 = vshrl.u32 %v88_v62, 7 }
  0x49   :  { %3975 = vmatprep.subr.bf16.mxu0 %v5727_v53  ;;  %4007 = vmatprep.subr.bf16.mxu1 %v5729_v54  ;;  %v448_v15 = vld [vmem:[#allocation9 + $0x160] sm:$0xff]  ;;  %v450_v18 = vld [vmem:[#allocation9 + $0x170] sm:$0xff]  ;;  %v81_v19 = vld [vmem:[%s6639_s0 + $0x28] sm:$0xff]  ;;  %v5767_v21 = vpack.c.bf16 %v451_v11, %v447_v10 }
  0x4a   :  { %3977 = vmatpush1.bf16.msra.mxu0 %v5733_v57  ;;  %4009 = vmatpush1.bf16.msra.mxu1 %v5735_v58  ;;  %v453_v22 = vld [vmem:[#allocation9 + $0x188] sm:$0xff]  ;;  %v5771_v24 = vpack.c.bf16 %v448_v15, %v444_v12  ;;  %v5773_v27 = vpack.c.bf16 %v450_v18, %v446_v16  ;;  %v455_v28 = vld [vmem:[#allocation9 + $0x198] sm:$0xff]  ;;  %v452_v32 = vld [vmem:[#allocation9 + $0x180] sm:$0xff]  ;;  %v90_v1 = vsub.s32 0, %v5861_v63  ;;  %v94_v5 = vsub.s32 1, %v5861_v63 }
  0x4b   :  { %234 = vmatprep.mubr.f32.mxu0 %v5572_v0  ;;  %347 = vmatprep.mubr.f32.mxu1 %v5572_v0  ;;  %v457_v23 = vld [vmem:[#allocation9 + $0x1a8] sm:$0xff]  ;;  %v459_v31 = vld [vmem:[#allocation9 + $0x1b8] sm:$0xff]  ;;  %v456_v33 = vld [vmem:[#allocation9 + $0x1a0] sm:$0xff]  ;;  %v98_v16 = vsub.s32 2, %v5861_v63 }
  0x4c   :  { %3846 = vmatmul.mubr.msk.f32.gmra.mrb[8].mxu0 %vm112_vm1, %v80_v2  ;;  %3856 = vmatmul.mubr.msk.f32.gmra.mrb[8].mxu1 %vm112_vm1, %v80_v2  ;;  %v454_v34 = vld [vmem:[#allocation9 + $0x190] sm:$0xff]  ;;  %v5784_v37 = vpack.c.bf16 %v457_v23, %v453_v22  ;;  %v5786_v38 = vpack.c.bf16 %v459_v31, %v455_v28  ;;  %v461_v39 = vld [vmem:[#allocation9 + $0x1c8] sm:$0xff]  ;;  %v5790_v43 = vpack.c.bf16 %v456_v33, %v452_v32  ;;  %v463_v47 = vld [vmem:[#allocation9 + $0x1d8] sm:$0xff]  ;;  %v102_v31 = vsub.s32 3, %v5861_v63 }
  0x4d   :  { %3979 = vmatprep.subr.bf16.mxu0 %v5746_v3  ;;  %4011 = vmatprep.subr.bf16.mxu1 %v5748_v4  ;;  %v458_v35 = vld [vmem:[#allocation9 + $0x1b0] sm:$0xff]  ;;  %v465_v42 = vld [vmem:[#allocation9 + $0x1e8] sm:$0xff]  ;;  %v467_v48 = vld [vmem:[#allocation9 + $0x1f8] sm:$0xff] }
  0x4e   :  { %3981 = vmatpush1.bf16.msra.mxu0 %v5752_v7  ;;  %4013 = vmatpush1.bf16.msra.mxu1 %v5754_v8  ;;  %v82_v36 = vld [vmem:[%s6639_s0 + $0x30] sm:$0xff]  ;;  %v5792_v46 = vpack.c.bf16 %v458_v35, %v454_v34  ;;  %v460_v49 = vld [vmem:[#allocation9 + $0x1c0] sm:$0xff]  ;;  %v83_v55 = vld [vmem:[%s6639_s0 + $0x38] sm:$0xff]  ;;  %v5803_v56 = vpack.c.bf16 %v465_v42, %v461_v39  ;;  %v5805_v59 = vpack.c.bf16 %v467_v48, %v463_v47 }
  0x4f   :  { %240 = vmatprep.mubr.f32.mxu0 %v5572_v0  ;;  %353 = vmatprep.mubr.f32.mxu1 %v5572_v0  ;;  %v464_v50 = vld [vmem:[#allocation9 + $0x1e0] sm:$0xff]  ;;  %v462_v51 = vld [vmem:[#allocation9 + $0x1d0] sm:$0xff] }
  0x50   :  { %3847 = vmatmul.mubr.msk.f32.gmra.mrb[10].mxu0 %vm112_vm1, %v81_v19  ;;  %3857 = vmatmul.mubr.msk.f32.gmra.mrb[10].mxu1 %vm112_vm1, %v81_v19  ;;  %v466_v52 = vld [vmem:[#allocation9 + $0x1f0] sm:$0xff]  ;;  %v5809_v60 = vpack.c.bf16 %v464_v50, %v460_v49  ;;  %v86_v2 = vld [vmem:[%s6643_s4] sm:$0xf] }
  0x51   :  { %3983 = vmatprep.subr.bf16.mxu0 %v5765_v20  ;;  %4015 = vmatprep.subr.bf16.mxu1 %v5767_v21  ;;  %v5811_v61 = vpack.c.bf16 %v466_v52, %v462_v51  ;;  %v5870_v6 = vrot.slane %v86_v2, %v90_v1  ;;  %v5874_v10 = vrot.slane %v86_v2, %v94_v5 }
  0x52   :  { %3985 = vmatpush1.bf16.msra.mxu0 %v5771_v24  ;;  %4017 = vmatpush1.bf16.msra.mxu1 %v5773_v27  ;;  %v5882_v32 = vrot.slane %v86_v2, %v98_v16  ;;  %v5886_v33 = vrot.slane %v86_v2, %v102_v31 }
  0x53   :  { %246 = vmatprep.mubr.f32.mxu0 %v5572_v0  ;;  %359 = vmatprep.mubr.f32.mxu1 %v5572_v0 }
  0x54   :  { %3848 = vmatmul.mubr.msk.f32.gmra.mrb[12].mxu0 %vm112_vm1, %v82_v36  ;;  %3858 = vmatmul.mubr.msk.f32.gmra.mrb[12].mxu1 %vm112_vm1, %v82_v36 }
  0x55   :  { %3987 = vmatprep.subr.bf16.mxu0 %v5784_v37  ;;  %4019 = vmatprep.subr.bf16.mxu1 %v5786_v38 }
  0x56   :  { %3989 = vmatpush1.bf16.msra.mxu0 %v5790_v43  ;;  %4021 = vmatpush1.bf16.msra.mxu1 %v5792_v46 }
  0x57   :  { %252 = vmatprep.mubr.f32.mxu0 %v5572_v0  ;;  %365 = vmatprep.mubr.f32.mxu1 %v5572_v0 }
  0x58   :  { %3849 = vmatmul.mubr.msk.f32.gmra.mrb[14].mxu0 %vm112_vm1, %v83_v55  ;;  %3859 = vmatmul.mubr.msk.f32.gmra.mrb[14].mxu1 %vm112_vm1, %v83_v55 }
  0x59   :  { %3991 = vmatprep.subr.bf16.mxu0 %v5803_v56  ;;  %4023 = vmatprep.subr.bf16.mxu1 %v5805_v59 }
  0x5a   :  { %3993 = vmatpush1.bf16.msra.mxu0 %v5809_v60  ;;  %4025 = vmatpush1.bf16.msra.mxu1 %v5811_v61 }
  0x5b   :  { %541 = vmatprep.mubr.f32.mxu0 %v5572_v0  ;;  %612 = vmatprep.mubr.f32.mxu1 %v5572_v0 }
  0x5c   :  { %4027 = vmatprep.subr.bf16.mxu0 %v5670_v9  ;;  %4059 = vmatprep.subr.bf16.mxu1 %v5674_v13 }
  0x5d   :  { %542 = vmatmul.mubr.f32.vlgmr.msra.gmra.mrb[0].mxu0 %v5572_v0  ;;  %613 = vmatmul.mubr.f32.vlgmr.msra.gmra.mrb[0].mxu1 %v5572_v0 }
  0x5e   :  { %4029 = vmatpush1.bf16.msra.mxu0 %v5676_v14  ;;  %4061 = vmatpush1.bf16.msra.mxu1 %v5680_v17 }
  0x5f   :  { %4031 = vmatprep.subr.bf16.mxu0 %v5689_v25  ;;  %4063 = vmatprep.subr.bf16.mxu1 %v5691_v26 }
  0x60   :  { %719 = vmatprep.mubr.f32.mxu0 %v5572_v0  ;;  %790 = vmatprep.mubr.f32.mxu1 %v5572_v0 }
  0x62   :  { %4033 = vmatpush1.bf16.msra.mxu0 %v5695_v29  ;;  %4065 = vmatpush1.bf16.msra.mxu1 %v5697_v30 }
  0x63   :  { %4035 = vmatprep.subr.bf16.mxu0 %v5708_v40  ;;  %4067 = vmatprep.subr.bf16.mxu1 %v5710_v41 }
  0x66   :  { %4037 = vmatpush1.bf16.msra.mxu0 %v5714_v44  ;;  %4069 = vmatpush1.bf16.msra.mxu1 %v5716_v45 }
  0x67   :  { %4039 = vmatprep.subr.bf16.mxu0 %v5727_v53  ;;  %4071 = vmatprep.subr.bf16.mxu1 %v5729_v54 }
  0x6a   :  { %4041 = vmatpush1.bf16.msra.mxu0 %v5733_v57  ;;  %4073 = vmatpush1.bf16.msra.mxu1 %v5735_v58 }
  0x6b   :  { %4043 = vmatprep.subr.bf16.mxu0 %v5746_v3  ;;  %4075 = vmatprep.subr.bf16.mxu1 %v5748_v4 }
  0x6e   :  { %4045 = vmatpush1.bf16.msra.mxu0 %v5752_v7  ;;  %4077 = vmatpush1.bf16.msra.mxu1 %v5754_v8 }
  0x6f   :  { %4047 = vmatprep.subr.bf16.mxu0 %v5765_v20  ;;  %4079 = vmatprep.subr.bf16.mxu1 %v5767_v21 }
  0x72   :  { %4049 = vmatpush1.bf16.msra.mxu0 %v5771_v24  ;;  %4081 = vmatpush1.bf16.msra.mxu1 %v5773_v27 }
  0x73   :  { %4051 = vmatprep.subr.bf16.mxu0 %v5784_v37  ;;  %4083 = vmatprep.subr.bf16.mxu1 %v5786_v38 }
  0x76   :  { %4053 = vmatpush1.bf16.msra.mxu0 %v5790_v43  ;;  %4085 = vmatpush1.bf16.msra.mxu1 %v5792_v46 }
  0x77   :  { %4055 = vmatprep.subr.bf16.mxu0 %v5803_v56  ;;  %4087 = vmatprep.subr.bf16.mxu1 %v5805_v59 }
  0x7a   :  { %4057 = vmatpush1.bf16.msra.mxu0 %v5809_v60  ;;  %4089 = vmatpush1.bf16.msra.mxu1 %v5811_v61 }
  0x7b   :  { %4091 = vmatprep.subr.bf16.mxu0 %v5670_v9  ;;  %4123 = vmatprep.subr.bf16.mxu1 %v5674_v13 }
 0x130   :  { %v543_v11 = vpop.f32.mrb[0].mxu0  ;;  %v614_v12 = vpop.f32.mrb[0].mxu1 }
 0x131   :  { %v5074_v15 = vadd.f32 %v543_v11, %v5870_v6  ;;  %v545_v18 = vpop.f32.mrb[1].mxu0  ;;  %v616_v19 = vpop.f32.mrb[1].mxu1  ;;  %v5090_v34 = vadd.f32 %v614_v12, %v5882_v32 }
 0x132   :  { %v5075_v22 = vadd.f32 %v545_v18, %v5874_v10  ;;  %v5091_v35 = vadd.f32 %v616_v19, %v5886_v33 }
 0x133   :  { %v3860_v23 = vmul.f32 -1.442695, %v5074_v15  ;;  %v3862_v36 = vmul.f32 -1.442695, %v5090_v34 }
 0x134   :  { %v3861_v28 = vmul.f32 -1.442695, %v5075_v22 }
 0x135   :  { %5215 = vpow2.f32 %v3860_v23 }
 0x136   :  { %5217 = vpow2.f32 %v3861_v28 }
 0x137   :  { %5219 = vtanh.f32 %v5091_v35 }
 0x138   :  { %5221 = vpow2.f32 %v3862_v36 }
 0x13f   :  { %v5216_v39 = vpop.eup %5215 }
 0x140   :  { %v632_v42 = vadd.f32 1.0, %v5216_v39  ;;  %v5218_v47 = vpop.eup %5217 }
 0x141   :  { %v633_v48 = vadd.f32 1.0, %v5218_v47  ;;  %v5220_v49 = vpop.eup %5219 }
 0x142   :  { %5223 = vrcp.f32 %v632_v42  ;;  %v5222_v50 = vpop.eup %5221 }
 0x143   :  { %5225 = vrcp.f32 %v633_v48  ;;  %v634_v62 = vadd.f32 1.0, %v5222_v50 }
 0x145   :  { %5227 = vrcp.f32 %v634_v62 }
 0x14c   :  { %v5224_v51 = vpop.eup %5223 }
 0x14d   :  { %v643_v52 = vmul.f32 %v5224_v51, %v5220_v49  ;;  %v5226_v55 = vpop.eup %5225 }
 0x14e   :  { %v642_v2 = vmul.f32 0.0, %v5226_v55 }
 0x14f   :  { %v5228_v12 = vpop.eup %5227 }
 0x150   :  { %v5890_v11 = vadd.f32 %v643_v52, %v642_v2 }
 0x152   :  { %5229 = vtanh.f32 %v5890_v11 }
 0x15c   :  { %v5230_v15 = vpop.eup %5229 }
 0x15d   :  { %v5893_v18 = vmul.f32 %v5230_v15, %v5228_v12 }
 0x15f   :  { %720 = vmatmul.mubr.f32.vlgmr.msra.gmra.mrb[2].mxu0 %v5893_v18  ;;  %791 = vmatmul.mubr.f32.vlgmr.msra.gmra.mrb[2].mxu1 %v5893_v18 }
 0x160   :  { %4093 = vmatpush1.bf16.msra.mxu0 %v5676_v14  ;;  %4125 = vmatpush1.bf16.msra.mxu1 %v5680_v17 }
 0x161   :  { %4095 = vmatprep.subr.bf16.mxu0 %v5689_v25  ;;  %4127 = vmatprep.subr.bf16.mxu1 %v5691_v26 }
 0x162   :  { %898 = vmatprep.mubr.f32.mxu0 %v5572_v0  ;;  %969 = vmatprep.mubr.f32.mxu1 %v5572_v0 }
 0x164   :  { %4097 = vmatpush1.bf16.msra.mxu0 %v5695_v29  ;;  %4129 = vmatpush1.bf16.msra.mxu1 %v5697_v30 }
 0x165   :  { %4099 = vmatprep.subr.bf16.mxu0 %v5708_v40  ;;  %4131 = vmatprep.subr.bf16.mxu1 %v5710_v41 }
 0x168   :  { %4101 = vmatpush1.bf16.msra.mxu0 %v5714_v44  ;;  %4133 = vmatpush1.bf16.msra.mxu1 %v5716_v45 }
 0x169   :  { %4103 = vmatprep.subr.bf16.mxu0 %v5727_v53  ;;  %4135 = vmatprep.subr.bf16.mxu1 %v5729_v54 }
 0x16c   :  { %4105 = vmatpush1.bf16.msra.mxu0 %v5733_v57  ;;  %4137 = vmatpush1.bf16.msra.mxu1 %v5735_v58 }
 0x16d   :  { %4107 = vmatprep.subr.bf16.mxu0 %v5746_v3  ;;  %4139 = vmatprep.subr.bf16.mxu1 %v5748_v4 }
 0x170   :  { %4109 = vmatpush1.bf16.msra.mxu0 %v5752_v7  ;;  %4141 = vmatpush1.bf16.msra.mxu1 %v5754_v8 }
 0x171   :  { %4111 = vmatprep.subr.bf16.mxu0 %v5765_v20  ;;  %4143 = vmatprep.subr.bf16.mxu1 %v5767_v21 }
 0x174   :  { %4113 = vmatpush1.bf16.msra.mxu0 %v5771_v24  ;;  %4145 = vmatpush1.bf16.msra.mxu1 %v5773_v27 }
 0x175   :  { %4115 = vmatprep.subr.bf16.mxu0 %v5784_v37  ;;  %4147 = vmatprep.subr.bf16.mxu1 %v5786_v38 }
 0x178   :  { %4117 = vmatpush1.bf16.msra.mxu0 %v5790_v43  ;;  %4149 = vmatpush1.bf16.msra.mxu1 %v5792_v46 }
 0x179   :  { %4119 = vmatprep.subr.bf16.mxu0 %v5803_v56  ;;  %4151 = vmatprep.subr.bf16.mxu1 %v5805_v59 }
 0x17c   :  { %4121 = vmatpush1.bf16.msra.mxu0 %v5809_v60  ;;  %4153 = vmatpush1.bf16.msra.mxu1 %v5811_v61 }
 0x17d   :  { %4155 = vmatprep.subr.bf16.mxu0 %v5670_v9  ;;  %4187 = vmatprep.subr.bf16.mxu1 %v5674_v13 }
 0x232   :  { %v721_v19 = vpop.f32.mrb[2].mxu0  ;;  %v792_v22 = vpop.f32.mrb[2].mxu1 }
 0x233   :  { %v5076_v23 = vadd.f32 %v721_v19, %v5870_v6  ;;  %v723_v28 = vpop.f32.mrb[3].mxu0  ;;  %v794_v34 = vpop.f32.mrb[3].mxu1  ;;  %v5092_v42 = vadd.f32 %v792_v22, %v5882_v32 }
 0x234   :  { %v5077_v35 = vadd.f32 %v723_v28, %v5874_v10  ;;  %v5093_v47 = vadd.f32 %v794_v34, %v5886_v33 }
 0x235   :  { %v3863_v36 = vmul.f32 -1.442695, %v5076_v23  ;;  %v3865_v48 = vmul.f32 -1.442695, %v5092_v42 }
 0x236   :  { %v3864_v39 = vmul.f32 -1.442695, %v5077_v35 }
 0x237   :  { %5231 = vpow2.f32 %v3863_v36 }
 0x238   :  { %5233 = vpow2.f32 %v3864_v39 }
 0x239   :  { %5235 = vtanh.f32 %v5093_v47 }
 0x23a   :  { %5237 = vpow2.f32 %v3865_v48 }
 0x241   :  { %v5232_v49 = vpop.eup %5231 }
 0x242   :  { %v810_v50 = vadd.f32 1.0, %v5232_v49  ;;  %v5234_v51 = vpop.eup %5233 }
 0x243   :  { %v811_v52 = vadd.f32 1.0, %v5234_v51  ;;  %v5236_v55 = vpop.eup %5235 }
 0x244   :  { %5239 = vrcp.f32 %v810_v50  ;;  %v5238_v62 = vpop.eup %5237 }
 0x245   :  { %5241 = vrcp.f32 %v811_v52  ;;  %v812_v19 = vadd.f32 1.0, %v5238_v62 }
 0x247   :  { %5243 = vrcp.f32 %v812_v19 }
 0x24e   :  { %v5240_v2 = vpop.eup %5239 }
 0x24f   :  { %v821_v12 = vmul.f32 %v5240_v2, %v5236_v55  ;;  %v5242_v15 = vpop.eup %5241 }
 0x250   :  { %v820_v23 = vmul.f32 %v5242_v15, %v5890_v11 }
 0x251   :  { %v5244_v28 = vpop.eup %5243 }
 0x252   :  { %v5936_v22 = vadd.f32 %v821_v12, %v820_v23 }
 0x254   :  { %5245 = vtanh.f32 %v5936_v22 }
 0x25e   :  { %v5246_v34 = vpop.eup %5245 }
 0x25f   :  { %v5939_v35 = vmul.f32 %v5246_v34, %v5244_v28 }
 0x261   :  { %899 = vmatmul.mubr.f32.vlgmr.msra.gmra.mrb[4].mxu0 %v5939_v35  ;;  %970 = vmatmul.mubr.f32.vlgmr.msra.gmra.mrb[4].mxu1 %v5939_v35 }
 0x262   :  { %4157 = vmatpush1.bf16.msra.mxu0 %v5676_v14  ;;  %4189 = vmatpush1.bf16.msra.mxu1 %v5680_v17 }
 0x263   :  { %4159 = vmatprep.subr.bf16.mxu0 %v5689_v25  ;;  %4191 = vmatprep.subr.bf16.mxu1 %v5691_v26 }
 0x264   :  { %1077 = vmatprep.mubr.f32.mxu0 %v5572_v0  ;;  %1148 = vmatprep.mubr.f32.mxu1 %v5572_v0 }
 0x266   :  { %4161 = vmatpush1.bf16.msra.mxu0 %v5695_v29  ;;  %4193 = vmatpush1.bf16.msra.mxu1 %v5697_v30 }
 0x267   :  { %4163 = vmatprep.subr.bf16.mxu0 %v5708_v40  ;;  %4195 = vmatprep.subr.bf16.mxu1 %v5710_v41 }
 0x26a   :  { %4165 = vmatpush1.bf16.msra.mxu0 %v5714_v44  ;;  %4197 = vmatpush1.bf16.msra.mxu1 %v5716_v45 }
 0x26b   :  { %4167 = vmatprep.subr.bf16.mxu0 %v5727_v53  ;;  %4199 = vmatprep.subr.bf16.mxu1 %v5729_v54 }
 0x26e   :  { %4169 = vmatpush1.bf16.msra.mxu0 %v5733_v57  ;;  %4201 = vmatpush1.bf16.msra.mxu1 %v5735_v58 }
 0x26f   :  { %4171 = vmatprep.subr.bf16.mxu0 %v5746_v3  ;;  %4203 = vmatprep.subr.bf16.mxu1 %v5748_v4 }
 0x272   :  { %4173 = vmatpush1.bf16.msra.mxu0 %v5752_v7  ;;  %4205 = vmatpush1.bf16.msra.mxu1 %v5754_v8 }
 0x273   :  { %4175 = vmatprep.subr.bf16.mxu0 %v5765_v20  ;;  %4207 = vmatprep.subr.bf16.mxu1 %v5767_v21 }
 0x276   :  { %4177 = vmatpush1.bf16.msra.mxu0 %v5771_v24  ;;  %4209 = vmatpush1.bf16.msra.mxu1 %v5773_v27 }
 0x277   :  { %4179 = vmatprep.subr.bf16.mxu0 %v5784_v37  ;;  %4211 = vmatprep.subr.bf16.mxu1 %v5786_v38 }
 0x27a   :  { %4181 = vmatpush1.bf16.msra.mxu0 %v5790_v43  ;;  %4213 = vmatpush1.bf16.msra.mxu1 %v5792_v46 }
 0x27b   :  { %4183 = vmatprep.subr.bf16.mxu0 %v5803_v56  ;;  %4215 = vmatprep.subr.bf16.mxu1 %v5805_v59 }
 0x27e   :  { %4185 = vmatpush1.bf16.msra.mxu0 %v5809_v60  ;;  %4217 = vmatpush1.bf16.msra.mxu1 %v5811_v61 }
 0x27f   :  { %4219 = vmatprep.subr.bf16.mxu0 %v5670_v9  ;;  %4251 = vmatprep.subr.bf16.mxu1 %v5674_v13 }
 0x334   :  { %v900_v11 = vpop.f32.mrb[4].mxu0  ;;  %v971_v36 = vpop.f32.mrb[4].mxu1 }
 0x335   :  { %v5078_v39 = vadd.f32 %v900_v11, %v5870_v6  ;;  %v902_v42 = vpop.f32.mrb[5].mxu0  ;;  %v973_v47 = vpop.f32.mrb[5].mxu1  ;;  %v5094_v51 = vadd.f32 %v971_v36, %v5882_v32 }
 0x336   :  { %v5079_v48 = vadd.f32 %v902_v42, %v5874_v10  ;;  %v5095_v52 = vadd.f32 %v973_v47, %v5886_v33 }
 0x337   :  { %v3866_v49 = vmul.f32 -1.442695, %v5078_v39  ;;  %v3868_v55 = vmul.f32 -1.442695, %v5094_v51 }
 0x338   :  { %v3867_v50 = vmul.f32 -1.442695, %v5079_v48 }
 0x339   :  { %5247 = vpow2.f32 %v3866_v49 }
 0x33a   :  { %5249 = vpow2.f32 %v3867_v50 }
 0x33b   :  { %5251 = vtanh.f32 %v5095_v52 }
 0x33c   :  { %5253 = vpow2.f32 %v3868_v55 }
 0x343   :  { %v5248_v62 = vpop.eup %5247 }
 0x344   :  { %v989_v2 = vadd.f32 1.0, %v5248_v62  ;;  %v5250_v12 = vpop.eup %5249 }
 0x345   :  { %v990_v15 = vadd.f32 1.0, %v5250_v12  ;;  %v5252_v19 = vpop.eup %5251 }
 0x346   :  { %5255 = vrcp.f32 %v989_v2  ;;  %v5254_v23 = vpop.eup %5253 }
 0x347   :  { %5257 = vrcp.f32 %v990_v15  ;;  %v991_v39 = vadd.f32 1.0, %v5254_v23 }
 0x349   :  { %5259 = vrcp.f32 %v991_v39 }
 0x350   :  { %v5256_v28 = vpop.eup %5255 }
 0x351   :  { %v1000_v34 = vmul.f32 %v5256_v28, %v5252_v19  ;;  %v5258_v11 = vpop.eup %5257 }
 0x352   :  { %v999_v42 = vmul.f32 %v5258_v11, %v5936_v22 }
 0x353   :  { %v5260_v47 = vpop.eup %5259 }
 0x354   :  { %v5982_v36 = vadd.f32 %v1000_v34, %v999_v42 }
 0x356   :  { %5261 = vtanh.f32 %v5982_v36 }
 0x360   :  { %v5262_v48 = vpop.eup %5261 }
 0x361   :  { %v5985_v49 = vmul.f32 %v5262_v48, %v5260_v47 }
 0x363   :  { %1078 = vmatmul.mubr.f32.vlgmr.msra.gmra.mrb[6].mxu0 %v5985_v49  ;;  %1149 = vmatmul.mubr.f32.vlgmr.msra.gmra.mrb[6].mxu1 %v5985_v49 }
 0x364   :  { %4221 = vmatpush1.bf16.msra.mxu0 %v5676_v14  ;;  %4253 = vmatpush1.bf16.msra.mxu1 %v5680_v17 }
 0x365   :  { %4223 = vmatprep.subr.bf16.mxu0 %v5689_v25  ;;  %4255 = vmatprep.subr.bf16.mxu1 %v5691_v26 }
 0x366   :  { %1256 = vmatprep.mubr.f32.mxu0 %v5572_v0  ;;  %1327 = vmatprep.mubr.f32.mxu1 %v5572_v0 }
 0x368   :  { %4225 = vmatpush1.bf16.msra.mxu0 %v5695_v29  ;;  %4257 = vmatpush1.bf16.msra.mxu1 %v5697_v30 }
 0x369   :  { %4227 = vmatprep.subr.bf16.mxu0 %v5708_v40  ;;  %4259 = vmatprep.subr.bf16.mxu1 %v5710_v41 }
 0x36c   :  { %4229 = vmatpush1.bf16.msra.mxu0 %v5714_v44  ;;  %4261 = vmatpush1.bf16.msra.mxu1 %v5716_v45 }
 0x36d   :  { %4231 = vmatprep.subr.bf16.mxu0 %v5727_v53  ;;  %4263 = vmatprep.subr.bf16.mxu1 %v5729_v54 }
 0x370   :  { %4233 = vmatpush1.bf16.msra.mxu0 %v5733_v57  ;;  %4265 = vmatpush1.bf16.msra.mxu1 %v5735_v58 }
 0x371   :  { %4235 = vmatprep.subr.bf16.mxu0 %v5746_v3  ;;  %4267 = vmatprep.subr.bf16.mxu1 %v5748_v4 }
 0x374   :  { %4237 = vmatpush1.bf16.msra.mxu0 %v5752_v7  ;;  %4269 = vmatpush1.bf16.msra.mxu1 %v5754_v8 }
 0x375   :  { %4239 = vmatprep.subr.bf16.mxu0 %v5765_v20  ;;  %4271 = vmatprep.subr.bf16.mxu1 %v5767_v21 }
 0x378   :  { %4241 = vmatpush1.bf16.msra.mxu0 %v5771_v24  ;;  %4273 = vmatpush1.bf16.msra.mxu1 %v5773_v27 }
 0x379   :  { %4243 = vmatprep.subr.bf16.mxu0 %v5784_v37  ;;  %4275 = vmatprep.subr.bf16.mxu1 %v5786_v38 }
 0x37c   :  { %4245 = vmatpush1.bf16.msra.mxu0 %v5790_v43  ;;  %4277 = vmatpush1.bf16.msra.mxu1 %v5792_v46 }
 0x37d   :  { %4247 = vmatprep.subr.bf16.mxu0 %v5803_v56  ;;  %4279 = vmatprep.subr.bf16.mxu1 %v5805_v59 }
 0x380   :  { %4249 = vmatpush1.bf16.msra.mxu0 %v5809_v60  ;;  %4281 = vmatpush1.bf16.msra.mxu1 %v5811_v61 }
 0x381   :  { %4283 = vmatprep.subr.bf16.mxu0 %v5670_v9  ;;  %4315 = vmatprep.subr.bf16.mxu1 %v5674_v13 }
 0x436   :  { %v1079_v22 = vpop.f32.mrb[6].mxu0  ;;  %v1150_v50 = vpop.f32.mrb[6].mxu1 }
 0x437   :  { %v5080_v51 = vadd.f32 %v1079_v22, %v5870_v6  ;;  %v1081_v52 = vpop.f32.mrb[7].mxu0  ;;  %v1152_v55 = vpop.f32.mrb[7].mxu1  ;;  %v5096_v15 = vadd.f32 %v1150_v50, %v5882_v32 }
 0x438   :  { %v5081_v62 = vadd.f32 %v1081_v52, %v5874_v10  ;;  %v5097_v19 = vadd.f32 %v1152_v55, %v5886_v33 }
 0x439   :  { %v3869_v2 = vmul.f32 -1.442695, %v5080_v51  ;;  %v3871_v23 = vmul.f32 -1.442695, %v5096_v15 }
 0x43a   :  { %v3870_v12 = vmul.f32 -1.442695, %v5081_v62 }
 0x43b   :  { %5263 = vpow2.f32 %v3869_v2 }
 0x43c   :  { %5265 = vpow2.f32 %v3870_v12 }
 0x43d   :  { %5267 = vtanh.f32 %v5097_v19 }
 0x43e   :  { %5269 = vpow2.f32 %v3871_v23 }
 0x445   :  { %v5264_v28 = vpop.eup %5263 }
 0x446   :  { %v1168_v34 = vadd.f32 1.0, %v5264_v28  ;;  %v5266_v11 = vpop.eup %5265 }
 0x447   :  { %v1169_v39 = vadd.f32 1.0, %v5266_v11  ;;  %v5268_v42 = vpop.eup %5267 }
 0x448   :  { %5271 = vrcp.f32 %v1168_v34  ;;  %v5270_v47 = vpop.eup %5269 }
 0x449   :  { %5273 = vrcp.f32 %v1169_v39  ;;  %v1170_v52 = vadd.f32 1.0, %v5270_v47 }
 0x44b   :  { %5275 = vrcp.f32 %v1170_v52 }
 0x452   :  { %v5272_v48 = vpop.eup %5271 }
 0x453   :  { %v1179_v22 = vmul.f32 %v5272_v48, %v5268_v42  ;;  %v5274_v51 = vpop.eup %5273 }
 0x454   :  { %v1178_v62 = vmul.f32 %v5274_v51, %v5982_v36 }
 0x455   :  { %v5276_v55 = vpop.eup %5275 }
 0x456   :  { %v6028_v50 = vadd.f32 %v1179_v22, %v1178_v62 }
 0x458   :  { %5277 = vtanh.f32 %v6028_v50 }
 0x462   :  { %v5278_v2 = vpop.eup %5277 }
 0x463   :  { %v6031_v12 = vmul.f32 %v5278_v2, %v5276_v55 }
 0x465   :  { %1257 = vmatmul.mubr.f32.vlgmr.msra.gmra.mrb[8].mxu0 %v6031_v12  ;;  %1328 = vmatmul.mubr.f32.vlgmr.msra.gmra.mrb[8].mxu1 %v6031_v12 }
 0x466   :  { %4285 = vmatpush1.bf16.msra.mxu0 %v5676_v14  ;;  %4317 = vmatpush1.bf16.msra.mxu1 %v5680_v17 }
 0x467   :  { %4287 = vmatprep.subr.bf16.mxu0 %v5689_v25  ;;  %4319 = vmatprep.subr.bf16.mxu1 %v5691_v26 }
 0x468   :  { %1435 = vmatprep.mubr.f32.mxu0 %v5572_v0  ;;  %1506 = vmatprep.mubr.f32.mxu1 %v5572_v0 }
 0x46a   :  { %4289 = vmatpush1.bf16.msra.mxu0 %v5695_v29  ;;  %4321 = vmatpush1.bf16.msra.mxu1 %v5697_v30 }
 0x46b   :  { %4291 = vmatprep.subr.bf16.mxu0 %v5708_v40  ;;  %4323 = vmatprep.subr.bf16.mxu1 %v5710_v41 }
 0x46e   :  { %4293 = vmatpush1.bf16.msra.mxu0 %v5714_v44  ;;  %4325 = vmatpush1.bf16.msra.mxu1 %v5716_v45 }
 0x46f   :  { %4295 = vmatprep.subr.bf16.mxu0 %v5727_v53  ;;  %4327 = vmatprep.subr.bf16.mxu1 %v5729_v54 }
 0x472   :  { %4297 = vmatpush1.bf16.msra.mxu0 %v5733_v57  ;;  %4329 = vmatpush1.bf16.msra.mxu1 %v5735_v58 }
 0x473   :  { %4299 = vmatprep.subr.bf16.mxu0 %v5746_v3  ;;  %4331 = vmatprep.subr.bf16.mxu1 %v5748_v4 }
 0x476   :  { %4301 = vmatpush1.bf16.msra.mxu0 %v5752_v7  ;;  %4333 = vmatpush1.bf16.msra.mxu1 %v5754_v8 }
 0x477   :  { %4303 = vmatprep.subr.bf16.mxu0 %v5765_v20  ;;  %4335 = vmatprep.subr.bf16.mxu1 %v5767_v21 }
 0x47a   :  { %4305 = vmatpush1.bf16.msra.mxu0 %v5771_v24  ;;  %4337 = vmatpush1.bf16.msra.mxu1 %v5773_v27 }
 0x47b   :  { %4307 = vmatprep.subr.bf16.mxu0 %v5784_v37  ;;  %4339 = vmatprep.subr.bf16.mxu1 %v5786_v38 }
 0x47e   :  { %4309 = vmatpush1.bf16.msra.mxu0 %v5790_v43  ;;  %4341 = vmatpush1.bf16.msra.mxu1 %v5792_v46 }
 0x47f   :  { %4311 = vmatprep.subr.bf16.mxu0 %v5803_v56  ;;  %4343 = vmatprep.subr.bf16.mxu1 %v5805_v59 }
 0x482   :  { %4313 = vmatpush1.bf16.msra.mxu0 %v5809_v60  ;;  %4345 = vmatpush1.bf16.msra.mxu1 %v5811_v61 }
 0x483   :  { %4347 = vmatprep.subr.bf16.mxu0 %v5670_v9  ;;  %4379 = vmatprep.subr.bf16.mxu1 %v5674_v13 }
 0x538   :  { %v1258_v36 = vpop.f32.mrb[8].mxu0  ;;  %v1329_v15 = vpop.f32.mrb[8].mxu1 }
 0x539   :  { %v5082_v19 = vadd.f32 %v1258_v36, %v5870_v6  ;;  %v1260_v23 = vpop.f32.mrb[9].mxu0  ;;  %v1331_v28 = vpop.f32.mrb[9].mxu1  ;;  %v5098_v42 = vadd.f32 %v1329_v15, %v5882_v32 }
 0x53a   :  { %v5083_v34 = vadd.f32 %v1260_v23, %v5874_v10  ;;  %v5099_v47 = vadd.f32 %v1331_v28, %v5886_v33 }
 0x53b   :  { %v3872_v11 = vmul.f32 -1.442695, %v5082_v19  ;;  %v3874_v48 = vmul.f32 -1.442695, %v5098_v42 }
 0x53c   :  { %v3873_v39 = vmul.f32 -1.442695, %v5083_v34 }
 0x53d   :  { %5279 = vpow2.f32 %v3872_v11 }
 0x53e   :  { %5281 = vpow2.f32 %v3873_v39 }
 0x53f   :  { %5283 = vtanh.f32 %v5099_v47 }
 0x540   :  { %5285 = vpow2.f32 %v3874_v48 }
 0x547   :  { %v5280_v22 = vpop.eup %5279 }
 0x548   :  { %v1347_v51 = vadd.f32 1.0, %v5280_v22  ;;  %v5282_v52 = vpop.eup %5281 }
 0x549   :  { %v1348_v62 = vadd.f32 1.0, %v5282_v52  ;;  %v5284_v55 = vpop.eup %5283 }
 0x54a   :  { %5287 = vrcp.f32 %v1347_v51  ;;  %v5286_v2 = vpop.eup %5285 }
 0x54b   :  { %5289 = vrcp.f32 %v1348_v62  ;;  %v1349_v34 = vadd.f32 1.0, %v5286_v2 }
 0x54d   :  { %5291 = vrcp.f32 %v1349_v34 }
 0x554   :  { %v5288_v36 = vpop.eup %5287 }
 0x555   :  { %v1358_v19 = vmul.f32 %v5288_v36, %v5284_v55  ;;  %v5290_v23 = vpop.eup %5289 }
 0x556   :  { %v1357_v11 = vmul.f32 %v5290_v23, %v6028_v50 }
 0x557   :  { %v5292_v28 = vpop.eup %5291 }
 0x558   :  { %v6074_v15 = vadd.f32 %v1358_v19, %v1357_v11 }
 0x55a   :  { %5293 = vtanh.f32 %v6074_v15 }
 0x564   :  { %v5294_v39 = vpop.eup %5293 }
 0x565   :  { %v6077_v42 = vmul.f32 %v5294_v39, %v5292_v28 }
 0x567   :  { %1436 = vmatmul.mubr.f32.vlgmr.msra.gmra.mrb[10].mxu0 %v6077_v42  ;;  %1507 = vmatmul.mubr.f32.vlgmr.msra.gmra.mrb[10].mxu1 %v6077_v42 }
 0x568   :  { %4349 = vmatpush1.bf16.msra.mxu0 %v5676_v14  ;;  %4381 = vmatpush1.bf16.msra.mxu1 %v5680_v17 }
 0x569   :  { %4351 = vmatprep.subr.bf16.mxu0 %v5689_v25  ;;  %4383 = vmatprep.subr.bf16.mxu1 %v5691_v26 }
 0x56a   :  { %1614 = vmatprep.mubr.f32.mxu0 %v5572_v0  ;;  %1685 = vmatprep.mubr.f32.mxu1 %v5572_v0 }
 0x56c   :  { %4353 = vmatpush1.bf16.msra.mxu0 %v5695_v29  ;;  %4385 = vmatpush1.bf16.msra.mxu1 %v5697_v30 }
 0x56d   :  { %4355 = vmatprep.subr.bf16.mxu0 %v5708_v40  ;;  %4387 = vmatprep.subr.bf16.mxu1 %v5710_v41 }
 0x570   :  { %4357 = vmatpush1.bf16.msra.mxu0 %v5714_v44  ;;  %4389 = vmatpush1.bf16.msra.mxu1 %v5716_v45 }
 0x571   :  { %4359 = vmatprep.subr.bf16.mxu0 %v5727_v53  ;;  %4391 = vmatprep.subr.bf16.mxu1 %v5729_v54 }
 0x574   :  { %4361 = vmatpush1.bf16.msra.mxu0 %v5733_v57  ;;  %4393 = vmatpush1.bf16.msra.mxu1 %v5735_v58 }
 0x575   :  { %4363 = vmatprep.subr.bf16.mxu0 %v5746_v3  ;;  %4395 = vmatprep.subr.bf16.mxu1 %v5748_v4 }
 0x578   :  { %4365 = vmatpush1.bf16.msra.mxu0 %v5752_v7  ;;  %4397 = vmatpush1.bf16.msra.mxu1 %v5754_v8 }
 0x579   :  { %4367 = vmatprep.subr.bf16.mxu0 %v5765_v20  ;;  %4399 = vmatprep.subr.bf16.mxu1 %v5767_v21 }
 0x57c   :  { %4369 = vmatpush1.bf16.msra.mxu0 %v5771_v24  ;;  %4401 = vmatpush1.bf16.msra.mxu1 %v5773_v27 }
 0x57d   :  { %4371 = vmatprep.subr.bf16.mxu0 %v5784_v37  ;;  %4403 = vmatprep.subr.bf16.mxu1 %v5786_v38 }
 0x580   :  { %4373 = vmatpush1.bf16.msra.mxu0 %v5790_v43  ;;  %4405 = vmatpush1.bf16.msra.mxu1 %v5792_v46 }
 0x581   :  { %4375 = vmatprep.subr.bf16.mxu0 %v5803_v56  ;;  %4407 = vmatprep.subr.bf16.mxu1 %v5805_v59 }
 0x584   :  { %4377 = vmatpush1.bf16.msra.mxu0 %v5809_v60  ;;  %4409 = vmatpush1.bf16.msra.mxu1 %v5811_v61 }
 0x585   :  { %4411 = vmatprep.subr.bf16.mxu0 %v5670_v9  ;;  %4443 = vmatprep.subr.bf16.mxu1 %v5674_v13 }
 0x63a   :  { %v1437_v50 = vpop.f32.mrb[10].mxu0  ;;  %v1508_v47 = vpop.f32.mrb[10].mxu1 }
 0x63b   :  { %v5084_v48 = vadd.f32 %v1437_v50, %v5870_v6  ;;  %v1439_v22 = vpop.f32.mrb[11].mxu0  ;;  %v1510_v51 = vpop.f32.mrb[11].mxu1  ;;  %v5100_v2 = vadd.f32 %v1508_v47, %v5882_v32 }
 0x63c   :  { %v5085_v52 = vadd.f32 %v1439_v22, %v5874_v10  ;;  %v5101_v36 = vadd.f32 %v1510_v51, %v5886_v33 }
 0x63d   :  { %v3875_v62 = vmul.f32 -1.442695, %v5084_v48  ;;  %v3877_v19 = vmul.f32 -1.442695, %v5100_v2  ;;  %v1913_v2 = vld [vmem:[#allocation6 + $0x10] sm:$0xff] }
 0x63e   :  { %v3876_v55 = vmul.f32 -1.442695, %v5085_v52 }
 0x63f   :  { %5295 = vpow2.f32 %v3875_v62 }
 0x640   :  { %5297 = vpow2.f32 %v3876_v55 }
 0x641   :  { %5299 = vtanh.f32 %v5101_v36  ;;  %v1917_v36 = vld [vmem:[#allocation6 + $0x30] sm:$0xff] }
 0x642   :  { %5301 = vpow2.f32 %v3877_v19  ;;  %v1920_v19 = vld [vmem:[#allocation6 + $0x48] sm:$0xff] }
 0x649   :  { %v5296_v9 = vpop.eup %5295 }
 0x64a   :  { %v1526_v23 = vadd.f32 1.0, %v5296_v9  ;;  %v5298_v13 = vpop.eup %5297  ;;  %v1924_v9 = vld [vmem:[#allocation6 + $0x68] sm:$0xff] }
 0x64b   :  { %v1527_v34 = vadd.f32 1.0, %v5298_v13  ;;  %v5300_v11 = vpop.eup %5299  ;;  %v1926_v13 = vld [vmem:[#allocation6 + $0x78] sm:$0xff] }
 0x64c   :  { %5303 = vrcp.f32 %v1526_v23  ;;  %v5302_v28 = vpop.eup %5301  ;;  %v1922_v23 = vld [vmem:[#allocation6 + $0x58] sm:$0xff] }
 0x64d   :  { %5305 = vrcp.f32 %v1527_v34  ;;  %v1528_v22 = vadd.f32 1.0, %v5302_v28 }
 0x64f   :  { %5307 = vrcp.f32 %v1528_v22 }
 0x656   :  { %v5304_v39 = vpop.eup %5303 }
 0x657   :  { %v1537_v50 = vmul.f32 %v5304_v39, %v5300_v11  ;;  %v5306_v48 = vpop.eup %5305  ;;  %v4508_v39 = vpack.c.bf16 %v1917_v36, %v1913_v2  ;;  %v1943_v2 = vld [vmem:[#allocation6 + $0x100] sm:$0xff] }
 0x658   :  { %v1536_v52 = vmul.f32 %v5306_v48, %v6074_v15  ;;  %v1915_v15 = vld [vmem:[#allocation6 + $0x20] sm:$0xff] }
 0x659   :  { %v5308_v51 = vpop.eup %5307  ;;  %v1923_v48 = vld [vmem:[#allocation6 + $0x60] sm:$0xff] }
 0x65a   :  { %v6120_v47 = vadd.f32 %v1537_v50, %v1536_v52  ;;  %v1919_v50 = vld [vmem:[#allocation6 + $0x40] sm:$0xff]  ;;  %v4478_v52 = vpack.c.bf16 %v1924_v9, %v1920_v19 }
 0x65b   :  { %v1947_v36 = vld [vmem:[#allocation6 + $0x120] sm:$0xff] }
 0x65c   :  { %5309 = vtanh.f32 %v6120_v47 }
 0x666   :  { %v5310_v62 = vpop.eup %5309 }
 0x667   :  { %v6123_v55 = vmul.f32 %v5310_v62, %v5308_v51  ;;  %v1921_v51 = vld [vmem:[#allocation6 + $0x50] sm:$0xff] }
 0x668   :  { %v1925_v62 = vld [vmem:[#allocation6 + $0x70] sm:$0xff] }
 0x669   :  { %1615 = vmatmul.mubr.f32.vlgmr.msra.gmra.mrb[12].mxu0 %v6123_v55  ;;  %1686 = vmatmul.mubr.f32.vlgmr.msra.gmra.mrb[12].mxu1 %v6123_v55 }
 0x66a   :  { %4413 = vmatpush1.bf16.msra.mxu0 %v5676_v14  ;;  %4445 = vmatpush1.bf16.msra.mxu1 %v5680_v17  ;;  %v1912_v14 = vld [vmem:[#allocation6 + $0x8] sm:$0xff] }
 0x66b   :  { %4415 = vmatprep.subr.bf16.mxu0 %v5689_v25  ;;  %4447 = vmatprep.subr.bf16.mxu1 %v5691_v26  ;;  %v1916_v17 = vld [vmem:[#allocation6 + $0x28] sm:$0xff]  ;;  %v1914_v25 = vld [vmem:[#allocation6 + $0x18] sm:$0xff] }
 0x66c   :  { %1793 = vmatprep.mubr.f32.mxu0 %v5572_v0  ;;  %1864 = vmatprep.mubr.f32.mxu1 %v5572_v0  ;;  %v4474_v26 = vpack.c.bf16 %v1916_v17, %v1912_v14  ;;  %v1928_v14 = vld [vmem:[#allocation6 + $0x88] sm:$0xff] }
 0x66d   :  { %v1932_v17 = vld [vmem:[#allocation6 + $0xa8] sm:$0xff] }
 0x66e   :  { %4417 = vmatpush1.bf16.msra.mxu0 %v5695_v29  ;;  %4449 = vmatpush1.bf16.msra.mxu1 %v5697_v30  ;;  %v1918_v29 = vld [vmem:[#allocation6 + $0x38] sm:$0xff] }
 0x66f   :  { %4419 = vmatprep.subr.bf16.mxu0 %v5708_v40  ;;  %4451 = vmatprep.subr.bf16.mxu1 %v5710_v41  ;;  %v4506_v30 = vpack.c.bf16 %v1918_v29, %v1914_v25  ;;  %v1930_v25 = vld [vmem:[#allocation6 + $0x98] sm:$0xff]  ;;  %v4480_v29 = vpack.c.bf16 %v1923_v48, %v1919_v50  ;;  %v4492_v50 = vpack.c.bf16 %v1947_v36, %v1943_v2  ;;  %v2259_v36 = vld [vmem:[#allocation9 + $0x210] sm:$0xff] }
 0x672   :  { %4421 = vmatpush1.bf16.msra.mxu0 %v5714_v44  ;;  %4453 = vmatpush1.bf16.msra.mxu1 %v5716_v45 }
 0x673   :  { %4423 = vmatprep.subr.bf16.mxu0 %v5727_v53  ;;  %4455 = vmatprep.subr.bf16.mxu1 %v5729_v54 }
 0x676   :  { %4425 = vmatpush1.bf16.msra.mxu0 %v5733_v57  ;;  %4457 = vmatpush1.bf16.msra.mxu1 %v5735_v58 }
 0x677   :  { %4427 = vmatprep.subr.bf16.mxu0 %v5746_v3  ;;  %4459 = vmatprep.subr.bf16.mxu1 %v5748_v4 }
 0x67a   :  { %4429 = vmatpush1.bf16.msra.mxu0 %v5752_v7  ;;  %4461 = vmatpush1.bf16.msra.mxu1 %v5754_v8 }
 0x67b   :  { %4431 = vmatprep.subr.bf16.mxu0 %v5765_v20  ;;  %4463 = vmatprep.subr.bf16.mxu1 %v5767_v21 }
 0x67e   :  { %4433 = vmatpush1.bf16.msra.mxu0 %v5771_v24  ;;  %4465 = vmatpush1.bf16.msra.mxu1 %v5773_v27 }
 0x67f   :  { %4435 = vmatprep.subr.bf16.mxu0 %v5784_v37  ;;  %4467 = vmatprep.subr.bf16.mxu1 %v5786_v38 }
 0x682   :  { %4437 = vmatpush1.bf16.msra.mxu0 %v5790_v43  ;;  %4469 = vmatpush1.bf16.msra.mxu1 %v5792_v46 }
 0x683   :  { %4439 = vmatprep.subr.bf16.mxu0 %v5803_v56  ;;  %4471 = vmatprep.subr.bf16.mxu1 %v5805_v59 }
 0x686   :  { %4441 = vmatpush1.bf16.msra.mxu0 %v5809_v60  ;;  %4473 = vmatpush1.bf16.msra.mxu1 %v5811_v61  ;;  %v1911_v61 = vld [vmem:[#allocation6] sm:$0xff] }
 0x687   :  { %4475 = vmatprep.subr.bf16.mxu0 %v4474_v26  ;;  %4507 = vmatprep.subr.bf16.mxu1 %v4506_v30  ;;  %v4476_v28 = vpack.c.bf16 %v1915_v15, %v1911_v61  ;;  %v1934_v26 = vld [vmem:[#allocation6 + $0xb8] sm:$0xff]  ;;  %v4512_v30 = vpack.c.bf16 %v1925_v62, %v1921_v51 }
 0x73c   :  { %v1616_v40 = vpop.f32.mrb[12].mxu0  ;;  %v1687_v41 = vpop.f32.mrb[12].mxu1 }
 0x73d   :  { %v5086_v44 = vadd.f32 %v1616_v40, %v5870_v6  ;;  %v1618_v45 = vpop.f32.mrb[13].mxu0  ;;  %v1689_v53 = vpop.f32.mrb[13].mxu1  ;;  %v5102_v3 = vadd.f32 %v1687_v41, %v5882_v32  ;;  %v1927_v40 = vld [vmem:[#allocation6 + $0x80] sm:$0xff] }
 0x73e   :  { %v5087_v54 = vadd.f32 %v1618_v45, %v5874_v10  ;;  %v5103_v4 = vadd.f32 %v1689_v53, %v5886_v33  ;;  %v1931_v41 = vld [vmem:[#allocation6 + $0xa0] sm:$0xff]  ;;  %v4514_v45 = vpack.c.bf16 %v1934_v26, %v1930_v25  ;;  %v1929_v53 = vld [vmem:[#allocation6 + $0x90] sm:$0xff]  ;;  %v1960_v25 = vld [vmem:[#allocation6 + $0x188] sm:$0xff] }
 0x73f   :  { %v3878_v57 = vmul.f32 -1.442695, %v5086_v44  ;;  %v3880_v7 = vmul.f32 -1.442695, %v5102_v3  ;;  %v4482_v44 = vpack.c.bf16 %v1932_v17, %v1928_v14  ;;  %v1938_v3 = vld [vmem:[#allocation6 + $0xd8] sm:$0xff]  ;;  %v1953_v14 = vld [vmem:[#allocation6 + $0x150] sm:$0xff] }
 0x740   :  { %v3879_v58 = vmul.f32 -1.442695, %v5087_v54  ;;  %v1933_v54 = vld [vmem:[#allocation6 + $0xb0] sm:$0xff]  ;;  %v1964_v26 = vld [vmem:[#allocation6 + $0x1a8] sm:$0xff] }
 0x741   :  { %5311 = vpow2.f32 %v3878_v57  ;;  %v1936_v57 = vld [vmem:[#allocation6 + $0xc8] sm:$0xff]  ;;  %v1957_v17 = vld [vmem:[#allocation6 + $0x170] sm:$0xff] }
 0x742   :  { %5313 = vpow2.f32 %v3879_v58  ;;  %v1940_v58 = vld [vmem:[#allocation6 + $0xe8] sm:$0xff] }
 0x743   :  { %5315 = vtanh.f32 %v5103_v4  ;;  %v1942_v4 = vld [vmem:[#allocation6 + $0xf8] sm:$0xff] }
 0x744   :  { %5317 = vpow2.f32 %v3880_v7  ;;  %v4484_v7 = vpack.c.bf16 %v1931_v41, %v1927_v40  ;;  %v4528_v41 = vpack.c.bf16 %v1957_v17, %v1953_v14  ;;  %v2278_v14 = vld [vmem:[#allocation9 + $0x2a8] sm:$0xff]  ;;  %v2276_v17 = vld [vmem:[#allocation9 + $0x298] sm:$0xff] }
 0x74b   :  { %v5312_v8 = vpop.eup %5311 }
 0x74c   :  { %v1705_v20 = vadd.f32 1.0, %v5312_v8  ;;  %v5314_v21 = vpop.eup %5313  ;;  %v4516_v8 = vpack.c.bf16 %v1933_v54, %v1929_v53  ;;  %v4498_v53 = vpack.c.bf16 %v1964_v26, %v1960_v25  ;;  %v2280_v26 = vld [vmem:[#allocation9 + $0x2b8] sm:$0xff] }
 0x74d   :  { %v1706_v24 = vadd.f32 1.0, %v5314_v21  ;;  %v5316_v27 = vpop.eup %5315  ;;  %v1939_v21 = vld [vmem:[#allocation6 + $0xe0] sm:$0xff] }
 0x74e   :  { %5319 = vrcp.f32 %v1705_v20  ;;  %v5318_v37 = vpop.eup %5317  ;;  %v1935_v20 = vld [vmem:[#allocation6 + $0xc0] sm:$0xff] }
 0x74f   :  { %5321 = vrcp.f32 %v1706_v24  ;;  %v1707_v56 = vadd.f32 1.0, %v5318_v37  ;;  %v4486_v24 = vpack.c.bf16 %v1940_v58, %v1936_v57  ;;  %v1937_v37 = vld [vmem:[#allocation6 + $0xd0] sm:$0xff]  ;;  %v4488_v61 = vpack.c.bf16 %v1939_v21, %v1935_v20 }
 0x750   :  { %v1961_v57 = vld [vmem:[#allocation6 + $0x190] sm:$0xff] }
 0x751   :  { %5323 = vrcp.f32 %v1707_v56  ;;  %v1946_v56 = vld [vmem:[#allocation6 + $0x118] sm:$0xff]  ;;  %v1965_v58 = vld [vmem:[#allocation6 + $0x1b0] sm:$0xff] }
 0x752   :  { %v4532_v21 = vpack.c.bf16 %v1965_v58, %v1961_v57  ;;  %v2286_v57 = vld [vmem:[#allocation9 + $0x2e8] sm:$0xff]  ;;  %v2284_v58 = vld [vmem:[#allocation9 + $0x2d8] sm:$0xff] }
 0x758   :  { %v5320_v38 = vpop.eup %5319 }
 0x759   :  { %v1716_v43 = vmul.f32 %v5320_v38, %v5316_v27  ;;  %v5322_v46 = vpop.eup %5321  ;;  %v4518_v27 = vpack.c.bf16 %v1942_v4, %v1938_v3  ;;  %v1941_v38 = vld [vmem:[#allocation6 + $0xf0] sm:$0xff]  ;;  %v1968_v3 = vld [vmem:[#allocation6 + $0x1c8] sm:$0xff] }
 0x75a   :  { %v1715_v59 = vmul.f32 %v5322_v46, %v6120_v47  ;;  %v4510_v47 = vpack.c.bf16 %v1926_v13, %v1922_v23  ;;  %v1948_v46 = vld [vmem:[#allocation6 + $0x128] sm:$0xff]  ;;  %v4520_v15 = vpack.c.bf16 %v1941_v38, %v1937_v37  ;;  %v1945_v23 = vld [vmem:[#allocation6 + $0x110] sm:$0xff]  ;;  %v1971_v38 = vld [vmem:[#allocation6 + $0x1e0] sm:$0xff] }
 0x75b   :  { %v5324_v34 = vpop.eup %5323  ;;  %v1949_v13 = vld [vmem:[#allocation6 + $0x130] sm:$0xff]  ;;  %v1972_v4 = vld [vmem:[#allocation6 + $0x1e8] sm:$0xff] }
 0x75c   :  { %v6164_v60 = vadd.f32 %v1716_v43, %v1715_v59  ;;  %v1944_v43 = vld [vmem:[#allocation6 + $0x108] sm:$0xff]  ;;  %v1950_v59 = vld [vmem:[#allocation6 + $0x138] sm:$0xff]  ;;  %v4524_v48 = vpack.c.bf16 %v1949_v13, %v1945_v23 }
 0x75d   :  { %v4490_v19 = vpack.c.bf16 %v1948_v46, %v1944_v43  ;;  %v4522_v9 = vpack.c.bf16 %v1950_v59, %v1946_v56  ;;  %v1969_v43 = vld [vmem:[#allocation6 + $0x1d0] sm:$0xff]  ;;  %v2270_v23 = vld [vmem:[#allocation9 + $0x268] sm:$0xff]  ;;  %v2268_v13 = vld [vmem:[#allocation9 + $0x258] sm:$0xff] }
 0x75e   :  { %5325 = vtanh.f32 %v6164_v60  ;;  %v1973_v46 = vld [vmem:[#allocation6 + $0x1f0] sm:$0xff] }
 0x75f   :  { %v4536_v59 = vpack.c.bf16 %v1973_v46, %v1969_v43  ;;  %v2294_v43 = vld [vmem:[#allocation9 + $0x328] sm:$0xff]  ;;  %v2292_v46 = vld [vmem:[#allocation9 + $0x318] sm:$0xff] }
 0x768   :  { %v5326_v11 = vpop.eup %5325 }
 0x769   :  { %v6167_v22 = vmul.f32 %v5326_v11, %v5324_v34  ;;  %v1952_v34 = vld [vmem:[#allocation6 + $0x148] sm:$0xff] }
 0x76a   :  { %v1956_v11 = vld [vmem:[#allocation6 + $0x168] sm:$0xff] }
 0x76b   :  { %1794 = vmatmul.mubr.f32.vlgmr.msra.gmra.mrb[14].mxu0 %v6167_v22  ;;  %1865 = vmatmul.mubr.f32.vlgmr.msra.gmra.mrb[14].mxu1 %v6167_v22  ;;  %v4494_v51 = vpack.c.bf16 %v1956_v11, %v1952_v34  ;;  %v2272_v11 = vld [vmem:[#allocation9 + $0x278] sm:$0xff] }
 0x76c   :  { %4477 = vmatpush1.bf16.msra.mxu0 %v4476_v28  ;;  %4509 = vmatpush1.bf16.msra.mxu1 %v4508_v39  ;;  %v1954_v28 = vld [vmem:[#allocation6 + $0x158] sm:$0xff] }
 0x76d   :  { %4479 = vmatprep.subr.bf16.mxu0 %v4478_v52  ;;  %4511 = vmatprep.subr.bf16.mxu1 %v4510_v47  ;;  %v1958_v39 = vld [vmem:[#allocation6 + $0x178] sm:$0xff]  ;;  %v1951_v52 = vld [vmem:[#allocation6 + $0x140] sm:$0xff] }
 0x76e   :  { %2062 = vmatprep.mubr.f32.mxu0 %v5572_v0  ;;  %2175 = vmatprep.mubr.f32.mxu1 %v5572_v0  ;;  %v1955_v47 = vld [vmem:[#allocation6 + $0x160] sm:$0xff]  ;;  %v4526_v62 = vpack.c.bf16 %v1958_v39, %v1954_v28 }
 0x76f   :  { %v4496_v40 = vpack.c.bf16 %v1955_v47, %v1951_v52  ;;  %v2265_v28 = vld [vmem:[#allocation9 + $0x240] sm:$0xff]  ;;  %v2267_v52 = vld [vmem:[#allocation9 + $0x250] sm:$0xff] }
 0x770   :  { %4481 = vmatpush1.bf16.msra.mxu0 %v4480_v29  ;;  %4513 = vmatpush1.bf16.msra.mxu1 %v4512_v30  ;;  %v1962_v29 = vld [vmem:[#allocation6 + $0x198] sm:$0xff]  ;;  %v2269_v39 = vld [vmem:[#allocation9 + $0x260] sm:$0xff]  ;;  %v2271_v47 = vld [vmem:[#allocation9 + $0x270] sm:$0xff] }
 0x771   :  { %4483 = vmatprep.subr.bf16.mxu0 %v4482_v44  ;;  %4515 = vmatprep.subr.bf16.mxu1 %v4514_v45  ;;  %v1966_v30 = vld [vmem:[#allocation6 + $0x1b8] sm:$0xff]  ;;  %v1959_v44 = vld [vmem:[#allocation6 + $0x180] sm:$0xff] }
 0x772   :  { %v1963_v45 = vld [vmem:[#allocation6 + $0x1a0] sm:$0xff]  ;;  %v4530_v54 = vpack.c.bf16 %v1966_v30, %v1962_v29 }
 0x773   :  { %v4500_v20 = vpack.c.bf16 %v1963_v45, %v1959_v44  ;;  %v2273_v29 = vld [vmem:[#allocation9 + $0x280] sm:$0xff]  ;;  %v2275_v44 = vld [vmem:[#allocation9 + $0x290] sm:$0xff] }
 0x774   :  { %4485 = vmatpush1.bf16.msra.mxu0 %v4484_v7  ;;  %4517 = vmatpush1.bf16.msra.mxu1 %v4516_v8  ;;  %v1970_v7 = vld [vmem:[#allocation6 + $0x1d8] sm:$0xff]  ;;  %v2277_v30 = vld [vmem:[#allocation9 + $0x2a0] sm:$0xff]  ;;  %v2279_v45 = vld [vmem:[#allocation9 + $0x2b0] sm:$0xff] }
 0x775   :  { %4487 = vmatprep.subr.bf16.mxu0 %v4486_v24  ;;  %4519 = vmatprep.subr.bf16.mxu1 %v4518_v27  ;;  %v1974_v8 = vld [vmem:[#allocation6 + $0x1f8] sm:$0xff]  ;;  %v1967_v24 = vld [vmem:[#allocation6 + $0x1c0] sm:$0xff]  ;;  %v4502_v27 = vpack.c.bf16 %v1972_v4, %v1968_v3 }
 0x776   :  { %v4534_v37 = vpack.c.bf16 %v1974_v8, %v1970_v7  ;;  %v4504_v56 = vpack.c.bf16 %v1971_v38, %v1967_v24  ;;  %v2288_v4 = vld [vmem:[#allocation9 + $0x2f8] sm:$0xff]  ;;  %v2281_v7 = vld [vmem:[#allocation9 + $0x2c0] sm:$0xff]  ;;  %v2283_v24 = vld [vmem:[#allocation9 + $0x2d0] sm:$0xff] }
 0x777   :  { %v2285_v8 = vld [vmem:[#allocation9 + $0x2e0] sm:$0xff]  ;;  %v2290_v38 = vld [vmem:[#allocation9 + $0x308] sm:$0xff] }
 0x778   :  { %4489 = vmatpush1.bf16.msra.mxu0 %v4488_v61  ;;  %4521 = vmatpush1.bf16.msra.mxu1 %v4520_v15  ;;  %v2257_v61 = vld [vmem:[#allocation9 + $0x200] sm:$0xff] }
 0x779   :  { %4491 = vmatprep.subr.bf16.mxu0 %v4490_v19  ;;  %4523 = vmatprep.subr.bf16.mxu1 %v4522_v9  ;;  %v2263_v19 = vld [vmem:[#allocation9 + $0x230] sm:$0xff]  ;;  %v2266_v9 = vld [vmem:[#allocation9 + $0x248] sm:$0xff] }
 0x77a   :  { %v6213_v34 = vpack.c.bf16 %v2270_v23, %v2266_v9  ;;  %v2302_v9 = vld [vmem:[#allocation9 + $0x368] sm:$0xff]  ;;  %v2300_v23 = vld [vmem:[#allocation9 + $0x358] sm:$0xff] }
 0x77c   :  { %4493 = vmatpush1.bf16.msra.mxu0 %v4492_v50  ;;  %4525 = vmatpush1.bf16.msra.mxu1 %v4524_v48  ;;  %v6215_v50 = vpack.c.bf16 %v2272_v11, %v2268_v13  ;;  %v6217_v48 = vpack.c.bf16 %v2269_v39, %v2265_v28  ;;  %v2304_v13 = vld [vmem:[#allocation9 + $0x378] sm:$0xff]  ;;  %v2297_v39 = vld [vmem:[#allocation9 + $0x340] sm:$0xff] }
 0x77d   :  { %4495 = vmatprep.subr.bf16.mxu0 %v4494_v51  ;;  %4527 = vmatprep.subr.bf16.mxu1 %v4526_v62  ;;  %v6220_v51 = vpack.c.bf16 %v2271_v47, %v2267_v52  ;;  %v2274_v62 = vld [vmem:[#allocation9 + $0x288] sm:$0xff]  ;;  %v6262_v28 = vpack.c.bf16 %v2304_v13, %v2300_v23  ;;  %v2301_v52 = vld [vmem:[#allocation9 + $0x360] sm:$0xff]  ;;  %v2299_v47 = vld [vmem:[#allocation9 + $0x350] sm:$0xff] }
 0x77e   :  { %v6225_v25 = vpack.c.bf16 %v2278_v14, %v2274_v62  ;;  %v6265_v62 = vpack.c.bf16 %v2301_v52, %v2297_v39  ;;  %v2303_v14 = vld [vmem:[#allocation9 + $0x370] sm:$0xff] }
 0x780   :  { %4497 = vmatpush1.bf16.msra.mxu0 %v4496_v40  ;;  %4529 = vmatpush1.bf16.msra.mxu1 %v4528_v41  ;;  %v6227_v40 = vpack.c.bf16 %v2280_v26, %v2276_v17  ;;  %v6229_v41 = vpack.c.bf16 %v2277_v30, %v2273_v29  ;;  %v2306_v17 = vld [vmem:[#allocation9 + $0x388] sm:$0xff]  ;;  %v6269_v29 = vpack.c.bf16 %v2303_v14, %v2299_v47 }
 0x781   :  { %4499 = vmatprep.subr.bf16.mxu0 %v4498_v53  ;;  %4531 = vmatprep.subr.bf16.mxu1 %v4530_v54  ;;  %v6232_v53 = vpack.c.bf16 %v2279_v45, %v2275_v44  ;;  %v2282_v54 = vld [vmem:[#allocation9 + $0x2c8] sm:$0xff]  ;;  %v2308_v44 = vld [vmem:[#allocation9 + $0x398] sm:$0xff] }
 0x782   :  { %v6237_v3 = vpack.c.bf16 %v2286_v57, %v2282_v54  ;;  %v2310_v26 = vld [vmem:[#allocation9 + $0x3a8] sm:$0xff]  ;;  %v2312_v45 = vld [vmem:[#allocation9 + $0x3b8] sm:$0xff]  ;;  %v2305_v54 = vld [vmem:[#allocation9 + $0x380] sm:$0xff] }
 0x783   :  { %v6271_v30 = vpack.c.bf16 %v2310_v26, %v2306_v17  ;;  %v6273_v57 = vpack.c.bf16 %v2312_v45, %v2308_v44 }
 0x784   :  { %4501 = vmatpush1.bf16.msra.mxu0 %v4500_v20  ;;  %4533 = vmatpush1.bf16.msra.mxu1 %v4532_v21  ;;  %v6239_v20 = vpack.c.bf16 %v2288_v4, %v2284_v58  ;;  %v6241_v21 = vpack.c.bf16 %v2285_v8, %v2281_v7  ;;  %v2309_v58 = vld [vmem:[#allocation9 + $0x3a0] sm:$0xff]  ;;  %v2307_v4 = vld [vmem:[#allocation9 + $0x390] sm:$0xff] }
 0x785   :  { %4503 = vmatprep.subr.bf16.mxu0 %v4502_v27  ;;  %4535 = vmatprep.subr.bf16.mxu1 %v4534_v37  ;;  %v2287_v27 = vld [vmem:[#allocation9 + $0x2f0] sm:$0xff]  ;;  %v6276_v8 = vpack.c.bf16 %v2309_v58, %v2305_v54 }
 0x786   :  { %v6244_v37 = vpack.c.bf16 %v2287_v27, %v2283_v24  ;;  %v2311_v7 = vld [vmem:[#allocation9 + $0x3b0] sm:$0xff]  ;;  %v2314_v27 = vld [vmem:[#allocation9 + $0x3c8] sm:$0xff] }
 0x787   :  { %v6280_v24 = vpack.c.bf16 %v2311_v7, %v2307_v4 }
 0x788   :  { %4505 = vmatpush1.bf16.msra.mxu0 %v4504_v56  ;;  %4537 = vmatpush1.bf16.msra.mxu1 %v4536_v59  ;;  %v6249_v56 = vpack.c.bf16 %v2294_v43, %v2290_v38  ;;  %v2296_v59 = vld [vmem:[#allocation9 + $0x338] sm:$0xff]  ;;  %v2318_v38 = vld [vmem:[#allocation9 + $0x3e8] sm:$0xff] }
 0x789   :  { %v2316_v43 = vld [vmem:[#allocation9 + $0x3d8] sm:$0xff] }
 0x78b   :  { %2063 = vmatmul.mubr.f32.vlgmr.msra.gmra.mrb[16].mxu0 %v5893_v18  ;;  %2176 = vmatmul.mubr.f32.vlgmr.msra.gmra.mrb[16].mxu1 %v5893_v18  ;;  %v2258_v18 = vld [vmem:[#allocation9 + $0x208] sm:$0xff] }
 0x78c   :  { %2068 = vmatprep.mubr.f32.mxu0 %v5572_v0  ;;  %2181 = vmatprep.mubr.f32.mxu1 %v5572_v0 }
 0x78f   :  { %2069 = vmatmul.mubr.f32.gmra.mrb[18].mxu0 %v5939_v35  ;;  %2182 = vmatmul.mubr.f32.gmra.mrb[18].mxu1 %v5939_v35  ;;  %v2262_v35 = vld [vmem:[#allocation9 + $0x228] sm:$0xff] }
 0x790   :  { %2074 = vmatprep.mubr.f32.mxu0 %v5572_v0  ;;  %2187 = vmatprep.mubr.f32.mxu1 %v5572_v0 }
 0x793   :  { %2075 = vmatmul.mubr.f32.gmra.mrb[20].mxu0 %v5985_v49  ;;  %2188 = vmatmul.mubr.f32.gmra.mrb[20].mxu1 %v5985_v49  ;;  %v2260_v49 = vld [vmem:[#allocation9 + $0x218] sm:$0xff] }
 0x794   :  { %2080 = vmatprep.mubr.f32.mxu0 %v5572_v0  ;;  %2193 = vmatprep.mubr.f32.mxu1 %v5572_v0 }
 0x797   :  { %2081 = vmatmul.mubr.f32.gmra.mrb[22].mxu0 %v6031_v12  ;;  %2194 = vmatmul.mubr.f32.gmra.mrb[22].mxu1 %v6031_v12  ;;  %v6201_v12 = vpack.c.bf16 %v2262_v35, %v2258_v18  ;;  %v2289_v18 = vld [vmem:[#allocation9 + $0x300] sm:$0xff] }
 0x798   :  { %2086 = vmatprep.mubr.f32.mxu0 %v5572_v0  ;;  %2199 = vmatprep.mubr.f32.mxu1 %v5572_v0  ;;  %v2293_v35 = vld [vmem:[#allocation9 + $0x320] sm:$0xff] }
 0x799   :  { %4539 = vmatprep.subr.bf16.mxu0 %v6201_v12 }
 0x79b   :  { %2087 = vmatmul.mubr.f32.gmra.mrb[24].mxu0 %v6077_v42  ;;  %2200 = vmatmul.mubr.f32.gmra.mrb[24].mxu1 %v6077_v42  ;;  %v2264_v42 = vld [vmem:[#allocation9 + $0x238] sm:$0xff] }
 0x79c   :  { %2092 = vmatprep.mubr.f32.mxu0 %v5572_v0  ;;  %2205 = vmatprep.mubr.f32.mxu1 %v5572_v0  ;;  %v6203_v15 = vpack.c.bf16 %v2264_v42, %v2260_v49  ;;  %v6251_v49 = vpack.c.bf16 %v2296_v59, %v2292_v46  ;;  %v6253_v42 = vpack.c.bf16 %v2293_v35, %v2289_v18  ;;  %v2320_v59 = vld [vmem:[#allocation9 + $0x3f8] sm:$0xff]  ;;  %v2313_v18 = vld [vmem:[#allocation9 + $0x3c0] sm:$0xff] }
 0x79d   :  { %v6285_v46 = vpack.c.bf16 %v2318_v38, %v2314_v27  ;;  %v2317_v35 = vld [vmem:[#allocation9 + $0x3e0] sm:$0xff] }
 0x79e   :  { %4571 = vmatprep.subr.bf16.mxu1 %v6203_v15 }
 0x79f   :  { %2093 = vmatmul.mubr.f32.gmra.mrb[26].mxu0 %v6123_v55  ;;  %2206 = vmatmul.mubr.f32.gmra.mrb[26].mxu1 %v6123_v55  ;;  %v2261_v55 = vld [vmem:[#allocation9 + $0x220] sm:$0xff] }
 0x7a0   :  { %2098 = vmatprep.mubr.f32.mxu0 %v5572_v0  ;;  %2211 = vmatprep.mubr.f32.mxu1 %v5572_v0  ;;  %v6205_v2 = vpack.c.bf16 %v2261_v55, %v2257_v61  ;;  %v2291_v61 = vld [vmem:[#allocation9 + $0x310] sm:$0xff] }
 0x7a1   :  { %v2295_v55 = vld [vmem:[#allocation9 + $0x330] sm:$0xff] }
 0x7a2   :  { %4541 = vmatpush1.bf16.msra.mxu0 %v6205_v2 }
 0x7a3   :  { %2099 = vmatmul.mubr.f32.gmra.mrb[28].mxu0 %v6167_v22  ;;  %2212 = vmatmul.mubr.f32.gmra.mrb[28].mxu1 %v6167_v22  ;;  %v6208_v22 = vpack.c.bf16 %v2263_v19, %v2259_v36  ;;  %v2298_v36 = vld [vmem:[#allocation9 + $0x348] sm:$0xff]  ;;  %v6256_v19 = vpack.c.bf16 %v2295_v55, %v2291_v61  ;;  %v6287_v61 = vpack.c.bf16 %v2320_v59, %v2316_v43 }
 0x7a4   :  { %2104 = vmatprep.mubr.f32.mxu0 %v5572_v0  ;;  %2217 = vmatprep.mubr.f32.mxu1 %v5572_v0  ;;  %v6260_v11 = vpack.c.bf16 %v2302_v9, %v2298_v36  ;;  %v6289_v55 = vpack.c.bf16 %v2317_v35, %v2313_v18  ;;  %v2315_v36 = vld [vmem:[#allocation9 + $0x3d0] sm:$0xff] }
 0x7a5   :  { %4573 = vmatpush1.bf16.msra.mxu1 %v6208_v22  ;;  %4543 = vmatprep.subr.bf16.mxu0 %v6213_v34  ;;  %v2319_v9 = vld [vmem:[#allocation9 + $0x3f0] sm:$0xff] }
 0x7a6   :  { %4575 = vmatprep.subr.bf16.mxu1 %v6215_v50  ;;  %4545 = vmatpush1.bf16.msra.mxu0 %v6217_v48  ;;  %v6292_v23 = vpack.c.bf16 %v2319_v9, %v2315_v36 }
 0x7a7   :  { %4547 = vmatprep.subr.bf16.mxu0 %v6225_v25 }
 0x7a9   :  { %4577 = vmatpush1.bf16.msra.mxu1 %v6220_v51 }
 0x7aa   :  { %4579 = vmatprep.subr.bf16.mxu1 %v6227_v40  ;;  %4549 = vmatpush1.bf16.msra.mxu0 %v6229_v41 }
 0x7ab   :  { %4551 = vmatprep.subr.bf16.mxu0 %v6237_v3 }
 0x7ad   :  { %4581 = vmatpush1.bf16.msra.mxu1 %v6232_v53 }
 0x7ae   :  { %4583 = vmatprep.subr.bf16.mxu1 %v6239_v20  ;;  %4553 = vmatpush1.bf16.msra.mxu0 %v6241_v21 }
 0x7af   :  { %4555 = vmatprep.subr.bf16.mxu0 %v6249_v56 }
 0x7b1   :  { %4585 = vmatpush1.bf16.msra.mxu1 %v6244_v37 }
 0x7b2   :  { %4587 = vmatprep.subr.bf16.mxu1 %v6251_v49  ;;  %4557 = vmatpush1.bf16.msra.mxu0 %v6253_v42 }
 0x7b3   :  { %4559 = vmatprep.subr.bf16.mxu0 %v6260_v11 }
 0x7b5   :  { %4589 = vmatpush1.bf16.msra.mxu1 %v6256_v19 }
 0x7b6   :  { %4591 = vmatprep.subr.bf16.mxu1 %v6262_v28  ;;  %4561 = vmatpush1.bf16.msra.mxu0 %v6265_v62 }
 0x7b7   :  { %4563 = vmatprep.subr.bf16.mxu0 %v6271_v30 }
 0x7b9   :  { %4593 = vmatpush1.bf16.msra.mxu1 %v6269_v29 }
 0x7ba   :  { %4595 = vmatprep.subr.bf16.mxu1 %v6273_v57  ;;  %4565 = vmatpush1.bf16.msra.mxu0 %v6276_v8 }
 0x7bb   :  { %4567 = vmatprep.subr.bf16.mxu0 %v6285_v46 }
 0x7bd   :  { %4597 = vmatpush1.bf16.msra.mxu1 %v6280_v24 }
 0x7be   :  { %4599 = vmatprep.subr.bf16.mxu1 %v6287_v61  ;;  %4569 = vmatpush1.bf16.msra.mxu0 %v6289_v55 }
 0x7bf   :  { %4603 = vmatprep.subr.bf16.mxu0 %v6201_v12 }
 0x7c1   :  { %4601 = vmatpush1.bf16.msra.mxu1 %v6292_v23 }
 0x7c2   :  { %4635 = vmatprep.subr.bf16.mxu1 %v6203_v15 }
 0x83e   :  { %v1795_v13 = vpop.f32.mrb[14].mxu0  ;;  %v1866_v39 = vpop.f32.mrb[14].mxu1 }
 0x83f   :  { %v5088_v52 = vadd.f32 %v1795_v13, %v5870_v6  ;;  %v1797_v47 = vpop.f32.mrb[15].mxu0  ;;  %v1868_v14 = vpop.f32.mrb[15].mxu1  ;;  %v5104_v45 = vadd.f32 %v1866_v39, %v5882_v32 }
 0x840   :  { %v5089_v17 = vadd.f32 %v1797_v47, %v5874_v10  ;;  %v5105_v54 = vadd.f32 %v1868_v14, %v5886_v33 }
 0x841   :  { %v3881_v26 = vmul.f32 -1.442695, %v5088_v52  ;;  %v3883_v58 = vmul.f32 -1.442695, %v5104_v45 }
 0x842   :  { %v3882_v44 = vmul.f32 -1.442695, %v5089_v17 }
 0x843   :  { %5327 = vpow2.f32 %v3881_v26 }
 0x844   :  { %5329 = vpow2.f32 %v3882_v44 }
 0x845   :  { %5331 = vtanh.f32 %v5105_v54 }
 0x846   :  { %5333 = vpow2.f32 %v3883_v58 }
 0x84d   :  { %v5328_v4 = vpop.eup %5327 }
 0x84e   :  { %v1884_v7 = vadd.f32 1.0, %v5328_v4  ;;  %v5330_v27 = vpop.eup %5329 }
 0x84f   :  { %v1885_v6 = vadd.f32 1.0, %v5330_v27  ;;  %v5332_v38 = vpop.eup %5331 }
 0x850   :  { %5335 = vrcp.f32 %v1884_v7  ;;  %v5334_v43 = vpop.eup %5333 }
 0x851   :  { %5337 = vrcp.f32 %v1885_v6  ;;  %v1886_v35 = vadd.f32 1.0, %v5334_v43 }
 0x853   :  { %5339 = vrcp.f32 %v1886_v35 }
 0x85a   :  { %v5336_v10 = vpop.eup %5335 }
 0x85b   :  { %v1895_v59 = vmul.f32 %v5336_v10, %v5332_v38  ;;  %v5338_v18 = vpop.eup %5337 }
 0x85c   :  { %v1894_v36 = vmul.f32 %v5338_v18, %v6164_v60  ;;  %v3884_v60 = vld [vmem:[%s6643_s4 + $0x4] sm:$0xf] }
 0x85d   :  { %v5340_v33 = vpop.eup %5339  ;;  %v6347_v39 = vrot.slane %v3884_v60, %v90_v1  ;;  %v6351_v52 = vrot.slane %v3884_v60, %v94_v5  ;;  %v6357_v4 = vrot.slane %v3884_v60, %v98_v16  ;;  %v6361_v1 = vrot.slane %v3884_v60, %v102_v31 }
 0x85e   :  { %v1896_v32 = vadd.f32 %v1895_v59, %v1894_v36 }
 0x860   :  { %5341 = vtanh.f32 %v1896_v32 }
 0x86a   :  { %v5342_v9 = vpop.eup %5341 }
 0x86b   :  { %v1898_v13 = vmul.f32 %v5342_v9, %v5340_v33 }
 0x86d   :  { %2105 = vmatmul.mubr.f32.gmra.mrb[30].mxu0 %v1898_v13  ;;  %2218 = vmatmul.mubr.f32.gmra.mrb[30].mxu1 %v1898_v13 }
 0x86e   :  { %2393 = vmatprep.mubr.f32.mxu0 %v5572_v0  ;;  %2464 = vmatprep.mubr.f32.mxu1 %v5572_v0 }
 0x871   :  { %2394 = vmatmul.mubr.f32.vlgmr.msra.gmra.mrb[16].mxu0 %v5572_v0  ;;  %2465 = vmatmul.mubr.f32.vlgmr.msra.gmra.mrb[16].mxu1 %v5572_v0 }
 0x872   :  { %4605 = vmatpush1.bf16.msra.mxu0 %v6205_v2  ;;  %4637 = vmatpush1.bf16.msra.mxu1 %v6208_v22 }
 0x873   :  { %4607 = vmatprep.subr.bf16.mxu0 %v6213_v34  ;;  %4639 = vmatprep.subr.bf16.mxu1 %v6215_v50 }
 0x874   :  { %2567 = vmatprep.mubr.f32.mxu0 %v5572_v0  ;;  %2638 = vmatprep.mubr.f32.mxu1 %v5572_v0 }
 0x876   :  { %4609 = vmatpush1.bf16.msra.mxu0 %v6217_v48  ;;  %4641 = vmatpush1.bf16.msra.mxu1 %v6220_v51 }
 0x877   :  { %4611 = vmatprep.subr.bf16.mxu0 %v6225_v25  ;;  %4643 = vmatprep.subr.bf16.mxu1 %v6227_v40 }
 0x87a   :  { %4613 = vmatpush1.bf16.msra.mxu0 %v6229_v41  ;;  %4645 = vmatpush1.bf16.msra.mxu1 %v6232_v53 }
 0x87b   :  { %4615 = vmatprep.subr.bf16.mxu0 %v6237_v3  ;;  %4647 = vmatprep.subr.bf16.mxu1 %v6239_v20 }
 0x87e   :  { %4617 = vmatpush1.bf16.msra.mxu0 %v6241_v21  ;;  %4649 = vmatpush1.bf16.msra.mxu1 %v6244_v37 }
 0x87f   :  { %4619 = vmatprep.subr.bf16.mxu0 %v6249_v56  ;;  %4651 = vmatprep.subr.bf16.mxu1 %v6251_v49 }
 0x882   :  { %4621 = vmatpush1.bf16.msra.mxu0 %v6253_v42  ;;  %4653 = vmatpush1.bf16.msra.mxu1 %v6256_v19 }
 0x883   :  { %4623 = vmatprep.subr.bf16.mxu0 %v6260_v11  ;;  %4655 = vmatprep.subr.bf16.mxu1 %v6262_v28 }
 0x886   :  { %4625 = vmatpush1.bf16.msra.mxu0 %v6265_v62  ;;  %4657 = vmatpush1.bf16.msra.mxu1 %v6269_v29 }
 0x887   :  { %4627 = vmatprep.subr.bf16.mxu0 %v6271_v30  ;;  %4659 = vmatprep.subr.bf16.mxu1 %v6273_v57 }
 0x88a   :  { %4629 = vmatpush1.bf16.msra.mxu0 %v6276_v8  ;;  %4661 = vmatpush1.bf16.msra.mxu1 %v6280_v24 }
 0x88b   :  { %4631 = vmatprep.subr.bf16.mxu0 %v6285_v46  ;;  %4663 = vmatprep.subr.bf16.mxu1 %v6287_v61 }
 0x88e   :  { %4633 = vmatpush1.bf16.msra.mxu0 %v6289_v55  ;;  %4665 = vmatpush1.bf16.msra.mxu1 %v6292_v23 }
 0x88f   :  { %4667 = vmatprep.subr.bf16.mxu0 %v6201_v12  ;;  %4699 = vmatprep.subr.bf16.mxu1 %v6203_v15 }
 0x944   :  { %v2395_v47 = vpop.f32.mrb[16].mxu0  ;;  %v2466_v14 = vpop.f32.mrb[16].mxu1 }
 0x945   :  { %v5106_v17 = vadd.f32 %v2395_v47, %v6347_v39  ;;  %v2397_v26 = vpop.f32.mrb[17].mxu0  ;;  %v2468_v44 = vpop.f32.mrb[17].mxu1  ;;  %v5122_v5 = vadd.f32 %v2466_v14, %v6357_v4 }
 0x946   :  { %v5107_v45 = vadd.f32 %v2397_v26, %v6351_v52  ;;  %v5123_v7 = vadd.f32 %v2468_v44, %v6361_v1 }
 0x947   :  { %v3885_v54 = vmul.f32 -1.442695, %v5106_v17  ;;  %v3887_v27 = vmul.f32 -1.442695, %v5122_v5 }
 0x948   :  { %v3886_v58 = vmul.f32 -1.442695, %v5107_v45 }
 0x949   :  { %5343 = vpow2.f32 %v3885_v54 }
 0x94a   :  { %5345 = vpow2.f32 %v3886_v58 }
 0x94b   :  { %5347 = vtanh.f32 %v5123_v7 }
 0x94c   :  { %5349 = vpow2.f32 %v3887_v27 }
 0x953   :  { %v5344_v6 = vpop.eup %5343 }
 0x954   :  { %v2484_v38 = vadd.f32 1.0, %v5344_v6  ;;  %v5346_v43 = vpop.eup %5345 }
 0x955   :  { %v2485_v10 = vadd.f32 1.0, %v5346_v43  ;;  %v5348_v16 = vpop.eup %5347 }
 0x956   :  { %5351 = vrcp.f32 %v2484_v38  ;;  %v5350_v59 = vpop.eup %5349 }
 0x957   :  { %5353 = vrcp.f32 %v2485_v10  ;;  %v2486_v31 = vadd.f32 1.0, %v5350_v59 }
 0x959   :  { %5355 = vrcp.f32 %v2486_v31 }
 0x960   :  { %v5352_v18 = vpop.eup %5351 }
 0x961   :  { %v2495_v35 = vmul.f32 %v5352_v18, %v5348_v16  ;;  %v5354_v63 = vpop.eup %5353 }
 0x962   :  { %v2494_v36 = vmul.f32 0.0, %v5354_v63 }
 0x963   :  { %v5356_v33 = vpop.eup %5355 }
 0x964   :  { %v6365_v32 = vadd.f32 %v2495_v35, %v2494_v36 }
 0x966   :  { %5357 = vtanh.f32 %v6365_v32 }
 0x970   :  { %v5358_v9 = vpop.eup %5357 }
 0x971   :  { %v2498_v13 = vmul.f32 %v5358_v9, %v5356_v33 }
 0x973   :  { %2568 = vmatmul.mubr.f32.vlgmr.msra.gmra.mrb[18].mxu0 %v2498_v13  ;;  %2639 = vmatmul.mubr.f32.vlgmr.msra.gmra.mrb[18].mxu1 %v2498_v13 }
 0x974   :  { %4669 = vmatpush1.bf16.msra.mxu0 %v6205_v2  ;;  %4701 = vmatpush1.bf16.msra.mxu1 %v6208_v22 }
 0x975   :  { %4671 = vmatprep.subr.bf16.mxu0 %v6213_v34  ;;  %4703 = vmatprep.subr.bf16.mxu1 %v6215_v50 }
 0x976   :  { %2741 = vmatprep.mubr.f32.mxu0 %v5572_v0  ;;  %2812 = vmatprep.mubr.f32.mxu1 %v5572_v0 }
 0x978   :  { %4673 = vmatpush1.bf16.msra.mxu0 %v6217_v48  ;;  %4705 = vmatpush1.bf16.msra.mxu1 %v6220_v51 }
 0x979   :  { %4675 = vmatprep.subr.bf16.mxu0 %v6225_v25  ;;  %4707 = vmatprep.subr.bf16.mxu1 %v6227_v40 }
 0x97c   :  { %4677 = vmatpush1.bf16.msra.mxu0 %v6229_v41  ;;  %4709 = vmatpush1.bf16.msra.mxu1 %v6232_v53 }
 0x97d   :  { %4679 = vmatprep.subr.bf16.mxu0 %v6237_v3  ;;  %4711 = vmatprep.subr.bf16.mxu1 %v6239_v20 }
 0x980   :  { %4681 = vmatpush1.bf16.msra.mxu0 %v6241_v21  ;;  %4713 = vmatpush1.bf16.msra.mxu1 %v6244_v37 }
 0x981   :  { %4683 = vmatprep.subr.bf16.mxu0 %v6249_v56  ;;  %4715 = vmatprep.subr.bf16.mxu1 %v6251_v49 }
 0x984   :  { %4685 = vmatpush1.bf16.msra.mxu0 %v6253_v42  ;;  %4717 = vmatpush1.bf16.msra.mxu1 %v6256_v19 }
 0x985   :  { %4687 = vmatprep.subr.bf16.mxu0 %v6260_v11  ;;  %4719 = vmatprep.subr.bf16.mxu1 %v6262_v28 }
 0x988   :  { %4689 = vmatpush1.bf16.msra.mxu0 %v6265_v62  ;;  %4721 = vmatpush1.bf16.msra.mxu1 %v6269_v29 }
 0x989   :  { %4691 = vmatprep.subr.bf16.mxu0 %v6271_v30  ;;  %4723 = vmatprep.subr.bf16.mxu1 %v6273_v57 }
 0x98c   :  { %4693 = vmatpush1.bf16.msra.mxu0 %v6276_v8  ;;  %4725 = vmatpush1.bf16.msra.mxu1 %v6280_v24 }
 0x98d   :  { %4695 = vmatprep.subr.bf16.mxu0 %v6285_v46  ;;  %4727 = vmatprep.subr.bf16.mxu1 %v6287_v61 }
 0x990   :  { %4697 = vmatpush1.bf16.msra.mxu0 %v6289_v55  ;;  %4729 = vmatpush1.bf16.msra.mxu1 %v6292_v23 }
 0x991   :  { %4731 = vmatprep.subr.bf16.mxu0 %v6201_v12  ;;  %4763 = vmatprep.subr.bf16.mxu1 %v6203_v15 }
 0xa46   :  { %v2569_v60 = vpop.f32.mrb[18].mxu0  ;;  %v2640_v47 = vpop.f32.mrb[18].mxu1 }
 0xa47   :  { %v5108_v14 = vadd.f32 %v2569_v60, %v6347_v39  ;;  %v2571_v17 = vpop.f32.mrb[19].mxu0  ;;  %v2642_v26 = vpop.f32.mrb[19].mxu1  ;;  %v5124_v58 = vadd.f32 %v2640_v47, %v6357_v4 }
 0xa48   :  { %v5109_v44 = vadd.f32 %v2571_v17, %v6351_v52  ;;  %v5125_v5 = vadd.f32 %v2642_v26, %v6361_v1 }
 0xa49   :  { %v3888_v45 = vmul.f32 -1.442695, %v5108_v14  ;;  %v3890_v7 = vmul.f32 -1.442695, %v5124_v58 }
 0xa4a   :  { %v3889_v54 = vmul.f32 -1.442695, %v5109_v44 }
 0xa4b   :  { %5359 = vpow2.f32 %v3888_v45 }
 0xa4c   :  { %5361 = vpow2.f32 %v3889_v54 }
 0xa4d   :  { %5363 = vtanh.f32 %v5125_v5 }
 0xa4e   :  { %5365 = vpow2.f32 %v3890_v7 }
 0xa55   :  { %v5360_v27 = vpop.eup %5359 }
 0xa56   :  { %v2658_v6 = vadd.f32 1.0, %v5360_v27  ;;  %v5362_v38 = vpop.eup %5361 }
 0xa57   :  { %v2659_v43 = vadd.f32 1.0, %v5362_v38  ;;  %v5364_v10 = vpop.eup %5363 }
 0xa58   :  { %5367 = vrcp.f32 %v2658_v6  ;;  %v5366_v16 = vpop.eup %5365 }
 0xa59   :  { %5369 = vrcp.f32 %v2659_v43  ;;  %v2660_v63 = vadd.f32 1.0, %v5366_v16 }
 0xa5b   :  { %5371 = vrcp.f32 %v2660_v63 }
 0xa62   :  { %v5368_v59 = vpop.eup %5367 }
 0xa63   :  { %v2669_v18 = vmul.f32 %v5368_v59, %v5364_v10  ;;  %v5370_v35 = vpop.eup %5369 }
 0xa64   :  { %v2668_v31 = vmul.f32 %v5370_v35, %v6365_v32 }
 0xa65   :  { %v5372_v33 = vpop.eup %5371 }
 0xa66   :  { %v6407_v36 = vadd.f32 %v2669_v18, %v2668_v31 }
 0xa68   :  { %5373 = vtanh.f32 %v6407_v36 }
 0xa72   :  { %v5374_v9 = vpop.eup %5373 }
 0xa73   :  { %v2672_v13 = vmul.f32 %v5374_v9, %v5372_v33 }
 0xa75   :  { %2742 = vmatmul.mubr.f32.vlgmr.msra.gmra.mrb[20].mxu0 %v2672_v13  ;;  %2813 = vmatmul.mubr.f32.vlgmr.msra.gmra.mrb[20].mxu1 %v2672_v13 }
 0xa76   :  { %4733 = vmatpush1.bf16.msra.mxu0 %v6205_v2  ;;  %4765 = vmatpush1.bf16.msra.mxu1 %v6208_v22 }
 0xa77   :  { %4735 = vmatprep.subr.bf16.mxu0 %v6213_v34  ;;  %4767 = vmatprep.subr.bf16.mxu1 %v6215_v50 }
 0xa78   :  { %2915 = vmatprep.mubr.f32.mxu0 %v5572_v0  ;;  %2986 = vmatprep.mubr.f32.mxu1 %v5572_v0 }
 0xa7a   :  { %4737 = vmatpush1.bf16.msra.mxu0 %v6217_v48  ;;  %4769 = vmatpush1.bf16.msra.mxu1 %v6220_v51 }
 0xa7b   :  { %4739 = vmatprep.subr.bf16.mxu0 %v6225_v25  ;;  %4771 = vmatprep.subr.bf16.mxu1 %v6227_v40 }
 0xa7e   :  { %4741 = vmatpush1.bf16.msra.mxu0 %v6229_v41  ;;  %4773 = vmatpush1.bf16.msra.mxu1 %v6232_v53 }
 0xa7f   :  { %4743 = vmatprep.subr.bf16.mxu0 %v6237_v3  ;;  %4775 = vmatprep.subr.bf16.mxu1 %v6239_v20 }
 0xa82   :  { %4745 = vmatpush1.bf16.msra.mxu0 %v6241_v21  ;;  %4777 = vmatpush1.bf16.msra.mxu1 %v6244_v37 }
 0xa83   :  { %4747 = vmatprep.subr.bf16.mxu0 %v6249_v56  ;;  %4779 = vmatprep.subr.bf16.mxu1 %v6251_v49 }
 0xa86   :  { %4749 = vmatpush1.bf16.msra.mxu0 %v6253_v42  ;;  %4781 = vmatpush1.bf16.msra.mxu1 %v6256_v19 }
 0xa87   :  { %4751 = vmatprep.subr.bf16.mxu0 %v6260_v11  ;;  %4783 = vmatprep.subr.bf16.mxu1 %v6262_v28 }
 0xa8a   :  { %4753 = vmatpush1.bf16.msra.mxu0 %v6265_v62  ;;  %4785 = vmatpush1.bf16.msra.mxu1 %v6269_v29 }
 0xa8b   :  { %4755 = vmatprep.subr.bf16.mxu0 %v6271_v30  ;;  %4787 = vmatprep.subr.bf16.mxu1 %v6273_v57 }
 0xa8e   :  { %4757 = vmatpush1.bf16.msra.mxu0 %v6276_v8  ;;  %4789 = vmatpush1.bf16.msra.mxu1 %v6280_v24 }
 0xa8f   :  { %4759 = vmatprep.subr.bf16.mxu0 %v6285_v46  ;;  %4791 = vmatprep.subr.bf16.mxu1 %v6287_v61 }
 0xa92   :  { %4761 = vmatpush1.bf16.msra.mxu0 %v6289_v55  ;;  %4793 = vmatpush1.bf16.msra.mxu1 %v6292_v23 }
 0xa93   :  { %4795 = vmatprep.subr.bf16.mxu0 %v6201_v12  ;;  %4827 = vmatprep.subr.bf16.mxu1 %v6203_v15 }
 0xb48   :  { %v2743_v32 = vpop.f32.mrb[20].mxu0  ;;  %v2814_v60 = vpop.f32.mrb[20].mxu1 }
 0xb49   :  { %v5110_v47 = vadd.f32 %v2743_v32, %v6347_v39  ;;  %v2745_v14 = vpop.f32.mrb[21].mxu0  ;;  %v2816_v17 = vpop.f32.mrb[21].mxu1  ;;  %v5126_v54 = vadd.f32 %v2814_v60, %v6357_v4 }
 0xb4a   :  { %v5111_v26 = vadd.f32 %v2745_v14, %v6351_v52  ;;  %v5127_v58 = vadd.f32 %v2816_v17, %v6361_v1 }
 0xb4b   :  { %v3891_v44 = vmul.f32 -1.442695, %v5110_v47  ;;  %v3893_v5 = vmul.f32 -1.442695, %v5126_v54 }
 0xb4c   :  { %v3892_v45 = vmul.f32 -1.442695, %v5111_v26 }
 0xb4d   :  { %5375 = vpow2.f32 %v3891_v44 }
 0xb4e   :  { %5377 = vpow2.f32 %v3892_v45 }
 0xb4f   :  { %5379 = vtanh.f32 %v5127_v58 }
 0xb50   :  { %5381 = vpow2.f32 %v3893_v5 }
 0xb57   :  { %v5376_v7 = vpop.eup %5375 }
 0xb58   :  { %v2832_v27 = vadd.f32 1.0, %v5376_v7  ;;  %v5378_v6 = vpop.eup %5377 }
 0xb59   :  { %v2833_v38 = vadd.f32 1.0, %v5378_v6  ;;  %v5380_v43 = vpop.eup %5379 }
 0xb5a   :  { %5383 = vrcp.f32 %v2832_v27  ;;  %v5382_v10 = vpop.eup %5381 }
 0xb5b   :  { %5385 = vrcp.f32 %v2833_v38  ;;  %v2834_v35 = vadd.f32 1.0, %v5382_v10 }
 0xb5d   :  { %5387 = vrcp.f32 %v2834_v35 }
 0xb64   :  { %v5384_v16 = vpop.eup %5383 }
 0xb65   :  { %v2843_v59 = vmul.f32 %v5384_v16, %v5380_v43  ;;  %v5386_v18 = vpop.eup %5385 }
 0xb66   :  { %v2842_v63 = vmul.f32 %v5386_v18, %v6407_v36 }
 0xb67   :  { %v5388_v33 = vpop.eup %5387 }
 0xb68   :  { %v6449_v31 = vadd.f32 %v2843_v59, %v2842_v63 }
 0xb6a   :  { %5389 = vtanh.f32 %v6449_v31 }
 0xb74   :  { %v5390_v9 = vpop.eup %5389 }
 0xb75   :  { %v2846_v13 = vmul.f32 %v5390_v9, %v5388_v33 }
 0xb77   :  { %2916 = vmatmul.mubr.f32.vlgmr.msra.gmra.mrb[22].mxu0 %v2846_v13  ;;  %2987 = vmatmul.mubr.f32.vlgmr.msra.gmra.mrb[22].mxu1 %v2846_v13 }
 0xb78   :  { %4797 = vmatpush1.bf16.msra.mxu0 %v6205_v2  ;;  %4829 = vmatpush1.bf16.msra.mxu1 %v6208_v22 }
 0xb79   :  { %4799 = vmatprep.subr.bf16.mxu0 %v6213_v34  ;;  %4831 = vmatprep.subr.bf16.mxu1 %v6215_v50 }
 0xb7a   :  { %3089 = vmatprep.mubr.f32.mxu0 %v5572_v0  ;;  %3160 = vmatprep.mubr.f32.mxu1 %v5572_v0 }
 0xb7c   :  { %4801 = vmatpush1.bf16.msra.mxu0 %v6217_v48  ;;  %4833 = vmatpush1.bf16.msra.mxu1 %v6220_v51 }
 0xb7d   :  { %4803 = vmatprep.subr.bf16.mxu0 %v6225_v25  ;;  %4835 = vmatprep.subr.bf16.mxu1 %v6227_v40 }
 0xb80   :  { %4805 = vmatpush1.bf16.msra.mxu0 %v6229_v41  ;;  %4837 = vmatpush1.bf16.msra.mxu1 %v6232_v53 }
 0xb81   :  { %4807 = vmatprep.subr.bf16.mxu0 %v6237_v3  ;;  %4839 = vmatprep.subr.bf16.mxu1 %v6239_v20 }
 0xb84   :  { %4809 = vmatpush1.bf16.msra.mxu0 %v6241_v21  ;;  %4841 = vmatpush1.bf16.msra.mxu1 %v6244_v37 }
 0xb85   :  { %4811 = vmatprep.subr.bf16.mxu0 %v6249_v56  ;;  %4843 = vmatprep.subr.bf16.mxu1 %v6251_v49 }
 0xb88   :  { %4813 = vmatpush1.bf16.msra.mxu0 %v6253_v42  ;;  %4845 = vmatpush1.bf16.msra.mxu1 %v6256_v19 }
 0xb89   :  { %4815 = vmatprep.subr.bf16.mxu0 %v6260_v11  ;;  %4847 = vmatprep.subr.bf16.mxu1 %v6262_v28 }
 0xb8c   :  { %4817 = vmatpush1.bf16.msra.mxu0 %v6265_v62  ;;  %4849 = vmatpush1.bf16.msra.mxu1 %v6269_v29 }
 0xb8d   :  { %4819 = vmatprep.subr.bf16.mxu0 %v6271_v30  ;;  %4851 = vmatprep.subr.bf16.mxu1 %v6273_v57 }
 0xb90   :  { %4821 = vmatpush1.bf16.msra.mxu0 %v6276_v8  ;;  %4853 = vmatpush1.bf16.msra.mxu1 %v6280_v24 }
 0xb91   :  { %4823 = vmatprep.subr.bf16.mxu0 %v6285_v46  ;;  %4855 = vmatprep.subr.bf16.mxu1 %v6287_v61 }
 0xb94   :  { %4825 = vmatpush1.bf16.msra.mxu0 %v6289_v55  ;;  %4857 = vmatpush1.bf16.msra.mxu1 %v6292_v23 }
 0xb95   :  { %4859 = vmatprep.subr.bf16.mxu0 %v6201_v12  ;;  %4891 = vmatprep.subr.bf16.mxu1 %v6203_v15 }
 0xc4a   :  { %v2917_v36 = vpop.f32.mrb[22].mxu0  ;;  %v2988_v32 = vpop.f32.mrb[22].mxu1 }
 0xc4b   :  { %v5112_v60 = vadd.f32 %v2917_v36, %v6347_v39  ;;  %v2919_v47 = vpop.f32.mrb[23].mxu0  ;;  %v2990_v14 = vpop.f32.mrb[23].mxu1  ;;  %v5128_v45 = vadd.f32 %v2988_v32, %v6357_v4 }
 0xc4c   :  { %v5113_v17 = vadd.f32 %v2919_v47, %v6351_v52  ;;  %v5129_v54 = vadd.f32 %v2990_v14, %v6361_v1 }
 0xc4d   :  { %v3894_v26 = vmul.f32 -1.442695, %v5112_v60  ;;  %v3896_v58 = vmul.f32 -1.442695, %v5128_v45 }
 0xc4e   :  { %v3895_v44 = vmul.f32 -1.442695, %v5113_v17 }
 0xc4f   :  { %5391 = vpow2.f32 %v3894_v26 }
 0xc50   :  { %5393 = vpow2.f32 %v3895_v44 }
 0xc51   :  { %5395 = vtanh.f32 %v5129_v54 }
 0xc52   :  { %5397 = vpow2.f32 %v3896_v58 }
 0xc59   :  { %v5392_v5 = vpop.eup %5391 }
 0xc5a   :  { %v3006_v7 = vadd.f32 1.0, %v5392_v5  ;;  %v5394_v27 = vpop.eup %5393 }
 0xc5b   :  { %v3007_v6 = vadd.f32 1.0, %v5394_v27  ;;  %v5396_v38 = vpop.eup %5395 }
 0xc5c   :  { %5399 = vrcp.f32 %v3006_v7  ;;  %v5398_v43 = vpop.eup %5397 }
 0xc5d   :  { %5401 = vrcp.f32 %v3007_v6  ;;  %v3008_v18 = vadd.f32 1.0, %v5398_v43 }
 0xc5f   :  { %5403 = vrcp.f32 %v3008_v18 }
 0xc66   :  { %v5400_v10 = vpop.eup %5399 }
 0xc67   :  { %v3017_v16 = vmul.f32 %v5400_v10, %v5396_v38  ;;  %v5402_v59 = vpop.eup %5401 }
 0xc68   :  { %v3016_v35 = vmul.f32 %v5402_v59, %v6449_v31 }
 0xc69   :  { %v5404_v33 = vpop.eup %5403 }
 0xc6a   :  { %v6491_v63 = vadd.f32 %v3017_v16, %v3016_v35 }
 0xc6c   :  { %5405 = vtanh.f32 %v6491_v63 }
 0xc76   :  { %v5406_v9 = vpop.eup %5405 }
 0xc77   :  { %v3020_v13 = vmul.f32 %v5406_v9, %v5404_v33 }
 0xc79   :  { %3090 = vmatmul.mubr.f32.vlgmr.msra.gmra.mrb[24].mxu0 %v3020_v13  ;;  %3161 = vmatmul.mubr.f32.vlgmr.msra.gmra.mrb[24].mxu1 %v3020_v13 }
 0xc7a   :  { %4861 = vmatpush1.bf16.msra.mxu0 %v6205_v2  ;;  %4893 = vmatpush1.bf16.msra.mxu1 %v6208_v22 }
 0xc7b   :  { %4863 = vmatprep.subr.bf16.mxu0 %v6213_v34  ;;  %4895 = vmatprep.subr.bf16.mxu1 %v6215_v50 }
 0xc7c   :  { %3263 = vmatprep.mubr.f32.mxu0 %v5572_v0  ;;  %3334 = vmatprep.mubr.f32.mxu1 %v5572_v0 }
 0xc7e   :  { %4865 = vmatpush1.bf16.msra.mxu0 %v6217_v48  ;;  %4897 = vmatpush1.bf16.msra.mxu1 %v6220_v51 }
 0xc7f   :  { %4867 = vmatprep.subr.bf16.mxu0 %v6225_v25  ;;  %4899 = vmatprep.subr.bf16.mxu1 %v6227_v40 }
 0xc82   :  { %4869 = vmatpush1.bf16.msra.mxu0 %v6229_v41  ;;  %4901 = vmatpush1.bf16.msra.mxu1 %v6232_v53 }
 0xc83   :  { %4871 = vmatprep.subr.bf16.mxu0 %v6237_v3  ;;  %4903 = vmatprep.subr.bf16.mxu1 %v6239_v20 }
 0xc86   :  { %4873 = vmatpush1.bf16.msra.mxu0 %v6241_v21  ;;  %4905 = vmatpush1.bf16.msra.mxu1 %v6244_v37 }
 0xc87   :  { %4875 = vmatprep.subr.bf16.mxu0 %v6249_v56  ;;  %4907 = vmatprep.subr.bf16.mxu1 %v6251_v49 }
 0xc8a   :  { %4877 = vmatpush1.bf16.msra.mxu0 %v6253_v42  ;;  %4909 = vmatpush1.bf16.msra.mxu1 %v6256_v19 }
 0xc8b   :  { %4879 = vmatprep.subr.bf16.mxu0 %v6260_v11  ;;  %4911 = vmatprep.subr.bf16.mxu1 %v6262_v28 }
 0xc8e   :  { %4881 = vmatpush1.bf16.msra.mxu0 %v6265_v62  ;;  %4913 = vmatpush1.bf16.msra.mxu1 %v6269_v29 }
 0xc8f   :  { %4883 = vmatprep.subr.bf16.mxu0 %v6271_v30  ;;  %4915 = vmatprep.subr.bf16.mxu1 %v6273_v57 }
 0xc92   :  { %4885 = vmatpush1.bf16.msra.mxu0 %v6276_v8  ;;  %4917 = vmatpush1.bf16.msra.mxu1 %v6280_v24 }
 0xc93   :  { %4887 = vmatprep.subr.bf16.mxu0 %v6285_v46  ;;  %4919 = vmatprep.subr.bf16.mxu1 %v6287_v61 }
 0xc96   :  { %4889 = vmatpush1.bf16.msra.mxu0 %v6289_v55  ;;  %4921 = vmatpush1.bf16.msra.mxu1 %v6292_v23 }
 0xc97   :  { %4923 = vmatprep.subr.bf16.mxu0 %v6201_v12  ;;  %4955 = vmatprep.subr.bf16.mxu1 %v6203_v15 }
 0xd4c   :  { %v3091_v31 = vpop.f32.mrb[24].mxu0  ;;  %v3162_v36 = vpop.f32.mrb[24].mxu1 }
 0xd4d   :  { %v5114_v32 = vadd.f32 %v3091_v31, %v6347_v39  ;;  %v3093_v60 = vpop.f32.mrb[25].mxu0  ;;  %v3164_v47 = vpop.f32.mrb[25].mxu1  ;;  %v5130_v44 = vadd.f32 %v3162_v36, %v6357_v4 }
 0xd4e   :  { %v5115_v14 = vadd.f32 %v3093_v60, %v6351_v52  ;;  %v5131_v45 = vadd.f32 %v3164_v47, %v6361_v1 }
 0xd4f   :  { %v3897_v17 = vmul.f32 -1.442695, %v5114_v32  ;;  %v3899_v54 = vmul.f32 -1.442695, %v5130_v44 }
 0xd50   :  { %v3898_v26 = vmul.f32 -1.442695, %v5115_v14 }
 0xd51   :  { %5407 = vpow2.f32 %v3897_v17 }
 0xd52   :  { %5409 = vpow2.f32 %v3898_v26 }
 0xd53   :  { %5411 = vtanh.f32 %v5131_v45 }
 0xd54   :  { %5413 = vpow2.f32 %v3899_v54 }
 0xd5b   :  { %v5408_v58 = vpop.eup %5407 }
 0xd5c   :  { %v3180_v5 = vadd.f32 1.0, %v5408_v58  ;;  %v5410_v7 = vpop.eup %5409 }
 0xd5d   :  { %v3181_v27 = vadd.f32 1.0, %v5410_v7  ;;  %v5412_v6 = vpop.eup %5411 }
 0xd5e   :  { %5415 = vrcp.f32 %v3180_v5  ;;  %v5414_v38 = vpop.eup %5413 }
 0xd5f   :  { %5417 = vrcp.f32 %v3181_v27  ;;  %v3182_v59 = vadd.f32 1.0, %v5414_v38 }
 0xd61   :  { %5419 = vrcp.f32 %v3182_v59 }
 0xd68   :  { %v5416_v43 = vpop.eup %5415 }
 0xd69   :  { %v3191_v10 = vmul.f32 %v5416_v43, %v5412_v6  ;;  %v5418_v16 = vpop.eup %5417 }
 0xd6a   :  { %v3190_v18 = vmul.f32 %v5418_v16, %v6491_v63 }
 0xd6b   :  { %v5420_v33 = vpop.eup %5419 }
 0xd6c   :  { %v6533_v35 = vadd.f32 %v3191_v10, %v3190_v18 }
 0xd6e   :  { %5421 = vtanh.f32 %v6533_v35 }
 0xd78   :  { %v5422_v9 = vpop.eup %5421 }
 0xd79   :  { %v3194_v13 = vmul.f32 %v5422_v9, %v5420_v33  ;;  %v3726_v9 = vld [vmem:[#allocation11 + $0x18] sm:$0xff] }
 0xd7b   :  { %3264 = vmatmul.mubr.f32.vlgmr.msra.gmra.mrb[26].mxu0 %v3194_v13  ;;  %3335 = vmatmul.mubr.f32.vlgmr.msra.gmra.mrb[26].mxu1 %v3194_v13 }
 0xd7c   :  { %4925 = vmatpush1.bf16.msra.mxu0 %v6205_v2  ;;  %4957 = vmatpush1.bf16.msra.mxu1 %v6208_v22 }
 0xd7d   :  { %4927 = vmatprep.subr.bf16.mxu0 %v6213_v34  ;;  %4959 = vmatprep.subr.bf16.mxu1 %v6215_v50 }
 0xd7e   :  { %3437 = vmatprep.mubr.f32.mxu0 %v5572_v0  ;;  %3508 = vmatprep.mubr.f32.mxu1 %v5572_v0 }
 0xd80   :  { %4929 = vmatpush1.bf16.msra.mxu0 %v6217_v48  ;;  %4961 = vmatpush1.bf16.msra.mxu1 %v6220_v51 }
 0xd81   :  { %4931 = vmatprep.subr.bf16.mxu0 %v6225_v25  ;;  %4963 = vmatprep.subr.bf16.mxu1 %v6227_v40 }
 0xd84   :  { %4933 = vmatpush1.bf16.msra.mxu0 %v6229_v41  ;;  %4965 = vmatpush1.bf16.msra.mxu1 %v6232_v53 }
 0xd85   :  { %4935 = vmatprep.subr.bf16.mxu0 %v6237_v3  ;;  %4967 = vmatprep.subr.bf16.mxu1 %v6239_v20 }
 0xd88   :  { %4937 = vmatpush1.bf16.msra.mxu0 %v6241_v21  ;;  %4969 = vmatpush1.bf16.msra.mxu1 %v6244_v37 }
 0xd89   :  { %4939 = vmatprep.subr.bf16.mxu0 %v6249_v56  ;;  %4971 = vmatprep.subr.bf16.mxu1 %v6251_v49 }
 0xd8c   :  { %4941 = vmatpush1.bf16.msra.mxu0 %v6253_v42  ;;  %4973 = vmatpush1.bf16.msra.mxu1 %v6256_v19 }
 0xd8d   :  { %4943 = vmatprep.subr.bf16.mxu0 %v6260_v11  ;;  %4975 = vmatprep.subr.bf16.mxu1 %v6262_v28 }
 0xd90   :  { %4945 = vmatpush1.bf16.msra.mxu0 %v6265_v62  ;;  %4977 = vmatpush1.bf16.msra.mxu1 %v6269_v29 }
 0xd91   :  { %4947 = vmatprep.subr.bf16.mxu0 %v6271_v30  ;;  %4979 = vmatprep.subr.bf16.mxu1 %v6273_v57 }
 0xd94   :  { %4949 = vmatpush1.bf16.msra.mxu0 %v6276_v8  ;;  %4981 = vmatpush1.bf16.msra.mxu1 %v6280_v24 }
 0xd95   :  { %4951 = vmatprep.subr.bf16.mxu0 %v6285_v46  ;;  %4983 = vmatprep.subr.bf16.mxu1 %v6287_v61 }
 0xd98   :  { %4953 = vmatpush1.bf16.msra.mxu0 %v6289_v55  ;;  %4985 = vmatpush1.bf16.msra.mxu1 %v6292_v23 }
 0xd99   :  { %4987 = vmatprep.subr.bf16.mxu0 %v6201_v12  ;;  %5019 = vmatprep.subr.bf16.mxu1 %v6203_v15 }
 0xe4e   :  { %v3265_v63 = vpop.f32.mrb[26].mxu0  ;;  %v3336_v31 = vpop.f32.mrb[26].mxu1 }
 0xe4f   :  { %v5116_v36 = vadd.f32 %v3265_v63, %v6347_v39  ;;  %v3267_v32 = vpop.f32.mrb[27].mxu0  ;;  %v3338_v60 = vpop.f32.mrb[27].mxu1  ;;  %v5132_v26 = vadd.f32 %v3336_v31, %v6357_v4  ;;  %v3727_v63 = vld [vmem:[#allocation11 + $0x20] sm:$0xff]  ;;  %v3728_v31 = vld [vmem:[#allocation11 + $0x28] sm:$0xff] }
 0xe50   :  { %v5117_v47 = vadd.f32 %v3267_v32, %v6351_v52  ;;  %v5133_v44 = vadd.f32 %v3338_v60, %v6361_v1  ;;  %v3729_v32 = vld [vmem:[#allocation11 + $0x30] sm:$0xff]  ;;  %v3730_v60 = vld [vmem:[#allocation11 + $0x38] sm:$0xff] }
 0xe51   :  { %v3900_v14 = vmul.f32 -1.442695, %v5116_v36  ;;  %v3902_v45 = vmul.f32 -1.442695, %v5132_v26  ;;  %v5057_v36 = vpack.c.bf16 %v3728_v31, %v3727_v63 }
 0xe52   :  { %v3901_v17 = vmul.f32 -1.442695, %v5117_v47  ;;  %v5060_v47 = vpack.c.bf16 %v3730_v60, %v3729_v32 }
 0xe53   :  { %5423 = vpow2.f32 %v3900_v14  ;;  %v3731_v14 = vld [vmem:[#allocation11 + $0x40] sm:$0xff] }
 0xe54   :  { %5425 = vpow2.f32 %v3901_v17  ;;  %v3732_v17 = vld [vmem:[#allocation11 + $0x48] sm:$0xff] }
 0xe55   :  { %5427 = vtanh.f32 %v5133_v44  ;;  %v5063_v26 = vpack.c.bf16 %v3732_v17, %v3731_v14  ;;  %v3733_v44 = vld [vmem:[#allocation11 + $0x50] sm:$0xff] }
 0xe56   :  { %5429 = vpow2.f32 %v3902_v45  ;;  %v3734_v45 = vld [vmem:[#allocation11 + $0x58] sm:$0xff] }
 0xe5d   :  { %v5424_v12 = vpop.eup %5423 }
 0xe5e   :  { %v3354_v54 = vadd.f32 1.0, %v5424_v12  ;;  %v5426_v15 = vpop.eup %5425  ;;  %v5066_v12 = vpack.c.bf16 %v3734_v45, %v3733_v44 }
 0xe5f   :  { %v3355_v58 = vadd.f32 1.0, %v5426_v15  ;;  %v5428_v5 = vpop.eup %5427  ;;  %v3736_v15 = vld [vmem:[#allocation11 + $0x68] sm:$0xff] }
 0xe60   :  { %5431 = vrcp.f32 %v3354_v54  ;;  %v5430_v7 = vpop.eup %5429  ;;  %v3735_v54 = vld [vmem:[#allocation11 + $0x60] sm:$0xff] }
 0xe61   :  { %5433 = vrcp.f32 %v3355_v58  ;;  %v3356_v43 = vadd.f32 1.0, %v5430_v7  ;;  %v5069_v58 = vpack.c.bf16 %v3736_v15, %v3735_v54  ;;  %v3738_v7 = vld [vmem:[#allocation11 + $0x78] sm:$0xff] }
 0xe63   :  { %5435 = vrcp.f32 %v3356_v43 }
 0xe6a   :  { %v5432_v27 = vpop.eup %5431 }
 0xe6b   :  { %v3365_v6 = vmul.f32 %v5432_v27, %v5428_v5  ;;  %v5434_v38 = vpop.eup %5433  ;;  %v3737_v5 = vld [vmem:[#allocation11 + $0x70] sm:$0xff] }
 0xe6c   :  { %v3364_v10 = vmul.f32 %v5434_v38, %v6533_v35  ;;  %v3725_v35 = vld [vmem:[#allocation11 + $0x10] sm:$0xff]  ;;  %v5072_v27 = vpack.c.bf16 %v3738_v7, %v3737_v5 }
 0xe6d   :  { %v5436_v59 = vpop.eup %5435  ;;  %v5054_v13 = vpack.c.bf16 %v3726_v9, %v3725_v35 }
 0xe6e   :  { %v6575_v16 = vadd.f32 %v3365_v6, %v3364_v10 }
 0xe70   :  { %5437 = vtanh.f32 %v6575_v16 }
 0xe7a   :  { %v5438_v18 = vpop.eup %5437 }
 0xe7b   :  { %v3368_v33 = vmul.f32 %v5438_v18, %v5436_v59 }
 0xe7d   :  { %3438 = vmatmul.mubr.f32.vlgmr.msra.gmra.mrb[28].mxu0 %v3368_v33  ;;  %3509 = vmatmul.mubr.f32.vlgmr.msra.gmra.mrb[28].mxu1 %v3368_v33 }
 0xe7e   :  { %4989 = vmatpush1.bf16.msra.mxu0 %v6205_v2  ;;  %5021 = vmatpush1.bf16.msra.mxu1 %v6208_v22 }
 0xe7f   :  { %4991 = vmatprep.subr.bf16.mxu0 %v6213_v34  ;;  %5023 = vmatprep.subr.bf16.mxu1 %v6215_v50 }
 0xe80   :  { %3611 = vmatprep.mubr.f32.mxu0 %v5572_v0  ;;  %3682 = vmatprep.mubr.f32.mxu1 %v5572_v0 }
 0xe82   :  { %4993 = vmatpush1.bf16.msra.mxu0 %v6217_v48  ;;  %5025 = vmatpush1.bf16.msra.mxu1 %v6220_v51 }
 0xe83   :  { %4995 = vmatprep.subr.bf16.mxu0 %v6225_v25  ;;  %5027 = vmatprep.subr.bf16.mxu1 %v6227_v40 }
 0xe86   :  { %4997 = vmatpush1.bf16.msra.mxu0 %v6229_v41  ;;  %5029 = vmatpush1.bf16.msra.mxu1 %v6232_v53 }
 0xe87   :  { %4999 = vmatprep.subr.bf16.mxu0 %v6237_v3  ;;  %5031 = vmatprep.subr.bf16.mxu1 %v6239_v20 }
 0xe8a   :  { %5001 = vmatpush1.bf16.msra.mxu0 %v6241_v21  ;;  %5033 = vmatpush1.bf16.msra.mxu1 %v6244_v37 }
 0xe8b   :  { %5003 = vmatprep.subr.bf16.mxu0 %v6249_v56  ;;  %5035 = vmatprep.subr.bf16.mxu1 %v6251_v49 }
 0xe8e   :  { %5005 = vmatpush1.bf16.msra.mxu0 %v6253_v42  ;;  %5037 = vmatpush1.bf16.msra.mxu1 %v6256_v19 }
 0xe8f   :  { %5007 = vmatprep.subr.bf16.mxu0 %v6260_v11  ;;  %5039 = vmatprep.subr.bf16.mxu1 %v6262_v28 }
 0xe92   :  { %5009 = vmatpush1.bf16.msra.mxu0 %v6265_v62  ;;  %5041 = vmatpush1.bf16.msra.mxu1 %v6269_v29 }
 0xe93   :  { %5011 = vmatprep.subr.bf16.mxu0 %v6271_v30  ;;  %5043 = vmatprep.subr.bf16.mxu1 %v6273_v57 }
 0xe96   :  { %5013 = vmatpush1.bf16.msra.mxu0 %v6276_v8  ;;  %5045 = vmatpush1.bf16.msra.mxu1 %v6280_v24 }
 0xe97   :  { %5015 = vmatprep.subr.bf16.mxu0 %v6285_v46  ;;  %5047 = vmatprep.subr.bf16.mxu1 %v6287_v61  ;;  %v3723_v46 = vld [vmem:[#allocation11] sm:$0xff]  ;;  %v3724_v61 = vld [vmem:[#allocation11 + $0x8] sm:$0xff] }
 0xe9a   :  { %5017 = vmatpush1.bf16.msra.mxu0 %v6289_v55  ;;  %5049 = vmatpush1.bf16.msra.mxu1 %v6292_v23  ;;  %v5051_v55 = vpack.c.bf16 %v3724_v61, %v3723_v46  ;;  %v5573_v23 = vmov 0.0|0.0  }
 0xe9b   :  { %5050 = vmatprep.subr.bf16.mxu0 %v5573_v23 }
 0xf50   :  { %v3439_v2 = vpop.f32.mrb[28].mxu0  ;;  %v3510_v22 = vpop.f32.mrb[28].mxu1 }
 0xf51   :  { %v5118_v34 = vadd.f32 %v3439_v2, %v6347_v39  ;;  %v3441_v50 = vpop.f32.mrb[29].mxu0  ;;  %v3512_v48 = vpop.f32.mrb[29].mxu1  ;;  %v5134_v41 = vadd.f32 %v3510_v22, %v6357_v4 }
 0xf52   :  { %v5119_v51 = vadd.f32 %v3441_v50, %v6351_v52  ;;  %v5135_v53 = vadd.f32 %v3512_v48, %v6361_v1 }
 0xf53   :  { %v3903_v25 = vmul.f32 -1.442695, %v5118_v34  ;;  %v3905_v3 = vmul.f32 -1.442695, %v5134_v41 }
 0xf54   :  { %v3904_v40 = vmul.f32 -1.442695, %v5119_v51 }
 0xf55   :  { %5439 = vpow2.f32 %v3903_v25 }
 0xf56   :  { %5441 = vpow2.f32 %v3904_v40 }
 0xf57   :  { %5443 = vtanh.f32 %v5135_v53 }
 0xf58   :  { %5445 = vpow2.f32 %v3905_v3 }
 0xf5f   :  { %v5440_v20 = vpop.eup %5439 }
 0xf60   :  { %v3528_v21 = vadd.f32 1.0, %v5440_v20  ;;  %v5442_v37 = vpop.eup %5441 }
 0xf61   :  { %v3529_v56 = vadd.f32 1.0, %v5442_v37  ;;  %v5444_v49 = vpop.eup %5443  ;;  %v3909_v37 = vld [vmem:[%s6645_s6] ss:$0 sm:$0xff] }
 0xf62   :  { %5447 = vrcp.f32 %v3528_v21  ;;  %v5446_v42 = vpop.eup %5445 }
 0xf63   :  { %5449 = vrcp.f32 %v3529_v56  ;;  %v3530_v62 = vadd.f32 1.0, %v5446_v42 }
 0xf65   :  { %5451 = vrcp.f32 %v3530_v62 }
 0xf6c   :  { %v5448_v19 = vpop.eup %5447 }
 0xf6d   :  { %v3539_v11 = vmul.f32 %v5448_v19, %v5444_v49  ;;  %v5450_v28 = vpop.eup %5449 }
 0xf6e   :  { %v3538_v29 = vmul.f32 %v5450_v28, %v6575_v16 }
 0xf6f   :  { %v5452_v57 = vpop.eup %5451 }
 0xf70   :  { %v6615_v30 = vadd.f32 %v3539_v11, %v3538_v29 }
 0xf72   :  { %5453 = vtanh.f32 %v6615_v30 }
 0xf7c   :  { %v5454_v8 = vpop.eup %5453 }
 0xf7d   :  { %v3542_v24 = vmul.f32 %v5454_v8, %v5452_v57 }
 0xf7f   :  { %3612 = vmatmul.mubr.f32.vlgmr.msra.gmra.mrb[30].mxu0 %v3542_v24  ;;  %3683 = vmatmul.mubr.f32.vlgmr.msra.gmra.mrb[30].mxu1 %v3542_v24 }
 0xf80   :  { %5052 = vmatpush3.bf16.msra.mxu0 %v5051_v55  ;;  %3959 = vmatprep.mubr.msk.f32.mxu0 %vm5574_vm2, %v5572_v0 }
 0xf81   :  { %5053 = vmatprep.subr.bf16.mxu0 %v5573_v23 }
 0xf84   :  { %5055 = vmatpush3.bf16.msra.mxu0 %v5054_v13 }
 0xf85   :  { %5056 = vmatprep.subr.bf16.mxu0 %v5573_v23 }
 0xf88   :  { %5058 = vmatpush3.bf16.msra.mxu0 %v5057_v36 }
 0xf89   :  { %5059 = vmatprep.subr.bf16.mxu0 %v5573_v23 }
 0xf8c   :  { %5061 = vmatpush3.bf16.msra.mxu0 %v5060_v47 }
 0xf8d   :  { %5062 = vmatprep.subr.bf16.mxu0 %v5573_v23 }
 0xf90   :  { %5064 = vmatpush3.bf16.msra.mxu0 %v5063_v26 }
 0xf91   :  { %5065 = vmatprep.subr.bf16.mxu0 %v5573_v23 }
 0xf94   :  { %5067 = vmatpush3.bf16.msra.mxu0 %v5066_v12 }
 0xf95   :  { %5068 = vmatprep.subr.bf16.mxu0 %v5573_v23 }
 0xf98   :  { %5070 = vmatpush3.bf16.msra.mxu0 %v5069_v58 }
 0xf99   :  { %5071 = vmatprep.subr.bf16.mxu0 %v5573_v23 }
 0xf9c   :  { %5073 = vmatpush3.bf16.msra.mxu0 %v5072_v27 }
0x1052   :  { %v3613_v6 = vpop.f32.mrb[30].mxu0  ;;  %v3684_v38 = vpop.f32.mrb[30].mxu1 }
0x1053   :  { %v5120_v43 = vadd.f32 %v3613_v6, %v6347_v39  ;;  %v3615_v10 = vpop.f32.mrb[31].mxu0  ;;  %v3686_v16 = vpop.f32.mrb[31].mxu1  ;;  %v5136_v0 = vadd.f32 %v3684_v38, %v6357_v4 }
0x1054   :  { %v5121_v59 = vadd.f32 %v3615_v10, %v6351_v52  ;;  %v5137_v2 = vadd.f32 %v3686_v16, %v6361_v1 }
0x1055   :  { %v3906_v18 = vmul.f32 -1.442695, %v5120_v43  ;;  %v3908_v22 = vmul.f32 -1.442695, %v5136_v0 }
0x1056   :  { %v3907_v33 = vmul.f32 -1.442695, %v5121_v59 }
0x1057   :  { %5455 = vpow2.f32 %v3906_v18 }
0x1058   :  { %5457 = vpow2.f32 %v3907_v33 }
0x1059   :  { %5459 = vtanh.f32 %v5137_v2 }
0x105a   :  { %5461 = vpow2.f32 %v3908_v22 }
0x1061   :  { %v5456_v34 = vpop.eup %5455 }
0x1062   :  { %v3702_v50 = vadd.f32 1.0, %v5456_v34  ;;  %v5458_v48 = vpop.eup %5457 }
0x1063   :  { %v3703_v39 = vadd.f32 1.0, %v5458_v48  ;;  %v5460_v51 = vpop.eup %5459 }
0x1064   :  { %5463 = vrcp.f32 %v3702_v50  ;;  %v5462_v25 = vpop.eup %5461 }
0x1065   :  { %5465 = vrcp.f32 %v3703_v39  ;;  %v3704_v53 = vadd.f32 1.0, %v5462_v25 }
0x1067   :  { %5467 = vrcp.f32 %v3704_v53 }
0x106e   :  { %v5464_v52 = vpop.eup %5463 }
0x106f   :  { %v3713_v40 = vmul.f32 %v5464_v52, %v5460_v51  ;;  %v5466_v41 = vpop.eup %5465 }
0x1070   :  { %v3712_v3 = vmul.f32 %v5466_v41, %v6615_v30 }
0x1071   :  { %v5468_v1 = vpop.eup %5467 }
0x1072   :  { %v3714_v4 = vadd.f32 %v3713_v40, %v3712_v3 }
0x1074   :  { %5469 = vtanh.f32 %v3714_v4 }
0x107e   :  { %v5470_v20 = vpop.eup %5469 }
0x107f   :  { %v3716_v21 = vmul.f32 %v5470_v20, %v5468_v1 }
0x1081   :  { %3960 = vmatmul.mubr.f32.vlgmr.msra.gmra.mrb[32].mxu0 %v3716_v21 }
0x1154   :  { %v3812_v56 = vpop.f32.mrb[32].mxu0 }
0x1155   :  { %v3813_v49 = vadd.f32 %v3909_v37, %v3812_v56  ;;  %v3961_v42 = vpop.f32.mrb[33].mxu0 }
0x1157   :  { %3816 = vst [vmem:[#allocation12] sm:$0xff] %v3813_v49 }
0x1158   :  { %5548 = shalt.err (!%p5545_p0)
}
0x1159   :  { %s5549_s18 = scalar_lea.hbm %s6646_s7, 128 }
0x115a   :  { %p5550_p1 = scmp.ne.s32.totalorder %s6646_s7, %s5549_s18  ;;  %p5553_p2 = scmp.lt.u32.totalorder %s5549_s18, %s6646_s7 }
0x115c   :  { %p5555_p3 = pnand %p5553_p2, %p5550_p1 }
0x115e   :  { %5558 = shalt.err (!%p5555_p3)
}
0x115f   :  { %3826 = dma.vmem_to_hbm [thread:$0]  %s3824_s13, 128, %s6646_s7, [#allocation8]  }
0x1160   :  { %5563 = dma.done.wait [#allocation8], 128  }
0x1161   :  { %5564 = vsyncadd [#allocation8], 4294967168 }
0x1162   :  { %3830 = vsyncpa [#allocation7], 1 }
0x1163   :  { %3831 = vsyncpa [#allocation10], 1 }
0x1164   :  { %3832 = vsyncpa [#allocation8], 1 }

// kernel: tpu_custom_call.1
= control target key start
LH: loop header
LB: loop body
LE: loop exit
PB: predicated region body
PF: predicated region fallthrough
CT: control target
= control target key end

     0   :  { %12 = vsyncpa [#allocation7], 0  ;;  %s6639_s0 = inlined_call_operand.vmem [shape: f32[64,4], index: 0, kind: input, shape index: {}]   ;;  %s6640_s1 = inlined_call_operand.vmem [shape: f32[4,512], index: 1, kind: input, shape index: {}]   ;;  %s6641_s2 = inlined_call_operand.hbm [shape: f32[1,128,512], index: 2, kind: input, shape index: {}]   ;;  %s6642_s3 = inlined_call_operand.hbm [shape: f32[2,128,512], index: 3, kind: input, shape index: {}]   ;;  %s6643_s4 = inlined_call_operand.vmem [shape: f32[2,1,512], index: 4, kind: input, shape index: {}]   ;;  %s6644_s5 = inlined_call_operand.hbm [shape: f32[128,128], index: 5, kind: input, shape index: {}]   ;;  %s6645_s6 = inlined_call_operand.vmem [shape: f32[1,128], index: 6, kind: input, shape index: {}]   ;;  %s6646_s7 = inlined_call_operand.hbm [shape: f32[8,128], index: 7, kind: output, shape index: {}]  }
   0x1   :  { %13 = vsyncpa [#allocation10], 0 }
   0x2   :  { %14 = vsyncpa [#allocation8], 0  ;;  %s5565_s24 = smov [#allocation9]   ;;  %s5566_s26 = smov [#allocation6]  }
   0x3   :  { %s36_s25 = sshll.u32 %s5565_s24, 4  ;;  %s24_s27 = sshll.u32 %s5566_s26, 4  ;;  %s37_s25 = int_to_ptr.vmem [resolvable:$true] %s36_s25  ;;  %s5616_s27 = int_to_ptr.vmem [resolvable:$true] %s24_s27 }
   0x4   :  { %s5471_s30 = scalar_lea.hbm %s6642_s3, 16384 }
   0x5   :  { %p5472_p0 = scmp.ne.s32.totalorder %s6642_s3, %s5471_s30  ;;  %p5475_p1 = scmp.lt.u32.totalorder %s5471_s30, %s6642_s3 }
   0x7   :  { %p5477_p2 = pnand %p5475_p1, %p5472_p0 }
   0x9   :  { %5480 = shalt.err (!%p5477_p2)
}
   0xa   :  { %s5481_s12 = scalar_lea.vmem %s37_s25, 16384  ;;  %p5486_p4 = scmp.lt.s32.totalorder %s37_s25, %s37_s25 }
   0xb   :  { %p5482_p3 = scmp.ne.s32.totalorder %s37_s25, %s5481_s12  ;;  %p5487_p5 = scmp.lt.s32.totalorder %s5481_s12, %s5481_s12 }
   0xd   :  { %p5488_p6 = por %p5487_p5, %p5486_p4 }
   0xf   :  { %p5489_p7 = pnand %p5488_p6, %p5482_p3 }
  0x11   :  { %5492 = shalt.err (!%p5489_p7)
}
  0x12   :  { %s5567_s13 = smov 512   ;;  %s5568_s14 = smov 32  }
  0x13   :  { %42 = dma.hbm_to_vmem [thread:$0]  %s6642_s3, 16384, %s37_s25, [#allocation10], %s5567_s13, %s5567_s13, %s5568_s14  }
  0x14   :  { %s5493_s19 = scalar_lea.hbm %s6641_s2, 8192 }
  0x15   :  { %p5494_p8 = scmp.ne.s32.totalorder %s6641_s2, %s5493_s19  ;;  %p5497_p9 = scmp.lt.u32.totalorder %s5493_s19, %s6641_s2 }
  0x17   :  { %p5499_p10 = pnand %p5497_p9, %p5494_p8 }
  0x19   :  { %5502 = shalt.err (!%p5499_p10)
}
  0x1a   :  { %s5503_s24 = scalar_lea.vmem %s5616_s27, 8192  ;;  %p5508_p12 = scmp.lt.s32.totalorder %s5616_s27, %s5616_s27 }
  0x1b   :  { %p5504_p11 = scmp.ne.s32.totalorder %s5616_s27, %s5503_s24  ;;  %p5509_p13 = scmp.lt.s32.totalorder %s5503_s24, %s5503_s24 }
  0x1d   :  { %p5510_p0 = por %p5509_p13, %p5508_p12 }
  0x1f   :  { %p5511_p1 = pnand %p5510_p0, %p5504_p11 }
  0x21   :  { %5514 = shalt.err (!%p5511_p1)
}
  0x22   :  { %30 = dma.hbm_to_vmem [thread:$0]  %s6641_s2, 8192, %s5616_s27, [#allocation7], %s5567_s13, %s5567_s13, %s5568_s14  }
  0x23   :  { %s5569_s26 = smov [#allocation11]   ;;  %s5515_s8 = scalar_lea.hbm %s6644_s5, 2048 }
  0x24   :  { %s50_s28 = sshll.u32 %s5569_s26, 4  ;;  %p5516_p2 = scmp.ne.s32.totalorder %s6644_s5, %s5515_s8  ;;  %s51_s28 = int_to_ptr.vmem [resolvable:$true] %s50_s28 }
  0x25   :  { %p5519_p3 = scmp.lt.u32.totalorder %s5515_s8, %s6644_s5 }
  0x27   :  { %p5521_p4 = pnand %p5519_p3, %p5516_p2 }
  0x29   :  { %5524 = shalt.err (!%p5521_p4)
}
  0x2a   :  { %s5525_s15 = scalar_lea.vmem %s51_s28, 2048  ;;  %p5530_p6 = scmp.lt.s32.totalorder %s51_s28, %s51_s28 }
  0x2b   :  { %p5526_p5 = scmp.ne.s32.totalorder %s51_s28, %s5525_s15  ;;  %p5531_p7 = scmp.lt.s32.totalorder %s5525_s15, %s5525_s15 }
  0x2d   :  { %p5532_p8 = por %p5531_p7, %p5530_p6 }
  0x2f   :  { %p5533_p9 = pnand %p5532_p8, %p5526_p5 }
  0x31   :  { %5536 = shalt.err (!%p5533_p9)
}
  0x32   :  { %s5570_s2 = smov 128   ;;  %s5571_s27 = smov 8  }
  0x33   :  { %56 = dma.hbm_to_vmem [thread:$0]  %s6644_s5, 2048, %s51_s28, [#allocation10], %s5570_s2, %s5570_s2, %s5571_s27  }
  0x34   :  { %5559 = dma.done.wait [#allocation7], 8192  }
  0x35   :  { %5560 = vsyncadd [#allocation7], 4294959104 }
  0x36   :  { %5561 = dma.done.wait [#allocation10], 18432  }
  0x37   :  { %5562 = vsyncadd [#allocation10], 4294948864  ;;  %v5572_v0 = vmov 0.0   ;;  %v84_v1 = vld [vmem:[%s6640_s1] sm:$0xff]  ;;  %vm137_vm0 = vcmask 1043456   ;;  %v85_v2 = vld [vmem:[%s6640_s1 + $0x8] sm:$0xff] }
  0x38   :  { %210 = vmatprep.mubr.f32.mxu0 %v5572_v0  ;;  %323 = vmatprep.mubr.f32.mxu1 %v5572_v0  ;;  %v76_v3 = vld [vmem:[%s6639_s0] sm:$0xff]  ;;  %v110_v4 = vcombine.high %v84_v1, %v84_v1  ;;  %v111_v5 = vcombine.high %v85_v2, %v85_v2  ;;  %v405_v6 = vld [vmem:[#allocation9 + $0x8] sm:$0xff]  ;;  %v407_v8 = vld [vmem:[#allocation9 + $0x18] sm:$0xff]  ;;  %vm112_vm1 = vcmask 31744   ;;  %vm5574_vm2 = vmmov 0   ;;  %s5575_s27 = smov [#allocation12]  }
  0x39   :  { %v409_v7 = vld [vmem:[#allocation9 + $0x28] sm:$0xff]  ;;  %v411_v10 = vld [vmem:[#allocation9 + $0x38] sm:$0xff]  ;;  %v404_v11 = vld [vmem:[#allocation9] sm:$0xff]  ;;  %s3823_s13 = sshll.u32 %s5575_s27, 4  ;;  %s3824_s13 = int_to_ptr.vmem [resolvable:$true] %s3823_s13 }
  0x3a   :  { %v5670_v9 = vpack.c.bf16 %v409_v7, %v405_v6  ;;  %v408_v12 = vld [vmem:[#allocation9 + $0x20] sm:$0xff]  ;;  %3840 = vmatprep.subr.msk.mxu0 %vm137_vm0, %v110_v4  ;;  %3850 = vmatprep.subr.msk.mxu1 %vm137_vm0, %v111_v5  ;;  %v5674_v13 = vpack.c.bf16 %v411_v10, %v407_v8  ;;  %v406_v15 = vld [vmem:[#allocation9 + $0x10] sm:$0xff]  ;;  %v413_v18 = vld [vmem:[#allocation9 + $0x48] sm:$0xff]  ;;  %s5537_s14 = scalar_lea.vmem %s3824_s13, 128  ;;  %p5542_p11 = scmp.lt.s32.totalorder %s3824_s13, %s3824_s13 }
  0x3b   :  { %v5676_v14 = vpack.c.bf16 %v408_v12, %v404_v11  ;;  %v410_v16 = vld [vmem:[#allocation9 + $0x30] sm:$0xff]  ;;  %3841 = vmatpush1.msk.msra.mxu0 %vm137_vm0, %v84_v1  ;;  %3851 = vmatpush1.msk.msra.mxu1 %vm137_vm0, %v85_v2  ;;  %v417_v19 = vld [vmem:[#allocation9 + $0x68] sm:$0xff]  ;;  %v415_v20 = vld [vmem:[#allocation9 + $0x58] sm:$0xff]  ;;  %p5538_p10 = scmp.ne.s32.totalorder %s3824_s13, %s5537_s14  ;;  %p5543_p12 = scmp.lt.s32.totalorder %s5537_s14, %s5537_s14 }
  0x3c   :  { %v5680_v17 = vpack.c.bf16 %v410_v16, %v406_v15  ;;  %3842 = vmatmul.mubr.msk.f32.vlgmr.msra.gmra.mrb[0].mxu0 %vm112_vm1, %v76_v3  ;;  %3852 = vmatmul.mubr.msk.f32.vlgmr.msra.gmra.mrb[0].mxu1 %vm112_vm1, %v76_v3  ;;  %v419_v21 = vld [vmem:[#allocation9 + $0x78] sm:$0xff]  ;;  %v412_v22 = vld [vmem:[#allocation9 + $0x40] sm:$0xff]  ;;  %v77_v24 = vld [vmem:[%s6639_s0 + $0x8] sm:$0xff]  ;;  %v5689_v25 = vpack.c.bf16 %v417_v19, %v413_v18 }
  0x3d   :  { %v416_v23 = vld [vmem:[#allocation9 + $0x60] sm:$0xff]  ;;  %3963 = vmatprep.subr.bf16.mxu0 %v5670_v9  ;;  %3995 = vmatprep.subr.bf16.mxu1 %v5674_v13  ;;  %v5691_v26 = vpack.c.bf16 %v419_v21, %v415_v20  ;;  %v414_v27 = vld [vmem:[#allocation9 + $0x50] sm:$0xff]  ;;  %v421_v31 = vld [vmem:[#allocation9 + $0x88] sm:$0xff]  ;;  %p5544_p13 = por %p5543_p12, %p5542_p11 }
  0x3e   :  { %v418_v28 = vld [vmem:[#allocation9 + $0x70] sm:$0xff]  ;;  %3965 = vmatpush1.bf16.msra.mxu0 %v5676_v14  ;;  %3997 = vmatpush1.bf16.msra.mxu1 %v5680_v17  ;;  %v5695_v29 = vpack.c.bf16 %v416_v23, %v412_v22  ;;  %v425_v32 = vld [vmem:[#allocation9 + $0xa8] sm:$0xff]  ;;  %v423_v33 = vld [vmem:[#allocation9 + $0x98] sm:$0xff] }
  0x3f   :  { %v5697_v30 = vpack.c.bf16 %v418_v28, %v414_v27  ;;  %216 = vmatprep.mubr.f32.mxu0 %v5572_v0  ;;  %329 = vmatprep.mubr.f32.mxu1 %v5572_v0  ;;  %v427_v34 = vld [vmem:[#allocation9 + $0xb8] sm:$0xff]  ;;  %v420_v35 = vld [vmem:[#allocation9 + $0x80] sm:$0xff]  ;;  %v422_v37 = vld [vmem:[#allocation9 + $0x90] sm:$0xff]  ;;  %v5708_v40 = vpack.c.bf16 %v425_v32, %v421_v31  ;;  %p5545_p0 = pnand %p5544_p13, %p5538_p10 }
  0x40   :  { %v424_v36 = vld [vmem:[#allocation9 + $0xa0] sm:$0xff]  ;;  %3843 = vmatmul.mubr.msk.f32.gmra.mrb[2].mxu0 %vm112_vm1, %v77_v24  ;;  %3853 = vmatmul.mubr.msk.f32.gmra.mrb[2].mxu1 %vm112_vm1, %v77_v24  ;;  %v426_v38 = vld [vmem:[#allocation9 + $0xb0] sm:$0xff]  ;;  %v5710_v41 = vpack.c.bf16 %v427_v34, %v423_v33  ;;  %v429_v42 = vld [vmem:[#allocation9 + $0xc8] sm:$0xff] }
  0x41   :  { %3967 = vmatprep.subr.bf16.mxu0 %v5689_v25  ;;  %3999 = vmatprep.subr.bf16.mxu1 %v5691_v26  ;;  %v78_v39 = vld [vmem:[%s6639_s0 + $0x10] sm:$0xff]  ;;  %v433_v43 = vld [vmem:[#allocation9 + $0xe8] sm:$0xff]  ;;  %v5714_v44 = vpack.c.bf16 %v424_v36, %v420_v35  ;;  %v5716_v45 = vpack.c.bf16 %v426_v38, %v422_v37  ;;  %v431_v46 = vld [vmem:[#allocation9 + $0xd8] sm:$0xff] }
  0x42   :  { %3969 = vmatpush1.bf16.msra.mxu0 %v5695_v29  ;;  %4001 = vmatpush1.bf16.msra.mxu1 %v5697_v30  ;;  %v435_v47 = vld [vmem:[#allocation9 + $0xf8] sm:$0xff]  ;;  %v428_v48 = vld [vmem:[#allocation9 + $0xc0] sm:$0xff]  ;;  %v430_v50 = vld [vmem:[#allocation9 + $0xd0] sm:$0xff]  ;;  %v5727_v53 = vpack.c.bf16 %v433_v43, %v429_v42 }
  0x43   :  { %222 = vmatprep.mubr.f32.mxu0 %v5572_v0  ;;  %335 = vmatprep.mubr.f32.mxu1 %v5572_v0  ;;  %v432_v49 = vld [vmem:[#allocation9 + $0xe0] sm:$0xff]  ;;  %v434_v51 = vld [vmem:[#allocation9 + $0xf0] sm:$0xff]  ;;  %v79_v52 = vld [vmem:[%s6639_s0 + $0x18] sm:$0xff]  ;;  %v5729_v54 = vpack.c.bf16 %v435_v47, %v431_v46 }
  0x44   :  { %3844 = vmatmul.mubr.msk.f32.gmra.mrb[4].mxu0 %vm112_vm1, %v78_v39  ;;  %3854 = vmatmul.mubr.msk.f32.gmra.mrb[4].mxu1 %vm112_vm1, %v78_v39  ;;  %v437_v55 = vld [vmem:[#allocation9 + $0x108] sm:$0xff]  ;;  %v5733_v57 = vpack.c.bf16 %v432_v49, %v428_v48  ;;  %v5735_v58 = vpack.c.bf16 %v434_v51, %v430_v50  ;;  %v439_v59 = vld [vmem:[#allocation9 + $0x118] sm:$0xff]  ;;  %v436_v61 = vld [vmem:[#allocation9 + $0x100] sm:$0xff] }
  0x45   :  { %3971 = vmatprep.subr.bf16.mxu0 %v5708_v40  ;;  %4003 = vmatprep.subr.bf16.mxu1 %v5710_v41  ;;  %v441_v56 = vld [vmem:[#allocation9 + $0x128] sm:$0xff]  ;;  %v443_v60 = vld [vmem:[#allocation9 + $0x138] sm:$0xff]  ;;  %v440_v62 = vld [vmem:[#allocation9 + $0x120] sm:$0xff] }
  0x46   :  { %3973 = vmatpush1.bf16.msra.mxu0 %v5714_v44  ;;  %4005 = vmatpush1.bf16.msra.mxu1 %v5716_v45  ;;  %v438_v63 = vld [vmem:[#allocation9 + $0x110] sm:$0xff]  ;;  %v80_v2 = vld [vmem:[%s6639_s0 + $0x20] sm:$0xff]  ;;  %v5746_v3 = vpack.c.bf16 %v441_v56, %v437_v55  ;;  %v5748_v4 = vpack.c.bf16 %v443_v60, %v439_v59  ;;  %v445_v5 = vld [vmem:[#allocation9 + $0x148] sm:$0xff]  ;;  %v5752_v7 = vpack.c.bf16 %v440_v62, %v436_v61  ;;  %v88_v62 = vlaneseq }
  0x47   :  { %228 = vmatprep.mubr.f32.mxu0 %v5572_v0  ;;  %341 = vmatprep.mubr.f32.mxu1 %v5572_v0  ;;  %v442_v1 = vld [vmem:[#allocation9 + $0x130] sm:$0xff]  ;;  %v449_v6 = vld [vmem:[#allocation9 + $0x168] sm:$0xff]  ;;  %v447_v10 = vld [vmem:[#allocation9 + $0x158] sm:$0xff] }
  0x48   :  { %3845 = vmatmul.mubr.msk.f32.gmra.mrb[6].mxu0 %vm112_vm1, %v79_v52  ;;  %3855 = vmatmul.mubr.msk.f32.gmra.mrb[6].mxu1 %vm112_vm1, %v79_v52  ;;  %v5754_v8 = vpack.c.bf16 %v442_v1, %v438_v63  ;;  %v451_v11 = vld [vmem:[#allocation9 + $0x178] sm:$0xff]  ;;  %v444_v12 = vld [vmem:[#allocation9 + $0x140] sm:$0xff]  ;;  %v446_v16 = vld [vmem:[#allocation9 + $0x150] sm:$0xff]  ;;  %v5765_v20 = vpack.c.bf16 %v449_v6, %v445_v5  ;;  %v5861_v63 = vshrl.u32 %v88_v62, 7 }
  0x49   :  { %3975 = vmatprep.subr.bf16.mxu0 %v5727_v53  ;;  %4007 = vmatprep.subr.bf16.mxu1 %v5729_v54  ;;  %v448_v15 = vld [vmem:[#allocation9 + $0x160] sm:$0xff]  ;;  %v450_v18 = vld [vmem:[#allocation9 + $0x170] sm:$0xff]  ;;  %v81_v19 = vld [vmem:[%s6639_s0 + $0x28] sm:$0xff]  ;;  %v5767_v21 = vpack.c.bf16 %v451_v11, %v447_v10 }
  0x4a   :  { %3977 = vmatpush1.bf16.msra.mxu0 %v5733_v57  ;;  %4009 = vmatpush1.bf16.msra.mxu1 %v5735_v58  ;;  %v453_v22 = vld [vmem:[#allocation9 + $0x188] sm:$0xff]  ;;  %v5771_v24 = vpack.c.bf16 %v448_v15, %v444_v12  ;;  %v5773_v27 = vpack.c.bf16 %v450_v18, %v446_v16  ;;  %v455_v28 = vld [vmem:[#allocation9 + $0x198] sm:$0xff]  ;;  %v452_v32 = vld [vmem:[#allocation9 + $0x180] sm:$0xff]  ;;  %v90_v1 = vsub.s32 0, %v5861_v63  ;;  %v94_v5 = vsub.s32 1, %v5861_v63 }
  0x4b   :  { %234 = vmatprep.mubr.f32.mxu0 %v5572_v0  ;;  %347 = vmatprep.mubr.f32.mxu1 %v5572_v0  ;;  %v457_v23 = vld [vmem:[#allocation9 + $0x1a8] sm:$0xff]  ;;  %v459_v31 = vld [vmem:[#allocation9 + $0x1b8] sm:$0xff]  ;;  %v456_v33 = vld [vmem:[#allocation9 + $0x1a0] sm:$0xff]  ;;  %v98_v16 = vsub.s32 2, %v5861_v63 }
  0x4c   :  { %3846 = vmatmul.mubr.msk.f32.gmra.mrb[8].mxu0 %vm112_vm1, %v80_v2  ;;  %3856 = vmatmul.mubr.msk.f32.gmra.mrb[8].mxu1 %vm112_vm1, %v80_v2  ;;  %v454_v34 = vld [vmem:[#allocation9 + $0x190] sm:$0xff]  ;;  %v5784_v37 = vpack.c.bf16 %v457_v23, %v453_v22  ;;  %v5786_v38 = vpack.c.bf16 %v459_v31, %v455_v28  ;;  %v461_v39 = vld [vmem:[#allocation9 + $0x1c8] sm:$0xff]  ;;  %v5790_v43 = vpack.c.bf16 %v456_v33, %v452_v32  ;;  %v463_v47 = vld [vmem:[#allocation9 + $0x1d8] sm:$0xff]  ;;  %v102_v31 = vsub.s32 3, %v5861_v63 }
  0x4d   :  { %3979 = vmatprep.subr.bf16.mxu0 %v5746_v3  ;;  %4011 = vmatprep.subr.bf16.mxu1 %v5748_v4  ;;  %v458_v35 = vld [vmem:[#allocation9 + $0x1b0] sm:$0xff]  ;;  %v465_v42 = vld [vmem:[#allocation9 + $0x1e8] sm:$0xff]  ;;  %v467_v48 = vld [vmem:[#allocation9 + $0x1f8] sm:$0xff] }
  0x4e   :  { %3981 = vmatpush1.bf16.msra.mxu0 %v5752_v7  ;;  %4013 = vmatpush1.bf16.msra.mxu1 %v5754_v8  ;;  %v82_v36 = vld [vmem:[%s6639_s0 + $0x30] sm:$0xff]  ;;  %v5792_v46 = vpack.c.bf16 %v458_v35, %v454_v34  ;;  %v460_v49 = vld [vmem:[#allocation9 + $0x1c0] sm:$0xff]  ;;  %v83_v55 = vld [vmem:[%s6639_s0 + $0x38] sm:$0xff]  ;;  %v5803_v56 = vpack.c.bf16 %v465_v42, %v461_v39  ;;  %v5805_v59 = vpack.c.bf16 %v467_v48, %v463_v47 }
  0x4f   :  { %240 = vmatprep.mubr.f32.mxu0 %v5572_v0  ;;  %353 = vmatprep.mubr.f32.mxu1 %v5572_v0  ;;  %v464_v50 = vld [vmem:[#allocation9 + $0x1e0] sm:$0xff]  ;;  %v462_v51 = vld [vmem:[#allocation9 + $0x1d0] sm:$0xff] }
  0x50   :  { %3847 = vmatmul.mubr.msk.f32.gmra.mrb[10].mxu0 %vm112_vm1, %v81_v19  ;;  %3857 = vmatmul.mubr.msk.f32.gmra.mrb[10].mxu1 %vm112_vm1, %v81_v19  ;;  %v466_v52 = vld [vmem:[#allocation9 + $0x1f0] sm:$0xff]  ;;  %v5809_v60 = vpack.c.bf16 %v464_v50, %v460_v49  ;;  %v86_v2 = vld [vmem:[%s6643_s4] sm:$0xf] }
  0x51   :  { %3983 = vmatprep.subr.bf16.mxu0 %v5765_v20  ;;  %4015 = vmatprep.subr.bf16.mxu1 %v5767_v21  ;;  %v5811_v61 = vpack.c.bf16 %v466_v52, %v462_v51  ;;  %v5870_v6 = vrot.slane %v86_v2, %v90_v1  ;;  %v5874_v10 = vrot.slane %v86_v2, %v94_v5 }
  0x52   :  { %3985 = vmatpush1.bf16.msra.mxu0 %v5771_v24  ;;  %4017 = vmatpush1.bf16.msra.mxu1 %v5773_v27  ;;  %v5882_v32 = vrot.slane %v86_v2, %v98_v16  ;;  %v5886_v33 = vrot.slane %v86_v2, %v102_v31 }
  0x53   :  { %246 = vmatprep.mubr.f32.mxu0 %v5572_v0  ;;  %359 = vmatprep.mubr.f32.mxu1 %v5572_v0 }
  0x54   :  { %3848 = vmatmul.mubr.msk.f32.gmra.mrb[12].mxu0 %vm112_vm1, %v82_v36  ;;  %3858 = vmatmul.mubr.msk.f32.gmra.mrb[12].mxu1 %vm112_vm1, %v82_v36 }
  0x55   :  { %3987 = vmatprep.subr.bf16.mxu0 %v5784_v37  ;;  %4019 = vmatprep.subr.bf16.mxu1 %v5786_v38 }
  0x56   :  { %3989 = vmatpush1.bf16.msra.mxu0 %v5790_v43  ;;  %4021 = vmatpush1.bf16.msra.mxu1 %v5792_v46 }
  0x57   :  { %252 = vmatprep.mubr.f32.mxu0 %v5572_v0  ;;  %365 = vmatprep.mubr.f32.mxu1 %v5572_v0 }
  0x58   :  { %3849 = vmatmul.mubr.msk.f32.gmra.mrb[14].mxu0 %vm112_vm1, %v83_v55  ;;  %3859 = vmatmul.mubr.msk.f32.gmra.mrb[14].mxu1 %vm112_vm1, %v83_v55 }
  0x59   :  { %3991 = vmatprep.subr.bf16.mxu0 %v5803_v56  ;;  %4023 = vmatprep.subr.bf16.mxu1 %v5805_v59 }
  0x5a   :  { %3993 = vmatpush1.bf16.msra.mxu0 %v5809_v60  ;;  %4025 = vmatpush1.bf16.msra.mxu1 %v5811_v61 }
  0x5b   :  { %541 = vmatprep.mubr.f32.mxu0 %v5572_v0  ;;  %612 = vmatprep.mubr.f32.mxu1 %v5572_v0 }
  0x5c   :  { %4027 = vmatprep.subr.bf16.mxu0 %v5670_v9  ;;  %4059 = vmatprep.subr.bf16.mxu1 %v5674_v13 }
  0x5d   :  { %542 = vmatmul.mubr.f32.vlgmr.msra.gmra.mrb[0].mxu0 %v5572_v0  ;;  %613 = vmatmul.mubr.f32.vlgmr.msra.gmra.mrb[0].mxu1 %v5572_v0 }
  0x5e   :  { %4029 = vmatpush1.bf16.msra.mxu0 %v5676_v14  ;;  %4061 = vmatpush1.bf16.msra.mxu1 %v5680_v17 }
  0x5f   :  { %4031 = vmatprep.subr.bf16.mxu0 %v5689_v25  ;;  %4063 = vmatprep.subr.bf16.mxu1 %v5691_v26 }
  0x60   :  { %719 = vmatprep.mubr.f32.mxu0 %v5572_v0  ;;  %790 = vmatprep.mubr.f32.mxu1 %v5572_v0 }
  0x62   :  { %4033 = vmatpush1.bf16.msra.mxu0 %v5695_v29  ;;  %4065 = vmatpush1.bf16.msra.mxu1 %v5697_v30 }
  0x63   :  { %4035 = vmatprep.subr.bf16.mxu0 %v5708_v40  ;;  %4067 = vmatprep.subr.bf16.mxu1 %v5710_v41 }
  0x66   :  { %4037 = vmatpush1.bf16.msra.mxu0 %v5714_v44  ;;  %4069 = vmatpush1.bf16.msra.mxu1 %v5716_v45 }
  0x67   :  { %4039 = vmatprep.subr.bf16.mxu0 %v5727_v53  ;;  %4071 = vmatprep.subr.bf16.mxu1 %v5729_v54 }
  0x6a   :  { %4041 = vmatpush1.bf16.msra.mxu0 %v5733_v57  ;;  %4073 = vmatpush1.bf16.msra.mxu1 %v5735_v58 }
  0x6b   :  { %4043 = vmatprep.subr.bf16.mxu0 %v5746_v3  ;;  %4075 = vmatprep.subr.bf16.mxu1 %v5748_v4 }
  0x6e   :  { %4045 = vmatpush1.bf16.msra.mxu0 %v5752_v7  ;;  %4077 = vmatpush1.bf16.msra.mxu1 %v5754_v8 }
  0x6f   :  { %4047 = vmatprep.subr.bf16.mxu0 %v5765_v20  ;;  %4079 = vmatprep.subr.bf16.mxu1 %v5767_v21 }
  0x72   :  { %4049 = vmatpush1.bf16.msra.mxu0 %v5771_v24  ;;  %4081 = vmatpush1.bf16.msra.mxu1 %v5773_v27 }
  0x73   :  { %4051 = vmatprep.subr.bf16.mxu0 %v5784_v37  ;;  %4083 = vmatprep.subr.bf16.mxu1 %v5786_v38 }
  0x76   :  { %4053 = vmatpush1.bf16.msra.mxu0 %v5790_v43  ;;  %4085 = vmatpush1.bf16.msra.mxu1 %v5792_v46 }
  0x77   :  { %4055 = vmatprep.subr.bf16.mxu0 %v5803_v56  ;;  %4087 = vmatprep.subr.bf16.mxu1 %v5805_v59 }
  0x7a   :  { %4057 = vmatpush1.bf16.msra.mxu0 %v5809_v60  ;;  %4089 = vmatpush1.bf16.msra.mxu1 %v5811_v61 }
  0x7b   :  { %4091 = vmatprep.subr.bf16.mxu0 %v5670_v9  ;;  %4123 = vmatprep.subr.bf16.mxu1 %v5674_v13 }
 0x130   :  { %v543_v11 = vpop.f32.mrb[0].mxu0  ;;  %v614_v12 = vpop.f32.mrb[0].mxu1 }
 0x131   :  { %v5074_v15 = vadd.f32 %v543_v11, %v5870_v6  ;;  %v545_v18 = vpop.f32.mrb[1].mxu0  ;;  %v616_v19 = vpop.f32.mrb[1].mxu1  ;;  %v5090_v34 = vadd.f32 %v614_v12, %v5882_v32 }
 0x132   :  { %v5075_v22 = vadd.f32 %v545_v18, %v5874_v10  ;;  %v5091_v35 = vadd.f32 %v616_v19, %v5886_v33 }
 0x133   :  { %v3860_v23 = vmul.f32 -1.442695, %v5074_v15  ;;  %v3862_v36 = vmul.f32 -1.442695, %v5090_v34 }
 0x134   :  { %v3861_v28 = vmul.f32 -1.442695, %v5075_v22 }
 0x135   :  { %5215 = vpow2.f32 %v3860_v23 }
 0x136   :  { %5217 = vpow2.f32 %v3861_v28 }
 0x137   :  { %5219 = vtanh.f32 %v5091_v35 }
 0x138   :  { %5221 = vpow2.f32 %v3862_v36 }
 0x13f   :  { %v5216_v39 = vpop.eup %5215 }
 0x140   :  { %v632_v42 = vadd.f32 1.0, %v5216_v39  ;;  %v5218_v47 = vpop.eup %5217 }
 0x141   :  { %v633_v48 = vadd.f32 1.0, %v5218_v47  ;;  %v5220_v49 = vpop.eup %5219 }
 0x142   :  { %5223 = vrcp.f32 %v632_v42  ;;  %v5222_v50 = vpop.eup %5221 }
 0x143   :  { %5225 = vrcp.f32 %v633_v48  ;;  %v634_v62 = vadd.f32 1.0, %v5222_v50 }
 0x145   :  { %5227 = vrcp.f32 %v634_v62 }
 0x14c   :  { %v5224_v51 = vpop.eup %5223 }
 0x14d   :  { %v643_v52 = vmul.f32 %v5224_v51, %v5220_v49  ;;  %v5226_v55 = vpop.eup %5225 }
 0x14e   :  { %v642_v2 = vmul.f32 0.0, %v5226_v55 }
 0x14f   :  { %v5228_v12 = vpop.eup %5227 }
 0x150   :  { %v5890_v11 = vadd.f32 %v643_v52, %v642_v2 }
 0x152   :  { %5229 = vtanh.f32 %v5890_v11 }
 0x15c   :  { %v5230_v15 = vpop.eup %5229 }
 0x15d   :  { %v5893_v18 = vmul.f32 %v5230_v15, %v5228_v12 }
 0x15f   :  { %720 = vmatmul.mubr.f32.vlgmr.msra.gmra.mrb[2].mxu0 %v5893_v18  ;;  %791 = vmatmul.mubr.f32.vlgmr.msra.gmra.mrb[2].mxu1 %v5893_v18 }
 0x160   :  { %4093 = vmatpush1.bf16.msra.mxu0 %v5676_v14  ;;  %4125 = vmatpush1.bf16.msra.mxu1 %v5680_v17 }
 0x161   :  { %4095 = vmatprep.subr.bf16.mxu0 %v5689_v25  ;;  %4127 = vmatprep.subr.bf16.mxu1 %v5691_v26 }
 0x162   :  { %898 = vmatprep.mubr.f32.mxu0 %v5572_v0  ;;  %969 = vmatprep.mubr.f32.mxu1 %v5572_v0 }
 0x164   :  { %4097 = vmatpush1.bf16.msra.mxu0 %v5695_v29  ;;  %4129 = vmatpush1.bf16.msra.mxu1 %v5697_v30 }
 0x165   :  { %4099 = vmatprep.subr.bf16.mxu0 %v5708_v40  ;;  %4131 = vmatprep.subr.bf16.mxu1 %v5710_v41 }
 0x168   :  { %4101 = vmatpush1.bf16.msra.mxu0 %v5714_v44  ;;  %4133 = vmatpush1.bf16.msra.mxu1 %v5716_v45 }
 0x169   :  { %4103 = vmatprep.subr.bf16.mxu0 %v5727_v53  ;;  %4135 = vmatprep.subr.bf16.mxu1 %v5729_v54 }
 0x16c   :  { %4105 = vmatpush1.bf16.msra.mxu0 %v5733_v57  ;;  %4137 = vmatpush1.bf16.msra.mxu1 %v5735_v58 }
 0x16d   :  { %4107 = vmatprep.subr.bf16.mxu0 %v5746_v3  ;;  %4139 = vmatprep.subr.bf16.mxu1 %v5748_v4 }
 0x170   :  { %4109 = vmatpush1.bf16.msra.mxu0 %v5752_v7  ;;  %4141 = vmatpush1.bf16.msra.mxu1 %v5754_v8 }
 0x171   :  { %4111 = vmatprep.subr.bf16.mxu0 %v5765_v20  ;;  %4143 = vmatprep.subr.bf16.mxu1 %v5767_v21 }
 0x174   :  { %4113 = vmatpush1.bf16.msra.mxu0 %v5771_v24  ;;  %4145 = vmatpush1.bf16.msra.mxu1 %v5773_v27 }
 0x175   :  { %4115 = vmatprep.subr.bf16.mxu0 %v5784_v37  ;;  %4147 = vmatprep.subr.bf16.mxu1 %v5786_v38 }
 0x178   :  { %4117 = vmatpush1.bf16.msra.mxu0 %v5790_v43  ;;  %4149 = vmatpush1.bf16.msra.mxu1 %v5792_v46 }
 0x179   :  { %4119 = vmatprep.subr.bf16.mxu0 %v5803_v56  ;;  %4151 = vmatprep.subr.bf16.mxu1 %v5805_v59 }
 0x17c   :  { %4121 = vmatpush1.bf16.msra.mxu0 %v5809_v60  ;;  %4153 = vmatpush1.bf16.msra.mxu1 %v5811_v61 }
 0x17d   :  { %4155 = vmatprep.subr.bf16.mxu0 %v5670_v9  ;;  %4187 = vmatprep.subr.bf16.mxu1 %v5674_v13 }
 0x232   :  { %v721_v19 = vpop.f32.mrb[2].mxu0  ;;  %v792_v22 = vpop.f32.mrb[2].mxu1 }
 0x233   :  { %v5076_v23 = vadd.f32 %v721_v19, %v5870_v6  ;;  %v723_v28 = vpop.f32.mrb[3].mxu0  ;;  %v794_v34 = vpop.f32.mrb[3].mxu1  ;;  %v5092_v42 = vadd.f32 %v792_v22, %v5882_v32 }
 0x234   :  { %v5077_v35 = vadd.f32 %v723_v28, %v5874_v10  ;;  %v5093_v47 = vadd.f32 %v794_v34, %v5886_v33 }
 0x235   :  { %v3863_v36 = vmul.f32 -1.442695, %v5076_v23  ;;  %v3865_v48 = vmul.f32 -1.442695, %v5092_v42 }
 0x236   :  { %v3864_v39 = vmul.f32 -1.442695, %v5077_v35 }
 0x237   :  { %5231 = vpow2.f32 %v3863_v36 }
 0x238   :  { %5233 = vpow2.f32 %v3864_v39 }
 0x239   :  { %5235 = vtanh.f32 %v5093_v47 }
 0x23a   :  { %5237 = vpow2.f32 %v3865_v48 }
 0x241   :  { %v5232_v49 = vpop.eup %5231 }
 0x242   :  { %v810_v50 = vadd.f32 1.0, %v5232_v49  ;;  %v5234_v51 = vpop.eup %5233 }
 0x243   :  { %v811_v52 = vadd.f32 1.0, %v5234_v51  ;;  %v5236_v55 = vpop.eup %5235 }
 0x244   :  { %5239 = vrcp.f32 %v810_v50  ;;  %v5238_v62 = vpop.eup %5237 }
 0x245   :  { %5241 = vrcp.f32 %v811_v52  ;;  %v812_v19 = vadd.f32 1.0, %v5238_v62 }
 0x247   :  { %5243 = vrcp.f32 %v812_v19 }
 0x24e   :  { %v5240_v2 = vpop.eup %5239 }
 0x24f   :  { %v821_v12 = vmul.f32 %v5240_v2, %v5236_v55  ;;  %v5242_v15 = vpop.eup %5241 }
 0x250   :  { %v820_v23 = vmul.f32 %v5242_v15, %v5890_v11 }
 0x251   :  { %v5244_v28 = vpop.eup %5243 }
 0x252   :  { %v5936_v22 = vadd.f32 %v821_v12, %v820_v23 }
 0x254   :  { %5245 = vtanh.f32 %v5936_v22 }
 0x25e   :  { %v5246_v34 = vpop.eup %5245 }
 0x25f   :  { %v5939_v35 = vmul.f32 %v5246_v34, %v5244_v28 }
 0x261   :  { %899 = vmatmul.mubr.f32.vlgmr.msra.gmra.mrb[4].mxu0 %v5939_v35  ;;  %970 = vmatmul.mubr.f32.vlgmr.msra.gmra.mrb[4].mxu1 %v5939_v35 }
 0x262   :  { %4157 = vmatpush1.bf16.msra.mxu0 %v5676_v14  ;;  %4189 = vmatpush1.bf16.msra.mxu1 %v5680_v17 }
 0x263   :  { %4159 = vmatprep.subr.bf16.mxu0 %v5689_v25  ;;  %4191 = vmatprep.subr.bf16.mxu1 %v5691_v26 }
 0x264   :  { %1077 = vmatprep.mubr.f32.mxu0 %v5572_v0  ;;  %1148 = vmatprep.mubr.f32.mxu1 %v5572_v0 }
 0x266   :  { %4161 = vmatpush1.bf16.msra.mxu0 %v5695_v29  ;;  %4193 = vmatpush1.bf16.msra.mxu1 %v5697_v30 }
 0x267   :  { %4163 = vmatprep.subr.bf16.mxu0 %v5708_v40  ;;  %4195 = vmatprep.subr.bf16.mxu1 %v5710_v41 }
 0x26a   :  { %4165 = vmatpush1.bf16.msra.mxu0 %v5714_v44  ;;  %4197 = vmatpush1.bf16.msra.mxu1 %v5716_v45 }
 0x26b   :  { %4167 = vmatprep.subr.bf16.mxu0 %v5727_v53  ;;  %4199 = vmatprep.subr.bf16.mxu1 %v5729_v54 }
 0x26e   :  { %4169 = vmatpush1.bf16.msra.mxu0 %v5733_v57  ;;  %4201 = vmatpush1.bf16.msra.mxu1 %v5735_v58 }
 0x26f   :  { %4171 = vmatprep.subr.bf16.mxu0 %v5746_v3  ;;  %4203 = vmatprep.subr.bf16.mxu1 %v5748_v4 }
 0x272   :  { %4173 = vmatpush1.bf16.msra.mxu0 %v5752_v7  ;;  %4205 = vmatpush1.bf16.msra.mxu1 %v5754_v8 }
 0x273   :  { %4175 = vmatprep.subr.bf16.mxu0 %v5765_v20  ;;  %4207 = vmatprep.subr.bf16.mxu1 %v5767_v21 }
 0x276   :  { %4177 = vmatpush1.bf16.msra.mxu0 %v5771_v24  ;;  %4209 = vmatpush1.bf16.msra.mxu1 %v5773_v27 }
 0x277   :  { %4179 = vmatprep.subr.bf16.mxu0 %v5784_v37  ;;  %4211 = vmatprep.subr.bf16.mxu1 %v5786_v38 }
 0x27a   :  { %4181 = vmatpush1.bf16.msra.mxu0 %v5790_v43  ;;  %4213 = vmatpush1.bf16.msra.mxu1 %v5792_v46 }
 0x27b   :  { %4183 = vmatprep.subr.bf16.mxu0 %v5803_v56  ;;  %4215 = vmatprep.subr.bf16.mxu1 %v5805_v59 }
 0x27e   :  { %4185 = vmatpush1.bf16.msra.mxu0 %v5809_v60  ;;  %4217 = vmatpush1.bf16.msra.mxu1 %v5811_v61 }
 0x27f   :  { %4219 = vmatprep.subr.bf16.mxu0 %v5670_v9  ;;  %4251 = vmatprep.subr.bf16.mxu1 %v5674_v13 }
 0x334   :  { %v900_v11 = vpop.f32.mrb[4].mxu0  ;;  %v971_v36 = vpop.f32.mrb[4].mxu1 }
 0x335   :  { %v5078_v39 = vadd.f32 %v900_v11, %v5870_v6  ;;  %v902_v42 = vpop.f32.mrb[5].mxu0  ;;  %v973_v47 = vpop.f32.mrb[5].mxu1  ;;  %v5094_v51 = vadd.f32 %v971_v36, %v5882_v32 }
 0x336   :  { %v5079_v48 = vadd.f32 %v902_v42, %v5874_v10  ;;  %v5095_v52 = vadd.f32 %v973_v47, %v5886_v33 }
 0x337   :  { %v3866_v49 = vmul.f32 -1.442695, %v5078_v39  ;;  %v3868_v55 = vmul.f32 -1.442695, %v5094_v51 }
 0x338   :  { %v3867_v50 = vmul.f32 -1.442695, %v5079_v48 }
 0x339   :  { %5247 = vpow2.f32 %v3866_v49 }
 0x33a   :  { %5249 = vpow2.f32 %v3867_v50 }
 0x33b   :  { %5251 = vtanh.f32 %v5095_v52 }
 0x33c   :  { %5253 = vpow2.f32 %v3868_v55 }
 0x343   :  { %v5248_v62 = vpop.eup %5247 }
 0x344   :  { %v989_v2 = vadd.f32 1.0, %v5248_v62  ;;  %v5250_v12 = vpop.eup %5249 }
 0x345   :  { %v990_v15 = vadd.f32 1.0, %v5250_v12  ;;  %v5252_v19 = vpop.eup %5251 }
 0x346   :  { %5255 = vrcp.f32 %v989_v2  ;;  %v5254_v23 = vpop.eup %5253 }
 0x347   :  { %5257 = vrcp.f32 %v990_v15  ;;  %v991_v39 = vadd.f32 1.0, %v5254_v23 }
 0x349   :  { %5259 = vrcp.f32 %v991_v39 }
 0x350   :  { %v5256_v28 = vpop.eup %5255 }
 0x351   :  { %v1000_v34 = vmul.f32 %v5256_v28, %v5252_v19  ;;  %v5258_v11 = vpop.eup %5257 }
 0x352   :  { %v999_v42 = vmul.f32 %v5258_v11, %v5936_v22 }
 0x353   :  { %v5260_v47 = vpop.eup %5259 }
 0x354   :  { %v5982_v36 = vadd.f32 %v1000_v34, %v999_v42 }
 0x356   :  { %5261 = vtanh.f32 %v5982_v36 }
 0x360   :  { %v5262_v48 = vpop.eup %5261 }
 0x361   :  { %v5985_v49 = vmul.f32 %v5262_v48, %v5260_v47 }
 0x363   :  { %1078 = vmatmul.mubr.f32.vlgmr.msra.gmra.mrb[6].mxu0 %v5985_v49  ;;  %1149 = vmatmul.mubr.f32.vlgmr.msra.gmra.mrb[6].mxu1 %v5985_v49 }
 0x364   :  { %4221 = vmatpush1.bf16.msra.mxu0 %v5676_v14  ;;  %4253 = vmatpush1.bf16.msra.mxu1 %v5680_v17 }
 0x365   :  { %4223 = vmatprep.subr.bf16.mxu0 %v5689_v25  ;;  %4255 = vmatprep.subr.bf16.mxu1 %v5691_v26 }
 0x366   :  { %1256 = vmatprep.mubr.f32.mxu0 %v5572_v0  ;;  %1327 = vmatprep.mubr.f32.mxu1 %v5572_v0 }
 0x368   :  { %4225 = vmatpush1.bf16.msra.mxu0 %v5695_v29  ;;  %4257 = vmatpush1.bf16.msra.mxu1 %v5697_v30 }
 0x369   :  { %4227 = vmatprep.subr.bf16.mxu0 %v5708_v40  ;;  %4259 = vmatprep.subr.bf16.mxu1 %v5710_v41 }
 0x36c   :  { %4229 = vmatpush1.bf16.msra.mxu0 %v5714_v44  ;;  %4261 = vmatpush1.bf16.msra.mxu1 %v5716_v45 }
 0x36d   :  { %4231 = vmatprep.subr.bf16.mxu0 %v5727_v53  ;;  %4263 = vmatprep.subr.bf16.mxu1 %v5729_v54 }
 0x370   :  { %4233 = vmatpush1.bf16.msra.mxu0 %v5733_v57  ;;  %4265 = vmatpush1.bf16.msra.mxu1 %v5735_v58 }
 0x371   :  { %4235 = vmatprep.subr.bf16.mxu0 %v5746_v3  ;;  %4267 = vmatprep.subr.bf16.mxu1 %v5748_v4 }
 0x374   :  { %4237 = vmatpush1.bf16.msra.mxu0 %v5752_v7  ;;  %4269 = vmatpush1.bf16.msra.mxu1 %v5754_v8 }
 0x375   :  { %4239 = vmatprep.subr.bf16.mxu0 %v5765_v20  ;;  %4271 = vmatprep.subr.bf16.mxu1 %v5767_v21 }
 0x378   :  { %4241 = vmatpush1.bf16.msra.mxu0 %v5771_v24  ;;  %4273 = vmatpush1.bf16.msra.mxu1 %v5773_v27 }
 0x379   :  { %4243 = vmatprep.subr.bf16.mxu0 %v5784_v37  ;;  %4275 = vmatprep.subr.bf16.mxu1 %v5786_v38 }
 0x37c   :  { %4245 = vmatpush1.bf16.msra.mxu0 %v5790_v43  ;;  %4277 = vmatpush1.bf16.msra.mxu1 %v5792_v46 }
 0x37d   :  { %4247 = vmatprep.subr.bf16.mxu0 %v5803_v56  ;;  %4279 = vmatprep.subr.bf16.mxu1 %v5805_v59 }
 0x380   :  { %4249 = vmatpush1.bf16.msra.mxu0 %v5809_v60  ;;  %4281 = vmatpush1.bf16.msra.mxu1 %v5811_v61 }
 0x381   :  { %4283 = vmatprep.subr.bf16.mxu0 %v5670_v9  ;;  %4315 = vmatprep.subr.bf16.mxu1 %v5674_v13 }
 0x436   :  { %v1079_v22 = vpop.f32.mrb[6].mxu0  ;;  %v1150_v50 = vpop.f32.mrb[6].mxu1 }
 0x437   :  { %v5080_v51 = vadd.f32 %v1079_v22, %v5870_v6  ;;  %v1081_v52 = vpop.f32.mrb[7].mxu0  ;;  %v1152_v55 = vpop.f32.mrb[7].mxu1  ;;  %v5096_v15 = vadd.f32 %v1150_v50, %v5882_v32 }
 0x438   :  { %v5081_v62 = vadd.f32 %v1081_v52, %v5874_v10  ;;  %v5097_v19 = vadd.f32 %v1152_v55, %v5886_v33 }
 0x439   :  { %v3869_v2 = vmul.f32 -1.442695, %v5080_v51  ;;  %v3871_v23 = vmul.f32 -1.442695, %v5096_v15 }
 0x43a   :  { %v3870_v12 = vmul.f32 -1.442695, %v5081_v62 }
 0x43b   :  { %5263 = vpow2.f32 %v3869_v2 }
 0x43c   :  { %5265 = vpow2.f32 %v3870_v12 }
 0x43d   :  { %5267 = vtanh.f32 %v5097_v19 }
 0x43e   :  { %5269 = vpow2.f32 %v3871_v23 }
 0x445   :  { %v5264_v28 = vpop.eup %5263 }
 0x446   :  { %v1168_v34 = vadd.f32 1.0, %v5264_v28  ;;  %v5266_v11 = vpop.eup %5265 }
 0x447   :  { %v1169_v39 = vadd.f32 1.0, %v5266_v11  ;;  %v5268_v42 = vpop.eup %5267 }
 0x448   :  { %5271 = vrcp.f32 %v1168_v34  ;;  %v5270_v47 = vpop.eup %5269 }
 0x449   :  { %5273 = vrcp.f32 %v1169_v39  ;;  %v1170_v52 = vadd.f32 1.0, %v5270_v47 }
 0x44b   :  { %5275 = vrcp.f32 %v1170_v52 }
 0x452   :  { %v5272_v48 = vpop.eup %5271 }
 0x453   :  { %v1179_v22 = vmul.f32 %v5272_v48, %v5268_v42  ;;  %v5274_v51 = vpop.eup %5273 }
 0x454   :  { %v1178_v62 = vmul.f32 %v5274_v51, %v5982_v36 }
 0x455   :  { %v5276_v55 = vpop.eup %5275 }
 0x456   :  { %v6028_v50 = vadd.f32 %v1179_v22, %v1178_v62 }
 0x458   :  { %5277 = vtanh.f32 %v6028_v50 }
 0x462   :  { %v5278_v2 = vpop.eup %5277 }
 0x463   :  { %v6031_v12 = vmul.f32 %v5278_v2, %v5276_v55 }
 0x465   :  { %1257 = vmatmul.mubr.f32.vlgmr.msra.gmra.mrb[8].mxu0 %v6031_v12  ;;  %1328 = vmatmul.mubr.f32.vlgmr.msra.gmra.mrb[8].mxu1 %v6031_v12 }
 0x466   :  { %4285 = vmatpush1.bf16.msra.mxu0 %v5676_v14  ;;  %4317 = vmatpush1.bf16.msra.mxu1 %v5680_v17 }
 0x467   :  { %4287 = vmatprep.subr.bf16.mxu0 %v5689_v25  ;;  %4319 = vmatprep.subr.bf16.mxu1 %v5691_v26 }
 0x468   :  { %1435 = vmatprep.mubr.f32.mxu0 %v5572_v0  ;;  %1506 = vmatprep.mubr.f32.mxu1 %v5572_v0 }
 0x46a   :  { %4289 = vmatpush1.bf16.msra.mxu0 %v5695_v29  ;;  %4321 = vmatpush1.bf16.msra.mxu1 %v5697_v30 }
 0x46b   :  { %4291 = vmatprep.subr.bf16.mxu0 %v5708_v40  ;;  %4323 = vmatprep.subr.bf16.mxu1 %v5710_v41 }
 0x46e   :  { %4293 = vmatpush1.bf16.msra.mxu0 %v5714_v44  ;;  %4325 = vmatpush1.bf16.msra.mxu1 %v5716_v45 }
 0x46f   :  { %4295 = vmatprep.subr.bf16.mxu0 %v5727_v53  ;;  %4327 = vmatprep.subr.bf16.mxu1 %v5729_v54 }
 0x472   :  { %4297 = vmatpush1.bf16.msra.mxu0 %v5733_v57  ;;  %4329 = vmatpush1.bf16.msra.mxu1 %v5735_v58 }
 0x473   :  { %4299 = vmatprep.subr.bf16.mxu0 %v5746_v3  ;;  %4331 = vmatprep.subr.bf16.mxu1 %v5748_v4 }
 0x476   :  { %4301 = vmatpush1.bf16.msra.mxu0 %v5752_v7  ;;  %4333 = vmatpush1.bf16.msra.mxu1 %v5754_v8 }
 0x477   :  { %4303 = vmatprep.subr.bf16.mxu0 %v5765_v20  ;;  %4335 = vmatprep.subr.bf16.mxu1 %v5767_v21 }
 0x47a   :  { %4305 = vmatpush1.bf16.msra.mxu0 %v5771_v24  ;;  %4337 = vmatpush1.bf16.msra.mxu1 %v5773_v27 }
 0x47b   :  { %4307 = vmatprep.subr.bf16.mxu0 %v5784_v37  ;;  %4339 = vmatprep.subr.bf16.mxu1 %v5786_v38 }
 0x47e   :  { %4309 = vmatpush1.bf16.msra.mxu0 %v5790_v43  ;;  %4341 = vmatpush1.bf16.msra.mxu1 %v5792_v46 }
 0x47f   :  { %4311 = vmatprep.subr.bf16.mxu0 %v5803_v56  ;;  %4343 = vmatprep.subr.bf16.mxu1 %v5805_v59 }
 0x482   :  { %4313 = vmatpush1.bf16.msra.mxu0 %v5809_v60  ;;  %4345 = vmatpush1.bf16.msra.mxu1 %v5811_v61 }
 0x483   :  { %4347 = vmatprep.subr.bf16.mxu0 %v5670_v9  ;;  %4379 = vmatprep.subr.bf16.mxu1 %v5674_v13 }
 0x538   :  { %v1258_v36 = vpop.f32.mrb[8].mxu0  ;;  %v1329_v15 = vpop.f32.mrb[8].mxu1 }
 0x539   :  { %v5082_v19 = vadd.f32 %v1258_v36, %v5870_v6  ;;  %v1260_v23 = vpop.f32.mrb[9].mxu0  ;;  %v1331_v28 = vpop.f32.mrb[9].mxu1  ;;  %v5098_v42 = vadd.f32 %v1329_v15, %v5882_v32 }
 0x53a   :  { %v5083_v34 = vadd.f32 %v1260_v23, %v5874_v10  ;;  %v5099_v47 = vadd.f32 %v1331_v28, %v5886_v33 }
 0x53b   :  { %v3872_v11 = vmul.f32 -1.442695, %v5082_v19  ;;  %v3874_v48 = vmul.f32 -1.442695, %v5098_v42 }
 0x53c   :  { %v3873_v39 = vmul.f32 -1.442695, %v5083_v34 }
 0x53d   :  { %5279 = vpow2.f32 %v3872_v11 }
 0x53e   :  { %5281 = vpow2.f32 %v3873_v39 }
 0x53f   :  { %5283 = vtanh.f32 %v5099_v47 }
 0x540   :  { %5285 = vpow2.f32 %v3874_v48 }
 0x547   :  { %v5280_v22 = vpop.eup %5279 }
 0x548   :  { %v1347_v51 = vadd.f32 1.0, %v5280_v22  ;;  %v5282_v52 = vpop.eup %5281 }
 0x549   :  { %v1348_v62 = vadd.f32 1.0, %v5282_v52  ;;  %v5284_v55 = vpop.eup %5283 }
 0x54a   :  { %5287 = vrcp.f32 %v1347_v51  ;;  %v5286_v2 = vpop.eup %5285 }
 0x54b   :  { %5289 = vrcp.f32 %v1348_v62  ;;  %v1349_v34 = vadd.f32 1.0, %v5286_v2 }
 0x54d   :  { %5291 = vrcp.f32 %v1349_v34 }
 0x554   :  { %v5288_v36 = vpop.eup %5287 }
 0x555   :  { %v1358_v19 = vmul.f32 %v5288_v36, %v5284_v55  ;;  %v5290_v23 = vpop.eup %5289 }
 0x556   :  { %v1357_v11 = vmul.f32 %v5290_v23, %v6028_v50 }
 0x557   :  { %v5292_v28 = vpop.eup %5291 }
 0x558   :  { %v6074_v15 = vadd.f32 %v1358_v19, %v1357_v11 }
 0x55a   :  { %5293 = vtanh.f32 %v6074_v15 }
 0x564   :  { %v5294_v39 = vpop.eup %5293 }
 0x565   :  { %v6077_v42 = vmul.f32 %v5294_v39, %v5292_v28 }
 0x567   :  { %1436 = vmatmul.mubr.f32.vlgmr.msra.gmra.mrb[10].mxu0 %v6077_v42  ;;  %1507 = vmatmul.mubr.f32.vlgmr.msra.gmra.mrb[10].mxu1 %v6077_v42 }
 0x568   :  { %4349 = vmatpush1.bf16.msra.mxu0 %v5676_v14  ;;  %4381 = vmatpush1.bf16.msra.mxu1 %v5680_v17 }
 0x569   :  { %4351 = vmatprep.subr.bf16.mxu0 %v5689_v25  ;;  %4383 = vmatprep.subr.bf16.mxu1 %v5691_v26 }
 0x56a   :  { %1614 = vmatprep.mubr.f32.mxu0 %v5572_v0  ;;  %1685 = vmatprep.mubr.f32.mxu1 %v5572_v0 }
 0x56c   :  { %4353 = vmatpush1.bf16.msra.mxu0 %v5695_v29  ;;  %4385 = vmatpush1.bf16.msra.mxu1 %v5697_v30 }
 0x56d   :  { %4355 = vmatprep.subr.bf16.mxu0 %v5708_v40  ;;  %4387 = vmatprep.subr.bf16.mxu1 %v5710_v41 }
 0x570   :  { %4357 = vmatpush1.bf16.msra.mxu0 %v5714_v44  ;;  %4389 = vmatpush1.bf16.msra.mxu1 %v5716_v45 }
 0x571   :  { %4359 = vmatprep.subr.bf16.mxu0 %v5727_v53  ;;  %4391 = vmatprep.subr.bf16.mxu1 %v5729_v54 }
 0x574   :  { %4361 = vmatpush1.bf16.msra.mxu0 %v5733_v57  ;;  %4393 = vmatpush1.bf16.msra.mxu1 %v5735_v58 }
 0x575   :  { %4363 = vmatprep.subr.bf16.mxu0 %v5746_v3  ;;  %4395 = vmatprep.subr.bf16.mxu1 %v5748_v4 }
 0x578   :  { %4365 = vmatpush1.bf16.msra.mxu0 %v5752_v7  ;;  %4397 = vmatpush1.bf16.msra.mxu1 %v5754_v8 }
 0x579   :  { %4367 = vmatprep.subr.bf16.mxu0 %v5765_v20  ;;  %4399 = vmatprep.subr.bf16.mxu1 %v5767_v21 }
 0x57c   :  { %4369 = vmatpush1.bf16.msra.mxu0 %v5771_v24  ;;  %4401 = vmatpush1.bf16.msra.mxu1 %v5773_v27 }
 0x57d   :  { %4371 = vmatprep.subr.bf16.mxu0 %v5784_v37  ;;  %4403 = vmatprep.subr.bf16.mxu1 %v5786_v38 }
 0x580   :  { %4373 = vmatpush1.bf16.msra.mxu0 %v5790_v43  ;;  %4405 = vmatpush1.bf16.msra.mxu1 %v5792_v46 }
 0x581   :  { %4375 = vmatprep.subr.bf16.mxu0 %v5803_v56  ;;  %4407 = vmatprep.subr.bf16.mxu1 %v5805_v59 }
 0x584   :  { %4377 = vmatpush1.bf16.msra.mxu0 %v5809_v60  ;;  %4409 = vmatpush1.bf16.msra.mxu1 %v5811_v61 }
 0x585   :  { %4411 = vmatprep.subr.bf16.mxu0 %v5670_v9  ;;  %4443 = vmatprep.subr.bf16.mxu1 %v5674_v13 }
 0x63a   :  { %v1437_v50 = vpop.f32.mrb[10].mxu0  ;;  %v1508_v47 = vpop.f32.mrb[10].mxu1 }
 0x63b   :  { %v5084_v48 = vadd.f32 %v1437_v50, %v5870_v6  ;;  %v1439_v22 = vpop.f32.mrb[11].mxu0  ;;  %v1510_v51 = vpop.f32.mrb[11].mxu1  ;;  %v5100_v2 = vadd.f32 %v1508_v47, %v5882_v32 }
 0x63c   :  { %v5085_v52 = vadd.f32 %v1439_v22, %v5874_v10  ;;  %v5101_v36 = vadd.f32 %v1510_v51, %v5886_v33 }
 0x63d   :  { %v3875_v62 = vmul.f32 -1.442695, %v5084_v48  ;;  %v3877_v19 = vmul.f32 -1.442695, %v5100_v2  ;;  %v1913_v2 = vld [vmem:[#allocation6 + $0x10] sm:$0xff] }
 0x63e   :  { %v3876_v55 = vmul.f32 -1.442695, %v5085_v52 }
 0x63f   :  { %5295 = vpow2.f32 %v3875_v62 }
 0x640   :  { %5297 = vpow2.f32 %v3876_v55 }
 0x641   :  { %5299 = vtanh.f32 %v5101_v36  ;;  %v1917_v36 = vld [vmem:[#allocation6 + $0x30] sm:$0xff] }
 0x642   :  { %5301 = vpow2.f32 %v3877_v19  ;;  %v1920_v19 = vld [vmem:[#allocation6 + $0x48] sm:$0xff] }
 0x649   :  { %v5296_v9 = vpop.eup %5295 }
 0x64a   :  { %v1526_v23 = vadd.f32 1.0, %v5296_v9  ;;  %v5298_v13 = vpop.eup %5297  ;;  %v1924_v9 = vld [vmem:[#allocation6 + $0x68] sm:$0xff] }
 0x64b   :  { %v1527_v34 = vadd.f32 1.0, %v5298_v13  ;;  %v5300_v11 = vpop.eup %5299  ;;  %v1926_v13 = vld [vmem:[#allocation6 + $0x78] sm:$0xff] }
 0x64c   :  { %5303 = vrcp.f32 %v1526_v23  ;;  %v5302_v28 = vpop.eup %5301  ;;  %v1922_v23 = vld [vmem:[#allocation6 + $0x58] sm:$0xff] }
 0x64d   :  { %5305 = vrcp.f32 %v1527_v34  ;;  %v1528_v22 = vadd.f32 1.0, %v5302_v28 }
 0x64f   :  { %5307 = vrcp.f32 %v1528_v22 }
 0x656   :  { %v5304_v39 = vpop.eup %5303 }
 0x657   :  { %v1537_v50 = vmul.f32 %v5304_v39, %v5300_v11  ;;  %v5306_v48 = vpop.eup %5305  ;;  %v4508_v39 = vpack.c.bf16 %v1917_v36, %v1913_v2  ;;  %v1943_v2 = vld [vmem:[#allocation6 + $0x100] sm:$0xff] }
 0x658   :  { %v1536_v52 = vmul.f32 %v5306_v48, %v6074_v15  ;;  %v1915_v15 = vld [vmem:[#allocation6 + $0x20] sm:$0xff] }
 0x659   :  { %v5308_v51 = vpop.eup %5307  ;;  %v1923_v48 = vld [vmem:[#allocation6 + $0x60] sm:$0xff] }
 0x65a   :  { %v6120_v47 = vadd.f32 %v1537_v50, %v1536_v52  ;;  %v1919_v50 = vld [vmem:[#allocation6 + $0x40] sm:$0xff]  ;;  %v4478_v52 = vpack.c.bf16 %v1924_v9, %v1920_v19 }
 0x65b   :  { %v1947_v36 = vld [vmem:[#allocation6 + $0x120] sm:$0xff] }
 0x65c   :  { %5309 = vtanh.f32 %v6120_v47 }
 0x666   :  { %v5310_v62 = vpop.eup %5309 }
 0x667   :  { %v6123_v55 = vmul.f32 %v5310_v62, %v5308_v51  ;;  %v1921_v51 = vld [vmem:[#allocation6 + $0x50] sm:$0xff] }
 0x668   :  { %v1925_v62 = vld [vmem:[#allocation6 + $0x70] sm:$0xff] }
 0x669   :  { %1615 = vmatmul.mubr.f32.vlgmr.msra.gmra.mrb[12].mxu0 %v6123_v55  ;;  %1686 = vmatmul.mubr.f32.vlgmr.msra.gmra.mrb[12].mxu1 %v6123_v55 }
 0x66a   :  { %4413 = vmatpush1.bf16.msra.mxu0 %v5676_v14  ;;  %4445 = vmatpush1.bf16.msra.mxu1 %v5680_v17  ;;  %v1912_v14 = vld [vmem:[#allocation6 + $0x8] sm:$0xff] }
 0x66b   :  { %4415 = vmatprep.subr.bf16.mxu0 %v5689_v25  ;;  %4447 = vmatprep.subr.bf16.mxu1 %v5691_v26  ;;  %v1916_v17 = vld [vmem:[#allocation6 + $0x28] sm:$0xff]  ;;  %v1914_v25 = vld [vmem:[#allocation6 + $0x18] sm:$0xff] }
 0x66c   :  { %1793 = vmatprep.mubr.f32.mxu0 %v5572_v0  ;;  %1864 = vmatprep.mubr.f32.mxu1 %v5572_v0  ;;  %v4474_v26 = vpack.c.bf16 %v1916_v17, %v1912_v14  ;;  %v1928_v14 = vld [vmem:[#allocation6 + $0x88] sm:$0xff] }
 0x66d   :  { %v1932_v17 = vld [vmem:[#allocation6 + $0xa8] sm:$0xff] }
 0x66e   :  { %4417 = vmatpush1.bf16.msra.mxu0 %v5695_v29  ;;  %4449 = vmatpush1.bf16.msra.mxu1 %v5697_v30  ;;  %v1918_v29 = vld [vmem:[#allocation6 + $0x38] sm:$0xff] }
 0x66f   :  { %4419 = vmatprep.subr.bf16.mxu0 %v5708_v40  ;;  %4451 = vmatprep.subr.bf16.mxu1 %v5710_v41  ;;  %v4506_v30 = vpack.c.bf16 %v1918_v29, %v1914_v25  ;;  %v1930_v25 = vld [vmem:[#allocation6 + $0x98] sm:$0xff]  ;;  %v4480_v29 = vpack.c.bf16 %v1923_v48, %v1919_v50  ;;  %v4492_v50 = vpack.c.bf16 %v1947_v36, %v1943_v2  ;;  %v2259_v36 = vld [vmem:[#allocation9 + $0x210] sm:$0xff] }
 0x672   :  { %4421 = vmatpush1.bf16.msra.mxu0 %v5714_v44  ;;  %4453 = vmatpush1.bf16.msra.mxu1 %v5716_v45 }
 0x673   :  { %4423 = vmatprep.subr.bf16.mxu0 %v5727_v53  ;;  %4455 = vmatprep.subr.bf16.mxu1 %v5729_v54 }
 0x676   :  { %4425 = vmatpush1.bf16.msra.mxu0 %v5733_v57  ;;  %4457 = vmatpush1.bf16.msra.mxu1 %v5735_v58 }
 0x677   :  { %4427 = vmatprep.subr.bf16.mxu0 %v5746_v3  ;;  %4459 = vmatprep.subr.bf16.mxu1 %v5748_v4 }
 0x67a   :  { %4429 = vmatpush1.bf16.msra.mxu0 %v5752_v7  ;;  %4461 = vmatpush1.bf16.msra.mxu1 %v5754_v8 }
 0x67b   :  { %4431 = vmatprep.subr.bf16.mxu0 %v5765_v20  ;;  %4463 = vmatprep.subr.bf16.mxu1 %v5767_v21 }
 0x67e   :  { %4433 = vmatpush1.bf16.msra.mxu0 %v5771_v24  ;;  %4465 = vmatpush1.bf16.msra.mxu1 %v5773_v27 }
 0x67f   :  { %4435 = vmatprep.subr.bf16.mxu0 %v5784_v37  ;;  %4467 = vmatprep.subr.bf16.mxu1 %v5786_v38 }
 0x682   :  { %4437 = vmatpush1.bf16.msra.mxu0 %v5790_v43  ;;  %4469 = vmatpush1.bf16.msra.mxu1 %v5792_v46 }
 0x683   :  { %4439 = vmatprep.subr.bf16.mxu0 %v5803_v56  ;;  %4471 = vmatprep.subr.bf16.mxu1 %v5805_v59 }
 0x686   :  { %4441 = vmatpush1.bf16.msra.mxu0 %v5809_v60  ;;  %4473 = vmatpush1.bf16.msra.mxu1 %v5811_v61  ;;  %v1911_v61 = vld [vmem:[#allocation6] sm:$0xff] }
 0x687   :  { %4475 = vmatprep.subr.bf16.mxu0 %v4474_v26  ;;  %4507 = vmatprep.subr.bf16.mxu1 %v4506_v30  ;;  %v4476_v28 = vpack.c.bf16 %v1915_v15, %v1911_v61  ;;  %v1934_v26 = vld [vmem:[#allocation6 + $0xb8] sm:$0xff]  ;;  %v4512_v30 = vpack.c.bf16 %v1925_v62, %v1921_v51 }
 0x73c   :  { %v1616_v40 = vpop.f32.mrb[12].mxu0  ;;  %v1687_v41 = vpop.f32.mrb[12].mxu1 }
 0x73d   :  { %v5086_v44 = vadd.f32 %v1616_v40, %v5870_v6  ;;  %v1618_v45 = vpop.f32.mrb[13].mxu0  ;;  %v1689_v53 = vpop.f32.mrb[13].mxu1  ;;  %v5102_v3 = vadd.f32 %v1687_v41, %v5882_v32  ;;  %v1927_v40 = vld [vmem:[#allocation6 + $0x80] sm:$0xff] }
 0x73e   :  { %v5087_v54 = vadd.f32 %v1618_v45, %v5874_v10  ;;  %v5103_v4 = vadd.f32 %v1689_v53, %v5886_v33  ;;  %v1931_v41 = vld [vmem:[#allocation6 + $0xa0] sm:$0xff]  ;;  %v4514_v45 = vpack.c.bf16 %v1934_v26, %v1930_v25  ;;  %v1929_v53 = vld [vmem:[#allocation6 + $0x90] sm:$0xff]  ;;  %v1960_v25 = vld [vmem:[#allocation6 + $0x188] sm:$0xff] }
 0x73f   :  { %v3878_v57 = vmul.f32 -1.442695, %v5086_v44  ;;  %v3880_v7 = vmul.f32 -1.442695, %v5102_v3  ;;  %v4482_v44 = vpack.c.bf16 %v1932_v17, %v1928_v14  ;;  %v1938_v3 = vld [vmem:[#allocation6 + $0xd8] sm:$0xff]  ;;  %v1953_v14 = vld [vmem:[#allocation6 + $0x150] sm:$0xff] }
 0x740   :  { %v3879_v58 = vmul.f32 -1.442695, %v5087_v54  ;;  %v1933_v54 = vld [vmem:[#allocation6 + $0xb0] sm:$0xff]  ;;  %v1964_v26 = vld [vmem:[#allocation6 + $0x1a8] sm:$0xff] }
 0x741   :  { %5311 = vpow2.f32 %v3878_v57  ;;  %v1936_v57 = vld [vmem:[#allocation6 + $0xc8] sm:$0xff]  ;;  %v1957_v17 = vld [vmem:[#allocation6 + $0x170] sm:$0xff] }
 0x742   :  { %5313 = vpow2.f32 %v3879_v58  ;;  %v1940_v58 = vld [vmem:[#allocation6 + $0xe8] sm:$0xff] }
 0x743   :  { %5315 = vtanh.f32 %v5103_v4  ;;  %v1942_v4 = vld [vmem:[#allocation6 + $0xf8] sm:$0xff] }
 0x744   :  { %5317 = vpow2.f32 %v3880_v7  ;;  %v4484_v7 = vpack.c.bf16 %v1931_v41, %v1927_v40  ;;  %v4528_v41 = vpack.c.bf16 %v1957_v17, %v1953_v14  ;;  %v2278_v14 = vld [vmem:[#allocation9 + $0x2a8] sm:$0xff]  ;;  %v2276_v17 = vld [vmem:[#allocation9 + $0x298] sm:$0xff] }
 0x74b   :  { %v5312_v8 = vpop.eup %5311 }
 0x74c   :  { %v1705_v20 = vadd.f32 1.0, %v5312_v8  ;;  %v5314_v21 = vpop.eup %5313  ;;  %v4516_v8 = vpack.c.bf16 %v1933_v54, %v1929_v53  ;;  %v4498_v53 = vpack.c.bf16 %v1964_v26, %v1960_v25  ;;  %v2280_v26 = vld [vmem:[#allocation9 + $0x2b8] sm:$0xff] }
 0x74d   :  { %v1706_v24 = vadd.f32 1.0, %v5314_v21  ;;  %v5316_v27 = vpop.eup %5315  ;;  %v1939_v21 = vld [vmem:[#allocation6 + $0xe0] sm:$0xff] }
 0x74e   :  { %5319 = vrcp.f32 %v1705_v20  ;;  %v5318_v37 = vpop.eup %5317  ;;  %v1935_v20 = vld [vmem:[#allocation6 + $0xc0] sm:$0xff] }
 0x74f   :  { %5321 = vrcp.f32 %v1706_v24  ;;  %v1707_v56 = vadd.f32 1.0, %v5318_v37  ;;  %v4486_v24 = vpack.c.bf16 %v1940_v58, %v1936_v57  ;;  %v1937_v37 = vld [vmem:[#allocation6 + $0xd0] sm:$0xff]  ;;  %v4488_v61 = vpack.c.bf16 %v1939_v21, %v1935_v20 }
 0x750   :  { %v1961_v57 = vld [vmem:[#allocation6 + $0x190] sm:$0xff] }
 0x751   :  { %5323 = vrcp.f32 %v1707_v56  ;;  %v1946_v56 = vld [vmem:[#allocation6 + $0x118] sm:$0xff]  ;;  %v1965_v58 = vld [vmem:[#allocation6 + $0x1b0] sm:$0xff] }
 0x752   :  { %v4532_v21 = vpack.c.bf16 %v1965_v58, %v1961_v57  ;;  %v2286_v57 = vld [vmem:[#allocation9 + $0x2e8] sm:$0xff]  ;;  %v2284_v58 = vld [vmem:[#allocation9 + $0x2d8] sm:$0xff] }
 0x758   :  { %v5320_v38 = vpop.eup %5319 }
 0x759   :  { %v1716_v43 = vmul.f32 %v5320_v38, %v5316_v27  ;;  %v5322_v46 = vpop.eup %5321  ;;  %v4518_v27 = vpack.c.bf16 %v1942_v4, %v1938_v3  ;;  %v1941_v38 = vld [vmem:[#allocation6 + $0xf0] sm:$0xff]  ;;  %v1968_v3 = vld [vmem:[#allocation6 + $0x1c8] sm:$0xff] }
 0x75a   :  { %v1715_v59 = vmul.f32 %v5322_v46, %v6120_v47  ;;  %v4510_v47 = vpack.c.bf16 %v1926_v13, %v1922_v23  ;;  %v1948_v46 = vld [vmem:[#allocation6 + $0x128] sm:$0xff]  ;;  %v4520_v15 = vpack.c.bf16 %v1941_v38, %v1937_v37  ;;  %v1945_v23 = vld [vmem:[#allocation6 + $0x110] sm:$0xff]  ;;  %v1971_v38 = vld [vmem:[#allocation6 + $0x1e0] sm:$0xff] }
 0x75b   :  { %v5324_v34 = vpop.eup %5323  ;;  %v1949_v13 = vld [vmem:[#allocation6 + $0x130] sm:$0xff]  ;;  %v1972_v4 = vld [vmem:[#allocation6 + $0x1e8] sm:$0xff] }
 0x75c   :  { %v6164_v60 = vadd.f32 %v1716_v43, %v1715_v59  ;;  %v1944_v43 = vld [vmem:[#allocation6 + $0x108] sm:$0xff]  ;;  %v1950_v59 = vld [vmem:[#allocation6 + $0x138] sm:$0xff]  ;;  %v4524_v48 = vpack.c.bf16 %v1949_v13, %v1945_v23 }
 0x75d   :  { %v4490_v19 = vpack.c.bf16 %v1948_v46, %v1944_v43  ;;  %v4522_v9 = vpack.c.bf16 %v1950_v59, %v1946_v56  ;;  %v1969_v43 = vld [vmem:[#allocation6 + $0x1d0] sm:$0xff]  ;;  %v2270_v23 = vld [vmem:[#allocation9 + $0x268] sm:$0xff]  ;;  %v2268_v13 = vld [vmem:[#allocation9 + $0x258] sm:$0xff] }
 0x75e   :  { %5325 = vtanh.f32 %v6164_v60  ;;  %v1973_v46 = vld [vmem:[#allocation6 + $0x1f0] sm:$0xff] }
 0x75f   :  { %v4536_v59 = vpack.c.bf16 %v1973_v46, %v1969_v43  ;;  %v2294_v43 = vld [vmem:[#allocation9 + $0x328] sm:$0xff]  ;;  %v2292_v46 = vld [vmem:[#allocation9 + $0x318] sm:$0xff] }
 0x768   :  { %v5326_v11 = vpop.eup %5325 }
 0x769   :  { %v6167_v22 = vmul.f32 %v5326_v11, %v5324_v34  ;;  %v1952_v34 = vld [vmem:[#allocation6 + $0x148] sm:$0xff] }
 0x76a   :  { %v1956_v11 = vld [vmem:[#allocation6 + $0x168] sm:$0xff] }
 0x76b   :  { %1794 = vmatmul.mubr.f32.vlgmr.msra.gmra.mrb[14].mxu0 %v6167_v22  ;;  %1865 = vmatmul.mubr.f32.vlgmr.msra.gmra.mrb[14].mxu1 %v6167_v22  ;;  %v4494_v51 = vpack.c.bf16 %v1956_v11, %v1952_v34  ;;  %v2272_v11 = vld [vmem:[#allocation9 + $0x278] sm:$0xff] }
 0x76c   :  { %4477 = vmatpush1.bf16.msra.mxu0 %v4476_v28  ;;  %4509 = vmatpush1.bf16.msra.mxu1 %v4508_v39  ;;  %v1954_v28 = vld [vmem:[#allocation6 + $0x158] sm:$0xff] }
 0x76d   :  { %4479 = vmatprep.subr.bf16.mxu0 %v4478_v52  ;;  %4511 = vmatprep.subr.bf16.mxu1 %v4510_v47  ;;  %v1958_v39 = vld [vmem:[#allocation6 + $0x178] sm:$0xff]  ;;  %v1951_v52 = vld [vmem:[#allocation6 + $0x140] sm:$0xff] }
 0x76e   :  { %2062 = vmatprep.mubr.f32.mxu0 %v5572_v0  ;;  %2175 = vmatprep.mubr.f32.mxu1 %v5572_v0  ;;  %v1955_v47 = vld [vmem:[#allocation6 + $0x160] sm:$0xff]  ;;  %v4526_v62 = vpack.c.bf16 %v1958_v39, %v1954_v28 }
 0x76f   :  { %v4496_v40 = vpack.c.bf16 %v1955_v47, %v1951_v52  ;;  %v2265_v28 = vld [vmem:[#allocation9 + $0x240] sm:$0xff]  ;;  %v2267_v52 = vld [vmem:[#allocation9 + $0x250] sm:$0xff] }
 0x770   :  { %4481 = vmatpush1.bf16.msra.mxu0 %v4480_v29  ;;  %4513 = vmatpush1.bf16.msra.mxu1 %v4512_v30  ;;  %v1962_v29 = vld [vmem:[#allocation6 + $0x198] sm:$0xff]  ;;  %v2269_v39 = vld [vmem:[#allocation9 + $0x260] sm:$0xff]  ;;  %v2271_v47 = vld [vmem:[#allocation9 + $0x270] sm:$0xff] }
 0x771   :  { %4483 = vmatprep.subr.bf16.mxu0 %v4482_v44  ;;  %4515 = vmatprep.subr.bf16.mxu1 %v4514_v45  ;;  %v1966_v30 = vld [vmem:[#allocation6 + $0x1b8] sm:$0xff]  ;;  %v1959_v44 = vld [vmem:[#allocation6 + $0x180] sm:$0xff] }
 0x772   :  { %v1963_v45 = vld [vmem:[#allocation6 + $0x1a0] sm:$0xff]  ;;  %v4530_v54 = vpack.c.bf16 %v1966_v30, %v1962_v29 }
 0x773   :  { %v4500_v20 = vpack.c.bf16 %v1963_v45, %v1959_v44  ;;  %v2273_v29 = vld [vmem:[#allocation9 + $0x280] sm:$0xff]  ;;  %v2275_v44 = vld [vmem:[#allocation9 + $0x290] sm:$0xff] }
 0x774   :  { %4485 = vmatpush1.bf16.msra.mxu0 %v4484_v7  ;;  %4517 = vmatpush1.bf16.msra.mxu1 %v4516_v8  ;;  %v1970_v7 = vld [vmem:[#allocation6 + $0x1d8] sm:$0xff]  ;;  %v2277_v30 = vld [vmem:[#allocation9 + $0x2a0] sm:$0xff]  ;;  %v2279_v45 = vld [vmem:[#allocation9 + $0x2b0] sm:$0xff] }
 0x775   :  { %4487 = vmatprep.subr.bf16.mxu0 %v4486_v24  ;;  %4519 = vmatprep.subr.bf16.mxu1 %v4518_v27  ;;  %v1974_v8 = vld [vmem:[#allocation6 + $0x1f8] sm:$0xff]  ;;  %v1967_v24 = vld [vmem:[#allocation6 + $0x1c0] sm:$0xff]  ;;  %v4502_v27 = vpack.c.bf16 %v1972_v4, %v1968_v3 }
 0x776   :  { %v4534_v37 = vpack.c.bf16 %v1974_v8, %v1970_v7  ;;  %v4504_v56 = vpack.c.bf16 %v1971_v38, %v1967_v24  ;;  %v2288_v4 = vld [vmem:[#allocation9 + $0x2f8] sm:$0xff]  ;;  %v2281_v7 = vld [vmem:[#allocation9 + $0x2c0] sm:$0xff]  ;;  %v2283_v24 = vld [vmem:[#allocation9 + $0x2d0] sm:$0xff] }
 0x777   :  { %v2285_v8 = vld [vmem:[#allocation9 + $0x2e0] sm:$0xff]  ;;  %v2290_v38 = vld [vmem:[#allocation9 + $0x308] sm:$0xff] }
 0x778   :  { %4489 = vmatpush1.bf16.msra.mxu0 %v4488_v61  ;;  %4521 = vmatpush1.bf16.msra.mxu1 %v4520_v15  ;;  %v2257_v61 = vld [vmem:[#allocation9 + $0x200] sm:$0xff] }
 0x779   :  { %4491 = vmatprep.subr.bf16.mxu0 %v4490_v19  ;;  %4523 = vmatprep.subr.bf16.mxu1 %v4522_v9  ;;  %v2263_v19 = vld [vmem:[#allocation9 + $0x230] sm:$0xff]  ;;  %v2266_v9 = vld [vmem:[#allocation9 + $0x248] sm:$0xff] }
 0x77a   :  { %v6213_v34 = vpack.c.bf16 %v2270_v23, %v2266_v9  ;;  %v2302_v9 = vld [vmem:[#allocation9 + $0x368] sm:$0xff]  ;;  %v2300_v23 = vld [vmem:[#allocation9 + $0x358] sm:$0xff] }
 0x77c   :  { %4493 = vmatpush1.bf16.msra.mxu0 %v4492_v50  ;;  %4525 = vmatpush1.bf16.msra.mxu1 %v4524_v48  ;;  %v6215_v50 = vpack.c.bf16 %v2272_v11, %v2268_v13  ;;  %v6217_v48 = vpack.c.bf16 %v2269_v39, %v2265_v28  ;;  %v2304_v13 = vld [vmem:[#allocation9 + $0x378] sm:$0xff]  ;;  %v2297_v39 = vld [vmem:[#allocation9 + $0x340] sm:$0xff] }
 0x77d   :  { %4495 = vmatprep.subr.bf16.mxu0 %v4494_v51  ;;  %4527 = vmatprep.subr.bf16.mxu1 %v4526_v62  ;;  %v6220_v51 = vpack.c.bf16 %v2271_v47, %v2267_v52  ;;  %v2274_v62 = vld [vmem:[#allocation9 + $0x288] sm:$0xff]  ;;  %v6262_v28 = vpack.c.bf16 %v2304_v13, %v2300_v23  ;;  %v2301_v52 = vld [vmem:[#allocation9 + $0x360] sm:$0xff]  ;;  %v2299_v47 = vld [vmem:[#allocation9 + $0x350] sm:$0xff] }
 0x77e   :  { %v6225_v25 = vpack.c.bf16 %v2278_v14, %v2274_v62  ;;  %v6265_v62 = vpack.c.bf16 %v2301_v52, %v2297_v39  ;;  %v2303_v14 = vld [vmem:[#allocation9 + $0x370] sm:$0xff] }
 0x780   :  { %4497 = vmatpush1.bf16.msra.mxu0 %v4496_v40  ;;  %4529 = vmatpush1.bf16.msra.mxu1 %v4528_v41  ;;  %v6227_v40 = vpack.c.bf16 %v2280_v26, %v2276_v17  ;;  %v6229_v41 = vpack.c.bf16 %v2277_v30, %v2273_v29  ;;  %v2306_v17 = vld [vmem:[#allocation9 + $0x388] sm:$0xff]  ;;  %v6269_v29 = vpack.c.bf16 %v2303_v14, %v2299_v47 }
 0x781   :  { %4499 = vmatprep.subr.bf16.mxu0 %v4498_v53  ;;  %4531 = vmatprep.subr.bf16.mxu1 %v4530_v54  ;;  %v6232_v53 = vpack.c.bf16 %v2279_v45, %v2275_v44  ;;  %v2282_v54 = vld [vmem:[#allocation9 + $0x2c8] sm:$0xff]  ;;  %v2308_v44 = vld [vmem:[#allocation9 + $0x398] sm:$0xff] }
 0x782   :  { %v6237_v3 = vpack.c.bf16 %v2286_v57, %v2282_v54  ;;  %v2310_v26 = vld [vmem:[#allocation9 + $0x3a8] sm:$0xff]  ;;  %v2312_v45 = vld [vmem:[#allocation9 + $0x3b8] sm:$0xff]  ;;  %v2305_v54 = vld [vmem:[#allocation9 + $0x380] sm:$0xff] }
 0x783   :  { %v6271_v30 = vpack.c.bf16 %v2310_v26, %v2306_v17  ;;  %v6273_v57 = vpack.c.bf16 %v2312_v45, %v2308_v44 }
 0x784   :  { %4501 = vmatpush1.bf16.msra.mxu0 %v4500_v20  ;;  %4533 = vmatpush1.bf16.msra.mxu1 %v4532_v21  ;;  %v6239_v20 = vpack.c.bf16 %v2288_v4, %v2284_v58  ;;  %v6241_v21 = vpack.c.bf16 %v2285_v8, %v2281_v7  ;;  %v2309_v58 = vld [vmem:[#allocation9 + $0x3a0] sm:$0xff]  ;;  %v2307_v4 = vld [vmem:[#allocation9 + $0x390] sm:$0xff] }
 0x785   :  { %4503 = vmatprep.subr.bf16.mxu0 %v4502_v27  ;;  %4535 = vmatprep.subr.bf16.mxu1 %v4534_v37  ;;  %v2287_v27 = vld [vmem:[#allocation9 + $0x2f0] sm:$0xff]  ;;  %v6276_v8 = vpack.c.bf16 %v2309_v58, %v2305_v54 }
 0x786   :  { %v6244_v37 = vpack.c.bf16 %v2287_v27, %v2283_v24  ;;  %v2311_v7 = vld [vmem:[#allocation9 + $0x3b0] sm:$0xff]  ;;  %v2314_v27 = vld [vmem:[#allocation9 + $0x3c8] sm:$0xff] }
 0x787   :  { %v6280_v24 = vpack.c.bf16 %v2311_v7, %v2307_v4 }
 0x788   :  { %4505 = vmatpush1.bf16.msra.mxu0 %v4504_v56  ;;  %4537 = vmatpush1.bf16.msra.mxu1 %v4536_v59  ;;  %v6249_v56 = vpack.c.bf16 %v2294_v43, %v2290_v38  ;;  %v2296_v59 = vld [vmem:[#allocation9 + $0x338] sm:$0xff]  ;;  %v2318_v38 = vld [vmem:[#allocation9 + $0x3e8] sm:$0xff] }
 0x789   :  { %v2316_v43 = vld [vmem:[#allocation9 + $0x3d8] sm:$0xff] }
 0x78b   :  { %2063 = vmatmul.mubr.f32.vlgmr.msra.gmra.mrb[16].mxu0 %v5893_v18  ;;  %2176 = vmatmul.mubr.f32.vlgmr.msra.gmra.mrb[16].mxu1 %v5893_v18  ;;  %v2258_v18 = vld [vmem:[#allocation9 + $0x208] sm:$0xff] }
 0x78c   :  { %2068 = vmatprep.mubr.f32.mxu0 %v5572_v0  ;;  %2181 = vmatprep.mubr.f32.mxu1 %v5572_v0 }
 0x78f   :  { %2069 = vmatmul.mubr.f32.gmra.mrb[18].mxu0 %v5939_v35  ;;  %2182 = vmatmul.mubr.f32.gmra.mrb[18].mxu1 %v5939_v35  ;;  %v2262_v35 = vld [vmem:[#allocation9 + $0x228] sm:$0xff] }
 0x790   :  { %2074 = vmatprep.mubr.f32.mxu0 %v5572_v0  ;;  %2187 = vmatprep.mubr.f32.mxu1 %v5572_v0 }
 0x793   :  { %2075 = vmatmul.mubr.f32.gmra.mrb[20].mxu0 %v5985_v49  ;;  %2188 = vmatmul.mubr.f32.gmra.mrb[20].mxu1 %v5985_v49  ;;  %v2260_v49 = vld [vmem:[#allocation9 + $0x218] sm:$0xff] }
 0x794   :  { %2080 = vmatprep.mubr.f32.mxu0 %v5572_v0  ;;  %2193 = vmatprep.mubr.f32.mxu1 %v5572_v0 }
 0x797   :  { %2081 = vmatmul.mubr.f32.gmra.mrb[22].mxu0 %v6031_v12  ;;  %2194 = vmatmul.mubr.f32.gmra.mrb[22].mxu1 %v6031_v12  ;;  %v6201_v12 = vpack.c.bf16 %v2262_v35, %v2258_v18  ;;  %v2289_v18 = vld [vmem:[#allocation9 + $0x300] sm:$0xff] }
 0x798   :  { %2086 = vmatprep.mubr.f32.mxu0 %v5572_v0  ;;  %2199 = vmatprep.mubr.f32.mxu1 %v5572_v0  ;;  %v2293_v35 = vld [vmem:[#allocation9 + $0x320] sm:$0xff] }
 0x799   :  { %4539 = vmatprep.subr.bf16.mxu0 %v6201_v12 }
 0x79b   :  { %2087 = vmatmul.mubr.f32.gmra.mrb[24].mxu0 %v6077_v42  ;;  %2200 = vmatmul.mubr.f32.gmra.mrb[24].mxu1 %v6077_v42  ;;  %v2264_v42 = vld [vmem:[#allocation9 + $0x238] sm:$0xff] }
 0x79c   :  { %2092 = vmatprep.mubr.f32.mxu0 %v5572_v0  ;;  %2205 = vmatprep.mubr.f32.mxu1 %v5572_v0  ;;  %v6203_v15 = vpack.c.bf16 %v2264_v42, %v2260_v49  ;;  %v6251_v49 = vpack.c.bf16 %v2296_v59, %v2292_v46  ;;  %v6253_v42 = vpack.c.bf16 %v2293_v35, %v2289_v18  ;;  %v2320_v59 = vld [vmem:[#allocation9 + $0x3f8] sm:$0xff]  ;;  %v2313_v18 = vld [vmem:[#allocation9 + $0x3c0] sm:$0xff] }
 0x79d   :  { %v6285_v46 = vpack.c.bf16 %v2318_v38, %v2314_v27  ;;  %v2317_v35 = vld [vmem:[#allocation9 + $0x3e0] sm:$0xff] }
 0x79e   :  { %4571 = vmatprep.subr.bf16.mxu1 %v6203_v15 }
 0x79f   :  { %2093 = vmatmul.mubr.f32.gmra.mrb[26].mxu0 %v6123_v55  ;;  %2206 = vmatmul.mubr.f32.gmra.mrb[26].mxu1 %v6123_v55  ;;  %v2261_v55 = vld [vmem:[#allocation9 + $0x220] sm:$0xff] }
 0x7a0   :  { %2098 = vmatprep.mubr.f32.mxu0 %v5572_v0  ;;  %2211 = vmatprep.mubr.f32.mxu1 %v5572_v0  ;;  %v6205_v2 = vpack.c.bf16 %v2261_v55, %v2257_v61  ;;  %v2291_v61 = vld [vmem:[#allocation9 + $0x310] sm:$0xff] }
 0x7a1   :  { %v2295_v55 = vld [vmem:[#allocation9 + $0x330] sm:$0xff] }
 0x7a2   :  { %4541 = vmatpush1.bf16.msra.mxu0 %v6205_v2 }
 0x7a3   :  { %2099 = vmatmul.mubr.f32.gmra.mrb[28].mxu0 %v6167_v22  ;;  %2212 = vmatmul.mubr.f32.gmra.mrb[28].mxu1 %v6167_v22  ;;  %v6208_v22 = vpack.c.bf16 %v2263_v19, %v2259_v36  ;;  %v2298_v36 = vld [vmem:[#allocation9 + $0x348] sm:$0xff]  ;;  %v6256_v19 = vpack.c.bf16 %v2295_v55, %v2291_v61  ;;  %v6287_v61 = vpack.c.bf16 %v2320_v59, %v2316_v43 }
 0x7a4   :  { %2104 = vmatprep.mubr.f32.mxu0 %v5572_v0  ;;  %2217 = vmatprep.mubr.f32.mxu1 %v5572_v0  ;;  %v6260_v11 = vpack.c.bf16 %v2302_v9, %v2298_v36  ;;  %v6289_v55 = vpack.c.bf16 %v2317_v35, %v2313_v18  ;;  %v2315_v36 = vld [vmem:[#allocation9 + $0x3d0] sm:$0xff] }
 0x7a5   :  { %4573 = vmatpush1.bf16.msra.mxu1 %v6208_v22  ;;  %4543 = vmatprep.subr.bf16.mxu0 %v6213_v34  ;;  %v2319_v9 = vld [vmem:[#allocation9 + $0x3f0] sm:$0xff] }
 0x7a6   :  { %4575 = vmatprep.subr.bf16.mxu1 %v6215_v50  ;;  %4545 = vmatpush1.bf16.msra.mxu0 %v6217_v48  ;;  %v6292_v23 = vpack.c.bf16 %v2319_v9, %v2315_v36 }
 0x7a7   :  { %4547 = vmatprep.subr.bf16.mxu0 %v6225_v25 }
 0x7a9   :  { %4577 = vmatpush1.bf16.msra.mxu1 %v6220_v51 }
 0x7aa   :  { %4579 = vmatprep.subr.bf16.mxu1 %v6227_v40  ;;  %4549 = vmatpush1.bf16.msra.mxu0 %v6229_v41 }
 0x7ab   :  { %4551 = vmatprep.subr.bf16.mxu0 %v6237_v3 }
 0x7ad   :  { %4581 = vmatpush1.bf16.msra.mxu1 %v6232_v53 }
 0x7ae   :  { %4583 = vmatprep.subr.bf16.mxu1 %v6239_v20  ;;  %4553 = vmatpush1.bf16.msra.mxu0 %v6241_v21 }
 0x7af   :  { %4555 = vmatprep.subr.bf16.mxu0 %v6249_v56 }
 0x7b1   :  { %4585 = vmatpush1.bf16.msra.mxu1 %v6244_v37 }
 0x7b2   :  { %4587 = vmatprep.subr.bf16.mxu1 %v6251_v49  ;;  %4557 = vmatpush1.bf16.msra.mxu0 %v6253_v42 }
 0x7b3   :  { %4559 = vmatprep.subr.bf16.mxu0 %v6260_v11 }
 0x7b5   :  { %4589 = vmatpush1.bf16.msra.mxu1 %v6256_v19 }
 0x7b6   :  { %4591 = vmatprep.subr.bf16.mxu1 %v6262_v28  ;;  %4561 = vmatpush1.bf16.msra.mxu0 %v6265_v62 }
 0x7b7   :  { %4563 = vmatprep.subr.bf16.mxu0 %v6271_v30 }
 0x7b9   :  { %4593 = vmatpush1.bf16.msra.mxu1 %v6269_v29 }
 0x7ba   :  { %4595 = vmatprep.subr.bf16.mxu1 %v6273_v57  ;;  %4565 = vmatpush1.bf16.msra.mxu0 %v6276_v8 }
 0x7bb   :  { %4567 = vmatprep.subr.bf16.mxu0 %v6285_v46 }
 0x7bd   :  { %4597 = vmatpush1.bf16.msra.mxu1 %v6280_v24 }
 0x7be   :  { %4599 = vmatprep.subr.bf16.mxu1 %v6287_v61  ;;  %4569 = vmatpush1.bf16.msra.mxu0 %v6289_v55 }
 0x7bf   :  { %4603 = vmatprep.subr.bf16.mxu0 %v6201_v12 }
 0x7c1   :  { %4601 = vmatpush1.bf16.msra.mxu1 %v6292_v23 }
 0x7c2   :  { %4635 = vmatprep.subr.bf16.mxu1 %v6203_v15 }
 0x83e   :  { %v1795_v13 = vpop.f32.mrb[14].mxu0  ;;  %v1866_v39 = vpop.f32.mrb[14].mxu1 }
 0x83f   :  { %v5088_v52 = vadd.f32 %v1795_v13, %v5870_v6  ;;  %v1797_v47 = vpop.f32.mrb[15].mxu0  ;;  %v1868_v14 = vpop.f32.mrb[15].mxu1  ;;  %v5104_v45 = vadd.f32 %v1866_v39, %v5882_v32 }
 0x840   :  { %v5089_v17 = vadd.f32 %v1797_v47, %v5874_v10  ;;  %v5105_v54 = vadd.f32 %v1868_v14, %v5886_v33 }
 0x841   :  { %v3881_v26 = vmul.f32 -1.442695, %v5088_v52  ;;  %v3883_v58 = vmul.f32 -1.442695, %v5104_v45 }
 0x842   :  { %v3882_v44 = vmul.f32 -1.442695, %v5089_v17 }
 0x843   :  { %5327 = vpow2.f32 %v3881_v26 }
 0x844   :  { %5329 = vpow2.f32 %v3882_v44 }
 0x845   :  { %5331 = vtanh.f32 %v5105_v54 }
 0x846   :  { %5333 = vpow2.f32 %v3883_v58 }
 0x84d   :  { %v5328_v4 = vpop.eup %5327 }
 0x84e   :  { %v1884_v7 = vadd.f32 1.0, %v5328_v4  ;;  %v5330_v27 = vpop.eup %5329 }
 0x84f   :  { %v1885_v6 = vadd.f32 1.0, %v5330_v27  ;;  %v5332_v38 = vpop.eup %5331 }
 0x850   :  { %5335 = vrcp.f32 %v1884_v7  ;;  %v5334_v43 = vpop.eup %5333 }
 0x851   :  { %5337 = vrcp.f32 %v1885_v6  ;;  %v1886_v35 = vadd.f32 1.0, %v5334_v43 }
 0x853   :  { %5339 = vrcp.f32 %v1886_v35 }
 0x85a   :  { %v5336_v10 = vpop.eup %5335 }
 0x85b   :  { %v1895_v59 = vmul.f32 %v5336_v10, %v5332_v38  ;;  %v5338_v18 = vpop.eup %5337 }
 0x85c   :  { %v1894_v36 = vmul.f32 %v5338_v18, %v6164_v60  ;;  %v3884_v60 = vld [vmem:[%s6643_s4 + $0x4] sm:$0xf] }
 0x85d   :  { %v5340_v33 = vpop.eup %5339  ;;  %v6347_v39 = vrot.slane %v3884_v60, %v90_v1  ;;  %v6351_v52 = vrot.slane %v3884_v60, %v94_v5  ;;  %v6357_v4 = vrot.slane %v3884_v60, %v98_v16  ;;  %v6361_v1 = vrot.slane %v3884_v60, %v102_v31 }
 0x85e   :  { %v1896_v32 = vadd.f32 %v1895_v59, %v1894_v36 }
 0x860   :  { %5341 = vtanh.f32 %v1896_v32 }
 0x86a   :  { %v5342_v9 = vpop.eup %5341 }
 0x86b   :  { %v1898_v13 = vmul.f32 %v5342_v9, %v5340_v33 }
 0x86d   :  { %2105 = vmatmul.mubr.f32.gmra.mrb[30].mxu0 %v1898_v13  ;;  %2218 = vmatmul.mubr.f32.gmra.mrb[30].mxu1 %v1898_v13 }
 0x86e   :  { %2393 = vmatprep.mubr.f32.mxu0 %v5572_v0  ;;  %2464 = vmatprep.mubr.f32.mxu1 %v5572_v0 }
 0x871   :  { %2394 = vmatmul.mubr.f32.vlgmr.msra.gmra.mrb[16].mxu0 %v5572_v0  ;;  %2465 = vmatmul.mubr.f32.vlgmr.msra.gmra.mrb[16].mxu1 %v5572_v0 }
 0x872   :  { %4605 = vmatpush1.bf16.msra.mxu0 %v6205_v2  ;;  %4637 = vmatpush1.bf16.msra.mxu1 %v6208_v22 }
 0x873   :  { %4607 = vmatprep.subr.bf16.mxu0 %v6213_v34  ;;  %4639 = vmatprep.subr.bf16.mxu1 %v6215_v50 }
 0x874   :  { %2567 = vmatprep.mubr.f32.mxu0 %v5572_v0  ;;  %2638 = vmatprep.mubr.f32.mxu1 %v5572_v0 }
 0x876   :  { %4609 = vmatpush1.bf16.msra.mxu0 %v6217_v48  ;;  %4641 = vmatpush1.bf16.msra.mxu1 %v6220_v51 }
 0x877   :  { %4611 = vmatprep.subr.bf16.mxu0 %v6225_v25  ;;  %4643 = vmatprep.subr.bf16.mxu1 %v6227_v40 }
 0x87a   :  { %4613 = vmatpush1.bf16.msra.mxu0 %v6229_v41  ;;  %4645 = vmatpush1.bf16.msra.mxu1 %v6232_v53 }
 0x87b   :  { %4615 = vmatprep.subr.bf16.mxu0 %v6237_v3  ;;  %4647 = vmatprep.subr.bf16.mxu1 %v6239_v20 }
 0x87e   :  { %4617 = vmatpush1.bf16.msra.mxu0 %v6241_v21  ;;  %4649 = vmatpush1.bf16.msra.mxu1 %v6244_v37 }
 0x87f   :  { %4619 = vmatprep.subr.bf16.mxu0 %v6249_v56  ;;  %4651 = vmatprep.subr.bf16.mxu1 %v6251_v49 }
 0x882   :  { %4621 = vmatpush1.bf16.msra.mxu0 %v6253_v42  ;;  %4653 = vmatpush1.bf16.msra.mxu1 %v6256_v19 }
 0x883   :  { %4623 = vmatprep.subr.bf16.mxu0 %v6260_v11  ;;  %4655 = vmatprep.subr.bf16.mxu1 %v6262_v28 }
 0x886   :  { %4625 = vmatpush1.bf16.msra.mxu0 %v6265_v62  ;;  %4657 = vmatpush1.bf16.msra.mxu1 %v6269_v29 }
 0x887   :  { %4627 = vmatprep.subr.bf16.mxu0 %v6271_v30  ;;  %4659 = vmatprep.subr.bf16.mxu1 %v6273_v57 }
 0x88a   :  { %4629 = vmatpush1.bf16.msra.mxu0 %v6276_v8  ;;  %4661 = vmatpush1.bf16.msra.mxu1 %v6280_v24 }
 0x88b   :  { %4631 = vmatprep.subr.bf16.mxu0 %v6285_v46  ;;  %4663 = vmatprep.subr.bf16.mxu1 %v6287_v61 }
 0x88e   :  { %4633 = vmatpush1.bf16.msra.mxu0 %v6289_v55  ;;  %4665 = vmatpush1.bf16.msra.mxu1 %v6292_v23 }
 0x88f   :  { %4667 = vmatprep.subr.bf16.mxu0 %v6201_v12  ;;  %4699 = vmatprep.subr.bf16.mxu1 %v6203_v15 }
 0x944   :  { %v2395_v47 = vpop.f32.mrb[16].mxu0  ;;  %v2466_v14 = vpop.f32.mrb[16].mxu1 }
 0x945   :  { %v5106_v17 = vadd.f32 %v2395_v47, %v6347_v39  ;;  %v2397_v26 = vpop.f32.mrb[17].mxu0  ;;  %v2468_v44 = vpop.f32.mrb[17].mxu1  ;;  %v5122_v5 = vadd.f32 %v2466_v14, %v6357_v4 }
 0x946   :  { %v5107_v45 = vadd.f32 %v2397_v26, %v6351_v52  ;;  %v5123_v7 = vadd.f32 %v2468_v44, %v6361_v1 }
 0x947   :  { %v3885_v54 = vmul.f32 -1.442695, %v5106_v17  ;;  %v3887_v27 = vmul.f32 -1.442695, %v5122_v5 }
 0x948   :  { %v3886_v58 = vmul.f32 -1.442695, %v5107_v45 }
 0x949   :  { %5343 = vpow2.f32 %v3885_v54 }
 0x94a   :  { %5345 = vpow2.f32 %v3886_v58 }
 0x94b   :  { %5347 = vtanh.f32 %v5123_v7 }
 0x94c   :  { %5349 = vpow2.f32 %v3887_v27 }
 0x953   :  { %v5344_v6 = vpop.eup %5343 }
 0x954   :  { %v2484_v38 = vadd.f32 1.0, %v5344_v6  ;;  %v5346_v43 = vpop.eup %5345 }
 0x955   :  { %v2485_v10 = vadd.f32 1.0, %v5346_v43  ;;  %v5348_v16 = vpop.eup %5347 }
 0x956   :  { %5351 = vrcp.f32 %v2484_v38  ;;  %v5350_v59 = vpop.eup %5349 }
 0x957   :  { %5353 = vrcp.f32 %v2485_v10  ;;  %v2486_v31 = vadd.f32 1.0, %v5350_v59 }
 0x959   :  { %5355 = vrcp.f32 %v2486_v31 }
 0x960   :  { %v5352_v18 = vpop.eup %5351 }
 0x961   :  { %v2495_v35 = vmul.f32 %v5352_v18, %v5348_v16  ;;  %v5354_v63 = vpop.eup %5353 }
 0x962   :  { %v2494_v36 = vmul.f32 0.0, %v5354_v63 }
 0x963   :  { %v5356_v33 = vpop.eup %5355 }
 0x964   :  { %v6365_v32 = vadd.f32 %v2495_v35, %v2494_v36 }
 0x966   :  { %5357 = vtanh.f32 %v6365_v32 }
 0x970   :  { %v5358_v9 = vpop.eup %5357 }
 0x971   :  { %v2498_v13 = vmul.f32 %v5358_v9, %v5356_v33 }
 0x973   :  { %2568 = vmatmul.mubr.f32.vlgmr.msra.gmra.mrb[18].mxu0 %v2498_v13  ;;  %2639 = vmatmul.mubr.f32.vlgmr.msra.gmra.mrb[18].mxu1 %v2498_v13 }
 0x974   :  { %4669 = vmatpush1.bf16.msra.mxu0 %v6205_v2  ;;  %4701 = vmatpush1.bf16.msra.mxu1 %v6208_v22 }
 0x975   :  { %4671 = vmatprep.subr.bf16.mxu0 %v6213_v34  ;;  %4703 = vmatprep.subr.bf16.mxu1 %v6215_v50 }
 0x976   :  { %2741 = vmatprep.mubr.f32.mxu0 %v5572_v0  ;;  %2812 = vmatprep.mubr.f32.mxu1 %v5572_v0 }
 0x978   :  { %4673 = vmatpush1.bf16.msra.mxu0 %v6217_v48  ;;  %4705 = vmatpush1.bf16.msra.mxu1 %v6220_v51 }
 0x979   :  { %4675 = vmatprep.subr.bf16.mxu0 %v6225_v25  ;;  %4707 = vmatprep.subr.bf16.mxu1 %v6227_v40 }
 0x97c   :  { %4677 = vmatpush1.bf16.msra.mxu0 %v6229_v41  ;;  %4709 = vmatpush1.bf16.msra.mxu1 %v6232_v53 }
 0x97d   :  { %4679 = vmatprep.subr.bf16.mxu0 %v6237_v3  ;;  %4711 = vmatprep.subr.bf16.mxu1 %v6239_v20 }
 0x980   :  { %4681 = vmatpush1.bf16.msra.mxu0 %v6241_v21  ;;  %4713 = vmatpush1.bf16.msra.mxu1 %v6244_v37 }
 0x981   :  { %4683 = vmatprep.subr.bf16.mxu0 %v6249_v56  ;;  %4715 = vmatprep.subr.bf16.mxu1 %v6251_v49 }
 0x984   :  { %4685 = vmatpush1.bf16.msra.mxu0 %v6253_v42  ;;  %4717 = vmatpush1.bf16.msra.mxu1 %v6256_v19 }
 0x985   :  { %4687 = vmatprep.subr.bf16.mxu0 %v6260_v11  ;;  %4719 = vmatprep.subr.bf16.mxu1 %v6262_v28 }
 0x988   :  { %4689 = vmatpush1.bf16.msra.mxu0 %v6265_v62  ;;  %4721 = vmatpush1.bf16.msra.mxu1 %v6269_v29 }
 0x989   :  { %4691 = vmatprep.subr.bf16.mxu0 %v6271_v30  ;;  %4723 = vmatprep.subr.bf16.mxu1 %v6273_v57 }
 0x98c   :  { %4693 = vmatpush1.bf16.msra.mxu0 %v6276_v8  ;;  %4725 = vmatpush1.bf16.msra.mxu1 %v6280_v24 }
 0x98d   :  { %4695 = vmatprep.subr.bf16.mxu0 %v6285_v46  ;;  %4727 = vmatprep.subr.bf16.mxu1 %v6287_v61 }
 0x990   :  { %4697 = vmatpush1.bf16.msra.mxu0 %v6289_v55  ;;  %4729 = vmatpush1.bf16.msra.mxu1 %v6292_v23 }
 0x991   :  { %4731 = vmatprep.subr.bf16.mxu0 %v6201_v12  ;;  %4763 = vmatprep.subr.bf16.mxu1 %v6203_v15 }
 0xa46   :  { %v2569_v60 = vpop.f32.mrb[18].mxu0  ;;  %v2640_v47 = vpop.f32.mrb[18].mxu1 }
 0xa47   :  { %v5108_v14 = vadd.f32 %v2569_v60, %v6347_v39  ;;  %v2571_v17 = vpop.f32.mrb[19].mxu0  ;;  %v2642_v26 = vpop.f32.mrb[19].mxu1  ;;  %v5124_v58 = vadd.f32 %v2640_v47, %v6357_v4 }
 0xa48   :  { %v5109_v44 = vadd.f32 %v2571_v17, %v6351_v52  ;;  %v5125_v5 = vadd.f32 %v2642_v26, %v6361_v1 }
 0xa49   :  { %v3888_v45 = vmul.f32 -1.442695, %v5108_v14  ;;  %v3890_v7 = vmul.f32 -1.442695, %v5124_v58 }
 0xa4a   :  { %v3889_v54 = vmul.f32 -1.442695, %v5109_v44 }
 0xa4b   :  { %5359 = vpow2.f32 %v3888_v45 }
 0xa4c   :  { %5361 = vpow2.f32 %v3889_v54 }
 0xa4d   :  { %5363 = vtanh.f32 %v5125_v5 }
 0xa4e   :  { %5365 = vpow2.f32 %v3890_v7 }
 0xa55   :  { %v5360_v27 = vpop.eup %5359 }
 0xa56   :  { %v2658_v6 = vadd.f32 1.0, %v5360_v27  ;;  %v5362_v38 = vpop.eup %5361 }
 0xa57   :  { %v2659_v43 = vadd.f32 1.0, %v5362_v38  ;;  %v5364_v10 = vpop.eup %5363 }
 0xa58   :  { %5367 = vrcp.f32 %v2658_v6  ;;  %v5366_v16 = vpop.eup %5365 }
 0xa59   :  { %5369 = vrcp.f32 %v2659_v43  ;;  %v2660_v63 = vadd.f32 1.0, %v5366_v16 }
 0xa5b   :  { %5371 = vrcp.f32 %v2660_v63 }
 0xa62   :  { %v5368_v59 = vpop.eup %5367 }
 0xa63   :  { %v2669_v18 = vmul.f32 %v5368_v59, %v5364_v10  ;;  %v5370_v35 = vpop.eup %5369 }
 0xa64   :  { %v2668_v31 = vmul.f32 %v5370_v35, %v6365_v32 }
 0xa65   :  { %v5372_v33 = vpop.eup %5371 }
 0xa66   :  { %v6407_v36 = vadd.f32 %v2669_v18, %v2668_v31 }
 0xa68   :  { %5373 = vtanh.f32 %v6407_v36 }
 0xa72   :  { %v5374_v9 = vpop.eup %5373 }
 0xa73   :  { %v2672_v13 = vmul.f32 %v5374_v9, %v5372_v33 }
 0xa75   :  { %2742 = vmatmul.mubr.f32.vlgmr.msra.gmra.mrb[20].mxu0 %v2672_v13  ;;  %2813 = vmatmul.mubr.f32.vlgmr.msra.gmra.mrb[20].mxu1 %v2672_v13 }
 0xa76   :  { %4733 = vmatpush1.bf16.msra.mxu0 %v6205_v2  ;;  %4765 = vmatpush1.bf16.msra.mxu1 %v6208_v22 }
 0xa77   :  { %4735 = vmatprep.subr.bf16.mxu0 %v6213_v34  ;;  %4767 = vmatprep.subr.bf16.mxu1 %v6215_v50 }
 0xa78   :  { %2915 = vmatprep.mubr.f32.mxu0 %v5572_v0  ;;  %2986 = vmatprep.mubr.f32.mxu1 %v5572_v0 }
 0xa7a   :  { %4737 = vmatpush1.bf16.msra.mxu0 %v6217_v48  ;;  %4769 = vmatpush1.bf16.msra.mxu1 %v6220_v51 }
 0xa7b   :  { %4739 = vmatprep.subr.bf16.mxu0 %v6225_v25  ;;  %4771 = vmatprep.subr.bf16.mxu1 %v6227_v40 }
 0xa7e   :  { %4741 = vmatpush1.bf16.msra.mxu0 %v6229_v41  ;;  %4773 = vmatpush1.bf16.msra.mxu1 %v6232_v53 }
 0xa7f   :  { %4743 = vmatprep.subr.bf16.mxu0 %v6237_v3  ;;  %4775 = vmatprep.subr.bf16.mxu1 %v6239_v20 }
 0xa82   :  { %4745 = vmatpush1.bf16.msra.mxu0 %v6241_v21  ;;  %4777 = vmatpush1.bf16.msra.mxu1 %v6244_v37 }
 0xa83   :  { %4747 = vmatprep.subr.bf16.mxu0 %v6249_v56  ;;  %4779 = vmatprep.subr.bf16.mxu1 %v6251_v49 }
 0xa86   :  { %4749 = vmatpush1.bf16.msra.mxu0 %v6253_v42  ;;  %4781 = vmatpush1.bf16.msra.mxu1 %v6256_v19 }
 0xa87   :  { %4751 = vmatprep.subr.bf16.mxu0 %v6260_v11  ;;  %4783 = vmatprep.subr.bf16.mxu1 %v6262_v28 }
 0xa8a   :  { %4753 = vmatpush1.bf16.msra.mxu0 %v6265_v62  ;;  %4785 = vmatpush1.bf16.msra.mxu1 %v6269_v29 }
 0xa8b   :  { %4755 = vmatprep.subr.bf16.mxu0 %v6271_v30  ;;  %4787 = vmatprep.subr.bf16.mxu1 %v6273_v57 }
 0xa8e   :  { %4757 = vmatpush1.bf16.msra.mxu0 %v6276_v8  ;;  %4789 = vmatpush1.bf16.msra.mxu1 %v6280_v24 }
 0xa8f   :  { %4759 = vmatprep.subr.bf16.mxu0 %v6285_v46  ;;  %4791 = vmatprep.subr.bf16.mxu1 %v6287_v61 }
 0xa92   :  { %4761 = vmatpush1.bf16.msra.mxu0 %v6289_v55  ;;  %4793 = vmatpush1.bf16.msra.mxu1 %v6292_v23 }
 0xa93   :  { %4795 = vmatprep.subr.bf16.mxu0 %v6201_v12  ;;  %4827 = vmatprep.subr.bf16.mxu1 %v6203_v15 }
 0xb48   :  { %v2743_v32 = vpop.f32.mrb[20].mxu0  ;;  %v2814_v60 = vpop.f32.mrb[20].mxu1 }
 0xb49   :  { %v5110_v47 = vadd.f32 %v2743_v32, %v6347_v39  ;;  %v2745_v14 = vpop.f32.mrb[21].mxu0  ;;  %v2816_v17 = vpop.f32.mrb[21].mxu1  ;;  %v5126_v54 = vadd.f32 %v2814_v60, %v6357_v4 }
 0xb4a   :  { %v5111_v26 = vadd.f32 %v2745_v14, %v6351_v52  ;;  %v5127_v58 = vadd.f32 %v2816_v17, %v6361_v1 }
 0xb4b   :  { %v3891_v44 = vmul.f32 -1.442695, %v5110_v47  ;;  %v3893_v5 = vmul.f32 -1.442695, %v5126_v54 }
 0xb4c   :  { %v3892_v45 = vmul.f32 -1.442695, %v5111_v26 }
 0xb4d   :  { %5375 = vpow2.f32 %v3891_v44 }
 0xb4e   :  { %5377 = vpow2.f32 %v3892_v45 }
 0xb4f   :  { %5379 = vtanh.f32 %v5127_v58 }
 0xb50   :  { %5381 = vpow2.f32 %v3893_v5 }
 0xb57   :  { %v5376_v7 = vpop.eup %5375 }
 0xb58   :  { %v2832_v27 = vadd.f32 1.0, %v5376_v7  ;;  %v5378_v6 = vpop.eup %5377 }
 0xb59   :  { %v2833_v38 = vadd.f32 1.0, %v5378_v6  ;;  %v5380_v43 = vpop.eup %5379 }
 0xb5a   :  { %5383 = vrcp.f32 %v2832_v27  ;;  %v5382_v10 = vpop.eup %5381 }
 0xb5b   :  { %5385 = vrcp.f32 %v2833_v38  ;;  %v2834_v35 = vadd.f32 1.0, %v5382_v10 }
 0xb5d   :  { %5387 = vrcp.f32 %v2834_v35 }
 0xb64   :  { %v5384_v16 = vpop.eup %5383 }
 0xb65   :  { %v2843_v59 = vmul.f32 %v5384_v16, %v5380_v43  ;;  %v5386_v18 = vpop.eup %5385 }
 0xb66   :  { %v2842_v63 = vmul.f32 %v5386_v18, %v6407_v36 }
 0xb67   :  { %v5388_v33 = vpop.eup %5387 }
 0xb68   :  { %v6449_v31 = vadd.f32 %v2843_v59, %v2842_v63 }
 0xb6a   :  { %5389 = vtanh.f32 %v6449_v31 }
 0xb74   :  { %v5390_v9 = vpop.eup %5389 }
 0xb75   :  { %v2846_v13 = vmul.f32 %v5390_v9, %v5388_v33 }
 0xb77   :  { %2916 = vmatmul.mubr.f32.vlgmr.msra.gmra.mrb[22].mxu0 %v2846_v13  ;;  %2987 = vmatmul.mubr.f32.vlgmr.msra.gmra.mrb[22].mxu1 %v2846_v13 }
 0xb78   :  { %4797 = vmatpush1.bf16.msra.mxu0 %v6205_v2  ;;  %4829 = vmatpush1.bf16.msra.mxu1 %v6208_v22 }
 0xb79   :  { %4799 = vmatprep.subr.bf16.mxu0 %v6213_v34  ;;  %4831 = vmatprep.subr.bf16.mxu1 %v6215_v50 }
 0xb7a   :  { %3089 = vmatprep.mubr.f32.mxu0 %v5572_v0  ;;  %3160 = vmatprep.mubr.f32.mxu1 %v5572_v0 }
 0xb7c   :  { %4801 = vmatpush1.bf16.msra.mxu0 %v6217_v48  ;;  %4833 = vmatpush1.bf16.msra.mxu1 %v6220_v51 }
 0xb7d   :  { %4803 = vmatprep.subr.bf16.mxu0 %v6225_v25  ;;  %4835 = vmatprep.subr.bf16.mxu1 %v6227_v40 }
 0xb80   :  { %4805 = vmatpush1.bf16.msra.mxu0 %v6229_v41  ;;  %4837 = vmatpush1.bf16.msra.mxu1 %v6232_v53 }
 0xb81   :  { %4807 = vmatprep.subr.bf16.mxu0 %v6237_v3  ;;  %4839 = vmatprep.subr.bf16.mxu1 %v6239_v20 }
 0xb84   :  { %4809 = vmatpush1.bf16.msra.mxu0 %v6241_v21  ;;  %4841 = vmatpush1.bf16.msra.mxu1 %v6244_v37 }
 0xb85   :  { %4811 = vmatprep.subr.bf16.mxu0 %v6249_v56  ;;  %4843 = vmatprep.subr.bf16.mxu1 %v6251_v49 }
 0xb88   :  { %4813 = vmatpush1.bf16.msra.mxu0 %v6253_v42  ;;  %4845 = vmatpush1.bf16.msra.mxu1 %v6256_v19 }
 0xb89   :  { %4815 = vmatprep.subr.bf16.mxu0 %v6260_v11  ;;  %4847 = vmatprep.subr.bf16.mxu1 %v6262_v28 }
 0xb8c   :  { %4817 = vmatpush1.bf16.msra.mxu0 %v6265_v62  ;;  %4849 = vmatpush1.bf16.msra.mxu1 %v6269_v29 }
 0xb8d   :  { %4819 = vmatprep.subr.bf16.mxu0 %v6271_v30  ;;  %4851 = vmatprep.subr.bf16.mxu1 %v6273_v57 }
 0xb90   :  { %4821 = vmatpush1.bf16.msra.mxu0 %v6276_v8  ;;  %4853 = vmatpush1.bf16.msra.mxu1 %v6280_v24 }
 0xb91   :  { %4823 = vmatprep.subr.bf16.mxu0 %v6285_v46  ;;  %4855 = vmatprep.subr.bf16.mxu1 %v6287_v61 }
 0xb94   :  { %4825 = vmatpush1.bf16.msra.mxu0 %v6289_v55  ;;  %4857 = vmatpush1.bf16.msra.mxu1 %v6292_v23 }
 0xb95   :  { %4859 = vmatprep.subr.bf16.mxu0 %v6201_v12  ;;  %4891 = vmatprep.subr.bf16.mxu1 %v6203_v15 }
 0xc4a   :  { %v2917_v36 = vpop.f32.mrb[22].mxu0  ;;  %v2988_v32 = vpop.f32.mrb[22].mxu1 }
 0xc4b   :  { %v5112_v60 = vadd.f32 %v2917_v36, %v6347_v39  ;;  %v2919_v47 = vpop.f32.mrb[23].mxu0  ;;  %v2990_v14 = vpop.f32.mrb[23].mxu1  ;;  %v5128_v45 = vadd.f32 %v2988_v32, %v6357_v4 }
 0xc4c   :  { %v5113_v17 = vadd.f32 %v2919_v47, %v6351_v52  ;;  %v5129_v54 = vadd.f32 %v2990_v14, %v6361_v1 }
 0xc4d   :  { %v3894_v26 = vmul.f32 -1.442695, %v5112_v60  ;;  %v3896_v58 = vmul.f32 -1.442695, %v5128_v45 }
 0xc4e   :  { %v3895_v44 = vmul.f32 -1.442695, %v5113_v17 }
 0xc4f   :  { %5391 = vpow2.f32 %v3894_v26 }
 0xc50   :  { %5393 = vpow2.f32 %v3895_v44 }
 0xc51   :  { %5395 = vtanh.f32 %v5129_v54 }
 0xc52   :  { %5397 = vpow2.f32 %v3896_v58 }
 0xc59   :  { %v5392_v5 = vpop.eup %5391 }
 0xc5a   :  { %v3006_v7 = vadd.f32 1.0, %v5392_v5  ;;  %v5394_v27 = vpop.eup %5393 }
 0xc5b   :  { %v3007_v6 = vadd.f32 1.0, %v5394_v27  ;;  %v5396_v38 = vpop.eup %5395 }
 0xc5c   :  { %5399 = vrcp.f32 %v3006_v7  ;;  %v5398_v43 = vpop.eup %5397 }
 0xc5d   :  { %5401 = vrcp.f32 %v3007_v6  ;;  %v3008_v18 = vadd.f32 1.0, %v5398_v43 }
 0xc5f   :  { %5403 = vrcp.f32 %v3008_v18 }
 0xc66   :  { %v5400_v10 = vpop.eup %5399 }
 0xc67   :  { %v3017_v16 = vmul.f32 %v5400_v10, %v5396_v38  ;;  %v5402_v59 = vpop.eup %5401 }
 0xc68   :  { %v3016_v35 = vmul.f32 %v5402_v59, %v6449_v31 }
 0xc69   :  { %v5404_v33 = vpop.eup %5403 }
 0xc6a   :  { %v6491_v63 = vadd.f32 %v3017_v16, %v3016_v35 }
 0xc6c   :  { %5405 = vtanh.f32 %v6491_v63 }
 0xc76   :  { %v5406_v9 = vpop.eup %5405 }
 0xc77   :  { %v3020_v13 = vmul.f32 %v5406_v9, %v5404_v33 }
 0xc79   :  { %3090 = vmatmul.mubr.f32.vlgmr.msra.gmra.mrb[24].mxu0 %v3020_v13  ;;  %3161 = vmatmul.mubr.f32.vlgmr.msra.gmra.mrb[24].mxu1 %v3020_v13 }
 0xc7a   :  { %4861 = vmatpush1.bf16.msra.mxu0 %v6205_v2  ;;  %4893 = vmatpush1.bf16.msra.mxu1 %v6208_v22 }
 0xc7b   :  { %4863 = vmatprep.subr.bf16.mxu0 %v6213_v34  ;;  %4895 = vmatprep.subr.bf16.mxu1 %v6215_v50 }
 0xc7c   :  { %3263 = vmatprep.mubr.f32.mxu0 %v5572_v0  ;;  %3334 = vmatprep.mubr.f32.mxu1 %v5572_v0 }
 0xc7e   :  { %4865 = vmatpush1.bf16.msra.mxu0 %v6217_v48  ;;  %4897 = vmatpush1.bf16.msra.mxu1 %v6220_v51 }
 0xc7f   :  { %4867 = vmatprep.subr.bf16.mxu0 %v6225_v25  ;;  %4899 = vmatprep.subr.bf16.mxu1 %v6227_v40 }
 0xc82   :  { %4869 = vmatpush1.bf16.msra.mxu0 %v6229_v41  ;;  %4901 = vmatpush1.bf16.msra.mxu1 %v6232_v53 }
 0xc83   :  { %4871 = vmatprep.subr.bf16.mxu0 %v6237_v3  ;;  %4903 = vmatprep.subr.bf16.mxu1 %v6239_v20 }
 0xc86   :  { %4873 = vmatpush1.bf16.msra.mxu0 %v6241_v21  ;;  %4905 = vmatpush1.bf16.msra.mxu1 %v6244_v37 }
 0xc87   :  { %4875 = vmatprep.subr.bf16.mxu0 %v6249_v56  ;;  %4907 = vmatprep.subr.bf16.mxu1 %v6251_v49 }
 0xc8a   :  { %4877 = vmatpush1.bf16.msra.mxu0 %v6253_v42  ;;  %4909 = vmatpush1.bf16.msra.mxu1 %v6256_v19 }
 0xc8b   :  { %4879 = vmatprep.subr.bf16.mxu0 %v6260_v11  ;;  %4911 = vmatprep.subr.bf16.mxu1 %v6262_v28 }
 0xc8e   :  { %4881 = vmatpush1.bf16.msra.mxu0 %v6265_v62  ;;  %4913 = vmatpush1.bf16.msra.mxu1 %v6269_v29 }
 0xc8f   :  { %4883 = vmatprep.subr.bf16.mxu0 %v6271_v30  ;;  %4915 = vmatprep.subr.bf16.mxu1 %v6273_v57 }
 0xc92   :  { %4885 = vmatpush1.bf16.msra.mxu0 %v6276_v8  ;;  %4917 = vmatpush1.bf16.msra.mxu1 %v6280_v24 }
 0xc93   :  { %4887 = vmatprep.subr.bf16.mxu0 %v6285_v46  ;;  %4919 = vmatprep.subr.bf16.mxu1 %v6287_v61 }
 0xc96   :  { %4889 = vmatpush1.bf16.msra.mxu0 %v6289_v55  ;;  %4921 = vmatpush1.bf16.msra.mxu1 %v6292_v23 }
 0xc97   :  { %4923 = vmatprep.subr.bf16.mxu0 %v6201_v12  ;;  %4955 = vmatprep.subr.bf16.mxu1 %v6203_v15 }
 0xd4c   :  { %v3091_v31 = vpop.f32.mrb[24].mxu0  ;;  %v3162_v36 = vpop.f32.mrb[24].mxu1 }
 0xd4d   :  { %v5114_v32 = vadd.f32 %v3091_v31, %v6347_v39  ;;  %v3093_v60 = vpop.f32.mrb[25].mxu0  ;;  %v3164_v47 = vpop.f32.mrb[25].mxu1  ;;  %v5130_v44 = vadd.f32 %v3162_v36, %v6357_v4 }
 0xd4e   :  { %v5115_v14 = vadd.f32 %v3093_v60, %v6351_v52  ;;  %v5131_v45 = vadd.f32 %v3164_v47, %v6361_v1 }
 0xd4f   :  { %v3897_v17 = vmul.f32 -1.442695, %v5114_v32  ;;  %v3899_v54 = vmul.f32 -1.442695, %v5130_v44 }
 0xd50   :  { %v3898_v26 = vmul.f32 -1.442695, %v5115_v14 }
 0xd51   :  { %5407 = vpow2.f32 %v3897_v17 }
 0xd52   :  { %5409 = vpow2.f32 %v3898_v26 }
 0xd53   :  { %5411 = vtanh.f32 %v5131_v45 }
 0xd54   :  { %5413 = vpow2.f32 %v3899_v54 }
 0xd5b   :  { %v5408_v58 = vpop.eup %5407 }
 0xd5c   :  { %v3180_v5 = vadd.f32 1.0, %v5408_v58  ;;  %v5410_v7 = vpop.eup %5409 }
 0xd5d   :  { %v3181_v27 = vadd.f32 1.0, %v5410_v7  ;;  %v5412_v6 = vpop.eup %5411 }
 0xd5e   :  { %5415 = vrcp.f32 %v3180_v5  ;;  %v5414_v38 = vpop.eup %5413 }
 0xd5f   :  { %5417 = vrcp.f32 %v3181_v27  ;;  %v3182_v59 = vadd.f32 1.0, %v5414_v38 }
 0xd61   :  { %5419 = vrcp.f32 %v3182_v59 }
 0xd68   :  { %v5416_v43 = vpop.eup %5415 }
 0xd69   :  { %v3191_v10 = vmul.f32 %v5416_v43, %v5412_v6  ;;  %v5418_v16 = vpop.eup %5417 }
 0xd6a   :  { %v3190_v18 = vmul.f32 %v5418_v16, %v6491_v63 }
 0xd6b   :  { %v5420_v33 = vpop.eup %5419 }
 0xd6c   :  { %v6533_v35 = vadd.f32 %v3191_v10, %v3190_v18 }
 0xd6e   :  { %5421 = vtanh.f32 %v6533_v35 }
 0xd78   :  { %v5422_v9 = vpop.eup %5421 }
 0xd79   :  { %v3194_v13 = vmul.f32 %v5422_v9, %v5420_v33  ;;  %v3726_v9 = vld [vmem:[#allocation11 + $0x18] sm:$0xff] }
 0xd7b   :  { %3264 = vmatmul.mubr.f32.vlgmr.msra.gmra.mrb[26].mxu0 %v3194_v13  ;;  %3335 = vmatmul.mubr.f32.vlgmr.msra.gmra.mrb[26].mxu1 %v3194_v13 }
 0xd7c   :  { %4925 = vmatpush1.bf16.msra.mxu0 %v6205_v2  ;;  %4957 = vmatpush1.bf16.msra.mxu1 %v6208_v22 }
 0xd7d   :  { %4927 = vmatprep.subr.bf16.mxu0 %v6213_v34  ;;  %4959 = vmatprep.subr.bf16.mxu1 %v6215_v50 }
 0xd7e   :  { %3437 = vmatprep.mubr.f32.mxu0 %v5572_v0  ;;  %3508 = vmatprep.mubr.f32.mxu1 %v5572_v0 }
 0xd80   :  { %4929 = vmatpush1.bf16.msra.mxu0 %v6217_v48  ;;  %4961 = vmatpush1.bf16.msra.mxu1 %v6220_v51 }
 0xd81   :  { %4931 = vmatprep.subr.bf16.mxu0 %v6225_v25  ;;  %4963 = vmatprep.subr.bf16.mxu1 %v6227_v40 }
 0xd84   :  { %4933 = vmatpush1.bf16.msra.mxu0 %v6229_v41  ;;  %4965 = vmatpush1.bf16.msra.mxu1 %v6232_v53 }
 0xd85   :  { %4935 = vmatprep.subr.bf16.mxu0 %v6237_v3  ;;  %4967 = vmatprep.subr.bf16.mxu1 %v6239_v20 }
 0xd88   :  { %4937 = vmatpush1.bf16.msra.mxu0 %v6241_v21  ;;  %4969 = vmatpush1.bf16.msra.mxu1 %v6244_v37 }
 0xd89   :  { %4939 = vmatprep.subr.bf16.mxu0 %v6249_v56  ;;  %4971 = vmatprep.subr.bf16.mxu1 %v6251_v49 }
 0xd8c   :  { %4941 = vmatpush1.bf16.msra.mxu0 %v6253_v42  ;;  %4973 = vmatpush1.bf16.msra.mxu1 %v6256_v19 }
 0xd8d   :  { %4943 = vmatprep.subr.bf16.mxu0 %v6260_v11  ;;  %4975 = vmatprep.subr.bf16.mxu1 %v6262_v28 }
 0xd90   :  { %4945 = vmatpush1.bf16.msra.mxu0 %v6265_v62  ;;  %4977 = vmatpush1.bf16.msra.mxu1 %v6269_v29 }
 0xd91   :  { %4947 = vmatprep.subr.bf16.mxu0 %v6271_v30  ;;  %4979 = vmatprep.subr.bf16.mxu1 %v6273_v57 }
 0xd94   :  { %4949 = vmatpush1.bf16.msra.mxu0 %v6276_v8  ;;  %4981 = vmatpush1.bf16.msra.mxu1 %v6280_v24 }
 0xd95   :  { %4951 = vmatprep.subr.bf16.mxu0 %v6285_v46  ;;  %4983 = vmatprep.subr.bf16.mxu1 %v6287_v61 }
 0xd98   :  { %4953 = vmatpush1.bf16.msra.mxu0 %v6289_v55  ;;  %4985 = vmatpush1.bf16.msra.mxu1 %v6292_v23 }
 0xd99   :  { %4987 = vmatprep.subr.bf16.mxu0 %v6201_v12  ;;  %5019 = vmatprep.subr.bf16.mxu1 %v6203_v15 }
 0xe4e   :  { %v3265_v63 = vpop.f32.mrb[26].mxu0  ;;  %v3336_v31 = vpop.f32.mrb[26].mxu1 }
 0xe4f   :  { %v5116_v36 = vadd.f32 %v3265_v63, %v6347_v39  ;;  %v3267_v32 = vpop.f32.mrb[27].mxu0  ;;  %v3338_v60 = vpop.f32.mrb[27].mxu1  ;;  %v5132_v26 = vadd.f32 %v3336_v31, %v6357_v4  ;;  %v3727_v63 = vld [vmem:[#allocation11 + $0x20] sm:$0xff]  ;;  %v3728_v31 = vld [vmem:[#allocation11 + $0x28] sm:$0xff] }
 0xe50   :  { %v5117_v47 = vadd.f32 %v3267_v32, %v6351_v52  ;;  %v5133_v44 = vadd.f32 %v3338_v60, %v6361_v1  ;;  %v3729_v32 = vld [vmem:[#allocation11 + $0x30] sm:$0xff]  ;;  %v3730_v60 = vld [vmem:[#allocation11 + $0x38] sm:$0xff] }
 0xe51   :  { %v3900_v14 = vmul.f32 -1.442695, %v5116_v36  ;;  %v3902_v45 = vmul.f32 -1.442695, %v5132_v26  ;;  %v5057_v36 = vpack.c.bf16 %v3728_v31, %v3727_v63 }
 0xe52   :  { %v3901_v17 = vmul.f32 -1.442695, %v5117_v47  ;;  %v5060_v47 = vpack.c.bf16 %v3730_v60, %v3729_v32 }
 0xe53   :  { %5423 = vpow2.f32 %v3900_v14  ;;  %v3731_v14 = vld [vmem:[#allocation11 + $0x40] sm:$0xff] }
 0xe54   :  { %5425 = vpow2.f32 %v3901_v17  ;;  %v3732_v17 = vld [vmem:[#allocation11 + $0x48] sm:$0xff] }
 0xe55   :  { %5427 = vtanh.f32 %v5133_v44  ;;  %v5063_v26 = vpack.c.bf16 %v3732_v17, %v3731_v14  ;;  %v3733_v44 = vld [vmem:[#allocation11 + $0x50] sm:$0xff] }
 0xe56   :  { %5429 = vpow2.f32 %v3902_v45  ;;  %v3734_v45 = vld [vmem:[#allocation11 + $0x58] sm:$0xff] }
 0xe5d   :  { %v5424_v12 = vpop.eup %5423 }
 0xe5e   :  { %v3354_v54 = vadd.f32 1.0, %v5424_v12  ;;  %v5426_v15 = vpop.eup %5425  ;;  %v5066_v12 = vpack.c.bf16 %v3734_v45, %v3733_v44 }
 0xe5f   :  { %v3355_v58 = vadd.f32 1.0, %v5426_v15  ;;  %v5428_v5 = vpop.eup %5427  ;;  %v3736_v15 = vld [vmem:[#allocation11 + $0x68] sm:$0xff] }
 0xe60   :  { %5431 = vrcp.f32 %v3354_v54  ;;  %v5430_v7 = vpop.eup %5429  ;;  %v3735_v54 = vld [vmem:[#allocation11 + $0x60] sm:$0xff] }
 0xe61   :  { %5433 = vrcp.f32 %v3355_v58  ;;  %v3356_v43 = vadd.f32 1.0, %v5430_v7  ;;  %v5069_v58 = vpack.c.bf16 %v3736_v15, %v3735_v54  ;;  %v3738_v7 = vld [vmem:[#allocation11 + $0x78] sm:$0xff] }
 0xe63   :  { %5435 = vrcp.f32 %v3356_v43 }
 0xe6a   :  { %v5432_v27 = vpop.eup %5431 }
 0xe6b   :  { %v3365_v6 = vmul.f32 %v5432_v27, %v5428_v5  ;;  %v5434_v38 = vpop.eup %5433  ;;  %v3737_v5 = vld [vmem:[#allocation11 + $0x70] sm:$0xff] }
 0xe6c   :  { %v3364_v10 = vmul.f32 %v5434_v38, %v6533_v35  ;;  %v3725_v35 = vld [vmem:[#allocation11 + $0x10] sm:$0xff]  ;;  %v5072_v27 = vpack.c.bf16 %v3738_v7, %v3737_v5 }
 0xe6d   :  { %v5436_v59 = vpop.eup %5435  ;;  %v5054_v13 = vpack.c.bf16 %v3726_v9, %v3725_v35 }
 0xe6e   :  { %v6575_v16 = vadd.f32 %v3365_v6, %v3364_v10 }
 0xe70   :  { %5437 = vtanh.f32 %v6575_v16 }
 0xe7a   :  { %v5438_v18 = vpop.eup %5437 }
 0xe7b   :  { %v3368_v33 = vmul.f32 %v5438_v18, %v5436_v59 }
 0xe7d   :  { %3438 = vmatmul.mubr.f32.vlgmr.msra.gmra.mrb[28].mxu0 %v3368_v33  ;;  %3509 = vmatmul.mubr.f32.vlgmr.msra.gmra.mrb[28].mxu1 %v3368_v33 }
 0xe7e   :  { %4989 = vmatpush1.bf16.msra.mxu0 %v6205_v2  ;;  %5021 = vmatpush1.bf16.msra.mxu1 %v6208_v22 }
 0xe7f   :  { %4991 = vmatprep.subr.bf16.mxu0 %v6213_v34  ;;  %5023 = vmatprep.subr.bf16.mxu1 %v6215_v50 }
 0xe80   :  { %3611 = vmatprep.mubr.f32.mxu0 %v5572_v0  ;;  %3682 = vmatprep.mubr.f32.mxu1 %v5572_v0 }
 0xe82   :  { %4993 = vmatpush1.bf16.msra.mxu0 %v6217_v48  ;;  %5025 = vmatpush1.bf16.msra.mxu1 %v6220_v51 }
 0xe83   :  { %4995 = vmatprep.subr.bf16.mxu0 %v6225_v25  ;;  %5027 = vmatprep.subr.bf16.mxu1 %v6227_v40 }
 0xe86   :  { %4997 = vmatpush1.bf16.msra.mxu0 %v6229_v41  ;;  %5029 = vmatpush1.bf16.msra.mxu1 %v6232_v53 }
 0xe87   :  { %4999 = vmatprep.subr.bf16.mxu0 %v6237_v3  ;;  %5031 = vmatprep.subr.bf16.mxu1 %v6239_v20 }
 0xe8a   :  { %5001 = vmatpush1.bf16.msra.mxu0 %v6241_v21  ;;  %5033 = vmatpush1.bf16.msra.mxu1 %v6244_v37 }
 0xe8b   :  { %5003 = vmatprep.subr.bf16.mxu0 %v6249_v56  ;;  %5035 = vmatprep.subr.bf16.mxu1 %v6251_v49 }
 0xe8e   :  { %5005 = vmatpush1.bf16.msra.mxu0 %v6253_v42  ;;  %5037 = vmatpush1.bf16.msra.mxu1 %v6256_v19 }
 0xe8f   :  { %5007 = vmatprep.subr.bf16.mxu0 %v6260_v11  ;;  %5039 = vmatprep.subr.bf16.mxu1 %v6262_v28 }
 0xe92   :  { %5009 = vmatpush1.bf16.msra.mxu0 %v6265_v62  ;;  %5041 = vmatpush1.bf16.msra.mxu1 %v6269_v29 }
 0xe93   :  { %5011 = vmatprep.subr.bf16.mxu0 %v6271_v30  ;;  %5043 = vmatprep.subr.bf16.mxu1 %v6273_v57 }
 0xe96   :  { %5013 = vmatpush1.bf16.msra.mxu0 %v6276_v8  ;;  %5045 = vmatpush1.bf16.msra.mxu1 %v6280_v24 }
 0xe97   :  { %5015 = vmatprep.subr.bf16.mxu0 %v6285_v46  ;;  %5047 = vmatprep.subr.bf16.mxu1 %v6287_v61  ;;  %v3723_v46 = vld [vmem:[#allocation11] sm:$0xff]  ;;  %v3724_v61 = vld [vmem:[#allocation11 + $0x8] sm:$0xff] }
 0xe9a   :  { %5017 = vmatpush1.bf16.msra.mxu0 %v6289_v55  ;;  %5049 = vmatpush1.bf16.msra.mxu1 %v6292_v23  ;;  %v5051_v55 = vpack.c.bf16 %v3724_v61, %v3723_v46  ;;  %v5573_v23 = vmov 0.0|0.0  }
 0xe9b   :  { %5050 = vmatprep.subr.bf16.mxu0 %v5573_v23 }
 0xf50   :  { %v3439_v2 = vpop.f32.mrb[28].mxu0  ;;  %v3510_v22 = vpop.f32.mrb[28].mxu1 }
 0xf51   :  { %v5118_v34 = vadd.f32 %v3439_v2, %v6347_v39  ;;  %v3441_v50 = vpop.f32.mrb[29].mxu0  ;;  %v3512_v48 = vpop.f32.mrb[29].mxu1  ;;  %v5134_v41 = vadd.f32 %v3510_v22, %v6357_v4 }
 0xf52   :  { %v5119_v51 = vadd.f32 %v3441_v50, %v6351_v52  ;;  %v5135_v53 = vadd.f32 %v3512_v48, %v6361_v1 }
 0xf53   :  { %v3903_v25 = vmul.f32 -1.442695, %v5118_v34  ;;  %v3905_v3 = vmul.f32 -1.442695, %v5134_v41 }
 0xf54   :  { %v3904_v40 = vmul.f32 -1.442695, %v5119_v51 }
 0xf55   :  { %5439 = vpow2.f32 %v3903_v25 }
 0xf56   :  { %5441 = vpow2.f32 %v3904_v40 }
 0xf57   :  { %5443 = vtanh.f32 %v5135_v53 }
 0xf58   :  { %5445 = vpow2.f32 %v3905_v3 }
 0xf5f   :  { %v5440_v20 = vpop.eup %5439 }
 0xf60   :  { %v3528_v21 = vadd.f32 1.0, %v5440_v20  ;;  %v5442_v37 = vpop.eup %5441 }
 0xf61   :  { %v3529_v56 = vadd.f32 1.0, %v5442_v37  ;;  %v5444_v49 = vpop.eup %5443  ;;  %v3909_v37 = vld [vmem:[%s6645_s6] ss:$0 sm:$0xff] }
 0xf62   :  { %5447 = vrcp.f32 %v3528_v21  ;;  %v5446_v42 = vpop.eup %5445 }
 0xf63   :  { %5449 = vrcp.f32 %v3529_v56  ;;  %v3530_v62 = vadd.f32 1.0, %v5446_v42 }
 0xf65   :  { %5451 = vrcp.f32 %v3530_v62 }
 0xf6c   :  { %v5448_v19 = vpop.eup %5447 }
 0xf6d   :  { %v3539_v11 = vmul.f32 %v5448_v19, %v5444_v49  ;;  %v5450_v28 = vpop.eup %5449 }
 0xf6e   :  { %v3538_v29 = vmul.f32 %v5450_v28, %v6575_v16 }
 0xf6f   :  { %v5452_v57 = vpop.eup %5451 }
 0xf70   :  { %v6615_v30 = vadd.f32 %v3539_v11, %v3538_v29 }
 0xf72   :  { %5453 = vtanh.f32 %v6615_v30 }
 0xf7c   :  { %v5454_v8 = vpop.eup %5453 }
 0xf7d   :  { %v3542_v24 = vmul.f32 %v5454_v8, %v5452_v57 }
 0xf7f   :  { %3612 = vmatmul.mubr.f32.vlgmr.msra.gmra.mrb[30].mxu0 %v3542_v24  ;;  %3683 = vmatmul.mubr.f32.vlgmr.msra.gmra.mrb[30].mxu1 %v3542_v24 }
 0xf80   :  { %5052 = vmatpush3.bf16.msra.mxu0 %v5051_v55  ;;  %3959 = vmatprep.mubr.msk.f32.mxu0 %vm5574_vm2, %v5572_v0 }
 0xf81   :  { %5053 = vmatprep.subr.bf16.mxu0 %v5573_v23 }
 0xf84   :  { %5055 = vmatpush3.bf16.msra.mxu0 %v5054_v13 }
 0xf85   :  { %5056 = vmatprep.subr.bf16.mxu0 %v5573_v23 }
 0xf88   :  { %5058 = vmatpush3.bf16.msra.mxu0 %v5057_v36 }
 0xf89   :  { %5059 = vmatprep.subr.bf16.mxu0 %v5573_v23 }
 0xf8c   :  { %5061 = vmatpush3.bf16.msra.mxu0 %v5060_v47 }
 0xf8d   :  { %5062 = vmatprep.subr.bf16.mxu0 %v5573_v23 }
 0xf90   :  { %5064 = vmatpush3.bf16.msra.mxu0 %v5063_v26 }
 0xf91   :  { %5065 = vmatprep.subr.bf16.mxu0 %v5573_v23 }
 0xf94   :  { %5067 = vmatpush3.bf16.msra.mxu0 %v5066_v12 }
 0xf95   :  { %5068 = vmatprep.subr.bf16.mxu0 %v5573_v23 }
 0xf98   :  { %5070 = vmatpush3.bf16.msra.mxu0 %v5069_v58 }
 0xf99   :  { %5071 = vmatprep.subr.bf16.mxu0 %v5573_v23 }
 0xf9c   :  { %5073 = vmatpush3.bf16.msra.mxu0 %v5072_v27 }
0x1052   :  { %v3613_v6 = vpop.f32.mrb[30].mxu0  ;;  %v3684_v38 = vpop.f32.mrb[30].mxu1 }
0x1053   :  { %v5120_v43 = vadd.f32 %v3613_v6, %v6347_v39  ;;  %v3615_v10 = vpop.f32.mrb[31].mxu0  ;;  %v3686_v16 = vpop.f32.mrb[31].mxu1  ;;  %v5136_v0 = vadd.f32 %v3684_v38, %v6357_v4 }
0x1054   :  { %v5121_v59 = vadd.f32 %v3615_v10, %v6351_v52  ;;  %v5137_v2 = vadd.f32 %v3686_v16, %v6361_v1 }
0x1055   :  { %v3906_v18 = vmul.f32 -1.442695, %v5120_v43  ;;  %v3908_v22 = vmul.f32 -1.442695, %v5136_v0 }
0x1056   :  { %v3907_v33 = vmul.f32 -1.442695, %v5121_v59 }
0x1057   :  { %5455 = vpow2.f32 %v3906_v18 }
0x1058   :  { %5457 = vpow2.f32 %v3907_v33 }
0x1059   :  { %5459 = vtanh.f32 %v5137_v2 }
0x105a   :  { %5461 = vpow2.f32 %v3908_v22 }
0x1061   :  { %v5456_v34 = vpop.eup %5455 }
0x1062   :  { %v3702_v50 = vadd.f32 1.0, %v5456_v34  ;;  %v5458_v48 = vpop.eup %5457 }
0x1063   :  { %v3703_v39 = vadd.f32 1.0, %v5458_v48  ;;  %v5460_v51 = vpop.eup %5459 }
0x1064   :  { %5463 = vrcp.f32 %v3702_v50  ;;  %v5462_v25 = vpop.eup %5461 }
0x1065   :  { %5465 = vrcp.f32 %v3703_v39  ;;  %v3704_v53 = vadd.f32 1.0, %v5462_v25 }
0x1067   :  { %5467 = vrcp.f32 %v3704_v53 }
0x106e   :  { %v5464_v52 = vpop.eup %5463 }
0x106f   :  { %v3713_v40 = vmul.f32 %v5464_v52, %v5460_v51  ;;  %v5466_v41 = vpop.eup %5465 }
0x1070   :  { %v3712_v3 = vmul.f32 %v5466_v41, %v6615_v30 }
0x1071   :  { %v5468_v1 = vpop.eup %5467 }
0x1072   :  { %v3714_v4 = vadd.f32 %v3713_v40, %v3712_v3 }
0x1074   :  { %5469 = vtanh.f32 %v3714_v4 }
0x107e   :  { %v5470_v20 = vpop.eup %5469 }
0x107f   :  { %v3716_v21 = vmul.f32 %v5470_v20, %v5468_v1 }
0x1081   :  { %3960 = vmatmul.mubr.f32.vlgmr.msra.gmra.mrb[32].mxu0 %v3716_v21 }
0x1154   :  { %v3812_v56 = vpop.f32.mrb[32].mxu0 }
0x1155   :  { %v3813_v49 = vadd.f32 %v3909_v37, %v3812_v56  ;;  %v3961_v42 = vpop.f32.mrb[33].mxu0 }
0x1157   :  { %3816 = vst [vmem:[#allocation12] sm:$0xff] %v3813_v49 }
0x1158   :  { %5548 = shalt.err (!%p5545_p0)
}
0x1159   :  { %s5549_s18 = scalar_lea.hbm %s6646_s7, 128 }
0x115a   :  { %p5550_p1 = scmp.ne.s32.totalorder %s6646_s7, %s5549_s18  ;;  %p5553_p2 = scmp.lt.u32.totalorder %s5549_s18, %s6646_s7 }
0x115c   :  { %p5555_p3 = pnand %p5553_p2, %p5550_p1 }
0x115e   :  { %5558 = shalt.err (!%p5555_p3)
}
0x115f   :  { %3826 = dma.vmem_to_hbm [thread:$0]  %s3824_s13, 128, %s6646_s7, [#allocation8]  }
0x1160   :  { %5563 = dma.done.wait [#allocation8], 128  }
0x1161   :  { %5564 = vsyncadd [#allocation8], 4294967168 }
0x1162   :  { %3830 = vsyncpa [#allocation7], 1 }
0x1163   :  { %3831 = vsyncpa [#allocation10], 1 }
0x1164   :  { %3832 = vsyncpa [#allocation8], 1 }

</bundles_post_ra>
